<compile_context>
chip_gen: v7x
topology: tpu7x:2x2x1
jax: 0.10.0
libtpu: 0.0.40
codegen_flags: <defaults>
</compile_context>

<pallas_src>
import numpy as np
import jax
import jax.numpy as jnp
from jax.experimental import pallas as pl
from jax.experimental.pallas import tpu as pltpu


CHANNELS = (4, 8, 8, 16, 16)             # the `test` list of the PyTorch module
RELU = (True, True, False, True, True)   # 3rd block: Conv -> BN -> MaxPool (no ReLU)
POOL = ((2, 2), (2, 2), (2, 2), (2, 2), (3, 1))
IN_CH = 3
HW = 128                                 # module hard-codes input_size=(3,128,128)


# ---------------------------------------------------------------- plan ------

def make_plan(channels=CHANNELS, in_ch=IN_CH, hw=HW):
    """Static per-block schedule (row counts, dilations, lane widths)."""
    plans = []
    hin = win = hw
    prev_rows, prev_wtil, prev_cin, d_store = in_ch * hw, hw, in_ch, 1
    first = True
    for i, cout in enumerate(channels):
        pk, ps = POOL[i]
        cin = prev_cin
        ho, wo = hin - 2, win - 2                       # conv (k=3, pad=0)
        hp, wp = (ho - pk) // ps + 1, (wo - pk) // ps + 1
        dprev = d_store                                 # row dilation of the input
        conv_rows = ho if first else prev_rows - 2 * dprev
        slid_rows = conv_rows - (pk - 1) * dprev        # after h sliding-max
        wtil = wo - (pk - 1)                            # stored w positions
        d = dprev * ps                                  # row dilation of the output
        # validity of the a-trous indexing
        assert dprev * (ho - 1) <= conv_rows - 1
        assert d * (hp - 1) <= slid_rows - 1
        if first:
            assert (wo - 1) + 2 <= hw - 1
        else:
            assert 2 * ((wo - 1) + 2) <= prev_wtil - 1
        plans.append(dict(first=first, cin=cin, cout=cout, ho=ho, wo=wo,
                          hp=hp, wp=wp, pk=pk, ps=ps, dprev=dprev, d=d,
                          conv_rows=conv_rows, slid_rows=slid_rows, wtil=wtil,
                          prev_rows=prev_rows, prev_wtil=prev_wtil, hw=hw))
        prev_rows, prev_wtil, prev_cin, d_store = slid_rows, wtil, cout, d
        hin, win = hp, wp
        first = False
    return plans


PLANS = make_plan()


# ------------------------------------------------- band-weight construction -

def _fold_bn(w, b, gamma, beta, mean, var, eps=1e-5):
    scale = gamma / np.sqrt(var + eps)
    return w * scale[:, None, None, None], scale * (b - mean) + beta


def _band_first(w_s, p):
    """Block 1: input rows (ci, h) from NCHW, lanes = w.  -> (3*cin*hw, Wo*cout)."""
    cout, cin, hw, wo_n = p['cout'], p['cin'], p['hw'], p['wo']
    band = np.zeros((3, cin, hw, wo_n * cout), np.float32)
    for ky in range(3):
        for kx in range(3):
            for ci in range(cin):
                for wo in range(wo_n):
                    band[ky, ci, wo + kx, wo * cout:(wo + 1) * cout] = w_s[:, ci, ky, kx]
    return band.reshape(3 * cin * hw, wo_n * cout)


def _band(w_s, p):
    """Blocks 2-5: input lanes (w~ , ci); width subsample (stride 2) folded in."""
    cout, cin, wo_n, pw = p['cout'], p['cin'], p['wo'], p['prev_wtil']
    k = pw * cin
    band = np.zeros((3, k, wo_n * cout), np.float32)
    for ky in range(3):
        for kx in range(3):
            for wo in range(wo_n):
                wt = 2 * (wo + kx)      # previous pool stride is always 2
                band[ky, wt * cin:(wt + 1) * cin,
                     wo * cout:(wo + 1) * cout] = w_s[:, :, ky, kx].T
    return band.reshape(3 * k, wo_n * cout)


def init_params(key, channels=CHANNELS, in_ch=IN_CH):
    plans = PLANS
    conv_w, conv_b = [], []
    cin = in_ch
    for cout in channels:
        key, kw, kb, kg, kbt = jax.random.split(key, 5)
        w = np.asarray(jax.random.normal(kw, (cout, cin, 3, 3), jnp.float32)) * 0.1
        b = np.asarray(jax.random.normal(kb, (cout,), jnp.float32)) * 0.05
        gamma = 1.0 + 0.1 * np.asarray(jax.random.normal(kg, (cout,), jnp.float32))
        beta = 0.1 * np.asarray(jax.random.normal(kbt, (cout,), jnp.float32))
        mean = np.zeros((cout,), np.float32)     # eval-mode running stats
        var = np.ones((cout,), np.float32)
        w_s, b_eff = _fold_bn(w, b, gamma, beta, mean, var)
        conv_w.append(w_s)
        conv_b.append(b_eff)
        cin = cout

    bands, biases = [], []
    for i, p in enumerate(plans):
        band = _band_first(conv_w[i], p) if p['first'] else _band(conv_w[i], p)
        bands.append(jnp.asarray(band, jnp.bfloat16))
        biases.append(jnp.asarray(np.tile(conv_b[i], p['wo']).reshape(1, -1),
                                  jnp.float32))

    # -------- FC head (fc1 rows permuted to the kernel's (hp, wp, c) layout,
    #          matching PyTorch's NCHW flatten order c*4 + hp*2 + wp) --------
    p5 = plans[-1]
    cout5, hp_n, wp_n = channels[-1], p5['hp'], p5['wp']
    flat = cout5 * hp_n * wp_n
    hid = flat // 2
    key, k1, k1b, k2, k2b = jax.random.split(key, 5)
    fc1_w = np.asarray(jax.random.normal(k1, (flat, hid), jnp.float32)) * 0.1
    fc1_b = np.asarray(jax.random.normal(k1b, (hid,), jnp.float32)) * 0.05
    fc2_w = np.asarray(jax.random.normal(k2, (hid, 1), jnp.float32)) * 0.1
    fc2_b = np.asarray(jax.random.normal(k2b, (1,), jnp.float32)) * 0.05
    seg = wp_n * cout5
    w1p = np.zeros((hp_n * seg, hid), np.float32)
    for hp in range(hp_n):
        for wp in range(wp_n):
            for c in range(cout5):
                w1p[hp * seg + wp * cout5 + c, :] = \
                    fc1_w[c * (hp_n * wp_n) + hp * wp_n + wp, :]

    return dict(bands=bands, biases=biases,
                w1p=jnp.asarray(w1p, jnp.bfloat16),
                fb1=jnp.asarray(fc1_b.reshape(1, -1), jnp.float32),
                w2=jnp.asarray(fc2_w, jnp.bfloat16),
                fb2=jnp.asarray(fc2_b.reshape(1, -1), jnp.float32))


# ------------------------------------------------------------- the kernel ---

def _fused_kernel(x_ref,
                  wb0, bb0, wb1, bb1, wb2, bb2, wb3, bb3, wb4, bb4,
                  w1p_ref, fb1_ref, w2_ref, fb2_ref,
                  o_ref,
                  act0, act1, act2, act3):
    wrefs = (wb0, wb1, wb2, wb3, wb4)
    brefs = (bb0, bb1, bb2, bb3, bb4)
    acts = (act0, act1, act2, act3)

    src = x_ref
    last = None
    for i, p in enumerate(PLANS):
        # ---- conv as banded matmul (f32 accumulation on the MXU) ----
        acc = None
        if p['first']:
            k = p['hw']
            for ky in range(3):
                for ci in range(p['cin']):
                    a = src[ci * p['hw'] + ky: ci * p['hw'] + ky + p['conv_rows'], :]
                    w = wrefs[i][(ky * p['cin'] + ci) * k:
                                 (ky * p['cin'] + ci + 1) * k, :]
                    d = jnp.dot(a, w, preferred_element_type=jnp.float32)
                    acc = d if acc is None else acc + d
        else:
            k = p['prev_wtil'] * p['cin']
            for ky in range(3):
                a = src[p['dprev'] * ky: p['dprev'] * ky + p['conv_rows'], :]
                w = wrefs[i][ky * k:(ky + 1) * k, :]
                d = jnp.dot(a, w, preferred_element_type=jnp.float32)
                acc = d if acc is None else acc + d

        # ---- folded BN bias (+ ReLU), hoisted out of the pooling max ----
        y = acc + brefs[i][...]
        if RELU[i]:
            y = jnp.maximum(y, 0.0)

        # ---- fused MaxPool: sliding max over rows (a-trous) and lanes ----
        hs, sh = p['slid_rows'], p['dprev']
        z = y[0:hs, :]
        for py in range(1, p['pk']):
            z = jnp.maximum(z, y[py * sh: py * sh + hs, :])
        wl = p['wtil'] * p['cout']
        zz = z[:, 0:wl]
        for px in range(1, p['pk']):
            zz = jnp.maximum(zz, z[:, px * p['cout']: px * p['cout'] + wl])

        if i < len(PLANS) - 1:
            acts[i][...] = zz.astype(jnp.bfloat16)   # stays in VMEM
            src = acts[i]
        else:
            last = zz                                # (19, 32) f32; rows 0/16 valid

    # ---- fused FC head: Linear -> ReLU -> Linear -> Sigmoid ----
    p5 = PLANS[-1]
    seg = p5['wp'] * p5['cout']
    h = fb1_ref[...]
    for hp in range(p5['hp']):
        row = last[p5['d'] * hp: p5['d'] * hp + 1, :].astype(jnp.bfloat16)
        wseg = w1p_ref[hp * seg:(hp + 1) * seg, :]
        h = h + jnp.dot(row, wseg, preferred_element_type=jnp.float32)
    h = jnp.maximum(h, 0.0)
    out = jnp.dot(h.astype(jnp.bfloat16), w2_ref[...],
                  preferred_element_type=jnp.float32) + fb2_ref[...]
    o_ref[0] = jax.nn.sigmoid(out)


# ------------------------------------------------------------- wrapper ------

def forward(x_nchw, params):
    n = x_nchw.shape[0]
    # NCHW -> rows (ci, h), lanes w; single cheap XLA fusion (cast + reshape).
    x2 = x_nchw.astype(jnp.bfloat16).reshape(n * IN_CH * HW, HW)

    flat_args = [x2]
    for band, bias in zip(params['bands'], params['biases']):
        flat_args += [band, bias]
    flat_args += [params['w1p'], params['fb1'], params['w2'], params['fb2']]

    in_specs = [pl.BlockSpec((IN_CH * HW, HW), lambda i: (i, 0))]
    for a in flat_args[1:]:
        in_specs.append(pl.BlockSpec(a.shape, lambda i: (0, 0)))
    out_spec = pl.BlockSpec((1, 1, 1), lambda i: (i, 0, 0))
    scratch = [pltpu.VMEM((p['slid_rows'], p['wtil'] * p['cout']), jnp.bfloat16)
               for p in PLANS[:-1]]

    out = pl.pallas_call(
        _fused_kernel,
        out_shape=jax.ShapeDtypeStruct((n, 1, 1), jnp.float32),
        grid=(n,),
        in_specs=in_specs,
        out_specs=out_spec,
        scratch_shapes=scratch,
        compiler_params=pltpu.CompilerParams(
            dimension_semantics=("parallel",),        # one image per TC on v7x
            vmem_limit_bytes=32 * 1024 * 1024),
    )(*flat_args)
    return out.reshape(n, 1)


if __name__ == "__main__":
    # 128x128 input is required: the module hard-codes input_size=(3,128,128)
    # to size its fully-connected head.
    x = jax.random.normal(jax.random.PRNGKey(0), (2, IN_CH, HW, HW), jnp.float32)
    params = init_params(jax.random.PRNGKey(42))
    fwd = jax.jit(forward)
    out = jax.block_until_ready(fwd(x, params))
    assert out.shape == (2, 1), out.shape
    assert bool(jnp.all(jnp.isfinite(out)))
    assert bool(jnp.all((out >= 0.0) & (out <= 1.0)))  # sigmoid output
    print("KERNEL_OK")
</pallas_src>

<mosaic_0001>
module attributes {stable_mosaic.version = 11 : i64} {
  func.func @_fused_kernel(%arg0: i32, %arg1: memref<384x128xbf16, #tpu.memory_space<vmem>>, %arg2: memref<1152x504xbf16, #tpu.memory_space<vmem>>, %arg3: memref<1x504xf32, #tpu.memory_space<vmem>>, %arg4: memref<1500x488xbf16, #tpu.memory_space<vmem>>, %arg5: memref<1x488xf32, #tpu.memory_space<vmem>>, %arg6: memref<1440x224xbf16, #tpu.memory_space<vmem>>, %arg7: memref<1x224xf32, #tpu.memory_space<vmem>>, %arg8: memref<648x192xbf16, #tpu.memory_space<vmem>>, %arg9: memref<1x192xf32, #tpu.memory_space<vmem>>, %arg10: memref<528x64xbf16, #tpu.memory_space<vmem>>, %arg11: memref<1x64xf32, #tpu.memory_space<vmem>>, %arg12: memref<64x32xbf16, #tpu.memory_space<vmem>>, %arg13: memref<1x32xf32, #tpu.memory_space<vmem>>, %arg14: memref<32x1xbf16, #tpu.memory_space<vmem>>, %arg15: memref<1x1xf32, #tpu.memory_space<vmem>>, %arg16: memref<1x1x1xf32, #tpu.memory_space<vmem>>, %arg17: memref<125x500xbf16, #tpu.memory_space<vmem>>, %arg18: memref<119x480xbf16, #tpu.memory_space<vmem>>, %arg19: memref<107x216xbf16, #tpu.memory_space<vmem>>, %arg20: memref<83x176xbf16, #tpu.memory_space<vmem>>) attributes {dimension_semantics = [#tpu.dimension_semantics<parallel>], iteration_bounds = array<i64: 2>, scalar_prefetch = 0 : i64, scratch_operands = 4 : i64, tpu.core_type = #tpu.core_type<tc>, window_params = [{transform_indices = @transform_0, window_bounds = array<i64: 384, 128>}, {pipeline_mode = #tpu.pipeline_mode<synchronous>, transform_indices = @transform_1, window_bounds = array<i64: 1152, 504>}, {pipeline_mode = #tpu.pipeline_mode<synchronous>, transform_indices = @transform_2, window_bounds = array<i64: 1, 504>}, {pipeline_mode = #tpu.pipeline_mode<synchronous>, transform_indices = @transform_3, window_bounds = array<i64: 1500, 488>}, {pipeline_mode = #tpu.pipeline_mode<synchronous>, transform_indices = @transform_4, window_bounds = array<i64: 1, 488>}, {pipeline_mode = #tpu.pipeline_mode<synchronous>, transform_indices = @transform_5, window_bounds = array<i64: 1440, 224>}, {pipeline_mode = #tpu.pipeline_mode<synchronous>, transform_indices = @transform_6, window_bounds = array<i64: 1, 224>}, {pipeline_mode = #tpu.pipeline_mode<synchronous>, transform_indices = @transform_7, window_bounds = array<i64: 648, 192>}, {pipeline_mode = #tpu.pipeline_mode<synchronous>, transform_indices = @transform_8, window_bounds = array<i64: 1, 192>}, {pipeline_mode = #tpu.pipeline_mode<synchronous>, transform_indices = @transform_9, window_bounds = array<i64: 528, 64>}, {pipeline_mode = #tpu.pipeline_mode<synchronous>, transform_indices = @transform_10, window_bounds = array<i64: 1, 64>}, {pipeline_mode = #tpu.pipeline_mode<synchronous>, transform_indices = @transform_11, window_bounds = array<i64: 64, 32>}, {pipeline_mode = #tpu.pipeline_mode<synchronous>, transform_indices = @transform_12, window_bounds = array<i64: 1, 32>}, {pipeline_mode = #tpu.pipeline_mode<synchronous>, transform_indices = @transform_13, window_bounds = array<i64: 32, 1>}, {pipeline_mode = #tpu.pipeline_mode<synchronous>, transform_indices = @transform_14, window_bounds = array<i64: 1, 1>}, {transform_indices = @transform_15, window_bounds = array<i64: 1, 1, 1>}]} {
    %c0 = arith.constant 0 : index
    %c0_0 = arith.constant 0 : index
    %0 = vector.load %arg1[%c0, %c0_0] : memref<384x128xbf16, #tpu.memory_space<vmem>>, vector<126x128xbf16>
    %c0_1 = arith.constant 0 : index
    %c0_2 = arith.constant 0 : index
    %1 = vector.load %arg2[%c0_1, %c0_2] : memref<1152x504xbf16, #tpu.memory_space<vmem>>, vector<128x504xbf16>
    %cst = arith.constant dense<0.000000e+00> : vector<126x504xf32>
    %2 = tpu.matmul %0, %1, %cst {dimension_numbers = #tpu.dot_dimension_numbers<[1], [0], [0], [1], [0, 0, 1, 1], [], []>} : vector<126x128xbf16>, vector<128x504xbf16>, vector<126x504xf32> -> vector<126x504xf32>
    %c128 = arith.constant 128 : index
    %c0_3 = arith.constant 0 : index
    %3 = vector.load %arg1[%c128, %c0_3] : memref<384x128xbf16, #tpu.memory_space<vmem>>, vector<126x128xbf16>
    %c128_4 = arith.constant 128 : index
    %c0_5 = arith.constant 0 : index
    %4 = vector.load %arg2[%c128_4, %c0_5] : memref<1152x504xbf16, #tpu.memory_space<vmem>>, vector<128x504xbf16>
    %cst_6 = arith.constant dense<0.000000e+00> : vector<126x504xf32>
    %5 = tpu.matmul %3, %4, %cst_6 {dimension_numbers = #tpu.dot_dimension_numbers<[1], [0], [0], [1], [0, 0, 1, 1], [], []>} : vector<126x128xbf16>, vector<128x504xbf16>, vector<126x504xf32> -> vector<126x504xf32>
    %6 = arith.addf %2, %5 : vector<126x504xf32>
    %c256 = arith.constant 256 : index
    %c0_7 = arith.constant 0 : index
    %7 = vector.load %arg1[%c256, %c0_7] : memref<384x128xbf16, #tpu.memory_space<vmem>>, vector<126x128xbf16>
    %c256_8 = arith.constant 256 : index
    %c0_9 = arith.constant 0 : index
    %8 = vector.load %arg2[%c256_8, %c0_9] : memref<1152x504xbf16, #tpu.memory_space<vmem>>, vector<128x504xbf16>
    %cst_10 = arith.constant dense<0.000000e+00> : vector<126x504xf32>
    %9 = tpu.matmul %7, %8, %cst_10 {dimension_numbers = #tpu.dot_dimension_numbers<[1], [0], [0], [1], [0, 0, 1, 1], [], []>} : vector<126x128xbf16>, vector<128x504xbf16>, vector<126x504xf32> -> vector<126x504xf32>
    %10 = arith.addf %6, %9 : vector<126x504xf32>
    %c1 = arith.constant 1 : index
    %c0_11 = arith.constant 0 : index
    %11 = vector.load %arg1[%c1, %c0_11] : memref<384x128xbf16, #tpu.memory_space<vmem>>, vector<126x128xbf16>
    %c384 = arith.constant 384 : index
    %c0_12 = arith.constant 0 : index
    %12 = vector.load %arg2[%c384, %c0_12] : memref<1152x504xbf16, #tpu.memory_space<vmem>>, vector<128x504xbf16>
    %cst_13 = arith.constant dense<0.000000e+00> : vector<126x504xf32>
    %13 = tpu.matmul %11, %12, %cst_13 {dimension_numbers = #tpu.dot_dimension_numbers<[1], [0], [0], [1], [0, 0, 1, 1], [], []>} : vector<126x128xbf16>, vector<128x504xbf16>, vector<126x504xf32> -> vector<126x504xf32>
    %14 = arith.addf %10, %13 : vector<126x504xf32>
    %c129 = arith.constant 129 : index
    %c0_14 = arith.constant 0 : index
    %15 = vector.load %arg1[%c129, %c0_14] : memref<384x128xbf16, #tpu.memory_space<vmem>>, vector<126x128xbf16>
    %c512 = arith.constant 512 : index
    %c0_15 = arith.constant 0 : index
    %16 = vector.load %arg2[%c512, %c0_15] : memref<1152x504xbf16, #tpu.memory_space<vmem>>, vector<128x504xbf16>
    %cst_16 = arith.constant dense<0.000000e+00> : vector<126x504xf32>
    %17 = tpu.matmul %15, %16, %cst_16 {dimension_numbers = #tpu.dot_dimension_numbers<[1], [0], [0], [1], [0, 0, 1, 1], [], []>} : vector<126x128xbf16>, vector<128x504xbf16>, vector<126x504xf32> -> vector<126x504xf32>
    %18 = arith.addf %14, %17 : vector<126x504xf32>
    %c257 = arith.constant 257 : index
    %c0_17 = arith.constant 0 : index
    %19 = vector.load %arg1[%c257, %c0_17] : memref<384x128xbf16, #tpu.memory_space<vmem>>, vector<126x128xbf16>
    %c640 = arith.constant 640 : index
    %c0_18 = arith.constant 0 : index
    %20 = vector.load %arg2[%c640, %c0_18] : memref<1152x504xbf16, #tpu.memory_space<vmem>>, vector<128x504xbf16>
    %cst_19 = arith.constant dense<0.000000e+00> : vector<126x504xf32>
    %21 = tpu.matmul %19, %20, %cst_19 {dimension_numbers = #tpu.dot_dimension_numbers<[1], [0], [0], [1], [0, 0, 1, 1], [], []>} : vector<126x128xbf16>, vector<128x504xbf16>, vector<126x504xf32> -> vector<126x504xf32>
    %22 = arith.addf %18, %21 : vector<126x504xf32>
    %c2 = arith.constant 2 : index
    %c0_20 = arith.constant 0 : index
    %23 = vector.load %arg1[%c2, %c0_20] : memref<384x128xbf16, #tpu.memory_space<vmem>>, vector<126x128xbf16>
    %c768 = arith.constant 768 : index
    %c0_21 = arith.constant 0 : index
    %24 = vector.load %arg2[%c768, %c0_21] : memref<1152x504xbf16, #tpu.memory_space<vmem>>, vector<128x504xbf16>
    %cst_22 = arith.constant dense<0.000000e+00> : vector<126x504xf32>
    %25 = tpu.matmul %23, %24, %cst_22 {dimension_numbers = #tpu.dot_dimension_numbers<[1], [0], [0], [1], [0, 0, 1, 1], [], []>} : vector<126x128xbf16>, vector<128x504xbf16>, vector<126x504xf32> -> vector<126x504xf32>
    %26 = arith.addf %22, %25 : vector<126x504xf32>
    %c130 = arith.constant 130 : index
    %c0_23 = arith.constant 0 : index
    %27 = vector.load %arg1[%c130, %c0_23] : memref<384x128xbf16, #tpu.memory_space<vmem>>, vector<126x128xbf16>
    %c896 = arith.constant 896 : index
    %c0_24 = arith.constant 0 : index
    %28 = vector.load %arg2[%c896, %c0_24] : memref<1152x504xbf16, #tpu.memory_space<vmem>>, vector<128x504xbf16>
    %cst_25 = arith.constant dense<0.000000e+00> : vector<126x504xf32>
    %29 = tpu.matmul %27, %28, %cst_25 {dimension_numbers = #tpu.dot_dimension_numbers<[1], [0], [0], [1], [0, 0, 1, 1], [], []>} : vector<126x128xbf16>, vector<128x504xbf16>, vector<126x504xf32> -> vector<126x504xf32>
    %30 = arith.addf %26, %29 : vector<126x504xf32>
    %c258 = arith.constant 258 : index
    %c0_26 = arith.constant 0 : index
    %31 = vector.load %arg1[%c258, %c0_26] : memref<384x128xbf16, #tpu.memory_space<vmem>>, vector<126x128xbf16>
    %c1024 = arith.constant 1024 : index
    %c0_27 = arith.constant 0 : index
    %32 = vector.load %arg2[%c1024, %c0_27] : memref<1152x504xbf16, #tpu.memory_space<vmem>>, vector<128x504xbf16>
    %cst_28 = arith.constant dense<0.000000e+00> : vector<126x504xf32>
    %33 = tpu.matmul %31, %32, %cst_28 {dimension_numbers = #tpu.dot_dimension_numbers<[1], [0], [0], [1], [0, 0, 1, 1], [], []>} : vector<126x128xbf16>, vector<128x504xbf16>, vector<126x504xf32> -> vector<126x504xf32>
    %34 = arith.addf %30, %33 : vector<126x504xf32>
    %c0_29 = arith.constant 0 : index
    %c0_30 = arith.constant 0 : index
    %35 = vector.load %arg3[%c0_29, %c0_30] : memref<1x504xf32, #tpu.memory_space<vmem>>, vector<1x504xf32>
    %36 = vector.broadcast %35 : vector<1x504xf32> to vector<126x504xf32>
    %37 = arith.addf %34, %36 : vector<126x504xf32>
    %cst_31 = arith.constant 0.000000e+00 : f32
    %38 = vector.broadcast %cst_31 : f32 to vector<126x504xf32>
    %39 = arith.maximumf %37, %38 : vector<126x504xf32>
    %40 = vector.extract_strided_slice %39 {offsets = [0, 0], sizes = [125, 504], strides = [1, 1]} : vector<126x504xf32> to vector<125x504xf32>
    %41 = vector.extract_strided_slice %39 {offsets = [1, 0], sizes = [125, 504], strides = [1, 1]} : vector<126x504xf32> to vector<125x504xf32>
    %42 = arith.maximumf %40, %41 : vector<125x504xf32>
    %43 = vector.extract_strided_slice %42 {offsets = [0, 0], sizes = [125, 500], strides = [1, 1]} : vector<125x504xf32> to vector<125x500xf32>
    %44 = vector.extract_strided_slice %42 {offsets = [0, 4], sizes = [125, 500], strides = [1, 1]} : vector<125x504xf32> to vector<125x500xf32>
    %45 = arith.maximumf %43, %44 : vector<125x500xf32>
    %46 = arith.truncf %45 : vector<125x500xf32> to vector<125x500xbf16>
    %c0_32 = arith.constant 0 : index
    %c0_33 = arith.constant 0 : index
    %47 = vector.load %arg17[%c0_32, %c0_33] : memref<125x500xbf16, #tpu.memory_space<vmem>>, vector<125x500xbf16>
    tpu.vector_store %arg17[%c0_32, %c0_33], %46 {strides = array<i32>} : memref<125x500xbf16, #tpu.memory_space<vmem>>, vector<125x500xbf16>,
    %c0_34 = arith.constant 0 : index
    %c0_35 = arith.constant 0 : index
    %48 = vector.load %arg17[%c0_34, %c0_35] : memref<125x500xbf16, #tpu.memory_space<vmem>>, vector<121x500xbf16>
    %c0_36 = arith.constant 0 : index
    %c0_37 = arith.constant 0 : index
    %49 = vector.load %arg4[%c0_36, %c0_37] : memref<1500x488xbf16, #tpu.memory_space<vmem>>, vector<500x488xbf16>
    %cst_38 = arith.constant dense<0.000000e+00> : vector<121x488xf32>
    %50 = tpu.matmul %48, %49, %cst_38 {dimension_numbers = #tpu.dot_dimension_numbers<[1], [0], [0], [1], [0, 0, 1, 1], [], []>} : vector<121x500xbf16>, vector<500x488xbf16>, vector<121x488xf32> -> vector<121x488xf32>
    %c2_39 = arith.constant 2 : index
    %c0_40 = arith.constant 0 : index
    %51 = vector.load %arg17[%c2_39, %c0_40] : memref<125x500xbf16, #tpu.memory_space<vmem>>, vector<121x500xbf16>
    %c500 = arith.constant 500 : index
    %c0_41 = arith.constant 0 : index
    %52 = vector.load %arg4[%c500, %c0_41] : memref<1500x488xbf16, #tpu.memory_space<vmem>>, vector<500x488xbf16>
    %cst_42 = arith.constant dense<0.000000e+00> : vector<121x488xf32>
    %53 = tpu.matmul %51, %52, %cst_42 {dimension_numbers = #tpu.dot_dimension_numbers<[1], [0], [0], [1], [0, 0, 1, 1], [], []>} : vector<121x500xbf16>, vector<500x488xbf16>, vector<121x488xf32> -> vector<121x488xf32>
    %54 = arith.addf %50, %53 : vector<121x488xf32>
    %c4 = arith.constant 4 : index
    %c0_43 = arith.constant 0 : index
    %55 = vector.load %arg17[%c4, %c0_43] : memref<125x500xbf16, #tpu.memory_space<vmem>>, vector<121x500xbf16>
    %c1000 = arith.constant 1000 : index
    %c0_44 = arith.constant 0 : index
    %56 = vector.load %arg4[%c1000, %c0_44] : memref<1500x488xbf16, #tpu.memory_space<vmem>>, vector<500x488xbf16>
    %cst_45 = arith.constant dense<0.000000e+00> : vector<121x488xf32>
    %57 = tpu.matmul %55, %56, %cst_45 {dimension_numbers = #tpu.dot_dimension_numbers<[1], [0], [0], [1], [0, 0, 1, 1], [], []>} : vector<121x500xbf16>, vector<500x488xbf16>, vector<121x488xf32> -> vector<121x488xf32>
    %58 = arith.addf %54, %57 : vector<121x488xf32>
    %c0_46 = arith.constant 0 : index
    %c0_47 = arith.constant 0 : index
    %59 = vector.load %arg5[%c0_46, %c0_47] : memref<1x488xf32, #tpu.memory_space<vmem>>, vector<1x488xf32>
    %60 = vector.broadcast %59 : vector<1x488xf32> to vector<121x488xf32>
    %61 = arith.addf %58, %60 : vector<121x488xf32>
    %cst_48 = arith.constant 0.000000e+00 : f32
    %62 = vector.broadcast %cst_48 : f32 to vector<121x488xf32>
    %63 = arith.maximumf %61, %62 : vector<121x488xf32>
    %64 = vector.extract_strided_slice %63 {offsets = [0, 0], sizes = [119, 488], strides = [1, 1]} : vector<121x488xf32> to vector<119x488xf32>
    %65 = vector.extract_strided_slice %63 {offsets = [2, 0], sizes = [119, 488], strides = [1, 1]} : vector<121x488xf32> to vector<119x488xf32>
    %66 = arith.maximumf %64, %65 : vector<119x488xf32>
    %67 = vector.extract_strided_slice %66 {offsets = [0, 0], sizes = [119, 480], strides = [1, 1]} : vector<119x488xf32> to vector<119x480xf32>
    %68 = vector.extract_strided_slice %66 {offsets = [0, 8], sizes = [119, 480], strides = [1, 1]} : vector<119x488xf32> to vector<119x480xf32>
    %69 = arith.maximumf %67, %68 : vector<119x480xf32>
    %70 = arith.truncf %69 : vector<119x480xf32> to vector<119x480xbf16>
    %c0_49 = arith.constant 0 : index
    %c0_50 = arith.constant 0 : index
    %71 = vector.load %arg18[%c0_49, %c0_50] : memref<119x480xbf16, #tpu.memory_space<vmem>>, vector<119x480xbf16>
    tpu.vector_store %arg18[%c0_49, %c0_50], %70 {strides = array<i32>} : memref<119x480xbf16, #tpu.memory_space<vmem>>, vector<119x480xbf16>,
    %c0_51 = arith.constant 0 : index
    %c0_52 = arith.constant 0 : index
    %72 = vector.load %arg18[%c0_51, %c0_52] : memref<119x480xbf16, #tpu.memory_space<vmem>>, vector<111x480xbf16>
    %c0_53 = arith.constant 0 : index
    %c0_54 = arith.constant 0 : index
    %73 = vector.load %arg6[%c0_53, %c0_54] : memref<1440x224xbf16, #tpu.memory_space<vmem>>, vector<480x224xbf16>
    %cst_55 = arith.constant dense<0.000000e+00> : vector<111x224xf32>
    %74 = tpu.matmul %72, %73, %cst_55 {dimension_numbers = #tpu.dot_dimension_numbers<[1], [0], [0], [1], [0, 0, 1, 1], [], []>} : vector<111x480xbf16>, vector<480x224xbf16>, vector<111x224xf32> -> vector<111x224xf32>
    %c4_56 = arith.constant 4 : index
    %c0_57 = arith.constant 0 : index
    %75 = vector.load %arg18[%c4_56, %c0_57] : memref<119x480xbf16, #tpu.memory_space<vmem>>, vector<111x480xbf16>
    %c480 = arith.constant 480 : index
    %c0_58 = arith.constant 0 : index
    %76 = vector.load %arg6[%c480, %c0_58] : memref<1440x224xbf16, #tpu.memory_space<vmem>>, vector<480x224xbf16>
    %cst_59 = arith.constant dense<0.000000e+00> : vector<111x224xf32>
    %77 = tpu.matmul %75, %76, %cst_59 {dimension_numbers = #tpu.dot_dimension_numbers<[1], [0], [0], [1], [0, 0, 1, 1], [], []>} : vector<111x480xbf16>, vector<480x224xbf16>, vector<111x224xf32> -> vector<111x224xf32>
    %78 = arith.addf %74, %77 : vector<111x224xf32>
    %c8 = arith.constant 8 : index
    %c0_60 = arith.constant 0 : index
    %79 = vector.load %arg18[%c8, %c0_60] : memref<119x480xbf16, #tpu.memory_space<vmem>>, vector<111x480xbf16>
    %c960 = arith.constant 960 : index
    %c0_61 = arith.constant 0 : index
    %80 = vector.load %arg6[%c960, %c0_61] : memref<1440x224xbf16, #tpu.memory_space<vmem>>, vector<480x224xbf16>
    %cst_62 = arith.constant dense<0.000000e+00> : vector<111x224xf32>
    %81 = tpu.matmul %79, %80, %cst_62 {dimension_numbers = #tpu.dot_dimension_numbers<[1], [0], [0], [1], [0, 0, 1, 1], [], []>} : vector<111x480xbf16>, vector<480x224xbf16>, vector<111x224xf32> -> vector<111x224xf32>
    %82 = arith.addf %78, %81 : vector<111x224xf32>
    %c0_63 = arith.constant 0 : index
    %c0_64 = arith.constant 0 : index
    %83 = vector.load %arg7[%c0_63, %c0_64] : memref<1x224xf32, #tpu.memory_space<vmem>>, vector<1x224xf32>
    %84 = vector.broadcast %83 : vector<1x224xf32> to vector<111x224xf32>
    %85 = arith.addf %82, %84 : vector<111x224xf32>
    %86 = vector.extract_strided_slice %85 {offsets = [0, 0], sizes = [107, 224], strides = [1, 1]} : vector<111x224xf32> to vector<107x224xf32>
    %87 = vector.extract_strided_slice %85 {offsets = [4, 0], sizes = [107, 224], strides = [1, 1]} : vector<111x224xf32> to vector<107x224xf32>
    %88 = arith.maximumf %86, %87 : vector<107x224xf32>
    %89 = vector.extract_strided_slice %88 {offsets = [0, 0], sizes = [107, 216], strides = [1, 1]} : vector<107x224xf32> to vector<107x216xf32>
    %90 = vector.extract_strided_slice %88 {offsets = [0, 8], sizes = [107, 216], strides = [1, 1]} : vector<107x224xf32> to vector<107x216xf32>
    %91 = arith.maximumf %89, %90 : vector<107x216xf32>
    %92 = arith.truncf %91 : vector<107x216xf32> to vector<107x216xbf16>
    %c0_65 = arith.constant 0 : index
    %c0_66 = arith.constant 0 : index
    %93 = vector.load %arg19[%c0_65, %c0_66] : memref<107x216xbf16, #tpu.memory_space<vmem>>, vector<107x216xbf16>
    tpu.vector_store %arg19[%c0_65, %c0_66], %92 {strides = array<i32>} : memref<107x216xbf16, #tpu.memory_space<vmem>>, vector<107x216xbf16>,
    %c0_67 = arith.constant 0 : index
    %c0_68 = arith.constant 0 : index
    %94 = vector.load %arg19[%c0_67, %c0_68] : memref<107x216xbf16, #tpu.memory_space<vmem>>, vector<91x216xbf16>
    %c0_69 = arith.constant 0 : index
    %c0_70 = arith.constant 0 : index
    %95 = vector.load %arg8[%c0_69, %c0_70] : memref<648x192xbf16, #tpu.memory_space<vmem>>, vector<216x192xbf16>
    %cst_71 = arith.constant dense<0.000000e+00> : vector<91x192xf32>
    %96 = tpu.matmul %94, %95, %cst_71 {dimension_numbers = #tpu.dot_dimension_numbers<[1], [0], [0], [1], [0, 0, 1, 1], [], []>} : vector<91x216xbf16>, vector<216x192xbf16>, vector<91x192xf32> -> vector<91x192xf32>
    %c8_72 = arith.constant 8 : index
    %c0_73 = arith.constant 0 : index
    %97 = vector.load %arg19[%c8_72, %c0_73] : memref<107x216xbf16, #tpu.memory_space<vmem>>, vector<91x216xbf16>
    %c216 = arith.constant 216 : index
    %c0_74 = arith.constant 0 : index
    %98 = vector.load %arg8[%c216, %c0_74] : memref<648x192xbf16, #tpu.memory_space<vmem>>, vector<216x192xbf16>
    %cst_75 = arith.constant dense<0.000000e+00> : vector<91x192xf32>
    %99 = tpu.matmul %97, %98, %cst_75 {dimension_numbers = #tpu.dot_dimension_numbers<[1], [0], [0], [1], [0, 0, 1, 1], [], []>} : vector<91x216xbf16>, vector<216x192xbf16>, vector<91x192xf32> -> vector<91x192xf32>
    %100 = arith.addf %96, %99 : vector<91x192xf32>
    %c16 = arith.constant 16 : index
    %c0_76 = arith.constant 0 : index
    %101 = vector.load %arg19[%c16, %c0_76] : memref<107x216xbf16, #tpu.memory_space<vmem>>, vector<91x216xbf16>
    %c432 = arith.constant 432 : index
    %c0_77 = arith.constant 0 : index
    %102 = vector.load %arg8[%c432, %c0_77] : memref<648x192xbf16, #tpu.memory_space<vmem>>, vector<216x192xbf16>
    %cst_78 = arith.constant dense<0.000000e+00> : vector<91x192xf32>
    %103 = tpu.matmul %101, %102, %cst_78 {dimension_numbers = #tpu.dot_dimension_numbers<[1], [0], [0], [1], [0, 0, 1, 1], [], []>} : vector<91x216xbf16>, vector<216x192xbf16>, vector<91x192xf32> -> vector<91x192xf32>
    %104 = arith.addf %100, %103 : vector<91x192xf32>
    %c0_79 = arith.constant 0 : index
    %c0_80 = arith.constant 0 : index
    %105 = vector.load %arg9[%c0_79, %c0_80] : memref<1x192xf32, #tpu.memory_space<vmem>>, vector<1x192xf32>
    %106 = vector.broadcast %105 : vector<1x192xf32> to vector<91x192xf32>
    %107 = arith.addf %104, %106 : vector<91x192xf32>
    %cst_81 = arith.constant 0.000000e+00 : f32
    %108 = vector.broadcast %cst_81 : f32 to vector<91x192xf32>
    %109 = arith.maximumf %107, %108 : vector<91x192xf32>
    %110 = vector.extract_strided_slice %109 {offsets = [0, 0], sizes = [83, 192], strides = [1, 1]} : vector<91x192xf32> to vector<83x192xf32>
    %111 = vector.extract_strided_slice %109 {offsets = [8, 0], sizes = [83, 192], strides = [1, 1]} : vector<91x192xf32> to vector<83x192xf32>
    %112 = arith.maximumf %110, %111 : vector<83x192xf32>
    %113 = vector.extract_strided_slice %112 {offsets = [0, 0], sizes = [83, 176], strides = [1, 1]} : vector<83x192xf32> to vector<83x176xf32>
    %114 = vector.extract_strided_slice %112 {offsets = [0, 16], sizes = [83, 176], strides = [1, 1]} : vector<83x192xf32> to vector<83x176xf32>
    %115 = arith.maximumf %113, %114 : vector<83x176xf32>
    %116 = arith.truncf %115 : vector<83x176xf32> to vector<83x176xbf16>
    %c0_82 = arith.constant 0 : index
    %c0_83 = arith.constant 0 : index
    %117 = vector.load %arg20[%c0_82, %c0_83] : memref<83x176xbf16, #tpu.memory_space<vmem>>, vector<83x176xbf16>
    tpu.vector_store %arg20[%c0_82, %c0_83], %116 {strides = array<i32>} : memref<83x176xbf16, #tpu.memory_space<vmem>>, vector<83x176xbf16>,
    %c0_84 = arith.constant 0 : index
    %c0_85 = arith.constant 0 : index
    %118 = vector.load %arg20[%c0_84, %c0_85] : memref<83x176xbf16, #tpu.memory_space<vmem>>, vector<51x176xbf16>
    %c0_86 = arith.constant 0 : index
    %c0_87 = arith.constant 0 : index
    %119 = vector.load %arg10[%c0_86, %c0_87] : memref<528x64xbf16, #tpu.memory_space<vmem>>, vector<176x64xbf16>
    %cst_88 = arith.constant dense<0.000000e+00> : vector<51x64xf32>
    %120 = tpu.matmul %118, %119, %cst_88 {dimension_numbers = #tpu.dot_dimension_numbers<[1], [0], [0], [1], [0, 0, 1, 1], [], []>} : vector<51x176xbf16>, vector<176x64xbf16>, vector<51x64xf32> -> vector<51x64xf32>
    %c16_89 = arith.constant 16 : index
    %c0_90 = arith.constant 0 : index
    %121 = vector.load %arg20[%c16_89, %c0_90] : memref<83x176xbf16, #tpu.memory_space<vmem>>, vector<51x176xbf16>
    %c176 = arith.constant 176 : index
    %c0_91 = arith.constant 0 : index
    %122 = vector.load %arg10[%c176, %c0_91] : memref<528x64xbf16, #tpu.memory_space<vmem>>, vector<176x64xbf16>
    %cst_92 = arith.constant dense<0.000000e+00> : vector<51x64xf32>
    %123 = tpu.matmul %121, %122, %cst_92 {dimension_numbers = #tpu.dot_dimension_numbers<[1], [0], [0], [1], [0, 0, 1, 1], [], []>} : vector<51x176xbf16>, vector<176x64xbf16>, vector<51x64xf32> -> vector<51x64xf32>
    %124 = arith.addf %120, %123 : vector<51x64xf32>
    %c32 = arith.constant 32 : index
    %c0_93 = arith.constant 0 : index
    %125 = vector.load %arg20[%c32, %c0_93] : memref<83x176xbf16, #tpu.memory_space<vmem>>, vector<51x176xbf16>
    %c352 = arith.constant 352 : index
    %c0_94 = arith.constant 0 : index
    %126 = vector.load %arg10[%c352, %c0_94] : memref<528x64xbf16, #tpu.memory_space<vmem>>, vector<176x64xbf16>
    %cst_95 = arith.constant dense<0.000000e+00> : vector<51x64xf32>
    %127 = tpu.matmul %125, %126, %cst_95 {dimension_numbers = #tpu.dot_dimension_numbers<[1], [0], [0], [1], [0, 0, 1, 1], [], []>} : vector<51x176xbf16>, vector<176x64xbf16>, vector<51x64xf32> -> vector<51x64xf32>
    %128 = arith.addf %124, %127 : vector<51x64xf32>
    %c0_96 = arith.constant 0 : index
    %c0_97 = arith.constant 0 : index
    %129 = vector.load %arg11[%c0_96, %c0_97] : memref<1x64xf32, #tpu.memory_space<vmem>>, vector<1x64xf32>
    %130 = vector.broadcast %129 : vector<1x64xf32> to vector<51x64xf32>
    %131 = arith.addf %128, %130 : vector<51x64xf32>
    %cst_98 = arith.constant 0.000000e+00 : f32
    %132 = vector.broadcast %cst_98 : f32 to vector<51x64xf32>
    %133 = arith.maximumf %131, %132 : vector<51x64xf32>
    %134 = vector.extract_strided_slice %133 {offsets = [0, 0], sizes = [19, 64], strides = [1, 1]} : vector<51x64xf32> to vector<19x64xf32>
    %135 = vector.extract_strided_slice %133 {offsets = [16, 0], sizes = [19, 64], strides = [1, 1]} : vector<51x64xf32> to vector<19x64xf32>
    %136 = arith.maximumf %134, %135 : vector<19x64xf32>
    %137 = vector.extract_strided_slice %133 {offsets = [32, 0], sizes = [19, 64], strides = [1, 1]} : vector<51x64xf32> to vector<19x64xf32>
    %138 = arith.maximumf %136, %137 : vector<19x64xf32>
    %139 = vector.extract_strided_slice %138 {offsets = [0, 0], sizes = [19, 32], strides = [1, 1]} : vector<19x64xf32> to vector<19x32xf32>
    %140 = vector.extract_strided_slice %138 {offsets = [0, 16], sizes = [19, 32], strides = [1, 1]} : vector<19x64xf32> to vector<19x32xf32>
    %141 = arith.maximumf %139, %140 : vector<19x32xf32>
    %142 = vector.extract_strided_slice %138 {offsets = [0, 32], sizes = [19, 32], strides = [1, 1]} : vector<19x64xf32> to vector<19x32xf32>
    %143 = arith.maximumf %141, %142 : vector<19x32xf32>
    %c0_99 = arith.constant 0 : index
    %c0_100 = arith.constant 0 : index
    %144 = vector.load %arg13[%c0_99, %c0_100] : memref<1x32xf32, #tpu.memory_space<vmem>>, vector<1x32xf32>
    %145 = vector.extract_strided_slice %143 {offsets = [0, 0], sizes = [1, 32], strides = [1, 1]} : vector<19x32xf32> to vector<1x32xf32>
    %146 = arith.truncf %145 : vector<1x32xf32> to vector<1x32xbf16>
    %c0_101 = arith.constant 0 : index
    %c0_102 = arith.constant 0 : index
    %147 = vector.load %arg12[%c0_101, %c0_102] : memref<64x32xbf16, #tpu.memory_space<vmem>>, vector<32x32xbf16>
    %cst_103 = arith.constant dense<0.000000e+00> : vector<1x32xf32>
    %148 = tpu.matmul %146, %147, %cst_103 {dimension_numbers = #tpu.dot_dimension_numbers<[1], [0], [0], [1], [0, 0, 1, 1], [], []>} : vector<1x32xbf16>, vector<32x32xbf16>, vector<1x32xf32> -> vector<1x32xf32>
    %149 = arith.addf %144, %148 : vector<1x32xf32>
    %150 = vector.extract_strided_slice %143 {offsets = [16, 0], sizes = [1, 32], strides = [1, 1]} : vector<19x32xf32> to vector<1x32xf32>
    %151 = arith.truncf %150 : vector<1x32xf32> to vector<1x32xbf16>
    %c32_104 = arith.constant 32 : index
    %c0_105 = arith.constant 0 : index
    %152 = vector.load %arg12[%c32_104, %c0_105] : memref<64x32xbf16, #tpu.memory_space<vmem>>, vector<32x32xbf16>
    %cst_106 = arith.constant dense<0.000000e+00> : vector<1x32xf32>
    %153 = tpu.matmul %151, %152, %cst_106 {dimension_numbers = #tpu.dot_dimension_numbers<[1], [0], [0], [1], [0, 0, 1, 1], [], []>} : vector<1x32xbf16>, vector<32x32xbf16>, vector<1x32xf32> -> vector<1x32xf32>
    %154 = arith.addf %149, %153 : vector<1x32xf32>
    %cst_107 = arith.constant 0.000000e+00 : f32
    %155 = vector.broadcast %cst_107 : f32 to vector<1x32xf32>
    %156 = arith.maximumf %154, %155 : vector<1x32xf32>
    %157 = arith.truncf %156 : vector<1x32xf32> to vector<1x32xbf16>
    %c0_108 = arith.constant 0 : index
    %c0_109 = arith.constant 0 : index
    %158 = vector.load %arg14[%c0_108, %c0_109] : memref<32x1xbf16, #tpu.memory_space<vmem>>, vector<32x1xbf16>
    %cst_110 = arith.constant dense<0.000000e+00> : vector<1x1xf32>
    %159 = tpu.matmul %157, %158, %cst_110 {dimension_numbers = #tpu.dot_dimension_numbers<[1], [0], [0], [1], [0, 0, 1, 1], [], []>} : vector<1x32xbf16>, vector<32x1xbf16>, vector<1x1xf32> -> vector<1x1xf32>
    %c0_111 = arith.constant 0 : index
    %c0_112 = arith.constant 0 : index
    %160 = vector.load %arg15[%c0_111, %c0_112] : memref<1x1xf32, #tpu.memory_space<vmem>>, vector<1x1xf32>
    %161 = arith.addf %159, %160 : vector<1x1xf32>
    %162 = arith.negf %161 : vector<1x1xf32>
    %163 = math.exp %162 : vector<1x1xf32>
    %cst_113 = arith.constant 1.000000e+00 : f32
    %164 = vector.broadcast %cst_113 : f32 to vector<1x1xf32>
    %165 = arith.addf %164, %163 : vector<1x1xf32>
    %166 = arith.divf %164, %165 : vector<1x1xf32>
    %c0_114 = arith.constant 0 : index
    %c0_115 = arith.constant 0 : index
    %c0_116 = arith.constant 0 : index
    %167 = vector.load %arg16[%c0_114, %c0_115, %c0_116] : memref<1x1x1xf32, #tpu.memory_space<vmem>>, vector<1x1x1xf32>
    %168 = vector.shape_cast %167 : vector<1x1x1xf32> to vector<1x1xf32>
    %169 = vector.shape_cast %166 : vector<1x1xf32> to vector<1x1x1xf32>
    tpu.vector_store %arg16[%c0_114, %c0_115, %c0_116], %169 {strides = array<i32>} : memref<1x1x1xf32, #tpu.memory_space<vmem>>, vector<1x1x1xf32>,
    return
  }
  func.func @transform_0(%arg0: i32) -> (i32, i32) {
    %c0_i32 = arith.constant 0 : i32
    %c0_i32_0 = arith.constant 0 : i32
    return %arg0, %c0_i32 : i32, i32
  }
  func.func @transform_1(%arg0: i32) -> (i32, i32) {
    %c0_i32 = arith.constant 0 : i32
    %c0_i32_0 = arith.constant 0 : i32
    %c0_i32_1 = arith.constant 0 : i32
    return %c0_i32, %c0_i32_0 : i32, i32
  }
  func.func @transform_2(%arg0: i32) -> (i32, i32) {
    %c0_i32 = arith.constant 0 : i32
    %c0_i32_0 = arith.constant 0 : i32
    %c0_i32_1 = arith.constant 0 : i32
    return %c0_i32, %c0_i32_0 : i32, i32
  }
  func.func @transform_3(%arg0: i32) -> (i32, i32) {
    %c0_i32 = arith.constant 0 : i32
    %c0_i32_0 = arith.constant 0 : i32
    %c0_i32_1 = arith.constant 0 : i32
    return %c0_i32, %c0_i32_0 : i32, i32
  }
  func.func @transform_4(%arg0: i32) -> (i32, i32) {
    %c0_i32 = arith.constant 0 : i32
    %c0_i32_0 = arith.constant 0 : i32
    %c0_i32_1 = arith.constant 0 : i32
    return %c0_i32, %c0_i32_0 : i32, i32
  }
  func.func @transform_5(%arg0: i32) -> (i32, i32) {
    %c0_i32 = arith.constant 0 : i32
    %c0_i32_0 = arith.constant 0 : i32
    %c0_i32_1 = arith.constant 0 : i32
    return %c0_i32, %c0_i32_0 : i32, i32
  }
  func.func @transform_6(%arg0: i32) -> (i32, i32) {
    %c0_i32 = arith.constant 0 : i32
    %c0_i32_0 = arith.constant 0 : i32
    %c0_i32_1 = arith.constant 0 : i32
    return %c0_i32, %c0_i32_0 : i32, i32
  }
  func.func @transform_7(%arg0: i32) -> (i32, i32) {
    %c0_i32 = arith.constant 0 : i32
    %c0_i32_0 = arith.constant 0 : i32
    %c0_i32_1 = arith.constant 0 : i32
    return %c0_i32, %c0_i32_0 : i32, i32
  }
  func.func @transform_8(%arg0: i32) -> (i32, i32) {
    %c0_i32 = arith.constant 0 : i32
    %c0_i32_0 = arith.constant 0 : i32
    %c0_i32_1 = arith.constant 0 : i32
    return %c0_i32, %c0_i32_0 : i32, i32
  }
  func.func @transform_9(%arg0: i32) -> (i32, i32) {
    %c0_i32 = arith.constant 0 : i32
    %c0_i32_0 = arith.constant 0 : i32
    %c0_i32_1 = arith.constant 0 : i32
    return %c0_i32, %c0_i32_0 : i32, i32
  }
  func.func @transform_10(%arg0: i32) -> (i32, i32) {
    %c0_i32 = arith.constant 0 : i32
    %c0_i32_0 = arith.constant 0 : i32
    %c0_i32_1 = arith.constant 0 : i32
    return %c0_i32, %c0_i32_0 : i32, i32
  }
  func.func @transform_11(%arg0: i32) -> (i32, i32) {
    %c0_i32 = arith.constant 0 : i32
    %c0_i32_0 = arith.constant 0 : i32
    %c0_i32_1 = arith.constant 0 : i32
    return %c0_i32, %c0_i32_0 : i32, i32
  }
  func.func @transform_12(%arg0: i32) -> (i32, i32) {
    %c0_i32 = arith.constant 0 : i32
    %c0_i32_0 = arith.constant 0 : i32
    %c0_i32_1 = arith.constant 0 : i32
    return %c0_i32, %c0_i32_0 : i32, i32
  }
  func.func @transform_13(%arg0: i32) -> (i32, i32) {
    %c0_i32 = arith.constant 0 : i32
    %c0_i32_0 = arith.constant 0 : i32
    %c0_i32_1 = arith.constant 0 : i32
    return %c0_i32, %c0_i32_0 : i32, i32
  }
  func.func @transform_14(%arg0: i32) -> (i32, i32) {
    %c0_i32 = arith.constant 0 : i32
    %c0_i32_0 = arith.constant 0 : i32
    %c0_i32_1 = arith.constant 0 : i32
    return %c0_i32, %c0_i32_0 : i32, i32
  }
  func.func @transform_15(%arg0: i32) -> (i32, i32, i32) {
    %c0_i32 = arith.constant 0 : i32
    %c0_i32_0 = arith.constant 0 : i32
    %c0_i32_1 = arith.constant 0 : i32
    return %arg0, %c0_i32, %c0_i32_0 : i32, i32, i32
  }
}

</mosaic_0001>

<bundles_post_ra>
// kernel: forward.1
= control target key start
LH: loop header
LB: loop body
LE: loop exit
PB: predicated region body
PF: predicated region fallthrough
CT: control target
= control target key end

     0   :  { %s21258_s20 = smov 0   ;;  %s29075_s0 = inlined_call_operand.vmem [shape: bf16[768,128], index: 0, kind: input, shape index: {}]   ;;  %s29076_s1 = inlined_call_operand.vmem [shape: bf16[1152,504], index: 1, kind: input, shape index: {}]   ;;  %s29077_s2 = inlined_call_operand.vmem [shape: f32[1,504], index: 2, kind: input, shape index: {}]   ;;  %s29078_s3 = inlined_call_operand.vmem [shape: bf16[1500,488], index: 3, kind: input, shape index: {}]   ;;  %s29079_s4 = inlined_call_operand.vmem [shape: f32[1,488], index: 4, kind: input, shape index: {}]   ;;  %s29080_s5 = inlined_call_operand.vmem [shape: bf16[1440,224], index: 5, kind: input, shape index: {}]   ;;  %s29081_s6 = inlined_call_operand.vmem [shape: f32[1,224], index: 6, kind: input, shape index: {}]   ;;  %s29082_s7 = inlined_call_operand.vmem [shape: bf16[648,192], index: 7, kind: input, shape index: {}]   ;;  %s29083_s8 = inlined_call_operand.vmem [shape: f32[1,192], index: 8, kind: input, shape index: {}]   ;;  %s29084_s9 = inlined_call_operand.vmem [shape: bf16[528,64], index: 9, kind: input, shape index: {}]   ;;  %s29085_s10 = inlined_call_operand.vmem [shape: f32[1,64], index: 10, kind: input, shape index: {}]   ;;  %s29086_s11 = inlined_call_operand.vmem [shape: bf16[64,32], index: 11, kind: input, shape index: {}]   ;;  %s29087_s12 = inlined_call_operand.vmem [shape: f32[1,32], index: 12, kind: input, shape index: {}]   ;;  %s29088_s13 = inlined_call_operand.vmem [shape: bf16[32,1], index: 13, kind: input, shape index: {}]   ;;  %s29089_s14 = inlined_call_operand.<no memory space> [shape: f32[1,1], index: 14, kind: input, shape index: {}]   ;;  %s29090_s15 = inlined_call_operand.vmem [shape: f32[2,1,1], index: 15, kind: output, shape index: {}]  }
   0x1   :  { %v20_v0 = vstv %s29089_s14 }
   0x2   :  { %21 = vst [vmem:[#allocation6] sm:$0x1] %v20_v0 }
   0x3 LB: > { %s21264_s21 = sadd.s32 4294967295, %s21166_s20   ;;  %p16494_p0 = scmp.ge.s32.totalorder %s21166_s20, 1  ;;  %s21166_s20 = sphi %s21258_s20, %s27_s20  }
   0x4   : > { %p440_p1 = scmp.lt.s32.totalorder %s21166_s20, 3 }
   0x6   : > { %p441_p2 = pnand %p16494_p0, %p440_p1 }
   0x8   : > { %444 = sbr.rel (%p441_p2) target bundleno = 3781 (0xec5), region = 80 }
   0xf   : > { %v19499_v1 = vld [vmem:[%s29076_s1 + $0x104] ss:$16 sps:$4 sm:$0xff]   ;;  %s486_s14 = smul.u32 48, %s21264_s21  ;;  %v19501_v2 = vld [vmem:[%s29076_s1 + $0x100] ss:$16 sps:$4 sm:$0xff]   ;;  %v29091_v3 = vmov 0  }
  0x10   : > { %832 = vmatprep.mubr.bf16.mxu0 %v29091_v3  ;;  %872 = vmatprep.mubr.bf16.mxu1 %v29091_v3  ;;  %v19502_v4 = vld [vmem:[%s29076_s1 + $0x124] ss:$16 sps:$4 sm:$0xff]   ;;  %v19504_v5 = vld [vmem:[%s29076_s1 + $0x120] ss:$16 sps:$4 sm:$0xff]   ;;  %v19528_v20 = vld [vmem:[%s29076_s1 + $0x10c] ss:$16 sps:$4 sm:$0xff]  }
  0x11   : > { %800 = vmatprep.subr.bf16.mxu0 %v19499_v1  ;;  %17991 = vmatprep.subr.bf16.mxu1 %v19499_v1  ;;  %p487_p3 = scmp.lt.s32.totalorder %s486_s14, 95  ;;  %v19505_v6 = vld [vmem:[%s29076_s1 + $0x144] ss:$16 sps:$4 sm:$0xff]   ;;  %v19507_v7 = vld [vmem:[%s29076_s1 + $0x140] ss:$16 sps:$4 sm:$0xff]   ;;  %vm3714_vm1 = vcmask 1046528  }
  0x12   : > { %801 = vmatpush1.bf16.msra.mxu0 %v19501_v2  ;;  %17999 = vmatpush1.bf16.msra.mxu1 %v19501_v2  ;;  %v19508_v8 = vld [vmem:[%s29076_s1 + $0x164] ss:$16 sps:$4 sm:$0xff]   ;;  %v19510_v9 = vld [vmem:[%s29076_s1 + $0x160] ss:$16 sps:$4 sm:$0xff]   ;;  %v19526_v24 = vld [vmem:[%s29076_s1 + $0x108] ss:$16 sps:$4 sm:$0xff]  }
  0x13   : > { %802 = vmatprep.subr.bf16.mxu0 %v19502_v4  ;;  %17992 = vmatprep.subr.bf16.mxu1 %v19502_v4  ;;  %s29917_s14 = smov (!%p487_p3, %s486_s14), 95  ;;  %v19511_v10 = vld [vmem:[%s29076_s1 + $0x184] ss:$16 sps:$4 sm:$0xff]   ;;  %v19513_v11 = vld [vmem:[%s29076_s1 + $0x180] ss:$16 sps:$4 sm:$0xff]   ;;  %s21169_s30 = smov 124  }
  0x14   : > { %s16495_s19 = sshll.u32 %s29917_s14, 2  ;;  %v19514_v12 = vld [vmem:[%s29076_s1 + $0x1a4] ss:$16 sps:$4 sm:$0xff]   ;;  %v19516_v13 = vld [vmem:[%s29076_s1 + $0x1a0] ss:$16 sps:$4 sm:$0xff]   ;;  %vm7289_vm2 = vcmask 1045504  }
  0x15   : > { %s21295_s26 = scalar_lea.vmem %s29075_s0, %s16495_s19  ;;  %v19517_v14 = vld [vmem:[%s29076_s1 + $0x1c4] ss:$16 sps:$4 sm:$0xff]   ;;  %v19519_v15 = vld [vmem:[%s29076_s1 + $0x1c0] ss:$16 sps:$4 sm:$0xff]   ;;  %v19534_v26 = vld [vmem:[%s29076_s1 + $0x12c] ss:$16 sps:$4 sm:$0xff]  }
  0x16   : > { %803 = vmatpush1.bf16.msra.mxu0 %v19504_v5  ;;  %18000 = vmatpush1.bf16.msra.mxu1 %v19504_v5  ;;  %v19520_v16 = vld [vmem:[%s29076_s1 + $0x1e4] ss:$16 sps:$4 sm:$0xff]   ;;  %v19522_v17 = vld [vmem:[%s29076_s1 + $0x1e0] ss:$16 sps:$4 sm:$0xff]   ;;  %v19532_v28 = vld [vmem:[%s29076_s1 + $0x128] ss:$16 sps:$4 sm:$0xff]  }
  0x17   : > { %804 = vmatprep.subr.bf16.mxu0 %v19505_v6  ;;  %17993 = vmatprep.subr.bf16.mxu1 %v19505_v6  ;;  %v544_v18 = vld [vmem:[%s21295_s26 + $0x40] sm:$0xf]  ;;  %v545_v19 = vld [vmem:[%s21295_s26 + $0x44] sm:$0xf]  ;;  %v19542_v30 = vld [vmem:[%s29076_s1 + $0x14c] ss:$16 sps:$4 sm:$0xff]  }
  0x18   : > { %v19531_v21 = vld [vmem:[%s29076_s1 + $0x4] ss:$16 sps:$4 sm:$0xff]   ;;  %v21335_v23 = vcombine.low %v544_v18, %v545_v19  ;;  %v19529_v25 = vld [vmem:[%s29076_s1] ss:$16 sps:$4 sm:$0xff]   ;;  %v21366_v32 = vld [vmem:[%s21295_s26 + $0x48] sm:$0xff]   ;;  %vm5865_vm3 = vcmask 1014784  }
  0x19   : > { %v21333_v22 = vld [vmem:[%s21295_s26 + $0x60] sm:$0xff]   ;;  %v21369_v33 = vld [vmem:[%s21295_s26 + $0x68] sm:$0xff]   ;;  %v21400_v42 = vld [vmem:[%s21295_s26 + $0x50] sm:$0xff]   ;;  %vm2042_vm0 = vsmask.f32 7424  ;;  %vm6235_vm4 = vcmask 1043456  }
  0x1a   : > { %805 = vmatpush1.bf16.msra.mxu0 %v19507_v7  ;;  %18001 = vmatpush1.bf16.msra.mxu1 %v19507_v7  ;;  %v19537_v27 = vld [vmem:[%s29076_s1 + $0x24] ss:$16 sps:$4 sm:$0xff]   ;;  %v19535_v29 = vld [vmem:[%s29076_s1 + $0x20] ss:$16 sps:$4 sm:$0xff]   ;;  %v19540_v34 = vld [vmem:[%s29076_s1 + $0x148] ss:$16 sps:$4 sm:$0xff]  }
  0x1b   : > { %806 = vmatprep.subr.bf16.mxu0 %v19508_v8  ;;  %17994 = vmatprep.subr.bf16.mxu1 %v19508_v8  ;;  %v19545_v31 = vld [vmem:[%s29076_s1 + $0x44] ss:$16 sps:$4 sm:$0xff]   ;;  %v19543_v35 = vld [vmem:[%s29076_s1 + $0x40] ss:$16 sps:$4 sm:$0xff]   ;;  %v19548_v36 = vld [vmem:[%s29076_s1 + $0x16c] ss:$16 sps:$4 sm:$0xff]  }
  0x1c   : > { %v19551_v37 = vld [vmem:[%s29076_s1 + $0x64] ss:$16 sps:$4 sm:$0xff]   ;;  %v19546_v38 = vld [vmem:[%s29076_s1 + $0x168] ss:$16 sps:$4 sm:$0xff]   ;;  %v19549_v39 = vld [vmem:[%s29076_s1 + $0x60] ss:$16 sps:$4 sm:$0xff]  }
  0x1d   : > { %v19556_v40 = vld [vmem:[%s29076_s1 + $0x18c] ss:$16 sps:$4 sm:$0xff]   ;;  %v19559_v41 = vld [vmem:[%s29076_s1 + $0x84] ss:$16 sps:$4 sm:$0xff]   ;;  %v19554_v44 = vld [vmem:[%s29076_s1 + $0x188] ss:$16 sps:$4 sm:$0xff]  }
  0x1e   : > { %807 = vmatpush1.bf16.msra.mxu0 %v19510_v9  ;;  %18002 = vmatpush1.bf16.msra.mxu1 %v19510_v9  ;;  %v21403_v43 = vld [vmem:[%s21295_s26 + $0x70] sm:$0xff]   ;;  %v19562_v46 = vld [vmem:[%s29076_s1 + $0x1ac] ss:$16 sps:$4 sm:$0xff]   ;;  %v19560_v48 = vld [vmem:[%s29076_s1 + $0x1a8] ss:$16 sps:$4 sm:$0xff]   ;;  %vm6236_vm5 = vcmask 949252  }
  0x1f   : > { %808 = vmatprep.subr.bf16.mxu0 %v19511_v10  ;;  %17995 = vmatprep.subr.bf16.mxu1 %v19511_v10  ;;  %v19557_v45 = vld [vmem:[%s29076_s1 + $0x80] ss:$16 sps:$4 sm:$0xff]   ;;  %v19565_v47 = vld [vmem:[%s29076_s1 + $0xa4] ss:$16 sps:$4 sm:$0xff]   ;;  %v558_v50 = vld [vmem:[%s21295_s26 + $0x78] sm:$0xf] }
  0x20   : > { %v19563_v49 = vld [vmem:[%s29076_s1 + $0xa0] ss:$16 sps:$4 sm:$0xff]   ;;  %v559_v51 = vld [vmem:[%s21295_s26 + $0x7c] sm:$0x7]  ;;  %v19574_v53 = vld [vmem:[%s29076_s1 + $0xc4] ss:$16 sps:$4 sm:$0xff]  }
  0x21   : > { %v19571_v52 = vld [vmem:[%s29076_s1 + $0x1cc] ss:$16 sps:$4 sm:$0xff]   ;;  %v19569_v55 = vld [vmem:[%s29076_s1 + $0x1c8] ss:$16 sps:$4 sm:$0xff]   ;;  %v21441_v56 = vcombine.low %v558_v50, %v559_v51  ;;  %v19572_v57 = vld [vmem:[%s29076_s1 + $0xc0] ss:$16 sps:$4 sm:$0xff]  }
  0x22   : > { %809 = vmatpush1.bf16.msra.mxu0 %v19513_v11  ;;  %18003 = vmatpush1.bf16.msra.mxu1 %v19513_v11  ;;  %v21436_v54 = vld [vmem:[%s21295_s26 + $0x58] sm:$0xff]   ;;  %v19580_v59 = vld [vmem:[%s29076_s1 + $0xe4] ss:$16 sps:$4 sm:$0xff]   ;;  %v19578_v61 = vld [vmem:[%s29076_s1 + $0xe0] ss:$16 sps:$4 sm:$0xff]   ;;  %vm6267_vm6 = vcmask 1042432  }
  0x23   : > { %810 = vmatprep.subr.bf16.mxu0 %v19514_v12  ;;  %17996 = vmatprep.subr.bf16.mxu1 %v19514_v12  ;;  %v19577_v58 = vld [vmem:[%s29076_s1 + $0x1ec] ss:$16 sps:$4 sm:$0xff]   ;;  %v19575_v60 = vld [vmem:[%s29076_s1 + $0x1e8] ss:$16 sps:$4 sm:$0xff]   ;;  %v496_v62 = vld [vmem:[%s21295_s26] sm:$0xf] }
  0x24   : > { %v497_v63 = vld [vmem:[%s21295_s26 + $0x4] sm:$0xf]  ;;  %v19584_v0 = vld [vmem:[%s29076_s1 + $0xc] ss:$16 sps:$4 sm:$0xff]   ;;  %v19582_v4 = vld [vmem:[%s29076_s1 + $0x8] ss:$16 sps:$4 sm:$0xff]  }
  0x25   : > { %v19603_v1 = vld [vmem:[%s29076_s1 + $0x204] ss:$16 sps:$4 sm:$0xff]   ;;  %v21470_v2 = vcombine.low %v496_v62, %v497_v63  ;;  %v19588_v5 = vld [vmem:[%s29076_s1 + $0x2c] ss:$16 sps:$4 sm:$0xff]   ;;  %v19601_v6 = vld [vmem:[%s29076_s1 + $0x200] ss:$16 sps:$4 sm:$0xff]  }
  0x26   : > { %811 = vmatpush1.bf16.msra.mxu0 %v19516_v13  ;;  %18004 = vmatpush1.bf16.msra.mxu1 %v19516_v13  ;;  %v19606_v7 = vld [vmem:[%s29076_s1 + $0x224] ss:$16 sps:$4 sm:$0xff]   ;;  %v19586_v8 = vld [vmem:[%s29076_s1 + $0x28] ss:$16 sps:$4 sm:$0xff]   ;;  %v19592_v9 = vld [vmem:[%s29076_s1 + $0x4c] ss:$16 sps:$4 sm:$0xff]  }
  0x27   : > { %812 = vmatprep.subr.bf16.mxu0 %v19517_v14  ;;  %17997 = vmatprep.subr.bf16.mxu1 %v19517_v14  ;;  %v19604_v10 = vld [vmem:[%s29076_s1 + $0x220] ss:$16 sps:$4 sm:$0xff]   ;;  %v21498_v11 = vld [vmem:[%s21295_s26 + $0x8] sm:$0xff]   ;;  %v19613_v14 = vld [vmem:[%s29076_s1 + $0x244] ss:$16 sps:$4 sm:$0xff]   ;;  %vm6270_vm8 = vcmask 1046532  }
  0x28   : > { %v19590_v12 = vld [vmem:[%s29076_s1 + $0x48] ss:$16 sps:$4 sm:$0xff]   ;;  %v19596_v13 = vld [vmem:[%s29076_s1 + $0x6c] ss:$16 sps:$4 sm:$0xff]   ;;  %v19614_v19 = vld [vmem:[%s29076_s1 + $0x260] ss:$16 sps:$4 sm:$0xff]  }
  0x29   : > { %v19600_v18 = vld [vmem:[%s29076_s1 + $0x8c] ss:$16 sps:$4 sm:$0xff]   ;;  %v19658_v51 = vld [vmem:[%s29076_s1 + $0x300] ss:$16 sps:$4 sm:$0xff]   ;;  %v19673_v62 = vld [vmem:[%s29076_s1 + $0x364] ss:$16 sps:$4 sm:$0xff]  }
  0x2a   : > { %813 = vmatpush1.bf16.msra.mxu0 %v19519_v15  ;;  %18005 = vmatpush1.bf16.msra.mxu1 %v19519_v15  ;;  %v19611_v15 = vld [vmem:[%s29076_s1 + $0x240] ss:$16 sps:$4 sm:$0xff]   ;;  %v19645_v50 = vld [vmem:[%s29076_s1 + $0x22c] ss:$16 sps:$4 sm:$0xff]   ;;  %vm6268_vm7 = vsmask.f32 2304  ;;  %vm24699_vm10 = vmor %vm6236_vm5, %vm6235_vm4 }
  0x2b   : > { %814 = vmatprep.subr.bf16.mxu0 %v19520_v16  ;;  %17998 = vmatprep.subr.bf16.mxu1 %v19520_v16  ;;  %v19616_v16 = vld [vmem:[%s29076_s1 + $0x264] ss:$16 sps:$4 sm:$0xff]   ;;  %v19657_v63 = vld [vmem:[%s29076_s1 + $0x28c] ss:$16 sps:$4 sm:$0xff]   ;;  %vm6271_vm9 = vsmask.f32 6400  ;;  %vm24735_vm11 = vmand %vm6267_vm6, %vm6268_vm7 }
  0x2c   : > { %vm6277_vm12 = vcmask 948228   ;;  %vm24746_vm13 = vmand %vm6270_vm8, %vm6271_vm9  ;;  %vm7691_vm5 = vcmask 1041408   ;;  %vm7666_vm6 = vcmask 949248   ;;  %s21170_s24 = smov 120   ;;  %vm11754_vm7 = vsmask.f32 3328 }
  0x2d   : > { %vm6273_vm14 = vmor %vm24746_vm13, %vm24735_vm11  ;;  %vm11756_vm8 = vcmask 1047556   ;;  %s21171_s19 = smov 112   ;;  %s21174_s16 = smov 96  }
  0x2e   : > { %815 = vmatpush1.bf16.msra.mxu0 %v19522_v17  ;;  %18006 = vmatpush1.bf16.msra.mxu1 %v19522_v17  ;;  %v19594_v17 = vld [vmem:[%s29076_s1 + $0x68] ss:$16 sps:$4 sm:$0xff]   ;;  %vm24825_vm15 = vmand %vm6277_vm12, %vm6271_vm9  ;;  %vm11724_vm12 = vcmask 785412   ;;  %p492_p4 = scmp.lt.s32.totalorder %s21264_s21, 1 }
  0x2f   : > { %913 = vmatprep.subr.bf16.mxu1 %v19528_v20  ;;  %1234 = vmatprep.subr.bf16.mxu0 %v19531_v21  ;;  %v21529_v20 = vld [vmem:[%s21295_s26 + $0x10] sm:$0xff]   ;;  %v19598_v21 = vld [vmem:[%s29076_s1 + $0x88] ss:$16 sps:$4 sm:$0xff]   ;;  %vm27203_vm9 = vmand %vm6235_vm4, %vm11754_vm7  ;;  %vm14313_vm7 = vsmask.f32 1280 }
  0x30   : > { %vm27276_vm13 = vmor %vm11724_vm12, %vm6235_vm4  ;;  %s29919_s21 = smov (!%p492_p4, %s21264_s21), 1 }
  0x31   : > { %833 = vmatmul.mubr.bf16.vlgmr.msra.gmra.mrb[0].mxu0 %v21335_v23  ;;  %873 = vmatmul.mubr.bf16.vlgmr.msra.gmra.mrb[0].mxu1 %v21333_v22  ;;  %s494_s29 = scalar_lea.vmem %s29090_s15, %s29919_s21 }
  0x32   : > { %914 = vmatpush1.bf16.msra.mxu1 %v19526_v24  ;;  %1235 = vmatpush1.bf16.msra.mxu0 %v19529_v25  ;;  %v19623_v24 = vld [vmem:[%s29076_s1 + $0x284] ss:$16 sps:$4 sm:$0xff]   ;;  %v19610_v25 = vld [vmem:[%s29076_s1 + $0xac] ss:$16 sps:$4 sm:$0xff]  }
  0x33   : > { %915 = vmatprep.subr.bf16.mxu1 %v19534_v26  ;;  %1236 = vmatprep.subr.bf16.mxu0 %v19537_v27  ;;  %v19621_v26 = vld [vmem:[%s29076_s1 + $0x280] ss:$16 sps:$4 sm:$0xff]   ;;  %v19626_v27 = vld [vmem:[%s29076_s1 + $0x2a4] ss:$16 sps:$4 sm:$0xff]  }
  0x34   : > { %842 = vmatprep.mubr.bf16.mxu0 %v29091_v3  ;;  %882 = vmatprep.mubr.bf16.mxu1 %v29091_v3 }
  0x36   : > { %916 = vmatpush1.bf16.msra.mxu1 %v19532_v28  ;;  %1237 = vmatpush1.bf16.msra.mxu0 %v19535_v29  ;;  %v19608_v28 = vld [vmem:[%s29076_s1 + $0xa8] ss:$16 sps:$4 sm:$0xff]   ;;  %v19620_v29 = vld [vmem:[%s29076_s1 + $0xcc] ss:$16 sps:$4 sm:$0xff]  }
  0x37   : > { %917 = vmatprep.subr.bf16.mxu1 %v19542_v30  ;;  %1238 = vmatprep.subr.bf16.mxu0 %v19545_v31  ;;  %v19624_v30 = vld [vmem:[%s29076_s1 + $0x2a0] ss:$16 sps:$4 sm:$0xff]   ;;  %v21560_v31 = vld [vmem:[%s21295_s26 + $0x18] sm:$0xff]  }
  0x39   : > { %843 = vmatmul.mubr.bf16.gmra.mrb[4].mxu0 %v21366_v32  ;;  %883 = vmatmul.mubr.bf16.gmra.mrb[4].mxu1 %v21369_v33 }
  0x3a   : > { %918 = vmatpush1.bf16.msra.mxu1 %v19540_v34  ;;  %1239 = vmatpush1.bf16.msra.mxu0 %v19543_v35  ;;  %v19631_v34 = vld [vmem:[%s29076_s1 + $0xec] ss:$16 sps:$4 sm:$0xff]   ;;  %v19634_v35 = vld [vmem:[%s29076_s1 + $0x2c4] ss:$16 sps:$4 sm:$0xff]  }
  0x3b   : > { %919 = vmatprep.subr.bf16.mxu1 %v19548_v36  ;;  %1240 = vmatprep.subr.bf16.mxu0 %v19551_v37  ;;  %v19632_v36 = vld [vmem:[%s29076_s1 + $0x2c0] ss:$16 sps:$4 sm:$0xff]   ;;  %v19637_v37 = vld [vmem:[%s29076_s1 + $0x2e4] ss:$16 sps:$4 sm:$0xff]  }
  0x3c   : > { %852 = vmatprep.mubr.bf16.mxu0 %v29091_v3  ;;  %892 = vmatprep.mubr.bf16.mxu1 %v29091_v3 }
  0x3e   : > { %920 = vmatpush1.bf16.msra.mxu1 %v19546_v38  ;;  %1241 = vmatpush1.bf16.msra.mxu0 %v19549_v39  ;;  %v19629_v38 = vld [vmem:[%s29076_s1 + $0xe8] ss:$16 sps:$4 sm:$0xff]   ;;  %v19635_v39 = vld [vmem:[%s29076_s1 + $0x2e0] ss:$16 sps:$4 sm:$0xff]  }
  0x3f   : > { %921 = vmatprep.subr.bf16.mxu1 %v19556_v40  ;;  %1242 = vmatprep.subr.bf16.mxu0 %v19559_v41  ;;  %v19641_v40 = vld [vmem:[%s29076_s1 + $0x20c] ss:$16 sps:$4 sm:$0xff]   ;;  %v21591_v41 = vld [vmem:[%s21295_s26 + $0x20] sm:$0xff]  }
  0x41   : > { %853 = vmatmul.mubr.bf16.gmra.mrb[8].mxu0 %v21400_v42  ;;  %893 = vmatmul.mubr.bf16.gmra.mrb[8].mxu1 %v21403_v43 }
  0x42   : > { %922 = vmatpush1.bf16.msra.mxu1 %v19554_v44  ;;  %1243 = vmatpush1.bf16.msra.mxu0 %v19557_v45  ;;  %v21601_v44 = vld [vmem:[%s21295_s26 + $0x28] sm:$0xff]   ;;  %v510_v45 = vld [vmem:[%s21295_s26 + $0x38] sm:$0xf] }
  0x43   : > { %923 = vmatprep.subr.bf16.mxu1 %v19562_v46  ;;  %1244 = vmatprep.subr.bf16.mxu0 %v19565_v47  ;;  %v511_v46 = vld [vmem:[%s21295_s26 + $0x3c] sm:$0x7] }
  0x44   : > { %862 = vmatprep.mubr.bf16.mxu0 %v29091_v3  ;;  %902 = vmatprep.mubr.bf16.mxu1 %v29091_v3  ;;  %v21616_v47 = vcombine.low %v510_v45, %v511_v46  ;;  %v2055_v45 = vshrl.u32 %v21498_v11, 16  ;;  %v2059_v46 = vshll.u32 %v21529_v20, 16 }
  0x46   : > { %924 = vmatpush1.bf16.msra.mxu1 %v19560_v48  ;;  %1245 = vmatpush1.bf16.msra.mxu0 %v19563_v49  ;;  %v1461_v48 = vld [vmem:[%s21295_s26 + $0x84] sm:$0xf] }
  0x47   : > { %925 = vmatprep.subr.bf16.mxu1 %v19571_v52  ;;  %1246 = vmatprep.subr.bf16.mxu0 %v19574_v53  ;;  %v19643_v52 = vld [vmem:[%s29076_s1 + $0x228] ss:$16 sps:$4 sm:$0xff]   ;;  %v19649_v53 = vld [vmem:[%s29076_s1 + $0x24c] ss:$16 sps:$4 sm:$0xff]  }
  0x49   : > { %863 = vmatmul.mubr.bf16.gmra.mrb[12].mxu0 %v21436_v54  ;;  %903 = vmatmul.mubr.bf16.gmra.mrb[12].mxu1 %v21441_v56 }
  0x4a   : > { %926 = vmatpush1.bf16.msra.mxu1 %v19569_v55  ;;  %1247 = vmatpush1.bf16.msra.mxu0 %v19572_v57  ;;  %v19661_v55 = vld [vmem:[%s29076_s1 + $0x320] ss:$16 sps:$4 sm:$0xff]   ;;  %v19647_v57 = vld [vmem:[%s29076_s1 + $0x248] ss:$16 sps:$4 sm:$0xff]  }
  0x4b   : > { %927 = vmatprep.subr.bf16.mxu1 %v19577_v58  ;;  %1248 = vmatprep.subr.bf16.mxu0 %v19580_v59  ;;  %v19670_v58 = vld [vmem:[%s29076_s1 + $0x344] ss:$16 sps:$4 sm:$0xff]   ;;  %v19653_v59 = vld [vmem:[%s29076_s1 + $0x26c] ss:$16 sps:$4 sm:$0xff]  }
  0x4c   : > { %945 = vmatprep.mubr.bf16.mxu1 %v29091_v3  ;;  %1266 = vmatprep.mubr.bf16.mxu0 %v29091_v3 }
  0x4e   : > { %928 = vmatpush1.bf16.msra.mxu1 %v19575_v60  ;;  %1249 = vmatpush1.bf16.msra.mxu0 %v19578_v61  ;;  %v19668_v60 = vld [vmem:[%s29076_s1 + $0x340] ss:$16 sps:$4 sm:$0xff]   ;;  %v19651_v61 = vld [vmem:[%s29076_s1 + $0x268] ss:$16 sps:$4 sm:$0xff]  }
  0x4f   : > { %1347 = vmatprep.subr.bf16.mxu1 %v19584_v0  ;;  %1716 = vmatprep.subr.bf16.mxu0 %v19603_v1  ;;  %v19671_v0 = vld [vmem:[%s29076_s1 + $0x360] ss:$16 sps:$4 sm:$0xff]  }
  0x50   : > { %v21683_v1 = vld [vmem:[%s21295_s26 + $0x90] sm:$0xff]  }
  0x51   : > { %946 = vmatmul.mubr.bf16.vlgmr.msra.gmra.mrb[16].mxu1 %v21335_v23  ;;  %1267 = vmatmul.mubr.bf16.vlgmr.msra.gmra.mrb[0].mxu0 %v21470_v2 }
  0x52   : > { %1348 = vmatpush1.bf16.msra.mxu1 %v19582_v4  ;;  %955 = vmatprep.mubr.bf16.mxu1 %v29091_v3  ;;  %v19655_v4 = vld [vmem:[%s29076_s1 + $0x288] ss:$16 sps:$4 sm:$0xff]  }
  0x53   : > { %1276 = vmatprep.mubr.bf16.mxu0 %v29091_v3  ;;  %1349 = vmatprep.subr.bf16.mxu1 %v19588_v5  ;;  %v19680_v5 = vld [vmem:[%s29076_s1 + $0x384] ss:$16 sps:$4 sm:$0xff]  }
  0x54   : > { %1717 = vmatpush1.bf16.msra.mxu0 %v19601_v6  ;;  %v19667_v6 = vld [vmem:[%s29076_s1 + $0x2ac] ss:$16 sps:$4 sm:$0xff]  }
  0x55   : > { %1718 = vmatprep.subr.bf16.mxu0 %v19606_v7  ;;  %v19678_v7 = vld [vmem:[%s29076_s1 + $0x380] ss:$16 sps:$4 sm:$0xff]  }
  0x56   : > { %1350 = vmatpush1.bf16.msra.mxu1 %v19586_v8  ;;  %v19665_v8 = vld [vmem:[%s29076_s1 + $0x2a8] ss:$16 sps:$4 sm:$0xff]  }
  0x57   : > { %1351 = vmatprep.subr.bf16.mxu1 %v19592_v9  ;;  %v19683_v9 = vld [vmem:[%s29076_s1 + $0x3a4] ss:$16 sps:$4 sm:$0xff]  }
  0x58   : > { %1719 = vmatpush1.bf16.msra.mxu0 %v19604_v10  ;;  %v19677_v10 = vld [vmem:[%s29076_s1 + $0x2cc] ss:$16 sps:$4 sm:$0xff]  }
  0x59   : > { %956 = vmatmul.mubr.bf16.gmra.mrb[20].mxu1 %v21366_v32  ;;  %1277 = vmatmul.mubr.bf16.gmra.mrb[4].mxu0 %v21498_v11  ;;  %v19618_v32 = vld [vmem:[%s29076_s1 + $0xc8] ss:$16 sps:$4 sm:$0xff]  }
  0x5a   : > { %965 = vmatprep.mubr.bf16.mxu1 %v29091_v3  ;;  %1286 = vmatprep.mubr.bf16.mxu0 %v29091_v3 }
  0x5b   : > { %1352 = vmatpush1.bf16.msra.mxu1 %v19590_v12  ;;  %1720 = vmatprep.subr.bf16.mxu0 %v19613_v14  ;;  %v19681_v12 = vld [vmem:[%s29076_s1 + $0x3a0] ss:$16 sps:$4 sm:$0xff]   ;;  %v19675_v14 = vld [vmem:[%s29076_s1 + $0x2c8] ss:$16 sps:$4 sm:$0xff]  }
  0x5c   : > { %1353 = vmatprep.subr.bf16.mxu1 %v19596_v13  ;;  %1721 = vmatpush1.bf16.msra.mxu0 %v19611_v15  ;;  %v21714_v13 = vld [vmem:[%s21295_s26 + $0x98] sm:$0xff]   ;;  %v19691_v15 = vld [vmem:[%s29076_s1 + $0x3c4] ss:$16 sps:$4 sm:$0xff]  }
  0x5d   : > { %1722 = vmatprep.subr.bf16.mxu0 %v19616_v16  ;;  %v19688_v16 = vld [vmem:[%s29076_s1 + $0x2ec] ss:$16 sps:$4 sm:$0xff]  }
  0x5f   : > { %1354 = vmatpush1.bf16.msra.mxu1 %v19594_v17  ;;  %v19689_v17 = vld [vmem:[%s29076_s1 + $0x3c0] ss:$16 sps:$4 sm:$0xff]  }
  0x60   : > { %1355 = vmatprep.subr.bf16.mxu1 %v19600_v18  ;;  %1723 = vmatpush1.bf16.msra.mxu0 %v19614_v19  ;;  %v19686_v18 = vld [vmem:[%s29076_s1 + $0x2e8] ss:$16 sps:$4 sm:$0xff]   ;;  %v19694_v19 = vld [vmem:[%s29076_s1 + $0x3e4] ss:$16 sps:$4 sm:$0xff]  }
  0x61   : > { %966 = vmatmul.mubr.bf16.gmra.mrb[24].mxu1 %v21400_v42  ;;  %1287 = vmatmul.mubr.bf16.gmra.mrb[8].mxu0 %v21529_v20  ;;  %v19660_v42 = vld [vmem:[%s29076_s1 + $0x304] ss:$16 sps:$4 sm:$0xff]  }
  0x62   : > { %975 = vmatprep.mubr.bf16.mxu1 %v29091_v3  ;;  %1296 = vmatprep.mubr.bf16.mxu0 %v29091_v3 }
  0x63   : > { %1356 = vmatpush1.bf16.msra.mxu1 %v19598_v21  ;;  %1724 = vmatprep.subr.bf16.mxu0 %v19623_v24  ;;  %v19692_v21 = vld [vmem:[%s29076_s1 + $0x3e0] ss:$16 sps:$4 sm:$0xff]   ;;  %v19697_v24 = vld [vmem:[%s29076_s1 + $0x30c] ss:$16 sps:$4 sm:$0xff]  }
  0x64   : > { %1357 = vmatprep.subr.bf16.mxu1 %v19610_v25  ;;  %1725 = vmatpush1.bf16.msra.mxu0 %v19621_v26  ;;  %v21745_v25 = vld [vmem:[%s21295_s26 + $0xa0] sm:$0xff]  }
  0x65   : > { %1726 = vmatprep.subr.bf16.mxu0 %v19626_v27  ;;  %v19712_v26 = vld [vmem:[%s29076_s1 + $0x404] ss:$16 sps:$4 sm:$0xff]   ;;  %v21755_v27 = vld [vmem:[%s21295_s26 + $0xa8] sm:$0xff]  }
  0x67   : > { %1358 = vmatpush1.bf16.msra.mxu1 %v19608_v28  ;;  %v21762_v28 = vld [vmem:[%s21295_s26 + $0xb0] sm:$0xff]  }
  0x68   : > { %1359 = vmatprep.subr.bf16.mxu1 %v19620_v29  ;;  %1727 = vmatpush1.bf16.msra.mxu0 %v19624_v30  ;;  %v1474_v29 = vld [vmem:[%s21295_s26 + $0xb8] sm:$0xf]  ;;  %v1475_v30 = vld [vmem:[%s21295_s26 + $0xbc] sm:$0x7] }
  0x69   : > { %976 = vmatmul.mubr.bf16.gmra.mrb[28].mxu1 %v21436_v54  ;;  %1297 = vmatmul.mubr.bf16.gmra.mrb[12].mxu0 %v21560_v31  ;;  %v19663_v54 = vld [vmem:[%s29076_s1 + $0x324] ss:$16 sps:$4 sm:$0xff]  }
  0x6a   : > { %985 = vmatprep.mubr.bf16.mxu1 %v29091_v3  ;;  %1306 = vmatprep.mubr.bf16.mxu0 %v29091_v3 }
  0x6b   : > { %1360 = vmatpush1.bf16.msra.mxu1 %v19618_v32  ;;  %1728 = vmatprep.subr.bf16.mxu0 %v19634_v35  ;;  %v2046_v32 = vshll.u32 %v21470_v2, 16  ;;  %v2044_v35 = vshrl.u32 %v21470_v2, 16 }
  0x6c   : > { %1361 = vmatprep.subr.bf16.mxu1 %v19631_v34  ;;  %1729 = vmatpush1.bf16.msra.mxu0 %v19632_v36  ;;  %v21771_v34 = vcombine.low %v1474_v29, %v1475_v30 }
  0x6d   : > { %1730 = vmatprep.subr.bf16.mxu0 %v19637_v37  ;;  %v2048_v36 = vrot.slane %v2046_v32, 1  ;;  %v2051_v37 = vshll.u32 %v21498_v11, 16  ;;  %v19745_v32 = vld [vmem:[%s29076_s1 + $0x40c] ss:$16 sps:$4 sm:$0xff]  }
  0x6f   : > { %1362 = vmatpush1.bf16.msra.mxu1 %v19629_v38  ;;  %v2049_v38 = vor.u32 %v2048_v36, %v2044_v35  ;;  %v2006_v35 = vld [vmem:[%s21295_s26 + $0x3c] sm:$0xf] }
  0x70   : > { %1731 = vmatpush1.bf16.msra.mxu0 %v19635_v39  ;;  %1829 = vmatprep.subr.bf16.mxu1 %v19641_v40  ;;  %v2053_v39 = vrot.slane %v2051_v37, 1  ;;  %v19695_v40 = vld [vmem:[%s29076_s1 + $0x308] ss:$16 sps:$4 sm:$0xff]  }
  0x71   : > { %986 = vmatmul.mubr.bf16.gmra.mrb[32].mxu1 %v21333_v22  ;;  %1307 = vmatmul.mubr.bf16.gmra.mrb[16].mxu0 %v21591_v41  ;;  %v21608_v22 = vld [vmem:[%s21295_s26 + $0x30] sm:$0xff]   ;;  %v21069_v37 = vld [vmem:[%s21295_s26 + $0x28] sm:$0xff]  }
  0x72   : > { %995 = vmatprep.mubr.bf16.mxu1 %v29091_v3  ;;  %1316 = vmatprep.mubr.bf16.mxu0 %v29091_v3 }
  0x73   : > { %2274 = vmatprep.subr.bf16.mxu0 %v19660_v42  ;;  %v21786_v42 = vsel %vm2042_vm0, %v2049_v38, %v2053_v39  ;;  %v2087_v38 = vshrl.u32 %v21069_v37, 16  ;;  %v19772_v37 = vld [vmem:[%s29076_s1 + $0x564] ss:$16 sps:$4 sm:$0xff]  }
  0x79   : > { %996 = vmatmul.mubr.bf16.gmra.mrb[36].mxu1 %v21369_v33  ;;  %1317 = vmatmul.mubr.bf16.gmra.mrb[20].mxu0 %v21601_v44  ;;  %v1460_v33 = vld [vmem:[%s21295_s26 + $0x80] sm:$0xf] }
  0x7a   : > { %1005 = vmatprep.mubr.bf16.mxu1 %v29091_v3  ;;  %1326 = vmatprep.mubr.bf16.mxu0 %v29091_v3  ;;  %v21627_v49 = vcombine.low %v1460_v33, %v1461_v48  ;;  %v19698_v33 = vld [vmem:[%s29076_s1 + $0x328] ss:$16 sps:$4 sm:$0xff]   ;;  %v19703_v48 = vld [vmem:[%s29076_s1 + $0x34c] ss:$16 sps:$4 sm:$0xff]  }
  0x81   : > { %1006 = vmatmul.mubr.bf16.gmra.mrb[40].mxu1 %v21403_v43  ;;  %1327 = vmatmul.mubr.bf16.gmra.mrb[24].mxu0 %v21608_v22  ;;  %v19639_v43 = vld [vmem:[%s29076_s1 + $0x208] ss:$16 sps:$4 sm:$0xff]  }
  0x82   : > { %1015 = vmatprep.mubr.bf16.mxu1 %v29091_v3  ;;  %1336 = vmatprep.mubr.bf16.mxu0 %v29091_v3 }
  0x89   : > { %1016 = vmatmul.mubr.bf16.gmra.mrb[44].mxu1 %v21441_v56  ;;  %1337 = vmatmul.mubr.bf16.gmra.mrb[28].mxu0 %v21616_v47  ;;  %v21652_v56 = vld [vmem:[%s21295_s26 + $0x88] sm:$0xff]  }
  0x8a   : > { %1379 = vmatprep.mubr.bf16.mxu1 %v29091_v3  ;;  %1748 = vmatprep.mubr.bf16.mxu0 %v29091_v3 }
  0x91   : > { %1380 = vmatmul.mubr.bf16.vlgmr.msra.gmra.mrb[16].mxu1 %v21470_v2  ;;  %1749 = vmatmul.mubr.bf16.vlgmr.msra.gmra.mrb[0].mxu0 %v21627_v49  ;;  %v19700_v2 = vld [vmem:[%s29076_s1 + $0x32c] ss:$16 sps:$4 sm:$0xff]  }
  0x92   : > { %1830 = vmatpush1.bf16.msra.mxu1 %v19639_v43  ;;  %1389 = vmatprep.mubr.bf16.mxu1 %v29091_v3  ;;  %v2057_v43 = vor.u32 %v2055_v45, %v2053_v39  ;;  %v2091_v39 = vshll.u32 %v21608_v22, 16 }
  0x93   : > { %1758 = vmatprep.mubr.bf16.mxu0 %v29091_v3  ;;  %1831 = vmatprep.subr.bf16.mxu1 %v19645_v50  ;;  %v2061_v50 = vrot.slane %v2059_v46, 1 }
  0x94   : > { %2275 = vmatpush1.bf16.msra.mxu0 %v19658_v51  ;;  %v19713_v51 = vld [vmem:[%s29076_s1 + $0x420] ss:$16 sps:$4 sm:$0xff]  }
  0x95   : > { %2276 = vmatprep.subr.bf16.mxu0 %v19663_v54  ;;  %v21816_v54 = vsel %vm2042_vm0, %v2057_v43, %v2061_v50 }
  0x96   : > { %1832 = vmatpush1.bf16.msra.mxu1 %v19643_v52  ;;  %v19701_v52 = vld [vmem:[%s29076_s1 + $0x348] ss:$16 sps:$4 sm:$0xff]  }
  0x97   : > { %1833 = vmatprep.subr.bf16.mxu1 %v19649_v53  ;;  %v19721_v53 = vld [vmem:[%s29076_s1 + $0x444] ss:$16 sps:$4 sm:$0xff]  }
  0x98   : > { %2277 = vmatpush1.bf16.msra.mxu0 %v19661_v55  ;;  %v2063_v55 = vshrl.u32 %v21529_v20, 16 }
  0x99   : > { %1390 = vmatmul.mubr.bf16.gmra.mrb[20].mxu1 %v21498_v11  ;;  %1759 = vmatmul.mubr.bf16.gmra.mrb[4].mxu0 %v21652_v56  ;;  %v19715_v11 = vld [vmem:[%s29076_s1 + $0x424] ss:$16 sps:$4 sm:$0xff]  }
  0x9a   : > { %1399 = vmatprep.mubr.bf16.mxu1 %v29091_v3  ;;  %1768 = vmatprep.mubr.bf16.mxu0 %v29091_v3 }
  0x9b   : > { %1834 = vmatpush1.bf16.msra.mxu1 %v19647_v57  ;;  %2278 = vmatprep.subr.bf16.mxu0 %v19670_v58  ;;  %v2067_v57 = vshll.u32 %v21560_v31, 16  ;;  %v19706_v58 = vld [vmem:[%s29076_s1 + $0x36c] ss:$16 sps:$4 sm:$0xff]  }
  0x9c   : > { %1835 = vmatprep.subr.bf16.mxu1 %v19653_v59  ;;  %2279 = vmatpush1.bf16.msra.mxu0 %v19668_v60  ;;  %v19719_v59 = vld [vmem:[%s29076_s1 + $0x440] ss:$16 sps:$4 sm:$0xff]   ;;  %v19724_v60 = vld [vmem:[%s29076_s1 + $0x464] ss:$16 sps:$4 sm:$0xff]  }
  0x9d   : > { %2280 = vmatprep.subr.bf16.mxu0 %v19673_v62  ;;  %v2069_v62 = vrot.slane %v2067_v57, 1  ;;  %v2601_v57 = vshrl.u32 %v21335_v23, 16 }
  0x9f   : > { %1836 = vmatpush1.bf16.msra.mxu1 %v19651_v61  ;;  %v2065_v61 = vor.u32 %v2063_v55, %v2061_v50 }
  0xa0   : > { %1837 = vmatprep.subr.bf16.mxu1 %v19657_v63  ;;  %2281 = vmatpush1.bf16.msra.mxu0 %v19671_v0  ;;  %v19722_v63 = vld [vmem:[%s29076_s1 + $0x460] ss:$16 sps:$4 sm:$0xff]   ;;  %v19707_v0 = vld [vmem:[%s29076_s1 + $0x388] ss:$16 sps:$4 sm:$0xff]  }
  0xa1   : > { %1400 = vmatmul.mubr.bf16.gmra.mrb[24].mxu1 %v21529_v20  ;;  %1769 = vmatmul.mubr.bf16.gmra.mrb[8].mxu0 %v21683_v1  ;;  %v19704_v20 = vld [vmem:[%s29076_s1 + $0x368] ss:$16 sps:$4 sm:$0xff]  }
  0xa2   : > { %1409 = vmatprep.mubr.bf16.mxu1 %v29091_v3  ;;  %1778 = vmatprep.mubr.bf16.mxu0 %v29091_v3 }
  0xa3   : > { %1838 = vmatpush1.bf16.msra.mxu1 %v19655_v4  ;;  %2282 = vmatprep.subr.bf16.mxu0 %v19680_v5  ;;  %v19730_v4 = vld [vmem:[%s29076_s1 + $0x484] ss:$16 sps:$4 sm:$0xff]   ;;  %v21849_v5 = vsel %vm2042_vm0, %v2065_v61, %v2069_v62 }
  0xa4   : > { %1839 = vmatprep.subr.bf16.mxu1 %v19667_v6  ;;  %2283 = vmatpush1.bf16.msra.mxu0 %v19678_v7  ;;  %v2071_v6 = vshrl.u32 %v21560_v31, 16  ;;  %v2075_v7 = vshll.u32 %v21591_v41, 16 }
  0xa5   : > { %2284 = vmatprep.subr.bf16.mxu0 %v19683_v9  ;;  %v19728_v9 = vld [vmem:[%s29076_s1 + $0x480] ss:$16 sps:$4 sm:$0xff]  }
  0xa7   : > { %1840 = vmatpush1.bf16.msra.mxu1 %v19665_v8  ;;  %v19718_v8 = vld [vmem:[%s29076_s1 + $0x3ac] ss:$16 sps:$4 sm:$0xff]  }
  0xa8   : > { %1841 = vmatprep.subr.bf16.mxu1 %v19677_v10  ;;  %2285 = vmatpush1.bf16.msra.mxu0 %v19681_v12  ;;  %v19733_v10 = vld [vmem:[%s29076_s1 + $0x4a4] ss:$16 sps:$4 sm:$0xff]   ;;  %v2073_v12 = vor.u32 %v2071_v6, %v2069_v62 }
  0xa9   : > { %1410 = vmatmul.mubr.bf16.gmra.mrb[28].mxu1 %v21560_v31  ;;  %1779 = vmatmul.mubr.bf16.gmra.mrb[12].mxu0 %v21714_v13  ;;  %v19716_v31 = vld [vmem:[%s29076_s1 + $0x3a8] ss:$16 sps:$4 sm:$0xff]  }
  0xaa   : > { %1419 = vmatprep.mubr.bf16.mxu1 %v29091_v3  ;;  %1788 = vmatprep.mubr.bf16.mxu0 %v29091_v3 }
  0xab   : > { %1842 = vmatpush1.bf16.msra.mxu1 %v19675_v14  ;;  %2286 = vmatprep.subr.bf16.mxu0 %v19691_v15  ;;  %v2077_v14 = vrot.slane %v2075_v7, 1  ;;  %v19731_v15 = vld [vmem:[%s29076_s1 + $0x4a0] ss:$16 sps:$4 sm:$0xff]  }
  0xac   : > { %1843 = vmatprep.subr.bf16.mxu1 %v19688_v16  ;;  %2287 = vmatpush1.bf16.msra.mxu0 %v19689_v17  ;;  %v19725_v16 = vld [vmem:[%s29076_s1 + $0x3c8] ss:$16 sps:$4 sm:$0xff]   ;;  %v19739_v17 = vld [vmem:[%s29076_s1 + $0x4c4] ss:$16 sps:$4 sm:$0xff]  }
  0xad   : > { %2288 = vmatprep.subr.bf16.mxu0 %v19694_v19  ;;  %v2079_v19 = vshrl.u32 %v21591_v41, 16  ;;  %v21073_v7 = vld [vmem:[%s21295_s26 + $0x50] sm:$0xff]  }
  0xaf   : > { %1844 = vmatpush1.bf16.msra.mxu1 %v19686_v18  ;;  %v21882_v18 = vsel %vm2042_vm0, %v2073_v12, %v2077_v14  ;;  %v2081_v29 = vor.u32 %v2079_v19, %v2077_v14  ;;  %v19751_v12 = vld [vmem:[%s29076_s1 + $0x44c] ss:$16 sps:$4 sm:$0xff]   ;;  %v19763_v14 = vld [vmem:[%s29076_s1 + $0x524] ss:$16 sps:$4 sm:$0xff]   ;;  %v19749_v19 = vld [vmem:[%s29076_s1 + $0x448] ss:$16 sps:$4 sm:$0xff]  }
  0xb0   : > { %2289 = vmatpush1.bf16.msra.mxu0 %v19692_v21  ;;  %2387 = vmatprep.subr.bf16.mxu1 %v19697_v24  ;;  %v2083_v21 = vshll.u32 %v21601_v44, 16  ;;  %v19736_v24 = vld [vmem:[%s29076_s1 + $0x3ec] ss:$16 sps:$4 sm:$0xff]  }
  0xb1   : > { %1420 = vmatmul.mubr.bf16.gmra.mrb[32].mxu1 %v21591_v41  ;;  %1789 = vmatmul.mubr.bf16.gmra.mrb[16].mxu0 %v21745_v25  ;;  %v19734_v41 = vld [vmem:[%s29076_s1 + $0x3e8] ss:$16 sps:$4 sm:$0xff]  }
  0xb2   : > { %1429 = vmatprep.mubr.bf16.mxu1 %v29091_v3  ;;  %1798 = vmatprep.mubr.bf16.mxu0 %v29091_v3  ;;  %v2085_v30 = vrot.slane %v2083_v21, 1  ;;  %v19769_v21 = vld [vmem:[%s29076_s1 + $0x544] ss:$16 sps:$4 sm:$0xff]  }
  0xb3   : > { %2831 = vmatprep.subr.bf16.mxu0 %v19712_v26  ;;  %v19737_v26 = vld [vmem:[%s29076_s1 + $0x4c0] ss:$16 sps:$4 sm:$0xff]  }
  0xb4   : > { %v21910_v36 = vsel %vm2042_vm0, %v2081_v29, %v2085_v30  ;;  %v2089_v46 = vor.u32 %v2087_v38, %v2085_v30  ;;  %v19754_v30 = vld [vmem:[%s29076_s1 + $0x46c] ss:$16 sps:$4 sm:$0xff]  }
  0xb9   : > { %1430 = vmatmul.mubr.bf16.gmra.mrb[36].mxu1 %v21601_v44  ;;  %1799 = vmatmul.mubr.bf16.gmra.mrb[20].mxu0 %v21755_v27  ;;  %v19742_v44 = vld [vmem:[%s29076_s1 + $0x4e4] ss:$16 sps:$4 sm:$0xff]  }
  0xba   : > { %1439 = vmatprep.mubr.bf16.mxu1 %v29091_v3  ;;  %1808 = vmatprep.mubr.bf16.mxu0 %v29091_v3 }
  0xc1   : > { %1440 = vmatmul.mubr.bf16.gmra.mrb[40].mxu1 %v21608_v22  ;;  %1809 = vmatmul.mubr.bf16.gmra.mrb[24].mxu0 %v21762_v28  ;;  %v2093_v22 = vrot.slane %v2091_v39, 1 }
  0xc2   : > { %1449 = vmatprep.mubr.bf16.mxu1 %v29091_v3  ;;  %1818 = vmatprep.mubr.bf16.mxu0 %v29091_v3 }
  0xc9   : > { %1450 = vmatmul.mubr.bf16.gmra.mrb[44].mxu1 %v21616_v47  ;;  %1819 = vmatmul.mubr.bf16.gmra.mrb[28].mxu0 %v21771_v34  ;;  %v19710_v47 = vld [vmem:[%s29076_s1 + $0x400] ss:$16 sps:$4 sm:$0xff]  }
  0xca   : > { %1861 = vmatprep.mubr.bf16.mxu1 %v29091_v3  ;;  %2306 = vmatprep.mubr.bf16.mxu0 %v29091_v3 }
  0xd1   : > { %1862 = vmatmul.mubr.bf16.vlgmr.msra.gmra.mrb[16].mxu1 %v21627_v49  ;;  %2307 = vmatmul.mubr.bf16.vlgmr.msra.gmra.mrb[0].mxu0 %v21786_v42 }
  0xd2   : > { %2388 = vmatpush1.bf16.msra.mxu1 %v19695_v40  ;;  %1871 = vmatprep.mubr.bf16.mxu1 %v29091_v3  ;;  %v19760_v40 = vld [vmem:[%s29076_s1 + $0x504] ss:$16 sps:$4 sm:$0xff]  }
  0xd3   : > { %2316 = vmatprep.mubr.bf16.mxu0 %v29091_v3  ;;  %2389 = vmatprep.subr.bf16.mxu1 %v19700_v2  ;;  %v21070_v2 = vld [vmem:[%s21295_s26 + $0x38] sm:$0xf] }
  0xd4   : > { %2832 = vmatpush1.bf16.msra.mxu0 %v19710_v47  ;;  %v21920_v45 = vcombine.low %v21070_v2, %v2006_v35  ;;  %v21925_v47 = vsel %vm2042_vm0, %v2089_v46, %v2093_v22  ;;  %v19752_v35 = vld [vmem:[%s29076_s1 + $0x468] ss:$16 sps:$4 sm:$0xff]  }
  0xd5   : > { %2833 = vmatprep.subr.bf16.mxu0 %v19715_v11 }
  0xd6   : > { %2390 = vmatpush1.bf16.msra.mxu1 %v19698_v33  ;;  %v21071_v33 = vld [vmem:[%s21295_s26 + $0x30] sm:$0xff]   ;;  %v2099_v11 = vshll.u32 %v21920_v45, 16 }
  0xd7   : > { %2391 = vmatprep.subr.bf16.mxu1 %v19703_v48  ;;  %v2095_v48 = vshrl.u32 %v21071_v33, 16  ;;  %v19778_v33 = vld [vmem:[%s29076_s1 + $0x584] ss:$16 sps:$4 sm:$0xff]  }
  0xd8   : > { %2834 = vmatpush1.bf16.msra.mxu0 %v19713_v51  ;;  %v2101_v43 = vrot.slane %v2099_v11, 1  ;;  %v2103_v51 = vshrl.u32 %v21920_v45, 16 }
  0xd9   : > { %1872 = vmatmul.mubr.bf16.gmra.mrb[20].mxu1 %v21652_v56  ;;  %2317 = vmatmul.mubr.bf16.gmra.mrb[4].mxu0 %v21816_v54  ;;  %v19709_v56 = vld [vmem:[%s29076_s1 + $0x38c] ss:$16 sps:$4 sm:$0xff]  }
  0xda   : > { %1881 = vmatprep.mubr.bf16.mxu1 %v29091_v3  ;;  %2326 = vmatprep.mubr.bf16.mxu0 %v29091_v3  ;;  %v21946_v55 = vor.u32 %v2103_v51, %v2101_v43 }
  0xdb   : > { %2392 = vmatpush1.bf16.msra.mxu1 %v19701_v52  ;;  %2835 = vmatprep.subr.bf16.mxu0 %v19721_v53 }
  0xdc   : > { %2393 = vmatprep.subr.bf16.mxu1 %v19706_v58  ;;  %2836 = vmatpush1.bf16.msra.mxu0 %v19719_v59  ;;  %v21072_v59 = vld [vmem:[%s21295_s26 + $0x48] sm:$0xff]  }
  0xdd   : > { %2837 = vmatprep.subr.bf16.mxu0 %v19724_v60  ;;  %v2612_v6 = vshrl.u32 %v21072_v59, 16 }
  0xdf   : > { %2394 = vmatpush1.bf16.msra.mxu1 %v19704_v20  ;;  %v2608_v20 = vshll.u32 %v21072_v59, 16  ;;  %v19764_v59 = vld [vmem:[%s29076_s1 + $0x4a8] ss:$16 sps:$4 sm:$0xff]  }
  0xe0   : > { %2395 = vmatprep.subr.bf16.mxu1 %v19709_v56  ;;  %2838 = vmatpush1.bf16.msra.mxu0 %v19722_v63 }
  0xe1   : > { %1882 = vmatmul.mubr.bf16.gmra.mrb[24].mxu1 %v21683_v1  ;;  %2327 = vmatmul.mubr.bf16.gmra.mrb[8].mxu0 %v21849_v5  ;;  %v19727_v1 = vld [vmem:[%s29076_s1 + $0x3cc] ss:$16 sps:$4 sm:$0xff]   ;;  %v2610_v62 = vrot.slane %v2608_v20, 1  ;;  %v19781_v20 = vld [vmem:[%s29076_s1 + $0x5a4] ss:$16 sps:$4 sm:$0xff]  }
  0xe2   : > { %1891 = vmatprep.mubr.bf16.mxu1 %v29091_v3  ;;  %2336 = vmatprep.mubr.bf16.mxu0 %v29091_v3 }
  0xe3   : > { %2396 = vmatpush1.bf16.msra.mxu1 %v19707_v0  ;;  %2839 = vmatprep.subr.bf16.mxu0 %v19730_v4 }
  0xe4   : > { %2397 = vmatprep.subr.bf16.mxu1 %v19718_v8  ;;  %2840 = vmatpush1.bf16.msra.mxu0 %v19728_v9  ;;  %v2616_v8 = vshll.u32 %v21073_v7, 16  ;;  %v19758_v9 = vld [vmem:[%s29076_s1 + $0x500] ss:$16 sps:$4 sm:$0xff]  }
  0xe5   : > { %2841 = vmatprep.subr.bf16.mxu0 %v19733_v10  ;;  %v19746_v10 = vld [vmem:[%s29076_s1 + $0x428] ss:$16 sps:$4 sm:$0xff]  }
  0xe7   : > { %2398 = vmatpush1.bf16.msra.mxu1 %v19716_v31 }
  0xe8   : > { %2399 = vmatprep.subr.bf16.mxu1 %v19727_v1  ;;  %2842 = vmatpush1.bf16.msra.mxu0 %v19731_v15  ;;  %v2614_v1 = vor.u32 %v2612_v6, %v2610_v62  ;;  %v2618_v15 = vrot.slane %v2616_v8, 1  ;;  %v19787_v6 = vld [vmem:[%s29076_s1 + $0x5c4] ss:$16 sps:$4 sm:$0xff]  }
  0xe9   : > { %1892 = vmatmul.mubr.bf16.gmra.mrb[28].mxu1 %v21714_v13  ;;  %2337 = vmatmul.mubr.bf16.gmra.mrb[12].mxu0 %v21882_v18  ;;  %v19740_v13 = vld [vmem:[%s29076_s1 + $0x4e0] ss:$16 sps:$4 sm:$0xff]  }
  0xea   : > { %1901 = vmatprep.mubr.bf16.mxu1 %v29091_v3  ;;  %2346 = vmatprep.mubr.bf16.mxu0 %v29091_v3 }
  0xeb   : > { %2400 = vmatpush1.bf16.msra.mxu1 %v19725_v16  ;;  %2843 = vmatprep.subr.bf16.mxu0 %v19739_v17 }
  0xec   : > { %2401 = vmatprep.subr.bf16.mxu1 %v19736_v24  ;;  %2844 = vmatpush1.bf16.msra.mxu0 %v19737_v26  ;;  %v22008_v26 = vsel %vm2042_vm0, %v2614_v1, %v2618_v15  ;;  %v19782_v1 = vld [vmem:[%s29076_s1 + $0x4e8] ss:$16 sps:$4 sm:$0xff]  }
  0xed   : > { %2845 = vmatprep.subr.bf16.mxu0 %v19742_v44  ;;  %v21074_v44 = vld [vmem:[%s21295_s26 + $0x58] sm:$0xff]  }
  0xee   : > { %v2624_v29 = vshll.u32 %v21074_v44, 16 }
  0xef   : > { %2402 = vmatpush1.bf16.msra.mxu1 %v19734_v41  ;;  %v2620_v41 = vshrl.u32 %v21073_v7, 16 }
  0xf0   : > { %2846 = vmatpush1.bf16.msra.mxu0 %v19740_v13  ;;  %2944 = vmatprep.subr.bf16.mxu1 %v19745_v32  ;;  %v19767_v13 = vld [vmem:[%s29076_s1 + $0x540] ss:$16 sps:$4 sm:$0xff]   ;;  %v2626_v39 = vrot.slane %v2624_v29, 1 }
  0xf1   : > { %1902 = vmatmul.mubr.bf16.gmra.mrb[32].mxu1 %v21745_v25  ;;  %2347 = vmatmul.mubr.bf16.gmra.mrb[16].mxu0 %v21910_v36  ;;  %v2097_v25 = vor.u32 %v2095_v48, %v2093_v22  ;;  %v2622_v38 = vor.u32 %v2620_v41, %v2618_v15  ;;  %v19755_v22 = vld [vmem:[%s29076_s1 + $0x488] ss:$16 sps:$4 sm:$0xff]   ;;  %v19790_v15 = vld [vmem:[%s29076_s1 + $0x5e4] ss:$16 sps:$4 sm:$0xff]   ;;  %v2564_v41 = vld [vmem:[%s21295_s26 + $0x7c] sm:$0xf] }
  0xf2   : > { %1911 = vmatprep.mubr.bf16.mxu1 %v29091_v3  ;;  %2356 = vmatprep.mubr.bf16.mxu0 %v29091_v3 }
  0xf3   : > { %3388 = vmatprep.subr.bf16.mxu0 %v19760_v40  ;;  %v21934_v50 = vsel %vm2042_vm0, %v2097_v25, %v2101_v43  ;;  %v19770_v40 = vld [vmem:[%s29076_s1 + $0x560] ss:$16 sps:$4 sm:$0xff]   ;;  %v22048_v11 = vsel %vm2042_vm0, %v2622_v38, %v2626_v39  ;;  %v2628_v25 = vshrl.u32 %v21074_v44, 16 }
  0xf4   : > { %v21075_v43 = vld [vmem:[%s21295_s26 + $0x60] sm:$0xff]  }
  0xf5   : > { %v2632_v51 = vshll.u32 %v21075_v43, 16  ;;  %v2636_v8 = vshrl.u32 %v21075_v43, 16 }
  0xf9   : > { %1912 = vmatmul.mubr.bf16.gmra.mrb[36].mxu1 %v21755_v27  ;;  %2357 = vmatmul.mubr.bf16.gmra.mrb[20].mxu0 %v21925_v47  ;;  %v2603_v27 = vshll.u32 %v21335_v23, 16  ;;  %v19743_v23 = vld [vmem:[%s29076_s1 + $0x408] ss:$16 sps:$4 sm:$0xff]  }
  0xfa   : > { %1921 = vmatprep.mubr.bf16.mxu1 %v29091_v3  ;;  %2366 = vmatprep.mubr.bf16.mxu0 %v29091_v3 }
 0x101   : > { %1922 = vmatmul.mubr.bf16.gmra.mrb[40].mxu1 %v21762_v28  ;;  %2367 = vmatmul.mubr.bf16.gmra.mrb[24].mxu0 %v21934_v50  ;;  %v2605_v28 = vrot.slane %v2603_v27, 1  ;;  %v19766_v27 = vld [vmem:[%s29076_s1 + $0x4ac] ss:$16 sps:$4 sm:$0xff]  }
 0x102   : > { %1931 = vmatprep.mubr.bf16.mxu1 %v29091_v3  ;;  %2376 = vmatprep.mubr.bf16.mxu0 %v29091_v3 }
 0x103   : > { %v2606_v61 = vor.u32 %v2605_v28, %v2601_v57  ;;  %v19776_v57 = vld [vmem:[%s29076_s1 + $0x580] ss:$16 sps:$4 sm:$0xff]  }
 0x104   : > { %v21942_v52 = vpop.f32.mrb[0].mxu1 }
 0x105   : > { %v21944_v53 = vpop.f32.mrb[1].mxu1  ;;  %v21971_v4 = vsel %vm2042_vm0, %v2606_v61, %v2610_v62  ;;  %v2630_v61 = vor.u32 %v2628_v25, %v2626_v39  ;;  %v2634_v62 = vrot.slane %v2632_v51, 1 }
 0x106   : > { %v21949_v58 = vpop.f32.mrb[2].mxu1 }
 0x107   : > { %v21952_v60 = vpop.f32.mrb[3].mxu1  ;;  %v22082_v7 = vsel %vm2042_vm0, %v2630_v61, %v2634_v62 }
 0x109   : > { %1932 = vmatmul.mubr.bf16.gmra.mrb[44].mxu1 %v21771_v34  ;;  %2377 = vmatmul.mubr.bf16.gmra.mrb[28].mxu0 %v21946_v55  ;;  %v19748_v34 = vld [vmem:[%s29076_s1 + $0x42c] ss:$16 sps:$4 sm:$0xff]  }
 0x10a   : > { %2419 = vmatprep.mubr.bf16.mxu1 %v29091_v3  ;;  %2863 = vmatprep.mubr.bf16.mxu0 %v29091_v3 }
 0x10c   : > { %v21958_v56 = vpop.f32.mrb[4].mxu1 }
 0x10d   : > { %v21963_v63 = vpop.f32.mrb[5].mxu1 }
 0x10e   : > { %v21968_v0 = vpop.f32.mrb[6].mxu1 }
 0x10f   : > { %v21977_v31 = vpop.f32.mrb[7].mxu1 }
 0x111   : > { %2420 = vmatmul.mubr.bf16.vlgmr.msra.gmra.mrb[16].mxu1 %v21786_v42  ;;  %2864 = vmatmul.mubr.bf16.vlgmr.msra.gmra.mrb[0].mxu0 %v21971_v4  ;;  %v19761_v42 = vld [vmem:[%s29076_s1 + $0x520] ss:$16 sps:$4 sm:$0xff]  }
 0x112   : > { %2945 = vmatpush1.bf16.msra.mxu1 %v19743_v23  ;;  %2429 = vmatprep.mubr.bf16.mxu1 %v29091_v3  ;;  %v19779_v23 = vld [vmem:[%s29076_s1 + $0x5a0] ss:$16 sps:$4 sm:$0xff]  }
 0x113   : > { %2873 = vmatprep.mubr.bf16.mxu0 %v29091_v3  ;;  %2946 = vmatprep.subr.bf16.mxu1 %v19748_v34  ;;  %v19773_v34 = vld [vmem:[%s29076_s1 + $0x4c8] ss:$16 sps:$4 sm:$0xff]  }
 0x114   : > { %v21995_v16 = vpop.f32.mrb[8].mxu1  ;;  %3389 = vmatpush1.bf16.msra.mxu0 %v19758_v9  ;;  %v21076_v9 = vld [vmem:[%s21295_s26 + $0x68] sm:$0xff]  }
 0x115   : > { %v21997_v17 = vpop.f32.mrb[9].mxu1  ;;  %3390 = vmatprep.subr.bf16.mxu0 %v19763_v14  ;;  %v19785_v14 = vld [vmem:[%s29076_s1 + $0x5c0] ss:$16 sps:$4 sm:$0xff]   ;;  %v2644_v29 = vshrl.u32 %v21076_v9, 16 }
 0x116   : > { %v22005_v24 = vpop.f32.mrb[10].mxu1  ;;  %2947 = vmatpush1.bf16.msra.mxu1 %v19746_v10  ;;  %v2640_v10 = vshll.u32 %v21076_v9, 16  ;;  %v19794_v9 = vld [vmem:[%s29076_s1 + $0x528] ss:$16 sps:$4 sm:$0xff]  }
 0x117   : > { %v22017_v32 = vpop.f32.mrb[11].mxu1  ;;  %2948 = vmatprep.subr.bf16.mxu1 %v19751_v12  ;;  %v19784_v12 = vld [vmem:[%s29076_s1 + $0x4ec] ss:$16 sps:$4 sm:$0xff]  }
 0x118   : > { %3391 = vmatpush1.bf16.msra.mxu0 %v19761_v42  ;;  %v2638_v42 = vor.u32 %v2636_v8, %v2634_v62  ;;  %v19806_v8 = vld [vmem:[%s29076_s1 + $0x600] ss:$16 sps:$4 sm:$0xff]  }
 0x119   : > { %2430 = vmatmul.mubr.bf16.gmra.mrb[20].mxu1 %v21816_v54  ;;  %2874 = vmatmul.mubr.bf16.gmra.mrb[4].mxu0 %v22008_v26  ;;  %v19757_v54 = vld [vmem:[%s29076_s1 + $0x48c] ss:$16 sps:$4 sm:$0xff]  }
 0x11a   : > { %2439 = vmatprep.mubr.bf16.mxu1 %v29091_v3  ;;  %2883 = vmatprep.mubr.bf16.mxu0 %v29091_v3 }
 0x11b   : > { %2949 = vmatpush1.bf16.msra.mxu1 %v19749_v19  ;;  %3392 = vmatprep.subr.bf16.mxu0 %v19769_v21  ;;  %v2642_v19 = vrot.slane %v2640_v10, 1  ;;  %v19793_v21 = vld [vmem:[%s29076_s1 + $0x50c] ss:$16 sps:$4 sm:$0xff]  }
 0x11c   : > { %v22035_v2 = vpop.f32.mrb[12].mxu1  ;;  %2950 = vmatprep.subr.bf16.mxu1 %v19754_v30  ;;  %3393 = vmatpush1.bf16.msra.mxu0 %v19767_v13  ;;  %v21077_v30 = vld [vmem:[%s21295_s26 + $0x70] sm:$0xff]   ;;  %v19799_v10 = vld [vmem:[%s29076_s1 + $0x54c] ss:$16 sps:$4 sm:$0xff]  }
 0x11d   : > { %v22037_v46 = vpop.f32.mrb[13].mxu1  ;;  %3394 = vmatprep.subr.bf16.mxu0 %v19772_v37  ;;  %v22109_v44 = vsel %vm2042_vm0, %v2638_v42, %v2642_v19  ;;  %v2648_v13 = vshll.u32 %v21077_v30, 16  ;;  %v21078_v37 = vld [vmem:[%s21295_s26 + $0x78] sm:$0xf]  ;;  %v2646_v39 = vor.u32 %v2644_v29, %v2642_v19  ;;  %v19817_v42 = vld [vmem:[%s29076_s1 + $0x644] ss:$16 sps:$4 sm:$0xff]  }
 0x11e   : > { %v22045_v48 = vpop.f32.mrb[14].mxu1  ;;  %v22118_v38 = vcombine.low %v21078_v37, %v2564_v41  ;;  %v19802_v29 = vld [vmem:[%s29076_s1 + $0x56c] ss:$16 sps:$4 sm:$0xff]  }
 0x11f   : > { %v22057_v28 = vpop.f32.mrb[15].mxu1  ;;  %2951 = vmatpush1.bf16.msra.mxu1 %v19752_v35  ;;  %v19808_v35 = vld [vmem:[%s29076_s1 + $0x604] ss:$16 sps:$4 sm:$0xff]  }
 0x120   : > { %2952 = vmatprep.subr.bf16.mxu1 %v19757_v54  ;;  %3395 = vmatpush1.bf16.msra.mxu0 %v19770_v40  ;;  %v2650_v54 = vrot.slane %v2648_v13, 1  ;;  %v2660_v51 = vshrl.u32 %v22118_v38, 16  ;;  %v19800_v13 = vld [vmem:[%s29076_s1 + $0x568] ss:$16 sps:$4 sm:$0xff]  }
 0x121   : > { %2440 = vmatmul.mubr.bf16.gmra.mrb[24].mxu1 %v21849_v5  ;;  %2884 = vmatmul.mubr.bf16.gmra.mrb[8].mxu0 %v22048_v11  ;;  %v19775_v5 = vld [vmem:[%s29076_s1 + $0x4cc] ss:$16 sps:$4 sm:$0xff]  }
 0x122   : > { %2449 = vmatprep.mubr.bf16.mxu1 %v29091_v3  ;;  %2893 = vmatprep.mubr.bf16.mxu0 %v29091_v3  ;;  %v22123_v40 = vsel %vm2042_vm0, %v2646_v39, %v2650_v54 }
 0x123   : > { %2953 = vmatpush1.bf16.msra.mxu1 %v19755_v22  ;;  %3396 = vmatprep.subr.bf16.mxu0 %v19778_v33  ;;  %v2652_v22 = vshrl.u32 %v21077_v30, 16  ;;  %v2656_v33 = vshll.u32 %v22118_v38, 16  ;;  %v19815_v30 = vld [vmem:[%s29076_s1 + $0x640] ss:$16 sps:$4 sm:$0xff]  }
 0x124   : > { %2954 = vmatprep.subr.bf16.mxu1 %v19766_v27  ;;  %3397 = vmatpush1.bf16.msra.mxu0 %v19776_v57  ;;  %v3158_v57 = vshrl.u32 %v21627_v49, 16 }
 0x125   : > { %3398 = vmatprep.subr.bf16.mxu0 %v19781_v20  ;;  %v2658_v25 = vrot.slane %v2656_v33, 1  ;;  %v21079_v20 = vld [vmem:[%s21295_s26 + $0x88] sm:$0xff]   ;;  %v19826_v33 = vld [vmem:[%s29076_s1 + $0x684] ss:$16 sps:$4 sm:$0xff]  }
 0x126   : > { %v3165_v61 = vshll.u32 %v21079_v20, 16 }
 0x127   : > { %2955 = vmatpush1.bf16.msra.mxu1 %v19764_v59  ;;  %v22139_v27 = vor.u32 %v2660_v51, %v2658_v25  ;;  %v21082_v51 = vld [vmem:[%s21295_s26 + $0xa0] sm:$0xff]  }
 0x128   : > { %2956 = vmatprep.subr.bf16.mxu1 %v19775_v5  ;;  %3399 = vmatpush1.bf16.msra.mxu0 %v19779_v23  ;;  %v3167_v62 = vrot.slane %v3165_v61, 1  ;;  %v19791_v5 = vld [vmem:[%s29076_s1 + $0x508] ss:$16 sps:$4 sm:$0xff]   ;;  %v19829_v61 = vld [vmem:[%s29076_s1 + $0x6a4] ss:$16 sps:$4 sm:$0xff]  }
 0x129   : > { %2450 = vmatmul.mubr.bf16.gmra.mrb[28].mxu1 %v21882_v18  ;;  %2894 = vmatmul.mubr.bf16.gmra.mrb[12].mxu0 %v22082_v7  ;;  %v19788_v18 = vld [vmem:[%s29076_s1 + $0x5e0] ss:$16 sps:$4 sm:$0xff]  }
 0x12a   : > { %2459 = vmatprep.mubr.bf16.mxu1 %v29091_v3  ;;  %2903 = vmatprep.mubr.bf16.mxu0 %v29091_v3 }
 0x12b   : > { %2957 = vmatpush1.bf16.msra.mxu1 %v19773_v34  ;;  %3400 = vmatprep.subr.bf16.mxu0 %v19787_v6  ;;  %v21080_v34 = vld [vmem:[%s21295_s26 + $0x90] sm:$0xff]  }
 0x12c   : > { %2958 = vmatprep.subr.bf16.mxu1 %v19784_v12  ;;  %3401 = vmatpush1.bf16.msra.mxu0 %v19785_v14  ;;  %v3173_v6 = vshll.u32 %v21080_v34, 16  ;;  %v19811_v12 = vld [vmem:[%s29076_s1 + $0x624] ss:$16 sps:$4 sm:$0xff]  }
 0x12d   : > { %3402 = vmatprep.subr.bf16.mxu0 %v19790_v15  ;;  %v19797_v15 = vld [vmem:[%s29076_s1 + $0x548] ss:$16 sps:$4 sm:$0xff]  }
 0x12f   : > { %2959 = vmatpush1.bf16.msra.mxu1 %v19782_v1  ;;  %v3175_v1 = vrot.slane %v3173_v6, 1  ;;  %v3193_v6 = vshrl.u32 %v21082_v51, 16 }
 0x130   : > { %3403 = vmatpush1.bf16.msra.mxu0 %v19788_v18  ;;  %3501 = vmatprep.subr.bf16.mxu1 %v19793_v21  ;;  %v3177_v18 = vshrl.u32 %v21080_v34, 16  ;;  %v21081_v21 = vld [vmem:[%s21295_s26 + $0x98] sm:$0xff]  }
 0x131   : > { %2460 = vmatmul.mubr.bf16.gmra.mrb[32].mxu1 %v21910_v36  ;;  %2904 = vmatmul.mubr.bf16.gmra.mrb[16].mxu0 %v22109_v44  ;;  %v2654_v36 = vor.u32 %v2652_v22, %v2650_v54  ;;  %v3181_v41 = vshll.u32 %v21081_v21, 16  ;;  %v19818_v54 = vld [vmem:[%s29076_s1 + $0x660] ss:$16 sps:$4 sm:$0xff]   ;;  %v19803_v22 = vld [vmem:[%s29076_s1 + $0x588] ss:$16 sps:$4 sm:$0xff]  }
 0x132   : > { %2469 = vmatprep.mubr.bf16.mxu1 %v29091_v3  ;;  %2913 = vmatprep.mubr.bf16.mxu0 %v29091_v3  ;;  %v3179_v37 = vor.u32 %v3177_v18, %v3175_v1  ;;  %v3121_v18 = vld [vmem:[%s21295_s26 + $0xbc] sm:$0xf] }
 0x133   : > { %3898 = vmatprep.subr.bf16.mxu0 %v19808_v35  ;;  %v22131_v43 = vsel %vm2042_vm0, %v2654_v36, %v2658_v25  ;;  %v19820_v35 = vld [vmem:[%s29076_s1 + $0x664] ss:$16 sps:$4 sm:$0xff]   ;;  %v3183_v39 = vrot.slane %v3181_v41, 1  ;;  %v3185_v25 = vshrl.u32 %v21081_v21, 16 }
 0x135   : > { %v22215_v36 = vsel %vm2042_vm0, %v3179_v37, %v3183_v39 }
 0x139   : > { %2470 = vmatmul.mubr.bf16.gmra.mrb[36].mxu1 %v21925_v47  ;;  %2914 = vmatmul.mubr.bf16.gmra.mrb[20].mxu0 %v22123_v40  ;;  %v3160_v47 = vshll.u32 %v21627_v49, 16  ;;  %v19796_v49 = vld [vmem:[%s29076_s1 + $0x52c] ss:$16 sps:$4 sm:$0xff]  }
 0x13a   : > { %2479 = vmatprep.mubr.bf16.mxu1 %v29091_v3  ;;  %2923 = vmatprep.mubr.bf16.mxu0 %v29091_v3 }
 0x13b   : > { %v3162_v59 = vrot.slane %v3160_v47, 1  ;;  %v3189_v47 = vshll.u32 %v21082_v51, 16 }
 0x141   : > { %2480 = vmatmul.mubr.bf16.gmra.mrb[40].mxu1 %v21934_v50  ;;  %2924 = vmatmul.mubr.bf16.gmra.mrb[24].mxu0 %v22131_v43  ;;  %v3163_v50 = vor.u32 %v3162_v59, %v3158_v57  ;;  %v19814_v57 = vld [vmem:[%s29076_s1 + $0x5ac] ss:$16 sps:$4 sm:$0xff]   ;;  %v19824_v59 = vld [vmem:[%s29076_s1 + $0x680] ss:$16 sps:$4 sm:$0xff]  }
 0x142   : > { %2489 = vmatprep.mubr.bf16.mxu1 %v29091_v3  ;;  %2933 = vmatprep.mubr.bf16.mxu0 %v29091_v3 }
 0x143   : > { %v22154_v23 = vsel %vm2042_vm0, %v3163_v50, %v3167_v62  ;;  %v3187_v50 = vor.u32 %v3185_v25, %v3183_v39 }
 0x149   : > { %2490 = vmatmul.mubr.bf16.gmra.mrb[44].mxu1 %v21946_v55  ;;  %2934 = vmatmul.mubr.bf16.gmra.mrb[28].mxu0 %v22139_v27  ;;  %v3169_v55 = vshrl.u32 %v21079_v20, 16  ;;  %v19812_v20 = vld [vmem:[%s29076_s1 + $0x5a8] ss:$16 sps:$4 sm:$0xff]  }
 0x14a   : > { %2976 = vmatprep.mubr.bf16.mxu1 %v29091_v3  ;;  %3420 = vmatprep.mubr.bf16.mxu0 %v29091_v3 }
 0x14b   : > { %v3171_v14 = vor.u32 %v3169_v55, %v3167_v62  ;;  %v3191_v62 = vrot.slane %v3189_v47, 1  ;;  %v19835_v55 = vld [vmem:[%s29076_s1 + $0x6c4] ss:$16 sps:$4 sm:$0xff]  }
 0x14d   : > { %v22183_v19 = vsel %vm2042_vm0, %v3171_v14, %v3175_v1  ;;  %v22247_v34 = vsel %vm2042_vm0, %v3187_v50, %v3191_v62  ;;  %v19830_v14 = vld [vmem:[%s29076_s1 + $0x5e8] ss:$16 sps:$4 sm:$0xff]   ;;  %v19838_v1 = vld [vmem:[%s29076_s1 + $0x6e4] ss:$16 sps:$4 sm:$0xff]  }
 0x151   : > { %2977 = vmatmul.mubr.bf16.vlgmr.msra.gmra.mrb[16].mxu1 %v21971_v4  ;;  %3421 = vmatmul.mubr.bf16.vlgmr.msra.gmra.mrb[0].mxu0 %v22154_v23  ;;  %v19809_v4 = vld [vmem:[%s29076_s1 + $0x620] ss:$16 sps:$4 sm:$0xff]  }
 0x152   : > { %3502 = vmatpush1.bf16.msra.mxu1 %v19791_v5  ;;  %2986 = vmatprep.mubr.bf16.mxu1 %v29091_v3  ;;  %v19827_v5 = vld [vmem:[%s29076_s1 + $0x6a0] ss:$16 sps:$4 sm:$0xff]  }
 0x153   : > { %3430 = vmatprep.mubr.bf16.mxu0 %v29091_v3  ;;  %3503 = vmatprep.subr.bf16.mxu1 %v19796_v49  ;;  %v19821_v49 = vld [vmem:[%s29076_s1 + $0x5c8] ss:$16 sps:$4 sm:$0xff]  }
 0x154   : > { %3899 = vmatpush1.bf16.msra.mxu0 %v19806_v8  ;;  %v21083_v8 = vld [vmem:[%s21295_s26 + $0xa8] sm:$0xff]  }
 0x155   : > { %3900 = vmatprep.subr.bf16.mxu0 %v19811_v12  ;;  %v19833_v12 = vld [vmem:[%s29076_s1 + $0x6c0] ss:$16 sps:$4 sm:$0xff]   ;;  %v3201_v41 = vshrl.u32 %v21083_v8, 16 }
 0x156   : > { %3504 = vmatpush1.bf16.msra.mxu1 %v19794_v9  ;;  %v3197_v9 = vshll.u32 %v21083_v8, 16  ;;  %v21088_v8 = vld [vmem:[%s21295_s26 + $0x10] sm:$0xff]  }
 0x157   : > { %3505 = vmatprep.subr.bf16.mxu1 %v19799_v10  ;;  %v19832_v10 = vld [vmem:[%s29076_s1 + $0x5ec] ss:$16 sps:$4 sm:$0xff]  }
 0x158   : > { %3901 = vmatpush1.bf16.msra.mxu0 %v19809_v4  ;;  %v3195_v4 = vor.u32 %v3193_v6, %v3191_v62  ;;  %v19840_v62 = vld [vmem:[%s29076_s1 + $0x608] ss:$16 sps:$4 sm:$0xff]   ;;  %v19860_v6 = vld [vmem:[%s29076_s1 + $0x724] ss:$16 sps:$4 sm:$0xff]  }
 0x159   : > { %2987 = vmatmul.mubr.bf16.gmra.mrb[20].mxu1 %v22008_v26  ;;  %3431 = vmatmul.mubr.bf16.gmra.mrb[4].mxu0 %v22183_v19  ;;  %v19805_v26 = vld [vmem:[%s29076_s1 + $0x58c] ss:$16 sps:$4 sm:$0xff]  }
 0x15a   : > { %2996 = vmatprep.mubr.bf16.mxu1 %v29091_v3  ;;  %3440 = vmatprep.mubr.bf16.mxu0 %v29091_v3 }
 0x15b   : > { %3506 = vmatpush1.bf16.msra.mxu1 %v19797_v15  ;;  %3902 = vmatprep.subr.bf16.mxu0 %v19817_v42  ;;  %v3199_v15 = vrot.slane %v3197_v9, 1  ;;  %v19842_v42 = vld [vmem:[%s29076_s1 + $0x60c] ss:$16 sps:$4 sm:$0xff]   ;;  %v3718_v9 = vrot.slane %v21088_v8, 1 }
 0x15c   : > { %3507 = vmatprep.subr.bf16.mxu1 %v19802_v29  ;;  %3903 = vmatpush1.bf16.msra.mxu0 %v19815_v30  ;;  %v21084_v29 = vld [vmem:[%s21295_s26 + $0xb0] sm:$0xff]  }
 0x15d   : > { %3904 = vmatprep.subr.bf16.mxu0 %v19820_v35  ;;  %v22274_v21 = vsel %vm2042_vm0, %v3195_v4, %v3199_v15  ;;  %v3205_v30 = vshll.u32 %v21084_v29, 16  ;;  %v21085_v35 = vld [vmem:[%s21295_s26 + $0xb8] sm:$0xf]  ;;  %v3203_v39 = vor.u32 %v3201_v41, %v3199_v15  ;;  %v19864_v4 = vld [vmem:[%s29076_s1 + $0x740] ss:$16 sps:$4 sm:$0xff]  }
 0x15e   : > { %v22283_v37 = vcombine.low %v21085_v35, %v3121_v18  ;;  %v19849_v15 = vld [vmem:[%s29076_s1 + $0x668] ss:$16 sps:$4 sm:$0xff]   ;;  %v19867_v41 = vld [vmem:[%s29076_s1 + $0x760] ss:$16 sps:$4 sm:$0xff]   ;;  %v19863_v35 = vld [vmem:[%s29076_s1 + $0x6ac] ss:$16 sps:$4 sm:$0xff]  }
 0x15f   : > { %3508 = vmatpush1.bf16.msra.mxu1 %v19800_v13  ;;  %v19857_v13 = vld [vmem:[%s29076_s1 + $0x704] ss:$16 sps:$4 sm:$0xff]  }
 0x160   : > { %3509 = vmatprep.subr.bf16.mxu1 %v19805_v26  ;;  %3905 = vmatpush1.bf16.msra.mxu0 %v19818_v54  ;;  %v3207_v26 = vrot.slane %v3205_v30, 1  ;;  %v3217_v47 = vshrl.u32 %v22283_v37, 16  ;;  %v19875_v30 = vld [vmem:[%s29076_s1 + $0x784] ss:$16 sps:$4 sm:$0xff]  }
 0x161   : > { %2997 = vmatmul.mubr.bf16.gmra.mrb[24].mxu1 %v22048_v11  ;;  %3441 = vmatmul.mubr.bf16.gmra.mrb[8].mxu0 %v22215_v36  ;;  %v19823_v11 = vld [vmem:[%s29076_s1 + $0x5cc] ss:$16 sps:$4 sm:$0xff]  }
 0x162   : > { %3006 = vmatprep.mubr.bf16.mxu1 %v29091_v3  ;;  %3450 = vmatprep.mubr.bf16.mxu0 %v29091_v3  ;;  %v22288_v54 = vsel %vm2042_vm0, %v3203_v39, %v3207_v26  ;;  %v19873_v39 = vld [vmem:[%s29076_s1 + $0x780] ss:$16 sps:$4 sm:$0xff]  }
 0x163   : > { %3510 = vmatpush1.bf16.msra.mxu1 %v19803_v22  ;;  %3906 = vmatprep.subr.bf16.mxu0 %v19826_v33  ;;  %v3209_v22 = vshrl.u32 %v21084_v29, 16  ;;  %v19852_v29 = vld [vmem:[%s29076_s1 + $0x688] ss:$16 sps:$4 sm:$0xff]  }
 0x164   : > { %3511 = vmatprep.subr.bf16.mxu1 %v19814_v57  ;;  %3907 = vmatpush1.bf16.msra.mxu0 %v19824_v59  ;;  %v21086_v59 = vld [vmem:[%s21295_s26 + $0x4] sm:$0xf] }
 0x165   : > { %3908 = vmatprep.subr.bf16.mxu0 %v19829_v61  ;;  %v3211_v33 = vor.u32 %v3209_v22, %v3207_v26  ;;  %v21087_v61 = vld [vmem:[%s21295_s26 + $0x8] sm:$0xff]   ;;  %v19878_v22 = vld [vmem:[%s29076_s1 + $0x7a4] ss:$16 sps:$4 sm:$0xff]  }
 0x166   : > { %v3716_v50 = vrot.slane %v21087_v61, 1  ;;  %v19861_v26 = vld [vmem:[%s29076_s1 + $0x6a8] ss:$16 sps:$4 sm:$0xff]  }
 0x167   : > { %3512 = vmatpush1.bf16.msra.mxu1 %v19812_v20  ;;  %v19879_v61 = vld [vmem:[%s29076_s1 + $0x6e8] ss:$16 sps:$4 sm:$0xff]  }
 0x168   : > { %3513 = vmatprep.subr.bf16.mxu1 %v19823_v11  ;;  %3909 = vmatpush1.bf16.msra.mxu0 %v19827_v5  ;;  %v19845_v11 = vld [vmem:[%s29076_s1 + $0x62c] ss:$16 sps:$4 sm:$0xff]   ;;  %v19855_v5 = vld [vmem:[%s29076_s1 + $0x700] ss:$16 sps:$4 sm:$0xff]  }
 0x169   : > { %3007 = vmatmul.mubr.bf16.gmra.mrb[28].mxu1 %v22082_v7  ;;  %3451 = vmatmul.mubr.bf16.gmra.mrb[12].mxu0 %v22247_v34  ;;  %v19836_v7 = vld [vmem:[%s29076_s1 + $0x6e0] ss:$16 sps:$4 sm:$0xff]  }
 0x16a   : > { %3016 = vmatprep.mubr.bf16.mxu1 %v29091_v3  ;;  %3460 = vmatprep.mubr.bf16.mxu0 %v29091_v3 }
 0x16b   : > { %3514 = vmatpush1.bf16.msra.mxu1 %v19821_v49  ;;  %3910 = vmatprep.subr.bf16.mxu0 %v19835_v55  ;;  %v19843_v49 = vld [vmem:[%s29076_s1 + $0x628] ss:$16 sps:$4 sm:$0xff]   ;;  %v19848_v55 = vld [vmem:[%s29076_s1 + $0x64c] ss:$16 sps:$4 sm:$0xff]  }
 0x16c   : > { %3515 = vmatprep.subr.bf16.mxu1 %v19832_v10  ;;  %3911 = vmatpush1.bf16.msra.mxu0 %v19833_v12  ;;  %v19858_v10 = vld [vmem:[%s29076_s1 + $0x720] ss:$16 sps:$4 sm:$0xff]   ;;  %v19866_v12 = vld [vmem:[%s29076_s1 + $0x744] ss:$16 sps:$4 sm:$0xff]  }
 0x16d   : > { %3912 = vmatprep.subr.bf16.mxu0 %v19838_v1  ;;  %v19851_v1 = vld [vmem:[%s29076_s1 + $0x66c] ss:$16 sps:$4 sm:$0xff]  }
 0x16f   : > { %3516 = vmatpush1.bf16.msra.mxu1 %v19830_v14  ;;  %v22348_v14 = vsel %vm3714_vm1, %v3716_v50, %v3718_v9 }
 0x170   : > { %3913 = vmatpush1.bf16.msra.mxu0 %v19836_v7  ;;  %4011 = vmatprep.subr.bf16.mxu1 %v19842_v42  ;;  %v19869_v7 = vld [vmem:[%s29076_s1 + $0x764] ss:$16 sps:$4 sm:$0xff]   ;;  %v21089_v42 = vld [vmem:[%s21295_s26 + $0x18] sm:$0xff]  }
 0x171   : > { %3017 = vmatmul.mubr.bf16.gmra.mrb[32].mxu1 %v22109_v44  ;;  %3461 = vmatmul.mubr.bf16.gmra.mrb[16].mxu0 %v22274_v21  ;;  %v3213_v44 = vshll.u32 %v22283_v37, 16  ;;  %v3720_v18 = vrot.slane %v21089_v42, 1  ;;  %v19893_v42 = vld [vmem:[%s29076_s1 + $0x72c] ss:$16 sps:$4 sm:$0xff]  }
 0x172   : > { %3026 = vmatprep.mubr.bf16.mxu1 %v29091_v3  ;;  %3470 = vmatprep.mubr.bf16.mxu0 %v29091_v3 }
 0x173   : > { %4407 = vmatprep.subr.bf16.mxu0 %v19857_v13  ;;  %v3215_v25 = vrot.slane %v3213_v44, 1  ;;  %v22380_v13 = vsel %vm3714_vm1, %v3718_v9, %v3720_v18  ;;  %v21090_v44 = vld [vmem:[%s21295_s26 + $0x20] sm:$0xff]  }
 0x175   : > { %v22296_v51 = vsel %vm2042_vm0, %v3211_v33, %v3215_v25  ;;  %v22304_v57 = vor.u32 %v3217_v47, %v3215_v25  ;;  %v3722_v33 = vrot.slane %v21090_v44, 1  ;;  %v19876_v25 = vld [vmem:[%s29076_s1 + $0x7a0] ss:$16 sps:$4 sm:$0xff]   ;;  %v19870_v47 = vld [vmem:[%s29076_s1 + $0x6c8] ss:$16 sps:$4 sm:$0xff]  }
 0x176   : > { %v19917_v44 = vld [vmem:[%s29076_s1 + $0x864] ss:$16 sps:$4 sm:$0xff]  }
 0x179   : > { %3027 = vmatmul.mubr.bf16.gmra.mrb[36].mxu1 %v22123_v40  ;;  %3471 = vmatmul.mubr.bf16.gmra.mrb[20].mxu0 %v22288_v54  ;;  %v3678_v40 = vld [vmem:[%s21295_s26] sm:$0xe] }
 0x17a   : > { %3036 = vmatprep.mubr.bf16.mxu1 %v29091_v3  ;;  %3480 = vmatprep.mubr.bf16.mxu0 %v29091_v3  ;;  %v16715_v20 = vcombine.low %v3678_v40, %v21086_v59  ;;  %v19884_v40 = vld [vmem:[%s29076_s1 + $0x7c4] ss:$16 sps:$4 sm:$0xff]   ;;  %v22412_v59 = vsel %vm3714_vm1, %v3720_v18, %v3722_v33  ;;  %v19903_v18 = vld [vmem:[%s29076_s1 + $0x800] ss:$16 sps:$4 sm:$0xff]  }
 0x181   : > { %3037 = vmatmul.mubr.bf16.gmra.mrb[40].mxu1 %v22131_v43  ;;  %3481 = vmatmul.mubr.bf16.gmra.mrb[24].mxu0 %v22296_v51  ;;  %v3715_v43 = vrot.slane %v16715_v20, 1  ;;  %v19881_v20 = vld [vmem:[%s29076_s1 + $0x6ec] ss:$16 sps:$4 sm:$0xff]  }
 0x182   : > { %3046 = vmatprep.mubr.bf16.mxu1 %v29091_v3  ;;  %3490 = vmatprep.mubr.bf16.mxu0 %v29091_v3 }
 0x189   : > { %3047 = vmatmul.mubr.bf16.gmra.mrb[44].mxu1 %v22139_v27  ;;  %3491 = vmatmul.mubr.bf16.gmra.mrb[28].mxu0 %v22304_v57  ;;  %v22319_v27 = vsel %vm3714_vm1, %v3715_v43, %v3716_v50  ;;  %v19882_v43 = vld [vmem:[%s29076_s1 + $0x7c0] ss:$16 sps:$4 sm:$0xff]   ;;  %v19887_v50 = vld [vmem:[%s29076_s1 + $0x7e4] ss:$16 sps:$4 sm:$0xff]  }
 0x18a   : > { %3533 = vmatprep.mubr.bf16.mxu1 %v29091_v3  ;;  %3930 = vmatprep.mubr.bf16.mxu0 %v29091_v3 }
 0x191   : > { %3534 = vmatmul.mubr.bf16.vlgmr.msra.gmra.mrb[16].mxu1 %v22154_v23  ;;  %3931 = vmatmul.mubr.bf16.vlgmr.msra.gmra.mrb[0].mxu0 %v22319_v27  ;;  %v19846_v23 = vld [vmem:[%s29076_s1 + $0x648] ss:$16 sps:$4 sm:$0xff]  }
 0x192   : > { %4012 = vmatpush1.bf16.msra.mxu1 %v19840_v62  ;;  %3543 = vmatprep.mubr.bf16.mxu1 %v29091_v3  ;;  %v21091_v62 = vld [vmem:[%s21295_s26 + $0x28] sm:$0xff]  }
 0x193   : > { %3940 = vmatprep.mubr.bf16.mxu0 %v29091_v3  ;;  %4013 = vmatprep.subr.bf16.mxu1 %v19845_v11  ;;  %v3724_v11 = vrot.slane %v21091_v62, 1  ;;  %v19926_v62 = vld [vmem:[%s29076_s1 + $0x8a4] ss:$16 sps:$4 sm:$0xff]  }
 0x194   : > { %4408 = vmatpush1.bf16.msra.mxu0 %v19855_v5  ;;  %v19890_v5 = vld [vmem:[%s29076_s1 + $0x70c] ss:$16 sps:$4 sm:$0xff]  }
 0x195   : > { %4409 = vmatprep.subr.bf16.mxu0 %v19860_v6  ;;  %v21092_v6 = vld [vmem:[%s21295_s26 + $0x30] sm:$0xff]  }
 0x196   : > { %4014 = vmatpush1.bf16.msra.mxu1 %v19843_v49  ;;  %v19905_v49 = vld [vmem:[%s29076_s1 + $0x804] ss:$16 sps:$4 sm:$0xff]   ;;  %v3726_v8 = vrot.slane %v21092_v6, 1 }
 0x197   : > { %4015 = vmatprep.subr.bf16.mxu1 %v19848_v55  ;;  %v22441_v55 = vsel %vm3714_vm1, %v3722_v33, %v3724_v11  ;;  %v21096_v33 = vld [vmem:[%s21295_s26 + $0x58] sm:$0xff]  }
 0x198   : > { %4410 = vmatpush1.bf16.msra.mxu0 %v19858_v10  ;;  %v22449_v9 = vsel %vm3714_vm1, %v3724_v11, %v3726_v8  ;;  %v21097_v11 = vld [vmem:[%s21295_s26 + $0x60] sm:$0xff]  }
 0x199   : > { %3544 = vmatmul.mubr.bf16.gmra.mrb[20].mxu1 %v22183_v19  ;;  %3941 = vmatmul.mubr.bf16.gmra.mrb[4].mxu0 %v22348_v14  ;;  %v19854_v19 = vld [vmem:[%s29076_s1 + $0x68c] ss:$16 sps:$4 sm:$0xff]  }
 0x19a   : > { %3553 = vmatprep.mubr.bf16.mxu1 %v29091_v3  ;;  %3950 = vmatprep.mubr.bf16.mxu0 %v29091_v3 }
 0x19b   : > { %4016 = vmatpush1.bf16.msra.mxu1 %v19846_v23  ;;  %4411 = vmatprep.subr.bf16.mxu0 %v19866_v12  ;;  %v4188_v23 = vld [vmem:[%s21295_s26 + $0x40] sm:$0xe] }
 0x19c   : > { %4017 = vmatprep.subr.bf16.mxu1 %v19851_v1  ;;  %4412 = vmatpush1.bf16.msra.mxu0 %v19864_v4  ;;  %v21094_v1 = vld [vmem:[%s21295_s26 + $0x48] sm:$0xff]  }
 0x19d   : > { %4413 = vmatprep.subr.bf16.mxu0 %v19869_v7  ;;  %v4225_v4 = vrot.slane %v21094_v1, 1  ;;  %v21098_v1 = vld [vmem:[%s21295_s26 + $0x68] sm:$0xff]  }
 0x19f   : > { %4018 = vmatpush1.bf16.msra.mxu1 %v19849_v15  ;;  %v21095_v15 = vld [vmem:[%s21295_s26 + $0x50] sm:$0xff]  }
 0x1a0   : > { %4019 = vmatprep.subr.bf16.mxu1 %v19854_v19  ;;  %4414 = vmatpush1.bf16.msra.mxu0 %v19867_v41  ;;  %v4227_v7 = vrot.slane %v21095_v15, 1  ;;  %v19908_v19 = vld [vmem:[%s29076_s1 + $0x824] ss:$16 sps:$4 sm:$0xff]   ;;  %v19891_v41 = vld [vmem:[%s29076_s1 + $0x728] ss:$16 sps:$4 sm:$0xff]  }
 0x1a1   : > { %3554 = vmatmul.mubr.bf16.gmra.mrb[24].mxu1 %v22215_v36  ;;  %3951 = vmatmul.mubr.bf16.gmra.mrb[8].mxu0 %v22380_v13  ;;  %v19872_v36 = vld [vmem:[%s29076_s1 + $0x6cc] ss:$16 sps:$4 sm:$0xff]   ;;  %v19927_v15 = vld [vmem:[%s29076_s1 + $0x7e8] ss:$16 sps:$4 sm:$0xff]  }
 0x1a2   : > { %3563 = vmatprep.mubr.bf16.mxu1 %v29091_v3  ;;  %3960 = vmatprep.mubr.bf16.mxu0 %v29091_v3 }
 0x1a3   : > { %4020 = vmatpush1.bf16.msra.mxu1 %v19852_v29  ;;  %4415 = vmatprep.subr.bf16.mxu0 %v19875_v30  ;;  %v19896_v29 = vld [vmem:[%s29076_s1 + $0x74c] ss:$16 sps:$4 sm:$0xff]   ;;  %v19906_v30 = vld [vmem:[%s29076_s1 + $0x820] ss:$16 sps:$4 sm:$0xff]  }
 0x1a4   : > { %4021 = vmatprep.subr.bf16.mxu1 %v19863_v35  ;;  %4416 = vmatpush1.bf16.msra.mxu0 %v19873_v39  ;;  %v19894_v35 = vld [vmem:[%s29076_s1 + $0x748] ss:$16 sps:$4 sm:$0xff]   ;;  %v19914_v39 = vld [vmem:[%s29076_s1 + $0x844] ss:$16 sps:$4 sm:$0xff]  }
 0x1a5   : > { %4417 = vmatprep.subr.bf16.mxu0 %v19878_v22  ;;  %v19912_v22 = vld [vmem:[%s29076_s1 + $0x840] ss:$16 sps:$4 sm:$0xff]  }
 0x1a7   : > { %4022 = vmatpush1.bf16.msra.mxu1 %v19861_v26  ;;  %v19899_v26 = vld [vmem:[%s29076_s1 + $0x76c] ss:$16 sps:$4 sm:$0xff]  }
 0x1a8   : > { %4023 = vmatprep.subr.bf16.mxu1 %v19872_v36  ;;  %4418 = vmatpush1.bf16.msra.mxu0 %v19876_v25  ;;  %v4229_v36 = vrot.slane %v21096_v33, 1  ;;  %v19897_v25 = vld [vmem:[%s29076_s1 + $0x768] ss:$16 sps:$4 sm:$0xff]  }
 0x1a9   : > { %3564 = vmatmul.mubr.bf16.gmra.mrb[28].mxu1 %v22247_v34  ;;  %3961 = vmatmul.mubr.bf16.gmra.mrb[12].mxu0 %v22412_v59  ;;  %v19885_v34 = vld [vmem:[%s29076_s1 + $0x7e0] ss:$16 sps:$4 sm:$0xff]   ;;  %v19940_v33 = vld [vmem:[%s29076_s1 + $0x828] ss:$16 sps:$4 sm:$0xff]  }
 0x1aa   : > { %3573 = vmatprep.mubr.bf16.mxu1 %v29091_v3  ;;  %3970 = vmatprep.mubr.bf16.mxu0 %v29091_v3 }
 0x1ab   : > { %4024 = vmatpush1.bf16.msra.mxu1 %v19870_v47  ;;  %4419 = vmatprep.subr.bf16.mxu0 %v19884_v40  ;;  %v19915_v47 = vld [vmem:[%s29076_s1 + $0x860] ss:$16 sps:$4 sm:$0xff]   ;;  %v22535_v40 = vsel %vm3714_vm1, %v4227_v7, %v4229_v36 }
 0x1ac   : > { %4025 = vmatprep.subr.bf16.mxu1 %v19881_v20  ;;  %4420 = vmatpush1.bf16.msra.mxu0 %v19882_v43  ;;  %v19900_v20 = vld [vmem:[%s29076_s1 + $0x788] ss:$16 sps:$4 sm:$0xff]   ;;  %v19923_v43 = vld [vmem:[%s29076_s1 + $0x884] ss:$16 sps:$4 sm:$0xff]  }
 0x1ad   : > { %4421 = vmatprep.subr.bf16.mxu0 %v19887_v50  ;;  %v19921_v50 = vld [vmem:[%s29076_s1 + $0x880] ss:$16 sps:$4 sm:$0xff]  }
 0x1af   : > { %4026 = vmatpush1.bf16.msra.mxu1 %v19879_v61  ;;  %v19911_v61 = vld [vmem:[%s29076_s1 + $0x7ac] ss:$16 sps:$4 sm:$0xff]  }
 0x1b0   : > { %4422 = vmatpush1.bf16.msra.mxu0 %v19885_v34  ;;  %4520 = vmatprep.subr.bf16.mxu1 %v19890_v5  ;;  %v4231_v34 = vrot.slane %v21097_v11, 1  ;;  %v19909_v5 = vld [vmem:[%s29076_s1 + $0x7a8] ss:$16 sps:$4 sm:$0xff]   ;;  %v21104_v11 = vld [vmem:[%s21295_s26 + $0xa0] sm:$0xff]  }
 0x1b1   : > { %3574 = vmatmul.mubr.bf16.gmra.mrb[32].mxu1 %v22274_v21  ;;  %3971 = vmatmul.mubr.bf16.gmra.mrb[16].mxu0 %v22441_v55  ;;  %v22454_v21 = vrot.slane %v21920_v45, 1  ;;  %v21093_v45 = vld [vmem:[%s21295_s26 + $0x44] sm:$0xf] }
 0x1b2   : > { %3583 = vmatprep.mubr.bf16.mxu1 %v29091_v3  ;;  %3980 = vmatprep.mubr.bf16.mxu0 %v29091_v3  ;;  %v22567_v6 = vsel %vm3714_vm1, %v4229_v36, %v4231_v34  ;;  %v19945_v36 = vld [vmem:[%s29076_s1 + $0x84c] ss:$16 sps:$4 sm:$0xff]  }
 0x1b3   : > { %4916 = vmatprep.subr.bf16.mxu0 %v19905_v49  ;;  %v22460_v10 = vsel %vm3714_vm1, %v3726_v8, %v22454_v21  ;;  %v19924_v49 = vld [vmem:[%s29076_s1 + $0x8a0] ss:$16 sps:$4 sm:$0xff]   ;;  %v19918_v8 = vld [vmem:[%s29076_s1 + $0x7c8] ss:$16 sps:$4 sm:$0xff]  }
 0x1b9   : > { %3584 = vmatmul.mubr.bf16.gmra.mrb[36].mxu1 %v22288_v54  ;;  %3981 = vmatmul.mubr.bf16.gmra.mrb[20].mxu0 %v22449_v9  ;;  %v16748_v54 = vcombine.low %v4188_v23, %v21093_v45  ;;  %v19932_v23 = vld [vmem:[%s29076_s1 + $0x8c4] ss:$16 sps:$4 sm:$0xff]   ;;  %v19929_v45 = vld [vmem:[%s29076_s1 + $0x7ec] ss:$16 sps:$4 sm:$0xff]  }
 0x1ba   : > { %3593 = vmatprep.mubr.bf16.mxu1 %v29091_v3  ;;  %3990 = vmatprep.mubr.bf16.mxu0 %v29091_v3 }
 0x1bb   : > { %v4224_v12 = vrot.slane %v16748_v54, 1  ;;  %v19930_v54 = vld [vmem:[%s29076_s1 + $0x8c0] ss:$16 sps:$4 sm:$0xff]  }
 0x1c1   : > { %3594 = vmatmul.mubr.bf16.gmra.mrb[40].mxu1 %v22296_v51  ;;  %3991 = vmatmul.mubr.bf16.gmra.mrb[24].mxu0 %v22460_v10  ;;  %v19888_v51 = vld [vmem:[%s29076_s1 + $0x708] ss:$16 sps:$4 sm:$0xff]  }
 0x1c2   : > { %3603 = vmatprep.mubr.bf16.mxu1 %v29091_v3  ;;  %4000 = vmatprep.mubr.bf16.mxu0 %v29091_v3 }
 0x1c9   : > { %3604 = vmatmul.mubr.bf16.gmra.mrb[44].mxu1 %v22304_v57  ;;  %4001 = vmatmul.mubr.bf16.gmra.mrb[28].mxu0 %v22454_v21  ;;  %v22481_v57 = vsel %vm3714_vm1, %v4224_v12, %v4225_v4  ;;  %v19935_v12 = vld [vmem:[%s29076_s1 + $0x8e4] ss:$16 sps:$4 sm:$0xff]  }
 0x1ca   : > { %4043 = vmatprep.mubr.bf16.mxu1 %v29091_v3  ;;  %4439 = vmatprep.mubr.bf16.mxu0 %v29091_v3 }
 0x1d1   : > { %4044 = vmatmul.mubr.bf16.vlgmr.msra.gmra.mrb[16].mxu1 %v22319_v27  ;;  %4440 = vmatmul.mubr.bf16.vlgmr.msra.gmra.mrb[0].mxu0 %v22481_v57  ;;  %v22503_v27 = vsel %vm3714_vm1, %v4225_v4, %v4227_v7  ;;  %v4233_v4 = vrot.slane %v21098_v1, 1  ;;  %v19939_v7 = vld [vmem:[%s29076_s1 + $0x80c] ss:$16 sps:$4 sm:$0xff]  }
 0x1d2   : > { %4521 = vmatpush1.bf16.msra.mxu1 %v19888_v51  ;;  %4053 = vmatprep.mubr.bf16.mxu1 %v29091_v3 }
 0x1d3   : > { %4449 = vmatprep.mubr.bf16.mxu0 %v29091_v3  ;;  %4522 = vmatprep.subr.bf16.mxu1 %v19893_v42  ;;  %v22599_v51 = vsel %vm3714_vm1, %v4231_v34, %v4233_v4  ;;  %v21099_v42 = vld [vmem:[%s21295_s26 + $0x70] sm:$0xff]   ;;  %v4740_v34 = vrot.slane %v21104_v11, 1 }
 0x1d4   : > { %4917 = vmatpush1.bf16.msra.mxu0 %v19903_v18  ;;  %v4235_v18 = vrot.slane %v21099_v42, 1  ;;  %v22735_v42 = vld [vmem:[%s29077_s2] sm:$0xf] }
 0x1d5   : > { %4918 = vmatprep.subr.bf16.mxu0 %v19908_v19 }
 0x1d6   : > { %4523 = vmatpush1.bf16.msra.mxu1 %v19891_v41  ;;  %v22607_v19 = vsel %vm3714_vm1, %v4233_v4, %v4235_v18 }
 0x1d7   : > { %4524 = vmatprep.subr.bf16.mxu1 %v19896_v29  ;;  %v21100_v29 = vld [vmem:[%s21295_s26 + $0x84] sm:$0xf] }
 0x1d8   : > { %4919 = vmatpush1.bf16.msra.mxu0 %v19906_v30 }
 0x1d9   : > { %4054 = vmatmul.mubr.bf16.gmra.mrb[20].mxu1 %v22348_v14  ;;  %4450 = vmatmul.mubr.bf16.gmra.mrb[4].mxu0 %v22503_v27  ;;  %v19902_v14 = vld [vmem:[%s29076_s1 + $0x78c] ss:$16 sps:$4 sm:$0xff]  }
 0x1da   : > { %4063 = vmatprep.mubr.bf16.mxu1 %v29091_v3  ;;  %4459 = vmatprep.mubr.bf16.mxu0 %v29091_v3 }
 0x1db   : > { %4525 = vmatpush1.bf16.msra.mxu1 %v19894_v35  ;;  %4920 = vmatprep.subr.bf16.mxu0 %v19914_v39 }
 0x1dc   : > { %4526 = vmatprep.subr.bf16.mxu1 %v19899_v26  ;;  %4921 = vmatpush1.bf16.msra.mxu0 %v19912_v22  ;;  %v19937_v26 = vld [vmem:[%s29076_s1 + $0x808] ss:$16 sps:$4 sm:$0xff]   ;;  %v21102_v22 = vld [vmem:[%s21295_s26 + $0x90] sm:$0xff]  }
 0x1dd   : > { %4922 = vmatprep.subr.bf16.mxu0 %v19917_v44  ;;  %v4736_v44 = vrot.slane %v21102_v22, 1 }
 0x1df   : > { %4527 = vmatpush1.bf16.msra.mxu1 %v19897_v25  ;;  %v19943_v25 = vld [vmem:[%s29076_s1 + $0x848] ss:$16 sps:$4 sm:$0xff]  }
 0x1e0   : > { %4528 = vmatprep.subr.bf16.mxu1 %v19902_v14  ;;  %4923 = vmatpush1.bf16.msra.mxu0 %v19915_v47  ;;  %v19948_v14 = vld [vmem:[%s29076_s1 + $0x86c] ss:$16 sps:$4 sm:$0xff]  }
 0x1e1   : > { %4064 = vmatmul.mubr.bf16.gmra.mrb[24].mxu1 %v22380_v13  ;;  %4460 = vmatmul.mubr.bf16.gmra.mrb[8].mxu0 %v22535_v40  ;;  %v19920_v13 = vld [vmem:[%s29076_s1 + $0x7cc] ss:$16 sps:$4 sm:$0xff]  }
 0x1e2   : > { %4073 = vmatprep.mubr.bf16.mxu1 %v29091_v3  ;;  %4469 = vmatprep.mubr.bf16.mxu0 %v29091_v3  ;;  %v21103_v47 = vld [vmem:[%s21295_s26 + $0x98] sm:$0xff]  }
 0x1e3   : > { %4529 = vmatpush1.bf16.msra.mxu1 %v19900_v20  ;;  %4924 = vmatprep.subr.bf16.mxu0 %v19923_v43  ;;  %v4738_v20 = vrot.slane %v21103_v47, 1  ;;  %v19946_v43 = vld [vmem:[%s29076_s1 + $0x868] ss:$16 sps:$4 sm:$0xff]  }
 0x1e4   : > { %4530 = vmatprep.subr.bf16.mxu1 %v19911_v61  ;;  %4925 = vmatpush1.bf16.msra.mxu0 %v19921_v50  ;;  %v19951_v61 = vld [vmem:[%s29076_s1 + $0x88c] ss:$16 sps:$4 sm:$0xff]   ;;  %v19949_v50 = vld [vmem:[%s29076_s1 + $0x888] ss:$16 sps:$4 sm:$0xff]  }
 0x1e5   : > { %4926 = vmatprep.subr.bf16.mxu0 %v19926_v62  ;;  %v19954_v62 = vld [vmem:[%s29076_s1 + $0x8ac] ss:$16 sps:$4 sm:$0xff]  }
 0x1e7   : > { %4531 = vmatpush1.bf16.msra.mxu1 %v19909_v5  ;;  %v19952_v5 = vld [vmem:[%s29076_s1 + $0x8a8] ss:$16 sps:$4 sm:$0xff]  }
 0x1e8   : > { %4532 = vmatprep.subr.bf16.mxu1 %v19920_v13  ;;  %4927 = vmatpush1.bf16.msra.mxu0 %v19924_v49  ;;  %v19957_v13 = vld [vmem:[%s29076_s1 + $0x8cc] ss:$16 sps:$4 sm:$0xff]   ;;  %v19955_v49 = vld [vmem:[%s29076_s1 + $0x8c8] ss:$16 sps:$4 sm:$0xff]  }
 0x1e9   : > { %4074 = vmatmul.mubr.bf16.gmra.mrb[28].mxu1 %v22412_v59  ;;  %4470 = vmatmul.mubr.bf16.gmra.mrb[12].mxu0 %v22567_v6  ;;  %v19933_v59 = vld [vmem:[%s29076_s1 + $0x8e0] ss:$16 sps:$4 sm:$0xff]  }
 0x1ea   : > { %4083 = vmatprep.mubr.bf16.mxu1 %v29091_v3  ;;  %4479 = vmatprep.mubr.bf16.mxu0 %v29091_v3 }
 0x1eb   : > { %4533 = vmatpush1.bf16.msra.mxu1 %v19918_v8  ;;  %4928 = vmatprep.subr.bf16.mxu0 %v19932_v23  ;;  %v19960_v8 = vld [vmem:[%s29076_s1 + $0x8ec] ss:$16 sps:$4 sm:$0xff]  }
 0x1ec   : > { %4534 = vmatprep.subr.bf16.mxu1 %v19929_v45  ;;  %4929 = vmatpush1.bf16.msra.mxu0 %v19930_v54  ;;  %v21105_v23 = vld [vmem:[%s21295_s26 + $0xa8] sm:$0xff]  }
 0x1ed   : > { %4930 = vmatprep.subr.bf16.mxu0 %v19935_v12  ;;  %v4742_v45 = vrot.slane %v21105_v23, 1  ;;  %v19958_v54 = vld [vmem:[%s29076_s1 + $0x8e8] ss:$16 sps:$4 sm:$0xff]  }
 0x1ef   : > { %4535 = vmatpush1.bf16.msra.mxu1 %v19927_v15  ;;  %v4743_v12 = vsel %vm3714_vm1, %v4740_v34, %v4742_v45  ;;  %v4746_v15 = vrot.slane %v22283_v37, 1  ;;  %v5208_v37 = vlaneseq }
 0x1f0   : > { %4931 = vmatpush1.bf16.msra.mxu0 %v19933_v59  ;;  %5029 = vmatprep.subr.bf16.mxu1 %v19939_v7 }
 0x1f1   : > { %4084 = vmatmul.mubr.bf16.gmra.mrb[32].mxu1 %v22441_v55  ;;  %4480 = vmatmul.mubr.bf16.gmra.mrb[16].mxu0 %v22599_v51  ;;  %v22614_v55 = vrot.slane %v22118_v38, 1  ;;  %v22727_v7 = vshrl.u32 %v5208_v37, 7 }
 0x1f2   : > { %4093 = vmatprep.mubr.bf16.mxu1 %v29091_v3  ;;  %4489 = vmatprep.mubr.bf16.mxu0 %v29091_v3 }
 0x1f3   : > { %v22618_v41 = vsel %vm3714_vm1, %v4235_v18, %v22614_v55  ;;  %29337 = vst [vmem:[#allocation7_spill] sm:$0xff] %v22727_v7  ;;  %v22738_v18 = vsub.s32 1, %v22727_v7 }
 0x1f5   : > { %29339 = vst [vmem:[#allocation9_spill] sm:$0xff] %v22738_v18 }
 0x1f9   : > { %4094 = vmatmul.mubr.bf16.gmra.mrb[36].mxu1 %v22449_v9  ;;  %4490 = vmatmul.mubr.bf16.gmra.mrb[20].mxu0 %v22607_v19  ;;  %v4697_v9 = vld [vmem:[%s21295_s26 + $0x80] sm:$0xe] }
 0x1fa   : > { %4103 = vmatprep.mubr.bf16.mxu1 %v29091_v3  ;;  %4499 = vmatprep.mubr.bf16.mxu0 %v29091_v3  ;;  %v16781_v30 = vcombine.low %v4697_v9, %v21100_v29 }
 0x1fc   : > { %v4733_v38 = vrot.slane %v16781_v30, 1 }
 0x201   : > { %4104 = vmatmul.mubr.bf16.gmra.mrb[40].mxu1 %v22460_v10  ;;  %4500 = vmatmul.mubr.bf16.gmra.mrb[24].mxu0 %v22618_v41  ;;  %v21101_v10 = vld [vmem:[%s21295_s26 + $0x88] sm:$0xff]  }
 0x202   : > { %4113 = vmatprep.mubr.bf16.mxu1 %v29091_v3  ;;  %4509 = vmatprep.mubr.bf16.mxu0 %v29091_v3  ;;  %v4734_v35 = vrot.slane %v21101_v10, 1 }
 0x204   : > { %v22632_v39 = vsel %vm3714_vm1, %v4733_v38, %v4734_v35 }
 0x209   : > { %4114 = vmatmul.mubr.bf16.gmra.mrb[44].mxu1 %v22454_v21  ;;  %4510 = vmatmul.mubr.bf16.gmra.mrb[28].mxu0 %v22614_v55  ;;  %v19942_v21 = vld [vmem:[%s29076_s1 + $0x82c] ss:$16 sps:$4 sm:$0xff]  }
 0x20a   : > { %4552 = vmatprep.mubr.bf16.mxu1 %v29091_v3  ;;  %4948 = vmatprep.mubr.bf16.mxu0 %v29091_v3 }
 0x211   : > { %4553 = vmatmul.mubr.bf16.vlgmr.msra.gmra.mrb[16].mxu1 %v22481_v57  ;;  %4949 = vmatmul.mubr.bf16.vlgmr.msra.gmra.mrb[0].mxu0 %v22632_v39  ;;  %v22652_v57 = vsel %vm3714_vm1, %v4734_v35, %v4736_v44 }
 0x212   : > { %5030 = vmatpush1.bf16.msra.mxu1 %v19937_v26  ;;  %4562 = vmatprep.mubr.bf16.mxu1 %v29091_v3 }
 0x213   : > { %4958 = vmatprep.mubr.bf16.mxu0 %v29091_v3  ;;  %5031 = vmatprep.subr.bf16.mxu1 %v19942_v21 }
 0x216   : > { %5032 = vmatpush1.bf16.msra.mxu1 %v19940_v33 }
 0x217   : > { %5033 = vmatprep.subr.bf16.mxu1 %v19945_v36 }
 0x219   : > { %4563 = vmatmul.mubr.bf16.gmra.mrb[20].mxu1 %v22503_v27  ;;  %4959 = vmatmul.mubr.bf16.gmra.mrb[4].mxu0 %v22652_v57  ;;  %v4739_v27 = vsel %vm3714_vm1, %v4736_v44, %v4738_v20 }
 0x21a   : > { %4572 = vmatprep.mubr.bf16.mxu1 %v29091_v3  ;;  %4968 = vmatprep.mubr.bf16.mxu0 %v29091_v3 }
 0x21b   : > { %5034 = vmatpush1.bf16.msra.mxu1 %v19943_v25 }
 0x21c   : > { %5035 = vmatprep.subr.bf16.mxu1 %v19948_v14 }
 0x21f   : > { %5036 = vmatpush1.bf16.msra.mxu1 %v19946_v43 }
 0x220   : > { %5037 = vmatprep.subr.bf16.mxu1 %v19951_v61 }
 0x221   : > { %4573 = vmatmul.mubr.bf16.gmra.mrb[24].mxu1 %v22535_v40  ;;  %4969 = vmatmul.mubr.bf16.gmra.mrb[8].mxu0 %v4739_v27  ;;  %v4741_v40 = vsel %vm3714_vm1, %v4738_v20, %v4740_v34 }
 0x222   : > { %4582 = vmatprep.mubr.bf16.mxu1 %v29091_v3  ;;  %4978 = vmatprep.mubr.bf16.mxu0 %v29091_v3 }
 0x223   : > { %5038 = vmatpush1.bf16.msra.mxu1 %v19949_v50 }
 0x224   : > { %5039 = vmatprep.subr.bf16.mxu1 %v19954_v62 }
 0x227   : > { %5040 = vmatpush1.bf16.msra.mxu1 %v19952_v5 }
 0x228   : > { %5041 = vmatprep.subr.bf16.mxu1 %v19957_v13 }
 0x229   : > { %4583 = vmatmul.mubr.bf16.gmra.mrb[28].mxu1 %v22567_v6  ;;  %4979 = vmatmul.mubr.bf16.gmra.mrb[12].mxu0 %v4741_v40  ;;  %v21106_v6 = vld [vmem:[%s21295_s26 + $0xb0] sm:$0xff]  }
 0x22a   : > { %4592 = vmatprep.mubr.bf16.mxu1 %v29091_v3  ;;  %4988 = vmatprep.mubr.bf16.mxu0 %v29091_v3  ;;  %v4744_v1 = vrot.slane %v21106_v6, 1 }
 0x22b   : > { %5042 = vmatpush1.bf16.msra.mxu1 %v19955_v49 }
 0x22c   : > { %5043 = vmatprep.subr.bf16.mxu1 %v19960_v8  ;;  %v4745_v4 = vsel %vm3714_vm1, %v4742_v45, %v4744_v1  ;;  %v4747_v59 = vsel %vm3714_vm1, %v4744_v1, %v4746_v15 }
 0x22f   : > { %5044 = vmatpush1.bf16.msra.mxu1 %v19958_v54 }
 0x231   : > { %4593 = vmatmul.mubr.bf16.gmra.mrb[32].mxu1 %v22599_v51  ;;  %4989 = vmatmul.mubr.bf16.gmra.mrb[16].mxu0 %v4743_v12  ;;  %v22730_v51 = vsub.s32 0, %v22727_v7 }
 0x232   : > { %4602 = vmatprep.mubr.bf16.mxu1 %v29091_v3  ;;  %4998 = vmatprep.mubr.bf16.mxu0 %v29091_v3 }
 0x233   : > { %29338 = vst [vmem:[#allocation8_spill] sm:$0xff] %v22730_v51 }
 0x239   : > { %4603 = vmatmul.mubr.bf16.gmra.mrb[36].mxu1 %v22607_v19  ;;  %4999 = vmatmul.mubr.bf16.gmra.mrb[20].mxu0 %v4745_v4  ;;  %v22742_v19 = vrot.slane %v22735_v42, %v22730_v51 }
 0x23a   : > { %4612 = vmatprep.mubr.bf16.mxu1 %v29091_v3  ;;  %5008 = vmatprep.mubr.bf16.mxu0 %v29091_v3 }
 0x241   : > { %4613 = vmatmul.mubr.bf16.gmra.mrb[40].mxu1 %v22618_v41  ;;  %5009 = vmatmul.mubr.bf16.gmra.mrb[24].mxu0 %v4747_v59 }
 0x242   : > { %4622 = vmatprep.mubr.bf16.mxu1 %v29091_v3  ;;  %5018 = vmatprep.mubr.bf16.mxu0 %v29091_v3 }
 0x249   : > { %4623 = vmatmul.mubr.bf16.gmra.mrb[44].mxu1 %v22614_v55  ;;  %5019 = vmatmul.mubr.bf16.gmra.mrb[28].mxu0 %v4746_v15  ;;  %v22746_v55 = vrot.slane %v22735_v42, %v22738_v18 }
 0x24a   : > { %5061 = vmatprep.mubr.bf16.mxu1 %v29091_v3 }
 0x251   : > { %5062 = vmatmul.mubr.bf16.vlgmr.msra.gmra.mrb[16].mxu1 %v22632_v39 }
 0x252   : > { %5071 = vmatprep.mubr.bf16.mxu1 %v29091_v3 }
 0x259   : > { %5072 = vmatmul.mubr.bf16.gmra.mrb[20].mxu1 %v22652_v57 }
 0x25a   : > { %5081 = vmatprep.mubr.bf16.mxu1 %v29091_v3 }
 0x261   : > { %5082 = vmatmul.mubr.bf16.gmra.mrb[24].mxu1 %v4739_v27 }
 0x262   : > { %5091 = vmatprep.mubr.bf16.mxu1 %v29091_v3 }
 0x269   : > { %5092 = vmatmul.mubr.bf16.gmra.mrb[28].mxu1 %v4741_v40 }
 0x26a   : > { %5101 = vmatprep.mubr.bf16.mxu1 %v29091_v3 }
 0x271   : > { %5102 = vmatmul.mubr.bf16.gmra.mrb[32].mxu1 %v4743_v12 }
 0x272   : > { %5111 = vmatprep.mubr.bf16.mxu1 %v29091_v3 }
 0x279   : > { %5112 = vmatmul.mubr.bf16.gmra.mrb[36].mxu1 %v4745_v4 }
 0x27a   : > { %5121 = vmatprep.mubr.bf16.mxu1 %v29091_v3 }
 0x281   : > { %5122 = vmatmul.mubr.bf16.gmra.mrb[40].mxu1 %v4747_v59 }
 0x282   : > { %5131 = vmatprep.mubr.bf16.mxu1 %v29091_v3 }
 0x289   : > { %5132 = vmatmul.mubr.bf16.gmra.mrb[44].mxu1 %v4746_v15 }
 0x2e4   : > { %v4950_v41 = vpop.f32.mrb[0].mxu0 }
 0x2e5   : > { %v5228_v9 = vadd.f32 %v22742_v19, %v4950_v41  ;;  %v4952_v29 = vpop.f32.mrb[1].mxu0 }
 0x2e6   : > { %v5229_v30 = vadd.f32 %v22746_v55, %v4952_v29  ;;  %v4954_v38 = vpop.f32.mrb[2].mxu0 }
 0x2e7   : > { %v5292_v10 = vmax.f32 %v5228_v9, 0.0  ;;  %v5232_v35 = vadd.f32 %v22742_v19, %v4954_v38  ;;  %v4956_v39 = vpop.f32.mrb[3].mxu0 }
 0x2e8   : > { %v5293_v26 = vmax.f32 %v5229_v30, 0.0  ;;  %v5233_v21 = vadd.f32 %v22746_v55, %v4956_v39 }
 0x2e9   : > { %v5296_v22 = vmax.f32 %v5232_v35, 0.0  ;;  %v5421_v33 = vrot.slane %v5292_v10, 1 }
 0x2ea   : > { %v5297_v44 = vmax.f32 %v5233_v21, 0.0  ;;  %v5424_v57 = vrot.slane %v5293_v26, 1 }
 0x2eb   : > { %v5422_v36 = vrot.slane %v5296_v22, 1 }
 0x2ec   : > { %v5425_v25 = vrot.slane %v5297_v44, 1  ;;  %v4960_v14 = vpop.f32.mrb[4].mxu0 }
 0x2ed   : > { %v5236_v47 = vadd.f32 %v22742_v19, %v4960_v14  ;;  %v4962_v20 = vpop.f32.mrb[5].mxu0  ;;  %v5423_v43 = vsel %vm3714_vm1, %v5421_v33, %v5422_v36 }
 0x2ee   : > { %v5237_v61 = vadd.f32 %v22746_v55, %v4962_v20  ;;  %v4964_v27 = vpop.f32.mrb[6].mxu0  ;;  %v5426_v50 = vsel %vm3714_vm1, %v5424_v57, %v5425_v25  ;;  %v22756_v62 = vmax.f32 %v5292_v10, %v5423_v43 }
 0x2ef   : > { %v5300_v11 = vmax.f32 %v5236_v47, 0.0  ;;  %v5240_v34 = vadd.f32 %v22742_v19, %v4964_v27  ;;  %v4966_v5 = vpop.f32.mrb[7].mxu0  ;;  %v22759_v13 = vmax.f32 %v5293_v26, %v5426_v50 }
 0x2f0   : > { %29340 = vst [vmem:[#allocation10_spill] sm:$0xff] %v22756_v62  ;;  %v5301_v40 = vmax.f32 %v5237_v61, 0.0  ;;  %v5241_v49 = vadd.f32 %v22746_v55, %v4966_v5  ;;  %v19961_v5 = vld [vmem:[%s29078_s3 + $0x3e4] ss:$16 sps:$4 sm:$0xfc]  }
 0x2f1   : > { %29341 = vst [vmem:[#allocation11_spill] sm:$0xff] %v22759_v13  ;;  %v5433_v8 = vrot.slane %v5300_v11, 1  ;;  %v5304_v23 = vmax.f32 %v5240_v34, 0.0  ;;  %v19069_v45 = vpack.i.bf16 %v22759_v13, %v22756_v62 }
 0x2f2   : > { %v5435_v54 = vrot.slane %v5301_v40, 1  ;;  %v5305_v12 = vmax.f32 %v5241_v49, 0.0 }
 0x2f3   : > { %v5441_v6 = vrot.slane %v5304_v23, 1  ;;  %19070 = vrot.lane.b32.xlu0 %v19069_v45, %s21169_s30  ;;  %v5434_v1 = vsel %vm3714_vm1, %v5422_v36, %v5433_v8 }
 0x2f4   : > { %v5443_v4 = vrot.slane %v5305_v12, 1  ;;  %v4970_v15 = vpop.f32.mrb[8].mxu0  ;;  %v22766_v59 = vmax.f32 %v5296_v22, %v5434_v1  ;;  %v5436_v37 = vsel %vm3714_vm1, %v5425_v25, %v5435_v54 }
 0x2f5   : > { %v5244_v41 = vadd.f32 %v22742_v19, %v4970_v15  ;;  %v4972_v9 = vpop.f32.mrb[9].mxu0  ;;  %v5442_v29 = vsel %vm3714_vm1, %v5433_v8, %v5441_v6  ;;  %v22771_v30 = vmax.f32 %v5297_v44, %v5436_v37  ;;  %v7293_v37 = vrot.slane %v19961_v5, 2 }
 0x2f6   : > { %v5245_v38 = vadd.f32 %v22746_v55, %v4972_v9  ;;  %v4974_v10 = vpop.f32.mrb[10].mxu0  ;;  %v5444_v35 = vsel %vm3714_vm1, %v5435_v54, %v5443_v4  ;;  %v22775_v39 = vmax.f32 %v5300_v11, %v5442_v29  ;;  %v22804_v54 = vld [vmem:[%s29078_s3 + $0x404] ss:$16 sps:$4 sm:$0xff]  }
 0x2f7   : > { %v5308_v26 = vmax.f32 %v5244_v41, 0.0  ;;  %v22778_v21 = vadd.f32 %v22742_v19, %v4974_v10  ;;  %v4976_v22 = vpop.f32.mrb[11].mxu0  ;;  %v22780_v33 = vmax.f32 %v5301_v40, %v5444_v35  ;;  %v22821_v41 = vld [vmem:[%s29078_s3 + $0x400] ss:$16 sps:$4 sm:$0xff]   ;;  %v7294_v35 = vrot.slane %v22804_v54, 2 }
 0x2f8   : > { %29342 = vst [vmem:[#allocation12_spill] sm:$0xff] %v22775_v39  ;;  %v5309_v36 = vmax.f32 %v5245_v38, 0.0  ;;  %v22783_v57 = vadd.f32 %v22746_v55, %v4976_v22  ;;  %v22852_v54 = vld [vmem:[%s29078_s3 + $0x424] ss:$16 sps:$4 sm:$0xff]  }
 0x2f9   : > { %29343 = vst [vmem:[#allocation13_spill] sm:$0xff] %v22780_v33  ;;  %v5449_v44 = vrot.slane %v5308_v26, 1  ;;  %v5312_v25 = vmax.f32 %v22778_v21, 0.0  ;;  %v19074_v14 = vpack.i.bf16 %v22780_v33, %v22775_v39 }
 0x2fa   : > { %v5451_v47 = vrot.slane %v5309_v36, 1  ;;  %v5313_v20 = vmax.f32 %v22783_v57, 0.0 }
 0x2fb   : > { %v5457_v43 = vrot.slane %v5312_v25, 1  ;;  %19075 = vrot.lane.b32.xlu1 %v19074_v14, %s21169_s30  ;;  %v5450_v61 = vsel %vm3714_vm1, %v5441_v6, %v5449_v44  ;;  %v19971_v14 = vld [vmem:[%s29078_s3 + $0x3e8] ss:$16 sps:$4 sm:$0xfc]  }
 0x2fc   : > { %v5459_v27 = vrot.slane %v5313_v20, 1  ;;  %v4980_v50 = vpop.f32.mrb[12].mxu0  ;;  %v22791_v11 = vmax.f32 %v5304_v23, %v5450_v61  ;;  %v5452_v34 = vsel %vm3714_vm1, %v5443_v4, %v5451_v47  ;;  %v19965_v23 = vld [vmem:[%s29078_s3 + $0x3ec] ss:$16 sps:$4 sm:$0xfc]  }
 0x2fd   : > { %v5252_v40 = vadd.f32 %v22742_v19, %v4980_v50  ;;  %v4982_v49 = vpop.f32.mrb[13].mxu0  ;;  %v5458_v8 = vsel %vm3714_vm1, %v5449_v44, %v5457_v43  ;;  %v22799_v45 = vmax.f32 %v5305_v12, %v5452_v34  ;;  %v22816_v12 = vld [vmem:[%s29078_s3 + $0x40c] ss:$16 sps:$4 sm:$0xff]   ;;  %v7299_v57 = vrot.slane %v19965_v23, 2  ;;  %v22845_v34 = vld [vmem:[%s29078_s3 + $0x408] ss:$16 sps:$4 sm:$0xff]  }
 0x2fe   : > { %29344 = vst [vmem:[#allocation14_spill] sm:$0xff] %v22791_v11  ;;  %v5253_v6 = vadd.f32 %v22746_v55, %v4982_v49  ;;  %v4984_v1 = vpop.f32.mrb[14].mxu0  ;;  %v5460_v4 = vsel %vm3714_vm1, %v5451_v47, %v5459_v27  ;;  %v22811_v15 = vmax.f32 %v5308_v26, %v5458_v8  ;;  %v19969_v26 = vld [vmem:[%s29078_s3 + $0x3e0] ss:$16 sps:$4 sm:$0xfc]   ;;  %v7300_v44 = vrot.slane %v22816_v12, 2 }
 0x2ff   : > { %v5316_v9 = vmax.f32 %v5252_v40, 0.0  ;;  %v22824_v29 = vadd.f32 %v22742_v19, %v4984_v1  ;;  %v4986_v38 = vpop.f32.mrb[15].mxu0  ;;  %v22826_v10 = vmax.f32 %v5309_v36, %v5460_v4  ;;  %v7295_v50 = vsel %vm7289_vm2, %v7293_v37, %v7294_v35  ;;  %v22861_v37 = vld [vmem:[%s29078_s3 + $0x42c] ss:$16 sps:$4 sm:$0xff]  }
 0x300   : > { %29345 = vst [vmem:[#allocation15_spill] sm:$0xff] %v22811_v15  ;;  %v5317_v21 = vmax.f32 %v5253_v6, 0.0  ;;  %v22833_v22 = vadd.f32 %v22746_v55, %v4986_v38  ;;  %7704 = vmatprep.subr.bf16.mxu0 %v7295_v50  ;;  %v7301_v49 = vsel %vm7289_vm2, %v7299_v57, %v7300_v44  ;;  %v7290_v8 = vrot.slane %v19969_v26, 2 }
 0x301   : > { %29346 = vst [vmem:[#allocation16_spill] sm:$0xff] %v22826_v10  ;;  %v5465_v47 = vrot.slane %v5316_v9, 1  ;;  %v29094_v36 = vmax.f32 %v22824_v29, 0.0  ;;  %7930 = vmatprep.subr.bf16.mxu1 %v7301_v49  ;;  %v7291_v1 = vrot.slane %v22821_v41, 2  ;;  %v7296_v4 = vrot.slane %v19971_v14, 2 }
 0x302   : > { %v5467_v5 = vrot.slane %v5317_v21, 1  ;;  %v29093_v40 = vmax.f32 %v22833_v22, 0.0  ;;  %v7297_v50 = vrot.slane %v22845_v34, 2 }
 0x303   : > { %v5473_v23 = vrot.slane %v29094_v36, 1  ;;  %v5466_v6 = vsel %vm3714_vm1, %v5457_v43, %v5465_v47  ;;  %v22872_v43 = vld [vmem:[%s29078_s3 + $0x420] ss:$16 sps:$4 sm:$0xff]   ;;  %v7292_v61 = vsel %vm7289_vm2, %v7290_v8, %v7291_v1 }
 0x304   : > { %v5475_v12 = vrot.slane %v29093_v40, 1  ;;  %v4990_v38 = vpop.f32.mrb[16].mxu0  ;;  %v22865_v26 = vmax.f32 %v5312_v25, %v5466_v6  ;;  %v5468_v57 = vsel %vm3714_vm1, %v5459_v27, %v5467_v5  ;;  %7705 = vmatpush1.bf16.msra.mxu0 %v7292_v61  ;;  %v7298_v40 = vsel %vm7289_vm2, %v7296_v4, %v7297_v50 }
 0x305   : > { %v18029_v41 = vadd.f32 %v4990_v38, %v21942_v52  ;;  %v4992_v14 = vpop.f32.mrb[17].mxu0  ;;  %v22875_v49 = vmax.f32 %v5313_v20, %v5468_v57  ;;  %v5474_v3 = vsel %vm3714_vm1, %v5465_v47, %v5473_v23  ;;  %7931 = vmatpush1.bf16.msra.mxu1 %v7298_v40  ;;  %v7304_v47 = vrot.slane %v22852_v54, 2  ;;  %v22911_v40 = vld [vmem:[%s29078_s3 + $0x440] ss:$16 sps:$4 sm:$0xff]  }
 0x306   : > { %29347 = vst [vmem:[#allocation17_spill] sm:$0xff] %v22865_v26  ;;  %v18030_v25 = vadd.f32 %v4992_v14, %v21944_v53  ;;  %v4994_v6 = vpop.f32.mrb[18].mxu0  ;;  %v5476_v27 = vsel %vm3714_vm1, %v5467_v5, %v5475_v12  ;;  %v22881_v34 = vmax.f32 %v5316_v9, %v5474_v3  ;;  %v22892_v53 = vld [vmem:[%s29078_s3 + $0x428] ss:$16 sps:$4 sm:$0xff]   ;;  %v22897_v3 = vld [vmem:[%s29078_s3 + $0x444] ss:$16 sps:$4 sm:$0xff]  }
 0x307   : > { %v5260_v36 = vadd.f32 %v18029_v41, %v22742_v19  ;;  %v18031_v52 = vadd.f32 %v4994_v6, %v21949_v58  ;;  %v4996_v20 = vpop.f32.mrb[19].mxu0  ;;  %v22886_v38 = vmax.f32 %v5317_v21, %v5476_v27  ;;  %v7308_v21 = vrot.slane %v22861_v37, 2  ;;  %v22906_v5 = vld [vmem:[%s29078_s3 + $0x44c] ss:$16 sps:$4 sm:$0xff]  }
 0x308   : > { %29348 = vst [vmem:[#allocation18_spill] sm:$0xff] %v22881_v34  ;;  %v5261_v9 = vadd.f32 %v18030_v25, %v22746_v55  ;;  %v18032_v58 = vadd.f32 %v4996_v20, %v21952_v60  ;;  %v7302_v61 = vrot.slane %v22872_v43, 2  ;;  %v7305_v4 = vsel %vm7289_vm2, %v7294_v35, %v7304_v47 }
 0x309   : > { %29349 = vst [vmem:[#allocation19_spill] sm:$0xff] %v22886_v38  ;;  %v5324_v8 = vmax.f32 %v5260_v36, 0.0  ;;  %v22914_v54 = vadd.f32 %v18031_v52, %v22742_v19  ;;  %7706 = vmatprep.subr.bf16.mxu0 %v7305_v4  ;;  %v7309_v43 = vsel %vm7289_vm2, %v7300_v44, %v7308_v21  ;;  %v7306_v36 = vrot.slane %v22892_v53, 2 }
 0x30a   : > { %v5325_v37 = vmax.f32 %v5261_v9, 0.0  ;;  %v22919_v57 = vadd.f32 %v18032_v58, %v22746_v55  ;;  %v7303_v41 = vsel %vm7289_vm2, %v7291_v1, %v7302_v61  ;;  %7932 = vmatprep.subr.bf16.mxu1 %v7309_v43  ;;  %v29350_v60 = vmax.f32 %v22824_v29, 0.0 }
 0x30b   : > { %v5481_v14 = vrot.slane %v5324_v8, 1  ;;  %v5328_v25 = vmax.f32 %v22914_v54, 0.0  ;;  %7707 = vmatpush1.bf16.msra.mxu0 %v7303_v41  ;;  %v7307_v4 = vsel %vm7289_vm2, %v7297_v50, %v7306_v36 }
 0x30c   : > { %v5483_v27 = vrot.slane %v5325_v37, 1  ;;  %v5329_v35 = vmax.f32 %v22919_v57, 0.0  ;;  %v5000_v52 = vpop.f32.mrb[20].mxu0  ;;  %7933 = vmatpush1.bf16.msra.mxu1 %v7307_v4  ;;  %v29354_v4 = vrot.slane %v22906_v5, 2 }
 0x30d   : > { %v5489_v44 = vrot.slane %v5328_v25, 1  ;;  %v18033_v1 = vadd.f32 %v5000_v52, %v21958_v56  ;;  %v5002_v58 = vpop.f32.mrb[21].mxu0  ;;  %v5482_v54 = vsel %vm3714_vm1, %v5473_v23, %v5481_v14  ;;  %v29352_v23 = vmax.f32 %v22833_v22, 0.0  ;;  %v22963_v22 = vld [vmem:[%s29078_s3 + $0x46c] ss:$16 sps:$4 sm:$0xff]  }
 0x30e   : > { %v5491_v43 = vrot.slane %v5329_v35, 1  ;;  %v18034_v53 = vadd.f32 %v5002_v58, %v21963_v63  ;;  %v5004_v41 = vpop.f32.mrb[22].mxu0  ;;  %v22935_v57 = vmax.f32 %v29350_v60, %v5482_v54  ;;  %v5484_v20 = vsel %vm3714_vm1, %v5475_v12, %v5483_v27  ;;  %v22948_v63 = vld [vmem:[%s29078_s3 + $0x448] ss:$16 sps:$4 sm:$0xff]  }
 0x30f   : > { %v5268_v9 = vadd.f32 %v18033_v1, %v22742_v19  ;;  %v18035_v56 = vadd.f32 %v5004_v41, %v21968_v0  ;;  %v5006_v52 = vpop.f32.mrb[23].mxu0  ;;  %v22942_v6 = vmax.f32 %v29352_v23, %v5484_v20  ;;  %v5490_v50 = vsel %vm3714_vm1, %v5481_v14, %v5489_v44  ;;  %v22958_v0 = vld [vmem:[%s29078_s3 + $0x464] ss:$16 sps:$4 sm:$0xff]  }
 0x310   : > { %29351 = vst [vmem:[#allocation20_spill] sm:$0xff] %v22935_v57  ;;  %v5269_v29 = vadd.f32 %v18034_v53, %v22746_v55  ;;  %v18036_v12 = vadd.f32 %v5006_v52, %v21977_v31  ;;  %v5492_v60 = vsel %vm3714_vm1, %v5483_v27, %v5491_v43  ;;  %v22953_v1 = vmax.f32 %v5324_v8, %v5490_v50 }
 0x311   : > { %v5332_v14 = vmax.f32 %v5268_v9, 0.0  ;;  %v22966_v20 = vadd.f32 %v18035_v56, %v22742_v19  ;;  %v22968_v58 = vmax.f32 %v5325_v37, %v5492_v60  ;;  %v29353_v31 = vrot.slane %v22897_v3, 2 }
 0x312   : > { %v5333_v27 = vmax.f32 %v5269_v29, 0.0  ;;  %v22974_v54 = vadd.f32 %v18036_v12, %v22746_v55  ;;  %v7317_v53 = vsel %vm7289_vm2, %v7308_v21, %v29354_v4  ;;  %v29355_v9 = vrot.slane %v22911_v40, 2 }
 0x313   : > { %v7313_v8 = vsel %vm7289_vm2, %v7304_v47, %v29353_v31  ;;  %v5497_v56 = vrot.slane %v5332_v14, 1  ;;  %v5336_v37 = vmax.f32 %v22966_v20, 0.0  ;;  %v29356_v52 = vsub.s32 2, %v22727_v7  ;;  %7934 = vmatprep.subr.bf16.mxu1 %v7317_v53 }
 0x314   : > { %7708 = vmatprep.subr.bf16.mxu0 %v7313_v8  ;;  %v7311_v41 = vsel %vm7289_vm2, %v7302_v61, %v29355_v9  ;;  %v7314_v23 = vrot.slane %v22948_v63, 2  ;;  %v5499_v50 = vrot.slane %v5333_v27, 1  ;;  %v5337_v29 = vmax.f32 %v22974_v54, 0.0  ;;  %v5010_v21 = vpop.f32.mrb[24].mxu0 }
 0x315   : > { %v22986_v47 = vrot.slane %v22735_v42, %v29356_v52  ;;  %7709 = vmatpush1.bf16.msra.mxu0 %v7311_v41  ;;  %v29095_v12 = vrot.slane %v22958_v0, 2  ;;  %v5505_v60 = vrot.slane %v5336_v37, 1  ;;  %v18037_v20 = vadd.f32 %v5010_v21, %v21995_v16  ;;  %v5012_v31 = vpop.f32.mrb[25].mxu0  ;;  %v23004_v16 = vld [vmem:[%s29078_s3 + $0x460] ss:$16 sps:$4 sm:$0xff]  }
 0x316   : > { %v5498_v8 = vsel %vm3714_vm1, %v5489_v44, %v5497_v56  ;;  %v7315_v4 = vsel %vm7289_vm2, %v7306_v36, %v7314_v23  ;;  %v5507_v53 = vrot.slane %v5337_v29, 1  ;;  %v18038_v63 = vadd.f32 %v5012_v31, %v21997_v17  ;;  %v5014_v9 = vpop.f32.mrb[26].mxu0 }
 0x317   : > { %v22998_v41 = vmax.f32 %v5328_v25, %v5498_v8  ;;  %v5500_v52 = vsel %vm3714_vm1, %v5491_v43, %v5499_v50  ;;  %7935 = vmatpush1.bf16.msra.mxu1 %v7315_v4  ;;  %v5276_v44 = vadd.f32 %v18037_v20, %v22742_v19  ;;  %v18039_v36 = vadd.f32 %v5014_v9, %v22005_v24  ;;  %v5016_v21 = vpop.f32.mrb[27].mxu0  ;;  %v23014_v25 = vld [vmem:[%s29078_s3 + $0x468] ss:$16 sps:$4 sm:$0xff]   ;;  %v23024_v24 = vld [vmem:[%s29078_s3 + $0x484] ss:$16 sps:$4 sm:$0xff]  }
 0x318   : > { %v23008_v61 = vmax.f32 %v5329_v35, %v5500_v52  ;;  %v5506_v17 = vsel %vm3714_vm1, %v5497_v56, %v5505_v60  ;;  %v5277_v43 = vadd.f32 %v18038_v63, %v22746_v55  ;;  %v18040_v31 = vadd.f32 %v5016_v21, %v22017_v32 }
 0x319   : > { %29357 = vst [vmem:[#allocation21_spill] sm:$0xff] %v22998_v41  ;;  %v5508_v8 = vsel %vm3714_vm1, %v5499_v50, %v5507_v53  ;;  %v23019_v4 = vmax.f32 %v5332_v14, %v5506_v17  ;;  %v5340_v35 = vmax.f32 %v5276_v44, 0.0  ;;  %v23027_v56 = vadd.f32 %v18039_v36, %v22742_v19 }
 0x31a   : > { %v23029_v20 = vmax.f32 %v5333_v27, %v5508_v8  ;;  %v29359_v63 = vrot.slane %v22897_v3, 2  ;;  %v5341_v50 = vmax.f32 %v5277_v43, 0.0  ;;  %v23037_v14 = vadd.f32 %v18040_v31, %v22746_v55 }
 0x31b   : > { %v29360_v9 = vrot.slane %v22963_v22, 2  ;;  %v29361_v52 = vrot.slane %v22906_v5, 2  ;;  %v7318_v27 = vrot.slane %v23004_v16, 2  ;;  %v5513_v36 = vrot.slane %v5340_v35, 1 }
 0x31c   : > { %29358 = vst [vmem:[#allocation22_spill] sm:$0xff] %v23029_v20  ;;  %v7321_v32 = vsel %vm7289_vm2, %v29359_v63, %v29095_v12  ;;  %v5344_v21 = vmax.f32 %v23027_v56, 0.0  ;;  %v29362_v3 = vsub.s32 3, %v22727_v7  ;;  %v7322_v43 = vrot.slane %v23014_v25, 2  ;;  %v5020_v63 = vpop.f32.mrb[28].mxu0 }
 0x31d   : > { %7710 = vmatprep.subr.bf16.mxu0 %v7321_v32  ;;  %v7325_v44 = vsel %vm7289_vm2, %v29361_v52, %v29360_v9  ;;  %v5515_v31 = vrot.slane %v5341_v50, 1  ;;  %v5345_v8 = vmax.f32 %v23037_v14, 0.0  ;;  %v29363_v5 = vrot.slane %v22911_v40, 2  ;;  %v5022_v52 = vpop.f32.mrb[29].mxu0  ;;  %v23163_v14 = vld [vmem:[%s29078_s3 + $0x4c4] ss:$16 sps:$4 sm:$0xff]  }
 0x31e   : > { %v23049_v17 = vrot.slane %v22735_v42, %v29362_v3  ;;  %7936 = vmatprep.subr.bf16.mxu1 %v7325_v44  ;;  %v29100_v16 = vrot.slane %v23024_v24, 2  ;;  %v5521_v9 = vrot.slane %v5344_v21, 1  ;;  %v18041_v56 = vadd.f32 %v5020_v63, %v22035_v2  ;;  %v5024_v12 = vpop.f32.mrb[30].mxu0  ;;  %v23069_v2 = vld [vmem:[%s29078_s3 + $0x48c] ss:$16 sps:$4 sm:$0xff]  }
 0x31f   : > { %v7319_v32 = vsel %vm7289_vm2, %v29363_v5, %v7318_v27  ;;  %v5514_v42 = vsel %vm3714_vm1, %v5505_v60, %v5513_v36  ;;  %v7323_v44 = vsel %vm7289_vm2, %v7314_v23, %v7322_v43  ;;  %v5523_v25 = vrot.slane %v5345_v8, 1  ;;  %v23074_v23 = vld [vmem:[%s29078_s3 + $0x480] ss:$16 sps:$4 sm:$0xff]   ;;  %v5026_v63 = vpop.f32.mrb[31].mxu0 }
 0x320   : > { %7711 = vmatpush1.bf16.msra.mxu0 %v7319_v32  ;;  %v18042_v3 = vadd.f32 %v5022_v52, %v22037_v46  ;;  %v23063_v40 = vmax.f32 %v5336_v37, %v5514_v42  ;;  %v5516_v5 = vsel %vm3714_vm1, %v5507_v53, %v5515_v31  ;;  %7937 = vmatpush1.bf16.msra.mxu1 %v7323_v44  ;;  %v23086_v32 = vld [vmem:[%s29078_s3 + $0x488] ss:$16 sps:$4 sm:$0xff]   ;;  %v7344_v51 = vrot.slane %v23163_v14, 2 }
 0x321   : > { %v5284_v60 = vadd.f32 %v18041_v56, %v22742_v19  ;;  %v18043_v46 = vadd.f32 %v5024_v12, %v22045_v48  ;;  %v23080_v37 = vmax.f32 %v5337_v29, %v5516_v5  ;;  %v5522_v53 = vsel %vm3714_vm1, %v5513_v36, %v5521_v9 }
 0x322   : > { %29364 = vst [vmem:[#allocation23_spill] sm:$0xff] %v23063_v40  ;;  %v5285_v52 = vadd.f32 %v18042_v3, %v22746_v55  ;;  %v18044_v42 = vadd.f32 %v5026_v63, %v22057_v28  ;;  %v5524_v56 = vsel %vm3714_vm1, %v5515_v31, %v5523_v25  ;;  %v23091_v44 = vmax.f32 %v5340_v35, %v5522_v53 }
 0x323   : > { %v5348_v48 = vmax.f32 %v5284_v60, 0.0  ;;  %v23094_v54 = vadd.f32 %v18043_v46, %v22742_v19  ;;  %v23096_v29 = vmax.f32 %v5341_v50, %v5524_v56  ;;  %v29367_v12 = vrot.slane %v22958_v0, 2 }
 0x324   : > { %29365 = vst [vmem:[#allocation24_spill] sm:$0xff] %v23091_v44  ;;  %v5349_v5 = vmax.f32 %v5285_v52, 0.0  ;;  %v23104_v3 = vadd.f32 %v18044_v42, %v22746_v55  ;;  %v7332_v28 = vrot.slane %v23069_v2, 2  ;;  %v29099_v35 = vrot.slane %v23074_v23, 2  ;;  %v5063_v0 = vpop.f32.mrb[16].mxu1 }
 0x325   : > { %29366 = vst [vmem:[#allocation25_spill] sm:$0xff] %v23096_v29  ;;  %v7329_v36 = vsel %vm7289_vm2, %v29367_v12, %v29100_v16  ;;  %v5529_v31 = vrot.slane %v5348_v48, 1  ;;  %v29097_v19 = vmax.f32 %v23094_v54, 0.0  ;;  %v29098_v50 = vrot.slane %v23086_v32, 2  ;;  %v5065_v42 = vpop.f32.mrb[17].mxu1 }
 0x326   : > { %7712 = vmatprep.subr.bf16.mxu0 %v7329_v36  ;;  %v5531_v60 = vrot.slane %v5349_v5, 1  ;;  %v29096_v46 = vmax.f32 %v23104_v3, 0.0  ;;  %v29368_v63 = vrot.slane %v22963_v22, 2  ;;  %v7327_v55 = vsel %vm7289_vm2, %v7318_v27, %v29099_v35  ;;  %v5067_v36 = vpop.f32.mrb[18].mxu1  ;;  %v23183_v16 = vld [vmem:[%s29078_s3 + $0x4c0] ss:$16 sps:$4 sm:$0xff]  }
 0x327   : > { %v23119_v2 = vrot.slane %v29097_v19, 1  ;;  %v5230_v52 = vadd.f32 %v22986_v47, %v5063_v0  ;;  %v5530_v56 = vsel %vm3714_vm1, %v5521_v9, %v5529_v31  ;;  %7713 = vmatpush1.bf16.msra.mxu0 %v7327_v55  ;;  %v7331_v22 = vsel %vm7289_vm2, %v7322_v43, %v29098_v50  ;;  %v19997_v9 = vld [vmem:[%s29078_s3 + $0x4a4] ss:$16 sps:$4 sm:$0xff]   ;;  %v19999_v43 = vld [vmem:[%s29078_s3 + $0x4ac] ss:$16 sps:$4 sm:$0xff]  }
 0x328   : > { %v7333_v53 = vsel %vm7289_vm2, %v29368_v63, %v7332_v28  ;;  %v23128_v12 = vrot.slane %v29096_v46, 1  ;;  %v5231_v27 = vadd.f32 %v23049_v17, %v5065_v42  ;;  %v23131_v63 = vmax.f32 %v5344_v21, %v5530_v56  ;;  %v5069_v46 = vpop.f32.mrb[19].mxu1  ;;  %v23153_v42 = vld [vmem:[%s29078_s3 + $0x4a8] ss:$16 sps:$4 sm:$0xff]  }
 0x329   : > { %7938 = vmatprep.subr.bf16.mxu1 %v7333_v53  ;;  %v5532_v0 = vsel %vm3714_vm1, %v5523_v25, %v5531_v60  ;;  %v5294_v53 = vmax.f32 %v5230_v52, 0.0  ;;  %v23141_v55 = vadd.f32 %v22986_v47, %v5067_v36  ;;  %v20001_v25 = vld [vmem:[%s29078_s3 + $0x4a0] ss:$16 sps:$4 sm:$0xff]   ;;  %v23156_v52 = vadd.f32 %v23049_v17, %v5069_v46 }
 0x32a   : > { %29369 = vst [vmem:[#allocation26_spill] sm:$0xff] %v23131_v63  ;;  %7939 = vmatpush1.bf16.msra.mxu1 %v7331_v22  ;;  %v23145_v21 = vmax.f32 %v5345_v8, %v5532_v0  ;;  %v5295_v56 = vmax.f32 %v5231_v27, 0.0  ;;  %v5538_v22 = vsel %vm3714_vm1, %v5529_v31, %v23119_v2  ;;  %v23168_v8 = vld [vmem:[%s29078_s3 + $0x4cc] ss:$16 sps:$4 sm:$0xff]   ;;  %v5540_v31 = vsel %vm3714_vm1, %v5531_v60, %v23128_v12 }
 0x32b   : > { %v5298_v36 = vmax.f32 %v23141_v55, 0.0  ;;  %v23173_v46 = vmax.f32 %v5348_v48, %v5538_v22  ;;  %v5427_v0 = vrot.slane %v5294_v53, 1  ;;  %v29111_v50 = vmax.f32 %v23156_v52, 0.0 }
 0x32c   : > { %29370 = vst [vmem:[#allocation27_spill] sm:$0xff] %v23145_v21  ;;  %v5430_v19 = vrot.slane %v5295_v56, 1  ;;  %v23178_v35 = vmax.f32 %v5349_v5, %v5540_v31  ;;  %v7336_v18 = vrot.slane %v19997_v9, 2  ;;  %v7340_v7 = vrot.slane %v19999_v43, 2  ;;  %v5073_v22 = vpop.f32.mrb[20].mxu1 }
 0x32d   : > { %29371 = vst [vmem:[#allocation28_spill] sm:$0xff] %v23173_v46  ;;  %v5428_v55 = vrot.slane %v5298_v36, 1  ;;  %v7334_v27 = vrot.slane %v20001_v25, 2  ;;  %v5431_v48 = vrot.slane %v29111_v50, 1  ;;  %v7338_v60 = vrot.slane %v23153_v42, 2  ;;  %v5075_v33 = vpop.f32.mrb[21].mxu1 }
 0x32e   : > { %29372 = vst [vmem:[#allocation29_spill] sm:$0xff] %v23178_v35  ;;  %v29113_v5 = vrot.slane %v23168_v8, 2  ;;  %v5238_v31 = vadd.f32 %v22986_v47, %v5073_v22  ;;  %v29373_v39 = vrot.slane %v23024_v24, 2  ;;  %v7341_v43 = vsel %vm7289_vm2, %v7332_v28, %v7340_v7  ;;  %v5077_v50 = vpop.f32.mrb[22].mxu1  ;;  %v23206_v24 = vld [vmem:[%s29078_s3 + $0x4c8] ss:$16 sps:$4 sm:$0xff]  }
 0x32f   : > { %v5429_v13 = vsel %vm3714_vm1, %v5427_v0, %v5428_v55  ;;  %v23197_v25 = vadd.f32 %v23049_v17, %v5075_v33  ;;  %v5432_v14 = vsel %vm3714_vm1, %v5430_v19, %v5431_v48  ;;  %7940 = vmatprep.subr.bf16.mxu1 %v7341_v43  ;;  %v23209_v28 = vadd.f32 %v22986_v47, %v5077_v50  ;;  %v5079_v33 = vpop.f32.mrb[23].mxu1 }
 0x330   : > { %v7337_v9 = vsel %vm7289_vm2, %v29373_v39, %v7336_v18  ;;  %v23199_v42 = vmax.f32 %v5294_v53, %v5429_v13  ;;  %v5302_v39 = vmax.f32 %v5238_v31, 0.0  ;;  %v23211_v0 = vmax.f32 %v5295_v56, %v5432_v14  ;;  %v23219_v53 = vld [vmem:[%s29078_s3 + $0x4e4] ss:$16 sps:$4 sm:$0xff]  }
 0x331   : > { %7714 = vmatprep.subr.bf16.mxu0 %v7337_v9  ;;  %v29376_v13 = vrot.slane %v23074_v23, 2  ;;  %v23224_v9 = vld [vmem:[%s29078_s3 + $0x4ec] ss:$16 sps:$4 sm:$0xff]   ;;  %v5303_v50 = vmax.f32 %v23197_v25, 0.0  ;;  %v23228_v31 = vadd.f32 %v23049_v17, %v5079_v33  ;;  %v29377_v56 = vrot.slane %v23086_v32, 2 }
 0x332   : > { %29374 = vst [vmem:[#allocation30_spill] sm:$0xff] %v23199_v42  ;;  %29375 = vst [vmem:[#allocation31_spill] sm:$0xff] %v23211_v0  ;;  %v19079_v23 = vpack.i.bf16 %v22766_v59, %v23199_v42  ;;  %v5437_v14 = vrot.slane %v5302_v39, 1  ;;  %v7345_v22 = vsel %vm7289_vm2, %v7336_v18, %v7344_v51  ;;  %v7349_v25 = vsel %vm7289_vm2, %v7340_v7, %v29113_v5 }
 0x333   : > { %v7335_v19 = vsel %vm7289_vm2, %v29376_v13, %v7334_v27  ;;  %v7339_v43 = vsel %vm7289_vm2, %v29377_v56, %v7338_v60  ;;  %v29115_v13 = vmax.f32 %v23209_v28, 0.0  ;;  %v5439_v33 = vrot.slane %v5303_v50, 1 }
 0x334   : > { %7715 = vmatpush1.bf16.msra.mxu0 %v7335_v19  ;;  %7941 = vmatpush1.bf16.msra.mxu1 %v7339_v43  ;;  %v29116_v62 = vmax.f32 %v23228_v31, 0.0  ;;  %v29378_v32 = vrot.slane %v23183_v16, 2  ;;  %v7346_v56 = vrot.slane %v23206_v24, 2  ;;  %v5438_v18 = vsel %vm3714_vm1, %v5428_v55, %v5437_v14 }
 0x335   : > { %19080 = vrot.lane.b32.xlu0 %v19079_v23, %s21169_s30  ;;  %7716 = vmatprep.subr.bf16.mxu0 %v7345_v22  ;;  %v5445_v43 = vrot.slane %v29115_v13, 1  ;;  %v7352_v7 = vrot.slane %v23219_v53, 2  ;;  %v7356_v5 = vrot.slane %v23224_v9, 2  ;;  %v5083_v22 = vpop.f32.mrb[24].mxu1  ;;  %v23253_v42 = vmax.f32 %v5298_v36, %v5438_v18  ;;  %v23267_v36 = vld [vmem:[%s29078_s3 + $0x4e0] ss:$16 sps:$4 sm:$0xff]  }
 0x336   : > { %v7343_v19 = vsel %vm7289_vm2, %v7334_v27, %v29378_v32  ;;  %7942 = vmatprep.subr.bf16.mxu1 %v7349_v25  ;;  %v5447_v23 = vrot.slane %v29116_v62, 1  ;;  %v5440_v27 = vsel %vm3714_vm1, %v5431_v48, %v5439_v33  ;;  %v7347_v24 = vsel %vm7289_vm2, %v7338_v60, %v7346_v56  ;;  %v5085_v13 = vpop.f32.mrb[25].mxu1  ;;  %v23272_v48 = vld [vmem:[%s29078_s3 + $0x4e8] ss:$16 sps:$4 sm:$0xff]   ;;  %v23283_v18 = vld [vmem:[%s29078_s3 + $0x504] ss:$16 sps:$4 sm:$0xff]  }
 0x337   : > { %29379 = vst [vmem:[#allocation32_spill] sm:$0xff] %v23253_v42  ;;  %v5246_v32 = vadd.f32 %v22986_v47, %v5083_v22  ;;  %v5446_v55 = vsel %vm3714_vm1, %v5437_v14, %v5445_v43  ;;  %v29380_v53 = vmax.f32 %v23156_v52, 0.0  ;;  %v7353_v9 = vsel %vm7289_vm2, %v7344_v51, %v7352_v7  ;;  %v5087_v14 = vpop.f32.mrb[26].mxu1  ;;  %v23288_v22 = vld [vmem:[%s29078_s3 + $0x50c] ss:$16 sps:$4 sm:$0xff]  }
 0x338   : > { %7717 = vmatpush1.bf16.msra.mxu0 %v7343_v19  ;;  %7943 = vmatpush1.bf16.msra.mxu1 %v7347_v24  ;;  %v5247_v60 = vadd.f32 %v23049_v17, %v5085_v13  ;;  %v19084_v52 = vpack.i.bf16 %v23253_v42, %v22771_v30  ;;  %v23277_v19 = vmax.f32 %v5302_v39, %v5446_v55  ;;  %v5089_v24 = vpop.f32.mrb[27].mxu1  ;;  %v7364_v39 = vrot.slane %v23288_v22, 2 }
 0x339   : > { %v23261_v25 = vmax.f32 %v29380_v53, %v5440_v27  ;;  %v5448_v51 = vsel %vm3714_vm1, %v5439_v33, %v5447_v23  ;;  %7718 = vmatprep.subr.bf16.mxu0 %v7353_v9  ;;  %v5310_v13 = vmax.f32 %v5246_v32, 0.0  ;;  %v23291_v27 = vadd.f32 %v22986_v47, %v5087_v14 }
 0x33a   : > { %29382 = vst [vmem:[#allocation34_spill] sm:$0xff] %v23277_v19  ;;  %v23295_v33 = vmax.f32 %v5303_v50, %v5448_v51  ;;  %v5311_v55 = vmax.f32 %v5247_v60, 0.0  ;;  %v23298_v53 = vadd.f32 %v23049_v17, %v5089_v24  ;;  %19085 = vrot.lane.b32.xlu1 %v19084_v52, %s21169_s30  ;;  %v19089_v9 = vpack.i.bf16 %v22791_v11, %v23277_v19 }
 0x33b   : > { %29381 = vst [vmem:[#allocation33_spill] sm:$0xff] %v23261_v25  ;;  %v29384_v32 = vrot.slane %v23168_v8, 2  ;;  %v5453_v62 = vrot.slane %v5310_v13, 1  ;;  %v29121_v42 = vmax.f32 %v23291_v27, 0.0  ;;  %v7350_v50 = vrot.slane %v23267_v36, 2 }
 0x33c   : > { %29383 = vst [vmem:[#allocation35_spill] sm:$0xff] %v23295_v33  ;;  %v7354_v60 = vrot.slane %v23272_v48, 2  ;;  %v5455_v51 = vrot.slane %v5311_v55, 1  ;;  %v29120_v24 = vmax.f32 %v23298_v53, 0.0  ;;  %19090 = vrot.lane.b32.xlu0 %v19089_v9, %s21169_s30  ;;  %v7360_v52 = vrot.slane %v23283_v18, 2  ;;  %v5093_v11 = vpop.f32.mrb[28].mxu1 }
 0x33d   : > { %v7357_v14 = vsel %vm7289_vm2, %v29384_v32, %v7356_v5  ;;  %v5461_v8 = vrot.slane %v29121_v42, 1  ;;  %v5454_v32 = vsel %vm3714_vm1, %v5445_v43, %v5453_v62  ;;  %v29386_v9 = vmax.f32 %v23209_v28, 0.0 }
 0x33e   : > { %7944 = vmatprep.subr.bf16.mxu1 %v7357_v14  ;;  %v29385_v14 = vrot.slane %v23183_v16, 2  ;;  %v7355_v48 = vsel %vm7289_vm2, %v7346_v56, %v7354_v60  ;;  %v5463_v19 = vrot.slane %v29120_v24, 1  ;;  %v5456_v22 = vsel %vm3714_vm1, %v5447_v23, %v5455_v51  ;;  %v23331_v16 = vld [vmem:[%s29078_s3 + $0x500] ss:$16 sps:$4 sm:$0xff]  }
 0x33f   : > { %v23324_v18 = vmax.f32 %v29386_v9, %v5454_v32  ;;  %7945 = vmatpush1.bf16.msra.mxu1 %v7355_v48  ;;  %v7361_v43 = vsel %vm7289_vm2, %v7352_v7, %v7360_v52  ;;  %v5254_v56 = vadd.f32 %v22986_v47, %v5093_v11  ;;  %v5462_v24 = vsel %vm3714_vm1, %v5453_v62, %v5461_v8  ;;  %v23343_v7 = vld [vmem:[%s29078_s3 + $0x508] ss:$16 sps:$4 sm:$0xff]  }
 0x340   : > { %v7351_v36 = vsel %vm7289_vm2, %v29385_v14, %v7350_v50  ;;  %v5095_v14 = vpop.f32.mrb[29].mxu1  ;;  %v29388_v28 = vmax.f32 %v23228_v31, 0.0  ;;  %v7365_v23 = vsel %vm7289_vm2, %v7356_v5, %v7364_v39  ;;  %v29390_v31 = vpack.i.bf16 %v22826_v10, %v22811_v15 }
 0x341   : > { %29387 = vst [vmem:[#allocation36_spill] sm:$0xff] %v23324_v18  ;;  %7719 = vmatpush1.bf16.msra.mxu0 %v7351_v36  ;;  %v23348_v36 = vld [vmem:[%s29078_s3 + $0x524] ss:$16 sps:$4 sm:$0xff]   ;;  %v5255_v11 = vadd.f32 %v23049_v17, %v5095_v14  ;;  %v5097_v62 = vpop.f32.mrb[30].mxu1  ;;  %v19094_v5 = vpack.i.bf16 %v23324_v18, %v22799_v45  ;;  %v23357_v48 = vmax.f32 %v5310_v13, %v5462_v24  ;;  %v7362_v10 = vrot.slane %v23343_v7, 2 }
 0x342   : > { %v23337_v32 = vmax.f32 %v29388_v28, %v5456_v22  ;;  %7720 = vmatprep.subr.bf16.mxu0 %v7361_v43  ;;  %19100 = vrot.lane.b32.xlu0 %v29390_v31, %s21169_s30  ;;  %v5464_v9 = vsel %vm3714_vm1, %v5455_v51, %v5463_v19  ;;  %v23363_v22 = vld [vmem:[%s29078_s3 + $0x52c] ss:$16 sps:$4 sm:$0xff]   ;;  %v5318_v43 = vmax.f32 %v5254_v56, 0.0  ;;  %v23366_v14 = vadd.f32 %v22986_v47, %v5097_v62  ;;  %v5099_v28 = vpop.f32.mrb[31].mxu1 }
 0x343   : > { %29391 = vst [vmem:[#allocation38_spill] sm:$0xff] %v23357_v48  ;;  %v23370_v42 = vmax.f32 %v5311_v55, %v5464_v9  ;;  %7946 = vmatprep.subr.bf16.mxu1 %v7365_v23  ;;  %v5319_v13 = vmax.f32 %v5255_v11, 0.0  ;;  %v23373_v24 = vadd.f32 %v23049_v17, %v5099_v28  ;;  %19095 = vrot.lane.b32.xlu1 %v19094_v5, %s21169_s30  ;;  %v7358_v56 = vrot.slane %v23331_v16, 2  ;;  %v23385_v23 = vld [vmem:[%s29078_s3 + $0x520] ss:$16 sps:$4 sm:$0xff]  }
 0x344   : > { %29389 = vst [vmem:[#allocation37_spill] sm:$0xff] %v23337_v32  ;;  %v19104_v51 = vpack.i.bf16 %v22865_v26, %v23357_v48  ;;  %v5469_v62 = vrot.slane %v5318_v43, 1  ;;  %v29127_v18 = vmax.f32 %v23366_v14, 0.0  ;;  %v7368_v55 = vrot.slane %v23348_v36, 2  ;;  %v5103_v26 = vpop.f32.mrb[32].mxu1 }
 0x345   : > { %29392 = vst [vmem:[#allocation39_spill] sm:$0xff] %v23370_v42  ;;  %v5471_v11 = vrot.slane %v5319_v13, 1  ;;  %v29128_v5 = vmax.f32 %v23373_v24, 0.0  ;;  %v7359_v9 = vsel %vm7289_vm2, %v7350_v50, %v7358_v56  ;;  %v7372_v28 = vrot.slane %v23363_v22, 2 }
 0x346   : > { %v5477_v16 = vrot.slane %v29127_v18, 1  ;;  %v5470_v31 = vsel %vm3714_vm1, %v5461_v8, %v5469_v62  ;;  %7721 = vmatpush1.bf16.msra.mxu0 %v7359_v9  ;;  %v7363_v7 = vsel %vm7289_vm2, %v7354_v60, %v7362_v10  ;;  %v7369_v36 = vsel %vm7289_vm2, %v7360_v52, %v7368_v55  ;;  %v5105_v60 = vpop.f32.mrb[33].mxu1 }
 0x347   : > { %v5479_v48 = vrot.slane %v29128_v5, 1  ;;  %19105 = vrot.lane.b32.xlu1 %v19104_v51, %s21169_s30  ;;  %v29393_v50 = vmax.f32 %v23291_v27, 0.0  ;;  %v5472_v22 = vsel %vm3714_vm1, %v5463_v19, %v5471_v11  ;;  %7947 = vmatpush1.bf16.msra.mxu1 %v7363_v7  ;;  %v7373_v8 = vsel %vm7289_vm2, %v7364_v39, %v7372_v28  ;;  %v23414_v19 = vld [vmem:[%s29078_s3 + $0x528] ss:$16 sps:$4 sm:$0xff]   ;;  %v23435_v7 = vld [vmem:[%s29078_s3 + $0x540] ss:$16 sps:$4 sm:$0xff]  }
 0x348   : > { %v5262_v9 = vadd.f32 %v22986_v47, %v5103_v26  ;;  %v5478_v52 = vsel %vm3714_vm1, %v5469_v62, %v5477_v16  ;;  %v29395_v18 = vmax.f32 %v23298_v53, 0.0  ;;  %7722 = vmatprep.subr.bf16.mxu0 %v7369_v36  ;;  %7948 = vmatprep.subr.bf16.mxu1 %v7373_v8  ;;  %v29130_v27 = vrot.slane %v23385_v23, 2  ;;  %v23419_v26 = vld [vmem:[%s29078_s3 + $0x544] ss:$16 sps:$4 sm:$0xff]   ;;  %v23430_v62 = vld [vmem:[%s29078_s3 + $0x54c] ss:$16 sps:$4 sm:$0xff]  }
 0x349   : > { %v23400_v15 = vmax.f32 %v29393_v50, %v5470_v31  ;;  %v5263_v39 = vadd.f32 %v23049_v17, %v5105_v60  ;;  %v5107_v31 = vpop.f32.mrb[34].mxu1  ;;  %v5480_v51 = vsel %vm3714_vm1, %v5471_v11, %v5479_v48 }
 0x34a   : > { %v23408_v5 = vmax.f32 %v29395_v18, %v5472_v22  ;;  %v23424_v18 = vmax.f32 %v5318_v43, %v5478_v52  ;;  %v5326_v36 = vmax.f32 %v5262_v9, 0.0  ;;  %v23438_v50 = vadd.f32 %v22986_v47, %v5107_v31  ;;  %v5109_v22 = vpop.f32.mrb[35].mxu1 }
 0x34b   : > { %29394 = vst [vmem:[#allocation40_spill] sm:$0xff] %v23400_v15  ;;  %v19109_v53 = vpack.i.bf16 %v23400_v15, %v22875_v49  ;;  %v23442_v8 = vmax.f32 %v5319_v13, %v5480_v51  ;;  %v5327_v11 = vmax.f32 %v5263_v39, 0.0  ;;  %v23445_v60 = vadd.f32 %v23049_v17, %v5109_v22  ;;  %v23463_v22 = vld [vmem:[%s29078_s3 + $0x548] ss:$16 sps:$4 sm:$0xff]  }
 0x34c   : > { %29396 = vst [vmem:[#allocation41_spill] sm:$0xff] %v23408_v5  ;;  %29397 = vst [vmem:[#allocation42_spill] sm:$0xff] %v23424_v18  ;;  %v29399_v52 = vpack.i.bf16 %v22886_v38, %v22881_v34  ;;  %v19119_v9 = vpack.i.bf16 %v22935_v57, %v23424_v18  ;;  %v7367_v31 = vsel %vm7289_vm2, %v7358_v56, %v29130_v27  ;;  %v5485_v13 = vrot.slane %v5326_v36, 1  ;;  %v5113_v57 = vpop.f32.mrb[36].mxu1 }
 0x34d   : > { %29398 = vst [vmem:[#allocation43_spill] sm:$0xff] %v23442_v8  ;;  %19110 = vrot.lane.b32.xlu0 %v19109_v53, %s21169_s30  ;;  %v29134_v39 = vmax.f32 %v23438_v50, 0.0  ;;  %7723 = vmatpush1.bf16.msra.mxu0 %v7367_v31  ;;  %v7370_v51 = vrot.slane %v23414_v19, 2  ;;  %v7376_v53 = vrot.slane %v23419_v26, 2  ;;  %v29136_v43 = vmax.f32 %v23445_v60, 0.0 }
 0x34e   : > { %19115 = vrot.lane.b32.xlu1 %v29399_v52, %s21169_s30  ;;  %v5487_v52 = vrot.slane %v5327_v11, 1  ;;  %v7380_v18 = vrot.slane %v23430_v62, 2  ;;  %v5486_v31 = vsel %vm3714_vm1, %v5477_v16, %v5485_v13  ;;  %v29400_v38 = vmax.f32 %v23366_v14, 0.0 }
 0x34f   : > { %v5493_v27 = vrot.slane %v29134_v39, 1  ;;  %v7371_v19 = vsel %vm7289_vm2, %v7362_v10, %v7370_v51  ;;  %v7377_v26 = vsel %vm7289_vm2, %v7368_v55, %v7376_v53  ;;  %v5495_v15 = vrot.slane %v29136_v43, 1  ;;  %v5115_v10 = vpop.f32.mrb[37].mxu1 }
 0x350   : > { %v23478_v62 = vmax.f32 %v29400_v38, %v5486_v31  ;;  %v5488_v56 = vsel %vm3714_vm1, %v5479_v48, %v5487_v52  ;;  %7949 = vmatpush1.bf16.msra.mxu1 %v7371_v19  ;;  %v7381_v39 = vsel %vm7289_vm2, %v7372_v28, %v7380_v18  ;;  %v5270_v16 = vadd.f32 %v22986_v47, %v5113_v57  ;;  %v23492_v38 = vld [vmem:[%s29078_s3 + $0x564] ss:$16 sps:$4 sm:$0xff]   ;;  %v5117_v28 = vpop.f32.mrb[38].mxu1 }
 0x351   : > { %19120 = vrot.lane.b32.xlu0 %v19119_v9, %s21169_s30  ;;  %v5494_v55 = vsel %vm3714_vm1, %v5485_v13, %v5493_v27  ;;  %v29402_v34 = vmax.f32 %v23373_v24, 0.0  ;;  %7724 = vmatprep.subr.bf16.mxu0 %v7377_v26  ;;  %v29141_v14 = vrot.slane %v23463_v22, 2  ;;  %v5271_v48 = vadd.f32 %v23049_v17, %v5115_v10  ;;  %v23503_v24 = vld [vmem:[%s29078_s3 + $0x56c] ss:$16 sps:$4 sm:$0xff]   ;;  %v23508_v13 = vld [vmem:[%s29078_s3 + $0x560] ss:$16 sps:$4 sm:$0xff]  }
 0x352   : > { %29401 = vst [vmem:[#allocation44_spill] sm:$0xff] %v23478_v62  ;;  %7950 = vmatprep.subr.bf16.mxu1 %v7381_v39  ;;  %v19124_v57 = vpack.i.bf16 %v23478_v62, %v22942_v6  ;;  %v23497_v9 = vmax.f32 %v5326_v36, %v5494_v55  ;;  %v5334_v39 = vmax.f32 %v5270_v16, 0.0  ;;  %v5119_v31 = vpop.f32.mrb[39].mxu1  ;;  %v29406_v16 = vpack.i.bf16 %v22968_v58, %v22953_v1 }
 0x353   : > { %v23486_v43 = vmax.f32 %v29402_v34, %v5488_v56  ;;  %v5496_v34 = vsel %vm3714_vm1, %v5487_v52, %v5495_v15  ;;  %v23511_v56 = vadd.f32 %v22986_v47, %v5117_v28  ;;  %v23520_v52 = vld [vmem:[%s29078_s3 + $0x568] ss:$16 sps:$4 sm:$0xff]   ;;  %v5335_v26 = vmax.f32 %v5271_v48, 0.0 }
 0x354   : > { %29404 = vst [vmem:[#allocation46_spill] sm:$0xff] %v23497_v9  ;;  %v23515_v19 = vmax.f32 %v5327_v11, %v5496_v34  ;;  %v23523_v10 = vadd.f32 %v23049_v17, %v5119_v31  ;;  %19125 = vrot.lane.b32.xlu1 %v19124_v57, %s21169_s30  ;;  %v19134_v11 = vpack.i.bf16 %v22998_v41, %v23497_v9  ;;  %v29407_v55 = vrot.slane %v23435_v7, 2 }
 0x355   : > { %29403 = vst [vmem:[#allocation45_spill] sm:$0xff] %v23486_v43  ;;  %19130 = vrot.lane.b32.xlu0 %v29406_v16, %s21169_s30  ;;  %v29408_v28 = vrot.slane %v23385_v23, 2  ;;  %v5501_v48 = vrot.slane %v5334_v39, 1  ;;  %v29140_v31 = vmax.f32 %v23511_v56, 0.0  ;;  %v7379_v57 = vsel %vm7289_vm2, %v7370_v51, %v29141_v14 }
 0x356   : > { %29405 = vst [vmem:[#allocation47_spill] sm:$0xff] %v23515_v19  ;;  %v7384_v36 = vrot.slane %v23492_v38, 2  ;;  %v5503_v16 = vrot.slane %v5335_v26, 1  ;;  %v29142_v62 = vmax.f32 %v23523_v10, 0.0  ;;  %7951 = vmatpush1.bf16.msra.mxu1 %v7379_v57  ;;  %v7388_v9 = vrot.slane %v23503_v24, 2  ;;  %v5123_v38 = vpop.f32.mrb[40].mxu1 }
 0x357   : > { %v7375_v34 = vsel %vm7289_vm2, %v29408_v28, %v29407_v55  ;;  %v7382_v23 = vrot.slane %v23508_v13, 2  ;;  %v5509_v55 = vrot.slane %v29140_v31, 1  ;;  %v5502_v28 = vsel %vm3714_vm1, %v5493_v27, %v5501_v48 }
 0x358   : > { %7725 = vmatpush1.bf16.msra.mxu0 %v7375_v34  ;;  %v7385_v34 = vsel %vm7289_vm2, %v7376_v53, %v7384_v36  ;;  %v5511_v51 = vrot.slane %v29142_v62, 1  ;;  %19135 = vrot.lane.b32.xlu1 %v19134_v11, %s21169_s30  ;;  %v29409_v57 = vmax.f32 %v23438_v50, 0.0  ;;  %v5504_v13 = vsel %vm3714_vm1, %v5495_v15, %v5503_v16  ;;  %v5125_v53 = vpop.f32.mrb[41].mxu1  ;;  %v23571_v15 = vld [vmem:[%s29078_s3 + $0x584] ss:$16 sps:$4 sm:$0xff]  }
 0x359   : > { %7726 = vmatprep.subr.bf16.mxu0 %v7385_v34  ;;  %v7389_v31 = vsel %vm7289_vm2, %v7380_v18, %v7388_v9  ;;  %v5278_v27 = vadd.f32 %v22986_v47, %v5123_v38  ;;  %v5510_v14 = vsel %vm3714_vm1, %v5501_v48, %v5509_v55  ;;  %v29411_v41 = vmax.f32 %v23445_v60, 0.0  ;;  %v23576_v18 = vld [vmem:[%s29078_s3 + $0x58c] ss:$16 sps:$4 sm:$0xff]   ;;  %v5127_v60 = vpop.f32.mrb[42].mxu1  ;;  %v23592_v34 = vld [vmem:[%s29078_s3 + $0x588] ss:$16 sps:$4 sm:$0xff]  }
 0x35a   : > { %v23555_v24 = vmax.f32 %v29409_v57, %v5502_v28  ;;  %7952 = vmatprep.subr.bf16.mxu1 %v7389_v31  ;;  %v29413_v11 = vrot.slane %v23435_v7, 2  ;;  %v5279_v48 = vadd.f32 %v23049_v17, %v5125_v53  ;;  %v23581_v31 = vmax.f32 %v5334_v39, %v5510_v14  ;;  %v23587_v28 = vld [vmem:[%s29078_s3 + $0x580] ss:$16 sps:$4 sm:$0xff]  }
 0x35b   : > { %v23563_v62 = vmax.f32 %v29411_v41, %v5504_v13  ;;  %v5512_v7 = vsel %vm3714_vm1, %v5503_v16, %v5511_v51  ;;  %v29415_v38 = vmax.f32 %v23094_v54, 0.0  ;;  %v5342_v14 = vmax.f32 %v5278_v27, 0.0  ;;  %v5129_v16 = vpop.f32.mrb[43].mxu1 }
 0x35c   : > { %29410 = vst [vmem:[#allocation48_spill] sm:$0xff] %v23555_v24  ;;  %v7383_v50 = vsel %vm7289_vm2, %v29413_v11, %v7382_v23  ;;  %v19139_v41 = vpack.i.bf16 %v23555_v24, %v23008_v61  ;;  %29414 = vst [vmem:[#allocation50_spill] sm:$0xff] %v23581_v31  ;;  %v23600_v39 = vadd.f32 %v22986_v47, %v5127_v60  ;;  %v5343_v53 = vmax.f32 %v5279_v48, 0.0  ;;  %v5133_v24 = vpop.f32.mrb[44].mxu1 }
 0x35d   : > { %29412 = vst [vmem:[#allocation49_spill] sm:$0xff] %v23563_v62  ;;  %7727 = vmatpush1.bf16.msra.mxu0 %v7383_v50  ;;  %v23597_v57 = vmax.f32 %v29415_v38, %v23119_v2  ;;  %v23602_v13 = vmax.f32 %v5335_v26, %v5512_v7  ;;  %v23605_v11 = vadd.f32 %v23049_v17, %v5129_v16  ;;  %v29419_v2 = vrot.slane %v23520_v52, 2  ;;  %v23625_v38 = vld [vmem:[%s29078_s3 + $0x5a4] ss:$16 sps:$4 sm:$0xff]  }
 0x35e   : > { %19140 = vrot.lane.b32.xlu0 %v19139_v41, %s21169_s30  ;;  %v29418_v50 = vpack.i.bf16 %v23029_v20, %v23019_v4  ;;  %v19149_v54 = vpack.i.bf16 %v23063_v40, %v23581_v31  ;;  %v29420_v27 = vrot.slane %v23463_v22, 2  ;;  %v5517_v48 = vrot.slane %v5342_v14, 1 }
 0x35f   : > { %29416 = vst [vmem:[#allocation51_spill] sm:$0xff] %v23597_v57  ;;  %29417 = vst [vmem:[#allocation52_spill] sm:$0xff] %v23602_v13  ;;  %v29146_v60 = vmax.f32 %v23600_v39, 0.0  ;;  %v7392_v41 = vrot.slane %v23571_v15, 2  ;;  %v7396_v7 = vrot.slane %v23576_v18, 2  ;;  %v5519_v16 = vrot.slane %v5343_v53, 1 }
 0x360   : > { %19145 = vrot.lane.b32.xlu1 %v29418_v50, %s21169_s30  ;;  %v7387_v26 = vsel %vm7289_vm2, %v29420_v27, %v29419_v2  ;;  %v29148_v50 = vmax.f32 %v23605_v11, 0.0  ;;  %v7390_v22 = vrot.slane %v23587_v28, 2  ;;  %v29421_v40 = vmax.f32 %v23511_v56, 0.0 }
 0x361   : > { %7953 = vmatpush1.bf16.msra.mxu1 %v7387_v26  ;;  %v5525_v27 = vrot.slane %v29146_v60, 1  ;;  %v5518_v26 = vsel %vm3714_vm1, %v5509_v55, %v5517_v48  ;;  %v7393_v15 = vsel %vm7289_vm2, %v7384_v36, %v7392_v41  ;;  %v7397_v18 = vsel %vm7289_vm2, %v7388_v9, %v7396_v7  ;;  %v5135_v36 = vpop.f32.mrb[45].mxu1 }
 0x362   : > { %v5527_v31 = vrot.slane %v29148_v50, 1  ;;  %19150 = vrot.lane.b32.xlu0 %v19149_v54, %s21169_s30  ;;  %v23640_v28 = vmax.f32 %v29421_v40, %v5518_v26  ;;  %v5520_v2 = vsel %vm3714_vm1, %v5511_v51, %v5519_v16  ;;  %7728 = vmatprep.subr.bf16.mxu0 %v7393_v15  ;;  %v7391_v60 = vsel %vm7289_vm2, %v7382_v23, %v7390_v22  ;;  %v23654_v40 = vld [vmem:[%s29078_s3 + $0x5ac] ss:$16 sps:$4 sm:$0xff]   ;;  %v5137_v51 = vpop.f32.mrb[46].mxu1  ;;  %v23683_v15 = vld [vmem:[%s29078_s3 + $0x5c4] ss:$16 sps:$4 sm:$0xff]  }
 0x363   : > { %v5286_v55 = vadd.f32 %v22986_v47, %v5133_v24  ;;  %v5526_v9 = vsel %vm3714_vm1, %v5517_v48, %v5525_v27  ;;  %v29423_v20 = vmax.f32 %v23523_v10, 0.0  ;;  %7954 = vmatprep.subr.bf16.mxu1 %v7397_v18  ;;  %7729 = vmatpush1.bf16.msra.mxu0 %v7391_v60  ;;  %v7400_v56 = vrot.slane %v23625_v38, 2  ;;  %v23665_v10 = vld [vmem:[%s29078_s3 + $0x5a0] ss:$16 sps:$4 sm:$0xff]   ;;  %v23670_v48 = vld [vmem:[%s29078_s3 + $0x5a8] ss:$16 sps:$4 sm:$0xff]  }
 0x364   : > { %29422 = vst [vmem:[#allocation53_spill] sm:$0xff] %v23640_v28  ;;  %v5287_v23 = vadd.f32 %v23049_v17, %v5135_v36  ;;  %v19154_v24 = vpack.i.bf16 %v23640_v28, %v23080_v37  ;;  %v23659_v54 = vmax.f32 %v5342_v14, %v5526_v9  ;;  %v29426_v60 = vmax.f32 %v23104_v3, 0.0  ;;  %v5139_v26 = vpop.f32.mrb[47].mxu1 }
 0x365   : > { %v23648_v50 = vmax.f32 %v29423_v20, %v5520_v2  ;;  %v5528_v20 = vsel %vm3714_vm1, %v5519_v16, %v5527_v31  ;;  %v5350_v2 = vmax.f32 %v5286_v55, 0.0  ;;  %v5290_v14 = vadd.f32 %v22986_v47, %v5137_v51 }
 0x366   : > { %29425 = vst [vmem:[#allocation55_spill] sm:$0xff] %v23659_v54  ;;  %v23675_v38 = vmax.f32 %v29426_v60, %v23128_v12  ;;  %v23678_v16 = vmax.f32 %v5343_v53, %v5528_v20  ;;  %v5351_v18 = vmax.f32 %v5287_v23, 0.0  ;;  %v23686_v36 = vadd.f32 %v23049_v17, %v5139_v26  ;;  %19155 = vrot.lane.b32.xlu1 %v19154_v24, %s21169_s30 }
 0x367   : > { %29424 = vst [vmem:[#allocation54_spill] sm:$0xff] %v23648_v50  ;;  %v29429_v3 = vpack.i.bf16 %v23096_v29, %v23091_v44  ;;  %v19164_v47 = vpack.i.bf16 %v23131_v63, %v23659_v54  ;;  %v29430_v12 = vrot.slane %v23592_v34, 2  ;;  %v29431_v53 = vrot.slane %v23520_v52, 2 }
 0x368   : > { %29427 = vst [vmem:[#allocation56_spill] sm:$0xff] %v23675_v38  ;;  %29428 = vst [vmem:[#allocation57_spill] sm:$0xff] %v23678_v16  ;;  %v5533_v9 = vrot.slane %v5350_v2, 1  ;;  %v5354_v23 = vmax.f32 %v5290_v14, 0.0  ;;  %v7401_v17 = vsel %vm7289_vm2, %v7392_v41, %v7400_v56  ;;  %v7404_v51 = vrot.slane %v23654_v40, 2 }
 0x369   : > { %19160 = vrot.lane.b32.xlu0 %v29429_v3, %s21169_s30  ;;  %v7395_v55 = vsel %vm7289_vm2, %v29431_v53, %v29430_v12  ;;  %v5535_v24 = vrot.slane %v5351_v18, 1  ;;  %v29149_v20 = vmax.f32 %v23686_v36, 0.0  ;;  %7730 = vmatprep.subr.bf16.mxu0 %v7401_v17  ;;  %v7398_v60 = vrot.slane %v23665_v10, 2  ;;  %v20059_v17 = vld [vmem:[%s29078_s3 + $0x5ec] ss:$16 sps:$4 sm:$0xff]  }
 0x36a   : > { %7955 = vmatpush1.bf16.msra.mxu1 %v7395_v55  ;;  %v7402_v26 = vrot.slane %v23670_v48, 2  ;;  %v5541_v3 = vrot.slane %v5354_v23, 1  ;;  %v5534_v52 = vsel %vm3714_vm1, %v5525_v27, %v5533_v9  ;;  %v7405_v12 = vsel %vm7289_vm2, %v7396_v7, %v7404_v51  ;;  %19165 = vrot.lane.b32.xlu1 %v19164_v47, %s21169_s30  ;;  %v20053_v7 = vld [vmem:[%s29078_s3 + $0x5cc] ss:$16 sps:$4 sm:$0xff]  }
 0x36b   : > { %v7408_v14 = vrot.slane %v23683_v15, 2  ;;  %v23710_v41 = vrot.slane %v29149_v20, 1  ;;  %v29432_v40 = vmax.f32 %v23600_v39, 0.0  ;;  %v5536_v10 = vsel %vm3714_vm1, %v5527_v31, %v5535_v24  ;;  %7956 = vmatprep.subr.bf16.mxu1 %v7405_v12  ;;  %v23755_v12 = vld [vmem:[%s29078_s3 + $0x5e0] ss:$16 sps:$4 sm:$0xff]  }
 0x36c   : > { %v7399_v48 = vsel %vm7289_vm2, %v7390_v22, %v7398_v60  ;;  %v23722_v27 = vmax.f32 %v5354_v23, %v5541_v3  ;;  %v5542_v15 = vsel %vm3714_vm1, %v5533_v9, %v5541_v3  ;;  %v29435_v55 = vmax.f32 %v23605_v11, 0.0  ;;  %v20055_v22 = vld [vmem:[%s29078_s3 + $0x5c0] ss:$16 sps:$4 sm:$0xff]   ;;  %v20056_v23 = vld [vmem:[%s29078_s3 + $0x5c8] ss:$16 sps:$4 sm:$0xff]  }
 0x36d   : > { %v23715_v53 = vmax.f32 %v29432_v40, %v5534_v52  ;;  %7731 = vmatpush1.bf16.msra.mxu0 %v7399_v48  ;;  %v29437_v39 = vrot.slane %v23592_v34, 2  ;;  %v19174_v11 = vpack.i.bf16 %v23675_v38, %v23597_v57  ;;  %v20057_v34 = vld [vmem:[%s29078_s3 + $0x5e4] ss:$16 sps:$4 sm:$0xff]   ;;  %v23748_v3 = vmax.f32 %v5350_v2, %v5542_v15  ;;  %v23760_v40 = vld [vmem:[%s29078_s3 + $0x5e8] ss:$16 sps:$4 sm:$0xff]  }
 0x36e   : > { %29434 = vst [vmem:[#allocation59_spill] sm:$0xff] %v23722_v27  ;;  %v23727_v47 = vmax.f32 %v29435_v55, %v5536_v10  ;;  %v5544_v52 = vsel %vm3714_vm1, %v5535_v24, %v23710_v41  ;;  %v7409_v2 = vsel %vm7289_vm2, %v7400_v56, %v7408_v14  ;;  %v7412_v48 = vrot.slane %v20053_v7, 2  ;;  %v23770_v24 = vld [vmem:[%s29078_s3 + $0x604] ss:$16 sps:$4 sm:$0xff]   ;;  %v23775_v15 = vld [vmem:[%s29078_s3 + $0x60c] ss:$16 sps:$4 sm:$0xff]  }
 0x36f   : > { %29433 = vst [vmem:[#allocation58_spill] sm:$0xff] %v23715_v53  ;;  %v7403_v31 = vsel %vm7289_vm2, %v29437_v39, %v7402_v26  ;;  %v19169_v9 = vpack.i.bf16 %v23715_v53, %v23145_v21  ;;  %29438 = vst [vmem:[#allocation61_spill] sm:$0xff] %v23748_v3  ;;  %19175 = vrot.lane.b32.xlu1 %v19174_v11, %s21169_s30  ;;  %v23764_v10 = vmax.f32 %v5351_v18, %v5544_v52  ;;  %v20115_v38 = vld [vmem:[%s29078_s3 + $0x700] ss:$16 sps:$4 sm:$0xff]  }
 0x370   : > { %29436 = vst [vmem:[#allocation60_spill] sm:$0xff] %v23727_v47  ;;  %7957 = vmatpush1.bf16.msra.mxu1 %v7403_v31  ;;  %v19179_v55 = vpack.i.bf16 %v23173_v46, %v23722_v27  ;;  %7732 = vmatprep.subr.bf16.mxu0 %v7409_v2  ;;  %v7406_v39 = vrot.slane %v20055_v22, 2  ;;  %v7410_v18 = vrot.slane %v20056_v23, 2  ;;  %v19184_v56 = vpack.i.bf16 %v23748_v3, %v23178_v35  ;;  %v29442_v3 = vld [vmem:[#allocation10_spill] sm:$0xff] }
 0x371   : > { %19170 = vrot.lane.b32.xlu0 %v19169_v9, %s21169_s30  ;;  %29439 = vst [vmem:[#allocation62_spill] sm:$0xff] %v23764_v10  ;;  %v7413_v7 = vsel %vm7289_vm2, %v7404_v51, %v7412_v48  ;;  %v7416_v31 = vrot.slane %v20057_v34, 2  ;;  %v7420_v9 = vrot.slane %v20059_v17, 2  ;;  %v29154_v20 = vrot.slane %v23755_v12, 2 }
 0x372   : > { %7958 = vmatprep.subr.bf16.mxu1 %v7413_v7  ;;  %v7407_v11 = vsel %vm7289_vm2, %v7398_v60, %v7406_v39  ;;  %v7411_v52 = vsel %vm7289_vm2, %v7402_v26, %v7410_v18  ;;  %v29153_v54 = vrot.slane %v23760_v40, 2  ;;  %v29152_v51 = vrot.slane %v23770_v24, 2 }
 0x373   : > { %19185 = vrot.lane.b32.xlu1 %v19184_v56, %s21169_s30  ;;  %v7417_v22 = vsel %vm7289_vm2, %v7408_v14, %v7416_v31  ;;  %v7421_v23 = vsel %vm7289_vm2, %v7412_v48, %v7420_v9  ;;  %v29151_v34 = vrot.slane %v23775_v15, 2  ;;  %v19189_v60 = vpack.i.bf16 %v23261_v25, %v23211_v0  ;;  %7733 = vmatpush1.bf16.msra.mxu0 %v7407_v11 }
 0x374   : > { %7959 = vmatpush1.bf16.msra.mxu1 %v7411_v52  ;;  %v19194_v26 = vpack.i.bf16 %v23337_v32, %v23295_v33  ;;  %7734 = vmatprep.subr.bf16.mxu0 %v7417_v22  ;;  %v7415_v14 = vsel %vm7289_vm2, %v7406_v39, %v29154_v20  ;;  %v7419_v17 = vsel %vm7289_vm2, %v7410_v18, %v29153_v54  ;;  %v29440_v18 = vmax.f32 %v23686_v36, 0.0  ;;  %v23833_v36 = vpop.permute.xlu0 %19070 }
 0x375   : > { %19180 = vrot.lane.b32.xlu0 %v19179_v55, %s21169_s30  ;;  %7960 = vmatprep.subr.bf16.mxu1 %v7421_v23  ;;  %v7425_v2 = vsel %vm7289_vm2, %v7416_v31, %v29152_v51  ;;  %v7429_v48 = vsel %vm7289_vm2, %v7420_v9, %v29151_v34  ;;  %v19199_v55 = vpack.i.bf16 %v23408_v5, %v23370_v42  ;;  %v29157_v52 = vunpack.i.h.bf16 %v23833_v36  ;;  %v20067_v23 = vld [vmem:[%s29078_s3 + $0x600] ss:$16 sps:$4 sm:$0xff]   ;;  %v20081_v34 = vld [vmem:[%s29078_s3 + $0x664] ss:$16 sps:$4 sm:$0xff]  }
 0x376   : > { %v19204_v39 = vpack.i.bf16 %v23486_v43, %v23442_v8  ;;  %v23819_v56 = vmax.f32 %v29440_v18, %v23710_v41  ;;  %v19209_v7 = vpack.i.bf16 %v23563_v62, %v23515_v19  ;;  %v19214_v31 = vpack.i.bf16 %v23648_v50, %v23602_v13  ;;  %v23835_v41 = vpop.permute.xlu1 %19075  ;;  %v20077_v18 = vld [vmem:[%s29078_s3 + $0x64c] ss:$16 sps:$4 sm:$0xff]   ;;  %v20097_v13 = vld [vmem:[%s29078_s3 + $0x6a0] ss:$16 sps:$4 sm:$0xff]  }
 0x377   : > { %19195 = vrot.lane.b32.xlu1 %v19194_v26, %s21169_s30  ;;  %7735 = vmatpush1.bf16.msra.mxu0 %v7415_v14  ;;  %v19219_v9 = vpack.i.bf16 %v23727_v47, %v23678_v16  ;;  %v19072_v22 = vunpack.i.l.bf16 %v23833_v36  ;;  %v20069_v26 = vld [vmem:[%s29078_s3 + $0x624] ss:$16 sps:$4 sm:$0xff]   ;;  %v20071_v14 = vld [vmem:[%s29078_s3 + $0x62c] ss:$16 sps:$4 sm:$0xff]   ;;  %v7448_v53 = vrot.slane %v20081_v34, 2  ;;  %v7462_v33 = vrot.slane %v20097_v13, 2 }
 0x378   : > { %7961 = vmatpush1.bf16.msra.mxu1 %v7419_v17  ;;  %7817 = vmatprep.subr.bf16.mxu0 %v7425_v2  ;;  %29441 = vst [vmem:[#allocation63_spill] sm:$0xff] %v23819_v56  ;;  %v19224_v11 = vpack.i.bf16 %v23764_v10, %v23819_v56  ;;  %v29159_v17 = vunpack.i.h.bf16 %v23835_v41  ;;  %v19077_v2 = vunpack.i.l.bf16 %v23835_v41  ;;  %v7432_v54 = vrot.slane %v20069_v26, 2  ;;  %v29451_v13 = vld [vmem:[#allocation11_spill] sm:$0xff] }
 0x379   : > { %19190 = vrot.lane.b32.xlu0 %v19189_v60, %s21169_s30  ;;  %8043 = vmatprep.subr.bf16.mxu1 %v7429_v48  ;;  %v20068_v60 = vld [vmem:[%s29078_s3 + $0x608] ss:$16 sps:$4 sm:$0xff]   ;;  %v20073_v48 = vld [vmem:[%s29078_s3 + $0x620] ss:$16 sps:$4 sm:$0xff]   ;;  %v7436_v20 = vrot.slane %v20071_v14, 2  ;;  %v7444_v14 = vrot.slane %v20077_v18, 2 }
 0x37a   : > { %v7426_v51 = vrot.slane %v20068_v60, 2  ;;  %v23882_v27 = vsel %vm5865_vm3, %v19077_v2, %v29159_v17  ;;  %v7430_v56 = vrot.slane %v20073_v48, 2  ;;  %v20086_v2 = vld [vmem:[%s29078_s3 + $0x668] ss:$16 sps:$4 sm:$0xff]   ;;  %v20087_v48 = vld [vmem:[%s29078_s3 + $0x684] ss:$16 sps:$4 sm:$0xff]  }
 0x37b   : > { %19205 = vrot.lane.b32.xlu1 %v19204_v39, %s21169_s30  ;;  %v20075_v39 = vld [vmem:[%s29078_s3 + $0x644] ss:$16 sps:$4 sm:$0xff]   ;;  %v20095_v18 = vld [vmem:[%s29078_s3 + $0x6ac] ss:$16 sps:$4 sm:$0xff]   ;;  %v23948_v28 = vsel %vm7289_vm2, %v7436_v20, %v7444_v14  ;;  %v7456_v19 = vrot.slane %v20087_v48, 2 }
 0x37c   : > { %v7440_v26 = vrot.slane %v20075_v39, 2  ;;  %v29444_v39 = vld [vmem:[#allocation12_spill] sm:$0xff]  ;;  %v23974_v48 = vld [vmem:[%s29078_s3 + $0x6cc] ss:$16 sps:$4 sm:$0xff]   ;;  %v7468_v5 = vrot.slane %v20095_v18, 2 }
 0x37d   : > { %19200 = vrot.lane.b32.xlu0 %v19199_v55, %s21169_s30  ;;  %v20074_v55 = vld [vmem:[%s29078_s3 + $0x628] ss:$16 sps:$4 sm:$0xff]   ;;  %v7476_v35 = vrot.slane %v23974_v48, 2 }
 0x37e   : > { %v23945_v50 = vsel %vm7289_vm2, %v7432_v54, %v7440_v26 }
 0x37f   : > { %19215 = vrot.lane.b32.xlu1 %v19214_v31, %s21169_s30  ;;  %v23871_v31 = vsel %vm5865_vm3, %v19072_v22, %v29157_v52  ;;  %v7434_v22 = vrot.slane %v20074_v55, 2  ;;  %v20085_v52 = vld [vmem:[%s29078_s3 + $0x660] ss:$16 sps:$4 sm:$0xff]   ;;  %v29443_v55 = vrot.slane %v23755_v12, 2  ;;  %v29446_v12 = vrot.slane %v23770_v24, 2 }
 0x380   : > { %v5978_v60 = vmax.f32 %v29442_v3, %v23871_v31  ;;  %v20089_v3 = vld [vmem:[%s29078_s3 + $0x68c] ss:$16 sps:$4 sm:$0xff]   ;;  %v29445_v31 = vrot.slane %v23760_v40, 2  ;;  %v20092_v40 = vld [vmem:[%s29078_s3 + $0x688] ss:$16 sps:$4 sm:$0xff]  }
 0x381   : > { %19210 = vrot.lane.b32.xlu0 %v19209_v7, %s21169_s30  ;;  %v20079_v7 = vld [vmem:[%s29078_s3 + $0x640] ss:$16 sps:$4 sm:$0xff]   ;;  %v20093_v24 = vld [vmem:[%s29078_s3 + $0x6a4] ss:$16 sps:$4 sm:$0xff]   ;;  %v7458_v43 = vrot.slane %v20092_v40, 2  ;;  %v29450_v40 = vunpack.i.h.bf16 %v23833_v36 }
 0x382   : > { %v7438_v10 = vrot.slane %v20079_v7, 2  ;;  %v23911_v47 = vsel %vm7289_vm2, %v29445_v31, %v7426_v51  ;;  %v29447_v7 = vrot.slane %v23775_v15, 2  ;;  %v23936_v15 = vsel %vm7289_vm2, %v7426_v51, %v7434_v22  ;;  %v23953_v51 = vld [vmem:[%s29078_s3 + $0x6a8] ss:$16 sps:$4 sm:$0xff]   ;;  %v24014_v36 = vld [vmem:[%s29078_s3 + $0x6e4] ss:$16 sps:$4 sm:$0xff]  }
 0x383   : > { %19225 = vrot.lane.b32.xlu1 %v19224_v11, %s21169_s30  ;;  %v20080_v11 = vld [vmem:[%s29078_s3 + $0x648] ss:$16 sps:$4 sm:$0xff]  }
 0x384   : > { %v7442_v16 = vrot.slane %v20080_v11, 2  ;;  %v23921_v34 = vsel %vm7289_vm2, %v29447_v7, %v7436_v20  ;;  %v20091_v11 = vld [vmem:[%s29078_s3 + $0x680] ss:$16 sps:$4 sm:$0xff]   ;;  %v7446_v7 = vrot.slane %v20085_v52, 2  ;;  %v7460_v20 = vrot.slane %v20089_v3, 2 }
 0x385   : > { %19220 = vrot.lane.b32.xlu0 %v19219_v9, %s21169_s30  ;;  %v7422_v9 = vrot.slane %v20067_v23, 2  ;;  %v20083_v23 = vld [vmem:[%s29078_s3 + $0x66c] ss:$16 sps:$4 sm:$0xff]   ;;  %v7454_v8 = vrot.slane %v20091_v11, 2 }
 0x386   : > { %v23961_v62 = vsel %vm7289_vm2, %v7434_v22, %v7442_v16  ;;  %v7464_v22 = vrot.slane %v20093_v24, 2  ;;  %v23986_v42 = vsel %vm7289_vm2, %v7438_v10, %v7446_v7 }
 0x387   : > { %v23901_v17 = vsel %vm7289_vm2, %v29443_v55, %v7422_v9  ;;  %v23916_v55 = vsel %vm7289_vm2, %v29446_v12, %v7432_v54  ;;  %v23933_v31 = vsel %vm7289_vm2, %v7422_v9, %v7430_v56  ;;  %v7452_v12 = vrot.slane %v20083_v23, 2 }
 0x388   : > { %v7450_v9 = vrot.slane %v20086_v2, 2  ;;  %v23958_v23 = vsel %vm7289_vm2, %v7430_v56, %v7438_v10  ;;  %v23964_v54 = vsel %vm7289_vm2, %v7440_v26, %v7448_v53  ;;  %v23969_v2 = vld [vmem:[%s29078_s3 + $0x6c4] ss:$16 sps:$4 sm:$0xff]   ;;  %v23980_v26 = vld [vmem:[%s29078_s3 + $0x6c0] ss:$16 sps:$4 sm:$0xff]   ;;  %v7466_v10 = vrot.slane %v23953_v51, 2 }
 0x389   : > { %v23983_v3 = vsel %vm7289_vm2, %v7444_v14, %v7452_v12  ;;  %v23991_v56 = vld [vmem:[%s29078_s3 + $0x6c8] ss:$16 sps:$4 sm:$0xff]   ;;  %v24002_v14 = vsel %vm7289_vm2, %v7448_v53, %v7456_v19  ;;  %v24007_v0 = vsel %vm7289_vm2, %v7452_v12, %v7460_v20  ;;  %v7472_v25 = vrot.slane %v23969_v2, 2 }
 0x38a   : > { %v23999_v32 = vsel %vm7289_vm2, %v7442_v16, %v7450_v9  ;;  %v24019_v16 = vld [vmem:[%s29078_s3 + $0x6ec] ss:$16 sps:$4 sm:$0xff]   ;;  %v24022_v53 = vsel %vm7289_vm2, %v7446_v7, %v7454_v8  ;;  %v24025_v12 = vsel %vm7289_vm2, %v7450_v9, %v7458_v43  ;;  %v24028_v51 = vsel %vm7289_vm2, %v7456_v19, %v7464_v22  ;;  %v20109_v9 = vld [vmem:[%s29078_s3 + $0x6e0] ss:$16 sps:$4 sm:$0xff]  }
 0x38b   : > { %v7470_v2 = vrot.slane %v23980_v26, 2  ;;  %v7474_v7 = vrot.slane %v23991_v56, 2  ;;  %v24047_v26 = vsel %vm7289_vm2, %v7458_v43, %v7466_v10  ;;  %v24058_v56 = vld [vmem:[%s29078_s3 + $0x70c] ss:$16 sps:$4 sm:$0xff]   ;;  %v24066_v43 = vsel %vm7289_vm2, %v7468_v5, %v7476_v35 }
 0x38c   : > { %29454 = vst [vmem:[#allocation64_spill] sm:$0xff] %v24066_v43  ;;  %v7484_v46 = vrot.slane %v24019_v16, 2  ;;  %v24092_v16 = vld [vmem:[%s29078_s3 + $0x72c] ss:$16 sps:$4 sm:$0xff]  }
 0x38d   : > { %v24079_v63 = vsel %vm7289_vm2, %v7462_v33, %v7470_v2 }
 0x38e   : > { %29456 = vst [vmem:[#allocation65_spill] sm:$0xff] %v24079_v63  ;;  %v29459_v63 = vunpack.i.h.bf16 %v23835_v41  ;;  %v24122_v41 = vsel %vm7289_vm2, %v7476_v35, %v7484_v46 }
 0x3a7   : > { %v23955_v52 = vpop.permute.xlu0 %19080 }
 0x3a8   : > { %29448 = vst [vmem:[#allocation10_spill] sm:$0xff] %v23955_v52  ;;  %v29449_v11 = vunpack.i.l.bf16 %v23955_v52  ;;  %v19083_v19 = vunpack.i.h.bf16 %v23955_v52  ;;  %v7480_v52 = vrot.slane %v24014_v36, 2  ;;  %v24087_v36 = vld [vmem:[%s29078_s3 + $0x724] ss:$16 sps:$4 sm:$0xff]  }
 0x3aa   : > { %v5867_v24 = vsel %vm5865_vm3, %v29450_v40, %v29449_v11  ;;  %v24034_v40 = vsel %vm7289_vm2, %v7460_v20, %v7468_v5  ;;  %v20111_v20 = vld [vmem:[%s29078_s3 + $0x704] ss:$16 sps:$4 sm:$0xff]   ;;  %v20116_v5 = vld [vmem:[%s29078_s3 + $0x708] ss:$16 sps:$4 sm:$0xff]  }
 0x3ab   : > { %v5979_v18 = vmax.f32 %v29451_v13, %v5867_v24  ;;  %v24037_v24 = vsel %vm7289_vm2, %v7454_v8, %v7462_v33  ;;  %v20110_v8 = vld [vmem:[%s29078_s3 + $0x6e8] ss:$16 sps:$4 sm:$0xff]   ;;  %v24063_v13 = vsel %vm7289_vm2, %v7464_v22, %v7472_v25  ;;  %v24097_v33 = vsel %vm7289_vm2, %v7466_v10, %v7474_v7  ;;  %v24102_v22 = vld [vmem:[%s29078_s3 + $0x720] ss:$16 sps:$4 sm:$0xff]  }
 0x3ac   : > { %v24031_v11 = vpop.permute.xlu1 %19085  ;;  %29457 = vst [vmem:[#allocation66_spill] sm:$0xff] %v24097_v33  ;;  %v7482_v44 = vrot.slane %v20110_v8, 2  ;;  %v7488_v43 = vrot.slane %v20111_v20, 2  ;;  %v24119_v33 = vsel %vm7289_vm2, %v7472_v25, %v7480_v52 }
 0x3ad   : > { %v17871_v48 = vpack.c.bf16 %v5979_v18, %v5978_v60  ;;  %29452 = vst [vmem:[#allocation12_spill] sm:$0xff] %v24031_v11  ;;  %v19087_v60 = vunpack.i.l.bf16 %v24031_v11 }
 0x3ae   : > { %v24060_v18 = vpop.permute.xlu0 %19090  ;;  %v24138_v20 = vsel %vm7289_vm2, %v7474_v7, %v7482_v44 }
 0x3af   : > { %6234 = vst [vmem:[#allocation2] sm:$0xff] %v17871_v48  ;;  %29453 = vst [vmem:[#allocation11_spill] sm:$0xff] %v24060_v18  ;;  %v5869_v57 = vsel %vm5865_vm3, %v19083_v19, %v19087_v60  ;;  %v29455_v48 = vunpack.i.h.bf16 %v24031_v11  ;;  %v29458_v11 = vunpack.i.l.bf16 %v24060_v18  ;;  %v19093_v25 = vunpack.i.h.bf16 %v24060_v18 }
 0x3b0   : > { %v5982_v19 = vmax.f32 %v22766_v59, %v5869_v57  ;;  %v7492_v59 = vrot.slane %v24058_v56, 2  ;;  %v29460_v57 = vld [vmem:[#allocation13_spill] sm:$0xff]  ;;  %29463 = vst [vmem:[#allocation68_spill] sm:$0xff] %v24138_v20 }
 0x3b1   : > { %v5870_v21 = vsel %vm5865_vm3, %v19087_v60, %v29455_v48  ;;  %v7478_v48 = vrot.slane %v20109_v9, 2  ;;  %v5873_v29 = vsel %vm5865_vm3, %v29459_v63, %v29458_v11  ;;  %v7486_v63 = vrot.slane %v20115_v38, 2  ;;  %v24154_v38 = vld [vmem:[%s29078_s3 + $0x74c] ss:$16 sps:$4 sm:$0xff]  }
 0x3b2   : > { %v5983_v60 = vmax.f32 %v22771_v30, %v5870_v21  ;;  %v24113_v30 = vld [vmem:[%s29078_s3 + $0x728] ss:$16 sps:$4 sm:$0xff]   ;;  %v5987_v10 = vmax.f32 %v29460_v57, %v5873_v29  ;;  %v7490_v11 = vrot.slane %v20116_v5, 2  ;;  %v24144_v8 = vsel %vm7289_vm2, %v7484_v46, %v7492_v59  ;;  %v24149_v29 = vld [vmem:[%s29078_s3 + $0x744] ss:$16 sps:$4 sm:$0xff]  }
 0x3b3   : > { %v24135_v5 = vsel %vm7289_vm2, %v7470_v2, %v7478_v48  ;;  %29465 = vst [vmem:[#allocation70_spill] sm:$0xff] %v24144_v8  ;;  %v24161_v46 = vsel %vm7289_vm2, %v7478_v48, %v7486_v63  ;;  %v24169_v8 = vld [vmem:[%s29078_s3 + $0x740] ss:$16 sps:$4 sm:$0xff]   ;;  %v29470_v48 = vrot.slane %v24087_v36, 2 }
 0x3b4   : > { %v24115_v21 = vpack.c.bf16 %v5983_v60, %v5982_v19  ;;  %v19101_v9 = vpop.permute.xlu0 %19100  ;;  %29462 = vst [vmem:[#allocation67_spill] sm:$0xff] %v24135_v5  ;;  %29466 = vst [vmem:[#allocation71_spill] sm:$0xff] %v24161_v46  ;;  %v24164_v18 = vsel %vm7289_vm2, %v7482_v44, %v7490_v11  ;;  %v29478_v44 = vld [vmem:[#allocation15_spill] sm:$0xff] }
 0x3b5   : > { %v19103_v56 = vunpack.i.h.bf16 %v19101_v9  ;;  %v19102_v19 = vunpack.i.l.bf16 %v19101_v9  ;;  %v24127_v60 = vpop.permute.xlu1 %19095  ;;  %v24141_v9 = vsel %vm7289_vm2, %v7480_v52, %v7488_v43  ;;  %29467 = vst [vmem:[#allocation72_spill] sm:$0xff] %v24164_v18  ;;  %v29472_v18 = vrot.slane %v24092_v16, 2 }
 0x3b6   : > { %6239 = vst [vmem:[#allocation2 + $0x10] sm:$0xff] %v24115_v21  ;;  %29461 = vst [vmem:[#allocation13_spill] sm:$0xff] %v24127_v60  ;;  %v29192_v57 = vunpack.i.h.bf16 %v24127_v60  ;;  %v19097_v35 = vunpack.i.l.bf16 %v24127_v60  ;;  %v6441_v7 = vld [vmem:[#allocation2] sm:$0xee] }
 0x3b7   : > { %29464 = vst [vmem:[#allocation69_spill] sm:$0xff] %v24141_v9  ;;  %v24172_v9 = vsel %vm5865_vm3, %v19102_v19, %v19103_v56  ;;  %v24187_v46 = vsel %vm7289_vm2, %v7492_v59, %v29472_v18  ;;  %v29474_v19 = vrot.slane %v24102_v22, 2 }
 0x3b8   : > { %v5875_v2 = vsel %vm5865_vm3, %v19093_v25, %v19097_v35  ;;  %v5876_v52 = vsel %vm5865_vm3, %v19097_v35, %v29192_v57  ;;  %v29468_v25 = vld [vmem:[#allocation14_spill] sm:$0xff]  ;;  %v24181_v57 = vsel %vm7289_vm2, %v7488_v43, %v29470_v48  ;;  %29473 = vst [vmem:[#allocation74_spill] sm:$0xff] %v24187_v46  ;;  %v16847_v43 = vcombine.high %v6441_v7, %v24115_v21 }
 0x3b9   : > { %v5990_v20 = vmax.f32 %v29468_v25, %v5875_v2  ;;  %v5991_v60 = vmax.f32 %v22799_v45, %v5876_v52  ;;  %v24176_v35 = vpop.permute.xlu1 %19105  ;;  %29471 = vst [vmem:[#allocation73_spill] sm:$0xff] %v24181_v57  ;;  %v24192_v2 = vsel %vm7289_vm2, %v7486_v63, %v29474_v19  ;;  %v29476_v45 = vrot.slane %v24113_v30, 2  ;;  %v29480_v25 = vld [vmem:[#allocation16_spill] sm:$0xff] }
 0x3ba   : > { %29469 = vst [vmem:[#allocation14_spill] sm:$0xff] %v24176_v35  ;;  %29475 = vst [vmem:[#allocation75_spill] sm:$0xff] %v24192_v2  ;;  %v5994_v18 = vmax.f32 %v29478_v44, %v24172_v9  ;;  %v29479_v59 = vunpack.i.l.bf16 %v24176_v35  ;;  %v16846_v63 = vcombine.low %v6441_v7, %v24115_v21  ;;  %v29482_v44 = vmax.f32 %v29444_v39, %v23882_v27 }
 0x3bb   : > { %v24197_v52 = vsel %vm7289_vm2, %v7490_v11, %v29476_v45  ;;  %v24212_v11 = vld [vmem:[%s29078_s3 + $0x748] ss:$16 sps:$4 sm:$0xff]   ;;  %v19108_v45 = vunpack.i.h.bf16 %v24176_v35  ;;  %v24223_v21 = vpack.c.bf16 %v5991_v60, %v5987_v10  ;;  %v6702_v27 = vrot.slane %v16847_v43, 1 }
 0x3bc   : > { %29477 = vst [vmem:[#allocation76_spill] sm:$0xff] %v24197_v52  ;;  %v5879_v46 = vsel %vm5865_vm3, %v19103_v56, %v29479_v59  ;;  %v24221_v56 = vpack.c.bf16 %v5990_v20, %v29482_v44  ;;  %v24242_v20 = vld [vmem:[%s29078_s3 + $0x760] ss:$16 sps:$4 sm:$0xff]   ;;  %v6699_v44 = vrot.slane %v16846_v63, 1  ;;  %v24252_v43 = vld [vmem:[%s29078_s3 + $0x768] ss:$16 sps:$4 sm:$0xff]  }
 0x3bd   : > { %v5995_v48 = vmax.f32 %v29480_v25, %v5879_v46  ;;  %29484 = vst [vmem:[#allocation77_spill] sm:$0xff] %v24223_v21  ;;  %v24230_v46 = vld [vmem:[%s29078_s3 + $0x764] ss:$16 sps:$4 sm:$0xff]   ;;  %v24235_v25 = vld [vmem:[%s29078_s3 + $0x76c] ss:$16 sps:$4 sm:$0xff]   ;;  %v6703_v39 = vrot.slane %v24223_v21, 1 }
 0x3be   : > { %29483 = vst [vmem:[#allocation16_spill] sm:$0xff] %v24221_v56  ;;  %v29485_v10 = vld [vmem:[#allocation17_spill] sm:$0xff]  ;;  %v29487_v35 = vrot.slane %v24149_v29, 2 }
 0x3bf   : > { %v24216_v52 = vpop.permute.xlu0 %19110 }
 0x3c0   : > { %29481 = vst [vmem:[#allocation15_spill] sm:$0xff] %v24216_v52  ;;  %v19116_v9 = vpop.permute.xlu1 %19115  ;;  %v29197_v7 = vunpack.i.h.bf16 %v24216_v52  ;;  %v19112_v59 = vunpack.i.l.bf16 %v24216_v52  ;;  %v6704_v52 = vsel %vm3714_vm1, %v6702_v27, %v6703_v39  ;;  %v29489_v27 = vrot.slane %v24154_v38, 2 }
 0x3c1   : > { %v19118_v19 = vunpack.i.h.bf16 %v19116_v9  ;;  %v19117_v2 = vunpack.i.l.bf16 %v19116_v9  ;;  %7736 = vmatprep.mubr.bf16.mxu0 %v6704_v52  ;;  %7962 = vmatprep.mubr.bf16.mxu1 %v6704_v52 }
 0x3c2   : > { %v5881_v60 = vsel %vm5865_vm3, %v19108_v45, %v19112_v59  ;;  %v5882_v9 = vsel %vm5865_vm3, %v19112_v59, %v29197_v7  ;;  %v29486_v59 = vrot.slane %v24221_v56, 1 }
 0x3c3   : > { %v5998_v21 = vmax.f32 %v29485_v10, %v5881_v60  ;;  %v5999_v57 = vmax.f32 %v22875_v49, %v5882_v9  ;;  %v24257_v5 = vsel %vm5865_vm3, %v19117_v2, %v19118_v19  ;;  %v24259_v45 = vpop.permute.xlu0 %19120  ;;  %v29488_v10 = vrot.slane %v24087_v36, 2  ;;  %v29491_v36 = vld [vmem:[#allocation18_spill] sm:$0xff] }
 0x3c4   : > { %v29198_v63 = vunpack.i.l.bf16 %v24259_v45  ;;  %v6701_v7 = vsel %vm3714_vm1, %v6699_v44, %v29486_v59  ;;  %v7512_v2 = vrot.slane %v24230_v46, 2  ;;  %v29490_v60 = vrot.slane %v24092_v16, 2 }
 0x3c5   : > { %v24271_v49 = vsel %vm7289_vm2, %v29488_v10, %v29487_v35  ;;  %7737 = vmatmul.mubr.bf16.vlgmr.msra.gmra.mrb[32].mxu0 %v6701_v7  ;;  %7963 = vmatmul.mubr.bf16.vlgmr.msra.gmra.mrb[48].mxu1 %v6701_v7  ;;  %v7516_v9 = vrot.slane %v24235_v25, 2  ;;  %v6002_v59 = vmax.f32 %v29491_v36, %v24257_v5  ;;  %v29492_v16 = vrot.slane %v24169_v8, 2  ;;  %v29494_v5 = vld [vmem:[#allocation19_spill] sm:$0xff] }
 0x3c6   : > { %v24279_v52 = vsel %vm7289_vm2, %v29490_v60, %v29489_v27  ;;  %v5885_v35 = vsel %vm5865_vm3, %v19118_v19, %v29198_v63  ;;  %7818 = vmatpush1.bf16.msra.mxu0 %v23901_v17  ;;  %8044 = vmatpush1.bf16.msra.mxu1 %v23911_v47  ;;  %v29493_v7 = vrot.slane %v24102_v22, 2  ;;  %v19123_v60 = vunpack.i.h.bf16 %v24259_v45  ;;  %v24300_v44 = vpop.permute.xlu1 %19125 }
 0x3c7   : > { %v6003_v36 = vmax.f32 %v29494_v5, %v5885_v35  ;;  %v19131_v19 = vpop.permute.xlu0 %19130  ;;  %7819 = vmatprep.subr.bf16.mxu0 %v23916_v55  ;;  %8045 = vmatprep.subr.bf16.mxu1 %v23921_v34  ;;  %v24304_v47 = vpack.c.bf16 %v5999_v57, %v5995_v48  ;;  %v24306_v17 = vpack.c.bf16 %v5998_v21, %v5994_v18  ;;  %v29199_v22 = vunpack.i.h.bf16 %v24300_v44  ;;  %v24322_v57 = vld [vmem:[%s29078_s3 + $0x784] ss:$16 sps:$4 sm:$0xff]   ;;  %v24327_v48 = vld [vmem:[%s29078_s3 + $0x78c] ss:$16 sps:$4 sm:$0xff]  }
 0x3c8   : > { %v24295_v10 = vsel %vm7289_vm2, %v29493_v7, %v29492_v16  ;;  %v19127_v16 = vunpack.i.l.bf16 %v24300_v44  ;;  %v19133_v7 = vunpack.i.h.bf16 %v19131_v19  ;;  %v19132_v63 = vunpack.i.l.bf16 %v19131_v19 }
 0x3c9   : > { %29495 = vst [vmem:[#allocation17_spill] sm:$0xff] %v24304_v47  ;;  %29496 = vst [vmem:[#allocation18_spill] sm:$0xff] %v24306_v17  ;;  %v6713_v27 = vrot.slane %v24304_v47, 1  ;;  %v29200_v35 = vrot.slane %v24306_v17, 1  ;;  %v29497_v5 = vrot.slane %v24212_v11, 2  ;;  %v29498_v55 = vrot.slane %v24113_v30, 2 }
 0x3ca   : > { %v5887_v18 = vsel %vm5865_vm3, %v19123_v60, %v19127_v16  ;;  %v5888_v21 = vsel %vm5865_vm3, %v19127_v16, %v29199_v22  ;;  %7820 = vmatpush1.bf16.msra.mxu0 %v23933_v31  ;;  %8046 = vmatpush1.bf16.msra.mxu1 %v23936_v15  ;;  %v29499_v30 = vrot.slane %v24149_v29, 2  ;;  %v24350_v60 = vld [vmem:[%s29078_s3 + $0x788] ss:$16 sps:$4 sm:$0xff]   ;;  %v24357_v29 = vpop.permute.xlu1 %19135 }
 0x3cb   : > { %v24317_v34 = vsel %vm7289_vm2, %v29498_v55, %v29497_v5  ;;  %v24345_v5 = vld [vmem:[%s29078_s3 + $0x780] ss:$16 sps:$4 sm:$0xff]   ;;  %v6007_v15 = vmax.f32 %v22942_v6, %v5888_v21  ;;  %v24355_v55 = vsel %vm5865_vm3, %v19132_v63, %v19133_v7  ;;  %7821 = vmatprep.subr.bf16.mxu0 %v23945_v50  ;;  %v29201_v22 = vunpack.i.l.bf16 %v24357_v29  ;;  %8047 = vmatprep.subr.bf16.mxu1 %v23948_v28 }
 0x3cc   : > { %v24340_v19 = vsel %vm7289_vm2, %v29499_v30, %v7512_v2  ;;  %v29500_v31 = vld [vmem:[#allocation20_spill] sm:$0xff]  ;;  %v6714_v30 = vsel %vm3714_vm1, %v6703_v39, %v6713_v27  ;;  %v29502_v63 = vrot.slane %v24154_v38, 2  ;;  %v29503_v39 = vrot.slane %v24242_v20, 2 }
 0x3cd   : > { %v6006_v16 = vmax.f32 %v29500_v31, %v5887_v18  ;;  %7746 = vmatprep.mubr.bf16.mxu0 %v6714_v30  ;;  %7972 = vmatprep.mubr.bf16.mxu1 %v6714_v30  ;;  %v29501_v18 = vrot.slane %v24221_v56, 1  ;;  %v29504_v50 = vrot.slane %v24169_v8, 2  ;;  %v29505_v30 = vrot.slane %v24252_v43, 2  ;;  %v24395_v8 = vld [vmem:[%s29078_s3 + $0x7a4] ss:$16 sps:$4 sm:$0xff]   ;;  %v29546_v56 = vld [vmem:[#allocation71_spill] sm:$0xff] }
 0x3ce   : > { %v24374_v21 = vsel %vm7289_vm2, %v29502_v63, %v7516_v9  ;;  %v7520_v38 = vrot.slane %v24322_v57, 2  ;;  %v7524_v63 = vrot.slane %v24327_v48, 2  ;;  %7822 = vmatpush1.bf16.msra.mxu0 %v23958_v23  ;;  %v24409_v48 = vld [vmem:[%s29078_s3 + $0x7ac] ss:$16 sps:$4 sm:$0xff]   ;;  %8048 = vmatpush1.bf16.msra.mxu1 %v23961_v62  ;;  %v24417_v28 = vpack.c.bf16 %v6007_v15, %v6003_v36  ;;  %v24446_v15 = vld [vmem:[%s29078_s3 + $0x7a8] ss:$16 sps:$4 sm:$0xff]  }
 0x3cf   : > { %v6712_v6 = vsel %vm3714_vm1, %v29501_v18, %v29200_v35  ;;  %v24381_v31 = vsel %vm7289_vm2, %v29504_v50, %v29503_v39  ;;  %v29506_v18 = vrot.slane %v24212_v11, 2  ;;  %v6010_v39 = vmax.f32 %v22953_v1, %v24355_v55  ;;  %7823 = vmatprep.subr.bf16.mxu0 %v23964_v54  ;;  %8049 = vmatprep.subr.bf16.mxu1 %v23983_v3  ;;  %v24430_v54 = vld [vmem:[%s29078_s3 + $0x7a0] ss:$16 sps:$4 sm:$0xff]  }
 0x3d0   : > { %7747 = vmatmul.mubr.bf16.gmra.mrb[36].mxu0 %v6712_v6  ;;  %7973 = vmatmul.mubr.bf16.gmra.mrb[52].mxu1 %v6712_v6  ;;  %v5891_v6 = vsel %vm5865_vm3, %v19133_v7, %v29201_v22  ;;  %v7518_v11 = vrot.slane %v24345_v5, 2  ;;  %v19138_v50 = vunpack.i.h.bf16 %v24357_v29  ;;  %v24413_v55 = vpop.permute.xlu0 %19140  ;;  %29507 = vst [vmem:[#allocation19_spill] sm:$0xff] %v24417_v28  ;;  %v24419_v23 = vpack.c.bf16 %v6006_v16, %v6002_v59  ;;  %v29528_v5 = vld [vmem:[#allocation66_spill] sm:$0xff] }
 0x3d1   : > { %v24388_v35 = vsel %vm7289_vm2, %v29506_v18, %v29505_v30  ;;  %v6011_v1 = vmax.f32 %v22968_v58, %v5891_v6  ;;  %v29203_v30 = vunpack.i.h.bf16 %v24413_v55  ;;  %v19142_v18 = vunpack.i.l.bf16 %v24413_v55 }
 0x3d2   : > { %v19146_v7 = vpop.permute.xlu1 %19145  ;;  %29508 = vst [vmem:[#allocation20_spill] sm:$0xff] %v24419_v23  ;;  %v6721_v58 = vrot.slane %v24417_v28, 1  ;;  %v6719_v6 = vrot.slane %v24419_v23, 1  ;;  %7824 = vmatpush1.bf16.msra.mxu0 %v23986_v42  ;;  %v24440_v3 = vsel %vm7289_vm2, %v7512_v2, %v7520_v38  ;;  %v29204_v16 = vrot.slane %v24409_v48, 2  ;;  %8050 = vmatpush1.bf16.msra.mxu1 %v23999_v32 }
 0x3d3   : > { %v19148_v22 = vunpack.i.h.bf16 %v19146_v7  ;;  %v19147_v57 = vunpack.i.l.bf16 %v19146_v7  ;;  %v5893_v59 = vsel %vm5865_vm3, %v19138_v50, %v19142_v18  ;;  %v5894_v36 = vsel %vm5865_vm3, %v19142_v18, %v29203_v30  ;;  %v29509_v7 = vld [vmem:[#allocation21_spill] sm:$0xff]  ;;  %7825 = vmatprep.subr.bf16.mxu0 %v24002_v14  ;;  %8051 = vmatprep.subr.bf16.mxu1 %v24007_v0 }
 0x3d4   : > { %v6014_v50 = vmax.f32 %v29509_v7, %v5893_v59  ;;  %v6015_v62 = vmax.f32 %v23008_v61, %v5894_v36  ;;  %v24453_v42 = vpop.permute.xlu0 %19150  ;;  %v6722_v46 = vsel %vm3714_vm1, %v6713_v27, %v6721_v58  ;;  %v29510_v61 = vrot.slane %v24306_v17, 1 }
 0x3d5   : > { %v24451_v18 = vsel %vm5865_vm3, %v19147_v57, %v19148_v22  ;;  %v29202_v2 = vunpack.i.l.bf16 %v24453_v42  ;;  %7756 = vmatprep.mubr.bf16.mxu0 %v6722_v46  ;;  %7982 = vmatprep.mubr.bf16.mxu1 %v6722_v46  ;;  %v24470_v32 = vsel %vm7289_vm2, %v7516_v9, %v7524_v63  ;;  %v29511_v59 = vrot.slane %v24242_v20, 2 }
 0x3d6   : > { %v6720_v57 = vsel %vm3714_vm1, %v29510_v61, %v6719_v6  ;;  %v29512_v36 = vrot.slane %v24350_v60, 2  ;;  %v29513_v7 = vrot.slane %v24252_v43, 2  ;;  %v29514_v25 = vrot.slane %v24395_v8, 2  ;;  %7826 = vmatpush1.bf16.msra.mxu0 %v24022_v53  ;;  %8052 = vmatpush1.bf16.msra.mxu1 %v24025_v12 }
 0x3d7   : > { %v24477_v27 = vsel %vm7289_vm2, %v29511_v59, %v7518_v11  ;;  %v7526_v20 = vrot.slane %v24430_v54, 2  ;;  %v6018_v61 = vmax.f32 %v23019_v4, %v24451_v18  ;;  %v5897_v14 = vsel %vm5865_vm3, %v19148_v22, %v29202_v2  ;;  %v6569_v59 = vld [vmem:[%s29078_s3 + $0x7c0] sm:$0xff]  ;;  %v29515_v18 = vld [vmem:[#allocation22_spill] sm:$0xff]  ;;  %7827 = vmatprep.subr.bf16.mxu0 %v24028_v51  ;;  %8053 = vmatprep.subr.bf16.mxu1 %v24034_v40 }
 0x3d8   : > { %7757 = vmatmul.mubr.bf16.gmra.mrb[40].mxu0 %v6720_v57  ;;  %v24485_v46 = vsel %vm7289_vm2, %v29513_v7, %v29512_v36  ;;  %v24490_v9 = vsel %vm7289_vm2, %v7520_v38, %v29514_v25  ;;  %7983 = vmatmul.mubr.bf16.gmra.mrb[56].mxu1 %v6720_v57  ;;  %v24502_v43 = vsel %vm7289_vm2, %v7524_v63, %v29204_v16  ;;  %v19153_v4 = vunpack.i.h.bf16 %v24453_v42  ;;  %v24510_v7 = vpop.permute.xlu1 %19155  ;;  %v24521_v57 = vld [vmem:[%s29078_s3 + $0x7c8] sm:$0xff] }
 0x3d9   : > { %v6019_v36 = vmax.f32 %v29515_v18, %v5897_v14  ;;  %v24514_v0 = vpack.c.bf16 %v6015_v62, %v6011_v1  ;;  %v24516_v63 = vpack.c.bf16 %v6014_v50, %v6010_v39  ;;  %v29206_v25 = vunpack.i.h.bf16 %v24510_v7 }
 0x3da   : > { %v19157_v14 = vunpack.i.l.bf16 %v24510_v7  ;;  %v17003_v39 = vcombine.high %v6569_v59, %v6569_v59  ;;  %v17005_v50 = vcombine.high %v24521_v57, %v24521_v57  ;;  %v17002_v30 = vcombine.low %v6569_v59, %v6569_v59  ;;  %7828 = vmatpush1.bf16.msra.mxu0 %v24037_v24  ;;  %8054 = vmatpush1.bf16.msra.mxu1 %v24047_v26 }
 0x3db   : > { %v19161_v22 = vpop.permute.xlu0 %19160  ;;  %29516 = vst [vmem:[#allocation21_spill] sm:$0xff] %v24514_v0  ;;  %29517 = vst [vmem:[#allocation22_spill] sm:$0xff] %v24516_v63  ;;  %v6729_v53 = vrot.slane %v24514_v0, 1  ;;  %v29207_v12 = vrot.slane %v24516_v63, 1  ;;  %7829 = vmatprep.subr.bf16.mxu0 %v24063_v13  ;;  %v24562_v24 = vsel %vm7289_vm2, %v7518_v11, %v7526_v20  ;;  %v29520_v26 = vrot.slane %v24446_v15, 2 }
 0x3dc   : > { %v19163_v18 = vunpack.i.h.bf16 %v19161_v22  ;;  %v19162_v2 = vunpack.i.l.bf16 %v19161_v22  ;;  %v5899_v1 = vsel %vm5865_vm3, %v19153_v4, %v19157_v14  ;;  %v5900_v62 = vsel %vm5865_vm3, %v19157_v14, %v29206_v25  ;;  %v29518_v22 = vld [vmem:[#allocation23_spill] sm:$0xff]  ;;  %v24540_v38 = vpop.permute.xlu1 %19165 }
 0x3dd   : > { %v6022_v16 = vmax.f32 %v29518_v22, %v5899_v1  ;;  %v6023_v51 = vmax.f32 %v23080_v37, %v5900_v62  ;;  %v29205_v4 = vunpack.i.l.bf16 %v24540_v38  ;;  %v6730_v59 = vsel %vm3714_vm1, %v6721_v58, %v6729_v53  ;;  %v29523_v1 = vld [vmem:[#allocation24_spill] sm:$0xff]  ;;  %v29526_v22 = vld [vmem:[#allocation25_spill] sm:$0xff] }
 0x3de   : > { %v24538_v40 = vsel %vm5865_vm3, %v19162_v2, %v19163_v18  ;;  %v6728_v37 = vsel %vm3714_vm1, %v6719_v6, %v29207_v12  ;;  %v29519_v2 = vld [vmem:[#allocation64_spill] sm:$0xff]  ;;  %7766 = vmatprep.mubr.bf16.mxu0 %v6730_v59  ;;  %7992 = vmatprep.mubr.bf16.mxu1 %v6730_v59  ;;  %v29521_v58 = vrot.slane %v24350_v60, 2  ;;  %v24571_v6 = vrot.slane %v17003_v39, 2 }
 0x3df   : > { %8055 = vmatprep.subr.bf16.mxu1 %v29519_v2  ;;  %v24580_v11 = vsel %vm5865_vm3, %v19163_v18, %v29205_v4  ;;  %v24582_v62 = vrot.slane %v17005_v50, 2  ;;  %v24584_v60 = vrot.slane %v17002_v30, 2  ;;  %v19168_v39 = vunpack.i.h.bf16 %v24540_v38 }
 0x3e0   : > { %v24569_v14 = vsel %vm7289_vm2, %v29521_v58, %v29520_v26  ;;  %29522 = vst [vmem:[#allocation23_spill] sm:$0xff] %v24571_v6  ;;  %7767 = vmatmul.mubr.bf16.gmra.mrb[44].mxu0 %v6728_v37  ;;  %7993 = vmatmul.mubr.bf16.gmra.mrb[60].mxu1 %v6728_v37  ;;  %v29527_v58 = vld [vmem:[#allocation65_spill] sm:$0xff]  ;;  %v24593_v18 = vpack.c.bf16 %v6023_v51, %v6019_v36  ;;  %v29529_v36 = vrot.slane %v24395_v8, 2  ;;  %v29530_v51 = vrot.slane %v24409_v48, 2  ;;  %v29531_v8 = vld [vmem:[#allocation26_spill] sm:$0xff] }
 0x3e1   : > { %29524 = vst [vmem:[#allocation64_spill] sm:$0xff] %v24582_v62  ;;  %29525 = vst [vmem:[#allocation24_spill] sm:$0xff] %v24584_v60  ;;  %v19176_v26 = vpop.permute.xlu1 %19175  ;;  %7830 = vmatpush1.bf16.msra.mxu0 %v29527_v58  ;;  %8056 = vmatpush1.bf16.msra.mxu1 %v29528_v5  ;;  %v24595_v4 = vpack.c.bf16 %v6022_v16, %v6018_v61  ;;  %v29533_v58 = vld [vmem:[#allocation67_spill] sm:$0xff]  ;;  %v24635_v48 = vsel %vm7289_vm2, %v7526_v20, %v24584_v60 }
 0x3e2   : > { %v19178_v37 = vunpack.i.h.bf16 %v19176_v26  ;;  %v19177_v25 = vunpack.i.l.bf16 %v19176_v26  ;;  %7831 = vmatprep.subr.bf16.mxu0 %v24119_v33  ;;  %8057 = vmatprep.subr.bf16.mxu1 %v24122_v41  ;;  %v29211_v13 = vrot.slane %v24593_v18, 1  ;;  %v24607_v16 = vsel %vm7289_vm2, %v29529_v36, %v24571_v6  ;;  %v29532_v36 = vld [vmem:[#allocation27_spill] sm:$0xff]  ;;  %29535 = vst [vmem:[#allocation25_spill] sm:$0xff] %v24635_v48  ;;  %v29536_v26 = vld [vmem:[#allocation69_spill] sm:$0xff]  ;;  %v29572_v6 = vld [vmem:[#allocation34_spill] sm:$0xff] }
 0x3e3   : > { %v24589_v2 = vpop.permute.xlu0 %19170  ;;  %v24620_v5 = vsel %vm7289_vm2, %v29530_v51, %v24582_v62  ;;  %v29539_v20 = vrot.slane %v24595_v4, 1  ;;  %v29540_v51 = vrot.slane %v24516_v63, 1  ;;  %v29544_v63 = vld [vmem:[#allocation28_spill] sm:$0xff] }
 0x3e4   : > { %v29208_v50 = vunpack.i.h.bf16 %v24589_v2  ;;  %v19172_v30 = vunpack.i.l.bf16 %v24589_v2  ;;  %v5911_v41 = vsel %vm5865_vm3, %v19177_v25, %v19178_v37  ;;  %v6738_v54 = vsel %vm3714_vm1, %v6729_v53, %v29211_v13  ;;  %v29543_v53 = vld [vmem:[#allocation56_spill] sm:$0xff] }
 0x3e5   : > { %7832 = vmatpush1.bf16.msra.mxu0 %v29533_v58  ;;  %v29538_v58 = vld [vmem:[#allocation51_spill] sm:$0xff]  ;;  %7776 = vmatprep.mubr.bf16.mxu0 %v6738_v54 }
 0x3e6   : > { %v24610_v61 = vsel %vm5865_vm3, %v19168_v39, %v19172_v30  ;;  %v5906_v33 = vsel %vm5865_vm3, %v19172_v30, %v29208_v50  ;;  %v24627_v39 = vpop.permute.xlu1 %19185  ;;  %v29534_v30 = vld [vmem:[#allocation68_spill] sm:$0xff]  ;;  %7833 = vmatprep.subr.bf16.mxu0 %v29536_v26  ;;  %v29537_v50 = vld [vmem:[#allocation70_spill] sm:$0xff]  ;;  %8002 = vmatprep.mubr.bf16.mxu1 %v6738_v54 }
 0x3e7   : > { %v6031_v59 = vmax.f32 %v29532_v36, %v5906_v33  ;;  %v24625_v12 = vpop.permute.xlu0 %19180  ;;  %8058 = vmatpush1.bf16.msra.mxu1 %v29534_v30  ;;  %v19187_v36 = vunpack.i.l.bf16 %v24627_v39  ;;  %v6038_v30 = vmax.f32 %v29538_v58, %v5911_v41  ;;  %v6736_v33 = vsel %vm3714_vm1, %v29540_v51, %v29539_v20  ;;  %v29545_v51 = vld [vmem:[#allocation29_spill] sm:$0xff] }
 0x3e8   : > { %v19183_v25 = vunpack.i.h.bf16 %v24625_v12  ;;  %8059 = vmatprep.subr.bf16.mxu1 %v29537_v50  ;;  %v29541_v26 = vunpack.i.l.bf16 %v24625_v12  ;;  %v29542_v58 = vunpack.i.h.bf16 %v24627_v39  ;;  %7777 = vmatmul.mubr.bf16.gmra.mrb[48].mxu0 %v6736_v33 }
 0x3e9   : > { %8003 = vmatmul.mubr.bf16.gmra.mrb[64].mxu1 %v6736_v33  ;;  %7834 = vmatpush1.bf16.msra.mxu0 %v29546_v56  ;;  %v29551_v33 = vmax.f32 %v29526_v22, %v24580_v11  ;;  %v29553_v56 = vld [vmem:[#allocation12_spill] sm:$0xff] }
 0x3ea   : > { %v5912_v50 = vsel %vm5865_vm3, %v19178_v37, %v29541_v26  ;;  %v5908_v41 = vsel %vm5865_vm3, %v19183_v25, %v19187_v36  ;;  %v5909_v0 = vsel %vm5865_vm3, %v19187_v36, %v29542_v58  ;;  %v19196_v17 = vpop.permute.xlu1 %19195  ;;  %v29547_v36 = vld [vmem:[#allocation72_spill] sm:$0xff]  ;;  %v29554_v58 = vunpack.i.h.bf16 %v29553_v56  ;;  %v29563_v56 = vld [vmem:[#allocation37_spill] sm:$0xff] }
 0x3eb   : > { %v6039_v13 = vmax.f32 %v29543_v53, %v5912_v50  ;;  %v6034_v23 = vmax.f32 %v29544_v63, %v5908_v41  ;;  %v6035_v20 = vmax.f32 %v29545_v51, %v5909_v0  ;;  %v19191_v28 = vpop.permute.xlu0 %19190  ;;  %v19198_v26 = vunpack.i.h.bf16 %v19196_v17  ;;  %8060 = vmatpush1.bf16.msra.mxu1 %v29547_v36  ;;  %v29549_v63 = vld [vmem:[#allocation73_spill] sm:$0xff]  ;;  %v29550_v0 = vld [vmem:[#allocation74_spill] sm:$0xff]  ;;  %v29558_v36 = vld [vmem:[#allocation31_spill] sm:$0xff] }
 0x3ec   : > { %v19193_v37 = vunpack.i.h.bf16 %v19191_v28  ;;  %v19192_v25 = vunpack.i.l.bf16 %v19191_v28  ;;  %v19197_v47 = vunpack.i.l.bf16 %v19196_v17  ;;  %7835 = vmatprep.subr.bf16.mxu0 %v29549_v63  ;;  %8061 = vmatprep.subr.bf16.mxu1 %v29550_v0  ;;  %v24675_v41 = vpack.c.bf16 %v6031_v59, %v29551_v33  ;;  %v29556_v53 = vld [vmem:[#allocation10_spill] sm:$0xff]  ;;  %v29559_v11 = vld [vmem:[#allocation32_spill] sm:$0xff]  ;;  %v29561_v0 = vld [vmem:[#allocation13_spill] sm:$0xff] }
 0x3ed   : > { %v24666_v54 = vpack.c.bf16 %v6039_v13, %v6038_v30  ;;  %v24668_v50 = vpack.c.bf16 %v6035_v20, %v6034_v23  ;;  %v29552_v17 = vcombine.low %v24521_v57, %v24521_v57  ;;  %v29555_v23 = vld [vmem:[#allocation33_spill] sm:$0xff]  ;;  %v29557_v51 = vunpack.i.l.bf16 %v29556_v53  ;;  %v29560_v59 = vld [vmem:[#allocation30_spill] sm:$0xff] }
 0x3ee   : > { %v5871_v13 = vsel %vm5865_vm3, %v29554_v58, %v19193_v37  ;;  %v5985_v30 = vmax.f32 %v29555_v23, %v19193_v37  ;;  %v5981_v63 = vmax.f32 %v29558_v36, %v19192_v25  ;;  %v29562_v33 = vunpack.i.h.bf16 %v29561_v0  ;;  %v19206_v37 = vpop.permute.xlu1 %19205  ;;  %v29569_v36 = vld [vmem:[#allocation35_spill] sm:$0xff] }
 0x3ef   : > { %29548 = vst [vmem:[#allocation65_spill] sm:$0xff] %v24668_v50  ;;  %v24680_v28 = vrot.slane %v29552_v17, 2  ;;  %v5868_v20 = vsel %vm5865_vm3, %v29557_v51, %v19192_v25  ;;  %6265 = vst [vmem:[#allocation2 + $0xe0] sm:$0xff] %v24668_v50  ;;  %v5984_v22 = vmax.f32 %v29559_v11, %v5871_v13  ;;  %v5993_v58 = vmax.f32 %v29563_v56, %v19198_v26  ;;  %v19201_v62 = vpop.permute.xlu0 %19200  ;;  %v29566_v25 = vld [vmem:[#allocation36_spill] sm:$0xff]  ;;  %v29567_v51 = vld [vmem:[#allocation11_spill] sm:$0xff] }
 0x3f0   : > { %v5980_v57 = vmax.f32 %v29560_v59, %v5868_v20  ;;  %v5877_v17 = vsel %vm5865_vm3, %v29562_v33, %v19198_v26  ;;  %v29568_v13 = vunpack.i.l.bf16 %v29567_v51  ;;  %v5989_v11 = vmax.f32 %v29569_v36, %v19197_v47  ;;  %v29570_v0 = vld [vmem:[#allocation75_spill] sm:$0xff]  ;;  %v29571_v26 = vld [vmem:[#allocation76_spill] sm:$0xff] }
 0x3f1   : > { %v5992_v53 = vmax.f32 %v29566_v25, %v5877_v17  ;;  %v19203_v59 = vunpack.i.h.bf16 %v19201_v62  ;;  %7836 = vmatpush1.bf16.msra.mxu0 %v29570_v0  ;;  %8062 = vmatpush1.bf16.msra.mxu1 %v29571_v26  ;;  %v17874_v33 = vpack.c.bf16 %v5985_v30, %v5984_v22  ;;  %v19202_v48 = vunpack.i.l.bf16 %v19201_v62  ;;  %v29573_v25 = vld [vmem:[#allocation15_spill] sm:$0xff]  ;;  %v29576_v62 = vld [vmem:[#allocation40_spill] sm:$0xff] }
 0x3f2   : > { %v5874_v20 = vsel %vm5865_vm3, %v29568_v13, %v19197_v47  ;;  %v17872_v56 = vpack.c.bf16 %v5981_v63, %v5980_v57  ;;  %7837 = vmatprep.subr.bf16.mxu0 %v24271_v49  ;;  %8063 = vmatprep.subr.bf16.mxu1 %v24279_v52  ;;  %v29574_v51 = vunpack.i.h.bf16 %v29573_v25  ;;  %v29575_v47 = vld [vmem:[#allocation41_spill] sm:$0xff]  ;;  %v19208_v50 = vunpack.i.h.bf16 %v19206_v37  ;;  %v29577_v49 = vld [vmem:[#allocation14_spill] sm:$0xff]  ;;  %v29579_v22 = vld [vmem:[#allocation39_spill] sm:$0xff] }
 0x3f3   : > { %v5988_v60 = vmax.f32 %v29572_v6, %v5874_v20  ;;  %v17878_v17 = vpack.c.bf16 %v5993_v58, %v5992_v53  ;;  %v6001_v36 = vmax.f32 %v29575_v47, %v19203_v59  ;;  %6240 = vst.msk [vmem:[#allocation2 + $0x18] sm:$0xff] %vm24699_vm10, %v17874_v33  ;;  %v29578_v63 = vunpack.i.l.bf16 %v29577_v49  ;;  %v19211_v58 = vpop.permute.xlu0 %19210  ;;  %v19216_v53 = vpop.permute.xlu1 %19215  ;;  %v29580_v20 = vld [vmem:[#allocation38_spill] sm:$0xff] }
 0x3f4   : > { %v5883_v13 = vsel %vm5865_vm3, %v29574_v51, %v19203_v59  ;;  %6238 = vst.msk [vmem:[#allocation2 + $0x8] sm:$0xff] %vm24699_vm10, %v17872_v56  ;;  %v5997_v57 = vmax.f32 %v29579_v22, %v19202_v48  ;;  %v29581_v0 = vunpack.i.h.bf16 %v24300_v44  ;;  %v19207_v33 = vunpack.i.l.bf16 %v19206_v37 }
 0x3f5   : > { %v17876_v6 = vpack.c.bf16 %v5989_v11, %v5988_v60  ;;  %v6000_v30 = vmax.f32 %v29576_v62, %v5883_v13  ;;  %v5880_v52 = vsel %vm5865_vm3, %v29578_v63, %v19202_v48  ;;  %6244 = vst.msk [vmem:[#allocation2 + $0x38] sm:$0xff] %vm24699_vm10, %v17878_v17  ;;  %v29582_v60 = vld [vmem:[#allocation45_spill] sm:$0xff]  ;;  %7838 = vmatpush1.bf16.msra.mxu0 %v24295_v10  ;;  %v29585_v48 = vld [vmem:[#allocation44_spill] sm:$0xff]  ;;  %v19213_v25 = vunpack.i.h.bf16 %v19211_v58  ;;  %v29589_v13 = vld [vmem:[#allocation43_spill] sm:$0xff] }
 0x3f6   : > { %v5996_v59 = vmax.f32 %v29580_v20, %v5880_v52  ;;  %v5889_v26 = vsel %vm5865_vm3, %v29581_v0, %v19208_v50  ;;  %v6009_v11 = vmax.f32 %v29582_v60, %v19208_v50  ;;  %8064 = vmatpush1.bf16.msra.mxu1 %v24317_v34  ;;  %v19212_v50 = vunpack.i.l.bf16 %v19211_v58  ;;  %7839 = vmatprep.subr.bf16.mxu0 %v24340_v19  ;;  %v29590_v62 = vld [vmem:[#allocation42_spill] sm:$0xff]  ;;  %v29592_v63 = vld [vmem:[#allocation49_spill] sm:$0xff]  ;;  %v29595_v20 = vld [vmem:[#allocation47_spill] sm:$0xff] }
 0x3f7   : > { %6242 = vst.msk [vmem:[#allocation2 + $0x28] sm:$0xff] %vm24699_vm10, %v17876_v6  ;;  %v17882_v44 = vpack.c.bf16 %v6001_v36, %v6000_v30  ;;  %v6008_v17 = vmax.f32 %v29585_v48, %v5889_v26  ;;  %8065 = vmatprep.subr.bf16.mxu1 %v24374_v21  ;;  %v29588_v34 = vunpack.i.l.bf16 %v24259_v45  ;;  %v6005_v47 = vmax.f32 %v29589_v13, %v19207_v33  ;;  %v19221_v52 = vpop.permute.xlu0 %19220  ;;  %v29593_v45 = vld [vmem:[#allocation48_spill] sm:$0xff]  ;;  %v6274_v26 = vld [vmem:[#allocation2 + $0xf0] sm:$0x77]  ;;  %v19226_v60 = vpop.permute.xlu1 %19225 }
 0x3f8   : > { %v17880_v10 = vpack.c.bf16 %v5997_v57, %v5996_v59  ;;  %v19218_v36 = vunpack.i.h.bf16 %v19216_v53  ;;  %v29591_v49 = vunpack.i.h.bf16 %v24413_v55  ;;  %v6017_v21 = vmax.f32 %v29592_v63, %v19213_v25  ;;  %v29607_v63 = vld [vmem:[#allocation57_spill] sm:$0xff] }
 0x3f9   : > { %v5886_v51 = vsel %vm5865_vm3, %v29588_v34, %v19207_v33  ;;  %6248 = vst.msk [vmem:[#allocation2 + $0x58] sm:$0xff] %vm24699_vm10, %v17882_v44  ;;  %v17886_v6 = vpack.c.bf16 %v6009_v11, %v6008_v17  ;;  %v29594_v57 = vunpack.i.l.bf16 %v24357_v29  ;;  %v6013_v59 = vmax.f32 %v29595_v20, %v19212_v50  ;;  %7840 = vmatpush1.bf16.msra.mxu0 %v24381_v31  ;;  %v29597_v11 = vld [vmem:[#allocation46_spill] sm:$0xff]  ;;  %v29598_v44 = vld [vmem:[#allocation53_spill] sm:$0xff] }
 0x3fa   : > { %v6004_v30 = vmax.f32 %v29590_v62, %v5886_v51  ;;  %v5895_v19 = vsel %vm5865_vm3, %v29591_v49, %v19213_v25  ;;  %6246 = vst.msk [vmem:[#allocation2 + $0x48] sm:$0xff] %vm24699_vm10, %v17880_v10  ;;  %v29596_v0 = vunpack.i.h.bf16 %v24510_v7  ;;  %v29599_v7 = vld [vmem:[#allocation54_spill] sm:$0xff]  ;;  %8066 = vmatpush1.bf16.msra.mxu1 %v24388_v35  ;;  %v19223_v10 = vunpack.i.h.bf16 %v19221_v52  ;;  %7841 = vmatprep.subr.bf16.mxu0 %v24440_v3  ;;  %v29603_v62 = vld [vmem:[#allocation60_spill] sm:$0xff] }
 0x3fb   : > { %v6016_v22 = vmax.f32 %v29593_v45, %v5895_v19  ;;  %v5892_v58 = vsel %vm5865_vm3, %v29594_v57, %v19212_v50  ;;  %6252 = vst.msk [vmem:[#allocation2 + $0x78] sm:$0xff] %vm24699_vm10, %v17886_v6  ;;  %v6025_v17 = vmax.f32 %v29599_v7, %v19218_v36  ;;  %v19217_v50 = vunpack.i.l.bf16 %v19216_v53  ;;  %8067 = vmatprep.subr.bf16.mxu1 %v24470_v32  ;;  %v29601_v53 = vld [vmem:[#allocation52_spill] sm:$0xff]  ;;  %v29609_v45 = vld [vmem:[#allocation62_spill] sm:$0xff] }
 0x3fc   : > { %v5901_v55 = vsel %vm5865_vm3, %v29596_v0, %v19218_v36  ;;  %v17884_v29 = vpack.c.bf16 %v6005_v47, %v6004_v30  ;;  %v6012_v33 = vmax.f32 %v29597_v11, %v5892_v58  ;;  %v19222_v34 = vunpack.i.l.bf16 %v19221_v52  ;;  %v29605_v30 = vld [vmem:[#allocation58_spill] sm:$0xff]  ;;  %v29608_v52 = vld [vmem:[#allocation55_spill] sm:$0xff] }
 0x3fd   : > { %v6024_v48 = vmax.f32 %v29598_v44, %v5901_v55  ;;  %v17890_v25 = vpack.c.bf16 %v6017_v21, %v6016_v22  ;;  %v6275_v35 = vsel %vm6273_vm14, %v24666_v54, %v6274_v26  ;;  %v19228_v13 = vunpack.i.h.bf16 %v19226_v60  ;;  %7842 = vmatpush1.bf16.msra.mxu0 %v24477_v27  ;;  %vm27378_vm14 = vmand %vm11724_vm12, %vm2042_vm0 }
 0x3fe   : > { %6250 = vst.msk [vmem:[#allocation2 + $0x68] sm:$0xff] %vm24699_vm10, %v17884_v29  ;;  %v17888_v31 = vpack.c.bf16 %v6013_v59, %v6012_v33  ;;  %v29600_v3 = vunpack.i.l.bf16 %v24453_v42  ;;  %v6021_v47 = vmax.f32 %v29601_v53, %v19217_v50  ;;  %v29602_v36 = vunpack.i.h.bf16 %v24589_v2  ;;  %6276 = vst [vmem:[#allocation2 + $0xf0] sm:$0x77] %v6275_v35  ;;  %v29604_v42 = vld [vmem:[#allocation50_spill] sm:$0xff]  ;;  %8068 = vmatpush1.bf16.msra.mxu1 %v24485_v46  ;;  %v29613_v46 = vld [vmem:[#allocation61_spill] sm:$0xff] }
 0x3ff   : > { %v17894_v51 = vpack.c.bf16 %v6025_v17, %v6024_v48  ;;  %6256 = vst.msk [vmem:[#allocation2 + $0x98] sm:$0xff] %vm24699_vm10, %v17890_v25  ;;  %v6033_v37 = vmax.f32 %v29603_v62, %v19223_v10  ;;  %v29606_v19 = vunpack.i.l.bf16 %v24540_v38  ;;  %v6029_v21 = vmax.f32 %v29607_v63, %v19222_v34  ;;  %7843 = vmatprep.subr.bf16.mxu0 %v24490_v9  ;;  %v29615_v9 = vld [vmem:[#allocation63_spill] sm:$0xff] }
 0x400   : > { %v5898_v32 = vsel %vm5865_vm3, %v29600_v3, %v19217_v50  ;;  %v5907_v6 = vsel %vm5865_vm3, %v29602_v36, %v19223_v10  ;;  %6254 = vst.msk [vmem:[#allocation2 + $0x88] sm:$0xff] %vm24699_vm10, %v17888_v31  ;;  %v6037_v22 = vmax.f32 %v29609_v45, %v19228_v13  ;;  %v19227_v57 = vunpack.i.l.bf16 %v19226_v60  ;;  %8069 = vmatprep.subr.bf16.mxu1 %v24502_v43  ;;  %v29622_v50 = vld [vmem:[#allocation65_spill] sm:$0xff]  ;;  %v20158_v3 = vld [vmem:[%s29078_s3 + $0x4] ss:$16 sps:$4 sm:$0xff]   ;;  %v24890_v62 = vld [vmem:[#allocation2 + $0x18] sm:$0xff] }
 0x401   : > { %6260 = vst.msk [vmem:[#allocation2 + $0xb8] sm:$0xff] %vm24699_vm10, %v17894_v51  ;;  %v6020_v54 = vmax.f32 %v29604_v42, %v5898_v32  ;;  %v6032_v49 = vmax.f32 %v29605_v30, %v5907_v6  ;;  %v5904_v2 = vsel %vm5865_vm3, %v29606_v19, %v19222_v34  ;;  %v29610_v58 = vunpack.i.h.bf16 %v24627_v39  ;;  %7844 = vmatpush1.bf16.msra.mxu0 %v24562_v24  ;;  %v6280_v24 = vld [vmem:[#allocation2 + $0xf8] sm:$0x77]  ;;  %v29623_v31 = vld [vmem:[#allocation25_spill] sm:$0xff]  ;;  %v29624_v51 = vld [vmem:[#allocation24_spill] sm:$0xff] }
 0x402   : > { %v6028_v27 = vmax.f32 %v29608_v52, %v5904_v2  ;;  %v6745_v26 = vrot.slane %v24675_v41, 1  ;;  %v29614_v39 = vunpack.i.l.bf16 %v24625_v12  ;;  %v6041_v11 = vmax.f32 %v29615_v9, %v19227_v57  ;;  %v29618_v12 = vld [vmem:[#allocation59_spill] sm:$0xff]  ;;  %8070 = vmatpush1.bf16.msra.mxu1 %v24569_v14  ;;  %7845 = vmatprep.subr.bf16.mxu0 %v24607_v16  ;;  %v29626_v32 = vld [vmem:[#allocation64_spill] sm:$0xff] }
 0x403   : > { %v5910_v20 = vsel %vm5865_vm3, %v29610_v58, %v19228_v13  ;;  %v17892_v38 = vpack.c.bf16 %v6021_v47, %v6020_v54  ;;  %v17898_v59 = vpack.c.bf16 %v6033_v37, %v6032_v49  ;;  %v29616_v43 = vmax.f32 %v29523_v1, %v24538_v40  ;;  %8071 = vmatprep.subr.bf16.mxu1 %v24620_v5  ;;  %v29625_v13 = vld [vmem:[#allocation23_spill] sm:$0xff]  ;;  %v6442_v37 = vld [vmem:[#allocation2 + $0x8] sm:$0xee]  ;;  %v20166_v58 = vld [vmem:[%s29078_s3 + $0x24] ss:$16 sps:$4 sm:$0xff]  }
 0x404   : > { %v6036_v55 = vmax.f32 %v29613_v46, %v5910_v20  ;;  %v17896_v60 = vpack.c.bf16 %v6029_v21, %v6028_v27  ;;  %v5913_v29 = vsel %vm5865_vm3, %v29614_v39, %v19227_v57  ;;  %v29617_v33 = vmax.f32 %v29531_v8, %v24610_v61  ;;  %vm6279_vm3 = vmor %vm24825_vm15, %vm24735_vm11  ;;  %v20161_v47 = vld [vmem:[%s29078_s3 + $0xc] ss:$16 sps:$4 sm:$0xff]   ;;  %v24897_v19 = vld [vmem:[#allocation2 + $0x28] ss:$16 sps:$4 sm:$0xff]  }
 0x405   : > { %6258 = vst.msk [vmem:[#allocation2 + $0xa8] sm:$0xff] %vm24699_vm10, %v17892_v38  ;;  %6264 = vst.msk [vmem:[#allocation2 + $0xd8] sm:$0xff] %vm24699_vm10, %v17898_v59  ;;  %v6040_v48 = vmax.f32 %v29618_v12, %v5913_v29  ;;  %v29619_v17 = vrot.slane %v24593_v18, 1  ;;  %v6443_v14 = vld [vmem:[#allocation2 + $0xf0] sm:$0x33]  ;;  %v29620_v16 = vrot.slane %v24446_v15, 2  ;;  %7846 = vmatpush1.bf16.msra.mxu0 %v29623_v31  ;;  %v16848_v49 = vcombine.low %v6442_v37, %v24890_v62 }
 0x406   : > { %v24841_v44 = vpack.c.bf16 %v29617_v33, %v29616_v43  ;;  %v17900_v7 = vpack.c.bf16 %v6037_v22, %v6036_v55  ;;  %6262 = vst.msk [vmem:[#allocation2 + $0xc8] sm:$0xff] %vm24699_vm10, %v17896_v60  ;;  %v29621_v56 = vrot.slane %v24595_v4, 1  ;;  %v16875_v10 = vcombine.high %v29622_v50, %v6443_v14  ;;  %17006 = vmatprep.subr.msk.bf16.mxu0 %vm7691_vm5, %v29625_v13  ;;  %v24893_v42 = vld [vmem:[#allocation2 + $0x2c] ss:$16 sps:$4 sm:$0xff]   ;;  %v20156_v45 = vld [vmem:[%s29078_s3] ss:$16 sps:$4 sm:$0xff]  }
 0x407   : > { %v6746_v40 = vsel %vm3714_vm1, %v29619_v17, %v6745_v26  ;;  %v17902_v61 = vpack.c.bf16 %v6041_v11, %v6040_v48  ;;  %v7539_v8 = vsel %vm7289_vm2, %v29620_v16, %v24680_v28  ;;  %v16874_v34 = vcombine.low %v29622_v50, %v6443_v14  ;;  %v24900_v63 = vld [vmem:[#allocation2 + $0x4c] ss:$16 sps:$4 sm:$0xff]   ;;  %v20159_v22 = vld [vmem:[%s29078_s3 + $0x8] ss:$16 sps:$4 sm:$0xff]   ;;  %v20164_v46 = vld [vmem:[%s29078_s3 + $0x20] ss:$16 sps:$4 sm:$0xff]  }
 0x408   : > { %7786 = vmatprep.mubr.bf16.mxu0 %v6746_v40  ;;  %8012 = vmatprep.mubr.bf16.mxu1 %v6746_v40  ;;  %v6743_v1 = vrot.slane %v24841_v44, 1  ;;  %6266 = vst.msk [vmem:[#allocation2 + $0xe8] sm:$0xff] %vm24699_vm10, %v17900_v7  ;;  %v7693_v5 = vsel %vm7691_vm5, %v29624_v51, 0  ;;  %v6753_v15 = vrot.slane %v16875_v10, 1  ;;  %v7699_v53 = vsel %vm7691_vm5, %v24680_v28, 0  ;;  %vm27220_vm10 = vmand %vm11756_vm8, %vm2042_vm0 }
 0x409   : > { %v6281_v23 = vsel %vm6279_vm3, %v17902_v61, %v6280_v24  ;;  %v6751_v35 = vrot.slane %v16874_v34, 1  ;;  %8072 = vmatpush1.bf16.msra.mxu1 %v7539_v8  ;;  %7848 = vmatpush1.bf16.msra.mxu0 %v7693_v5  ;;  %v16849_v28 = vcombine.high %v6442_v37, %v24890_v62  ;;  %v6709_v30 = vrot.slane %v24893_v42, 1  ;;  %v20169_v20 = vld [vmem:[%s29078_s3 + $0x2c] ss:$16 sps:$4 sm:$0xff]   ;;  %v24919_v38 = vld [vmem:[#allocation2 + $0x48] ss:$16 sps:$4 sm:$0xff]   ;;  %vm11758_vm11 = vmor %vm27220_vm10, %vm27203_vm9 }
 0x40a   : > { %v6744_v25 = vsel %vm3714_vm1, %v29621_v56, %v6743_v1  ;;  %6282 = vst [vmem:[#allocation2 + $0xf8] sm:$0x77] %v6281_v23  ;;  %17015 = vmatprep.subr.msk.bf16.mxu1 %vm7691_vm5, %v29626_v32  ;;  %v6754_v36 = vsel %vm3714_vm1, %v6745_v26, %v6753_v15  ;;  %8866 = vmatprep.subr.bf16.mxu0 %v20158_v3  ;;  %v6705_v21 = vrot.slane %v16848_v49, 1  ;;  %v6706_v52 = vrot.slane %v24897_v19, 1  ;;  %v24922_v0 = vld [vmem:[#allocation2 + $0x6c] ss:$16 sps:$4 sm:$0xff]   ;;  %vm11764_vm0 = vmor %vm27378_vm14, %vm27203_vm9 }
 0x40b   : > { %7787 = vmatmul.mubr.bf16.gmra.mrb[52].mxu0 %v6744_v25  ;;  %8013 = vmatmul.mubr.bf16.gmra.mrb[68].mxu1 %v6744_v25  ;;  %v6752_v6 = vsel %vm3714_vm1, %v6743_v1, %v6751_v35  ;;  %v6708_v54 = vrot.slane %v16849_v28, 1  ;;  %v6717_v27 = vrot.slane %v24900_v63, 1  ;;  %v20167_v55 = vld [vmem:[%s29078_s3 + $0x28] ss:$16 sps:$4 sm:$0xff]   ;;  %v6715_v26 = vrot.slane %v24919_v38, 1  ;;  %vm28418_vm10 = vmand %vm7691_vm5, %vm14313_vm7 }
 0x40c   : > { %7796 = vmatprep.mubr.bf16.mxu0 %v6754_v36  ;;  %8022 = vmatprep.mubr.bf16.mxu1 %v6754_v36  ;;  %v6707_v57 = vsel %vm3714_vm1, %v6705_v21, %v6706_v52  ;;  %v20173_v60 = vld [vmem:[%s29078_s3 + $0x44] ss:$16 sps:$4 sm:$0xff]   ;;  %v20176_v39 = vld [vmem:[%s29078_s3 + $0x4c] ss:$16 sps:$4 sm:$0xff]   ;;  %v6725_v29 = vrot.slane %v24922_v0, 1  ;;  %vm12423_vm15 = vcmask 785408  }
 0x40d   : > { %8074 = vmatpush1.bf16.msra.mxu1 %v7699_v53  ;;  %v6710_v2 = vsel %vm3714_vm1, %v6708_v54, %v6709_v30  ;;  %v6718_v59 = vsel %vm3714_vm1, %v6709_v30, %v6717_v27  ;;  %v20171_v9 = vld [vmem:[%s29078_s3 + $0x40] ss:$16 sps:$4 sm:$0xff]   ;;  %v20174_v11 = vld [vmem:[%s29078_s3 + $0x48] ss:$16 sps:$4 sm:$0xff]   ;;  %v6716_v43 = vsel %vm3714_vm1, %v6706_v52, %v6715_v26  ;;  %v20181_v33 = vld [vmem:[%s29078_s3 + $0x64] ss:$16 sps:$4 sm:$0xff]  }
 0x40e   : > { %9092 = vmatprep.subr.bf16.mxu1 %v20161_v47  ;;  %v20184_v12 = vld [vmem:[%s29078_s3 + $0x6c] ss:$16 sps:$4 sm:$0xff]   ;;  %v24953_v48 = vld [vmem:[#allocation2 + $0x68] ss:$16 sps:$4 sm:$0xff]   ;;  %v6726_v7 = vsel %vm3714_vm1, %v6717_v27, %v6725_v29  ;;  %v20179_v40 = vld [vmem:[%s29078_s3 + $0x60] ss:$16 sps:$4 sm:$0xff]  }
 0x40f   : > { %v24956_v17 = vld [vmem:[#allocation2 + $0x8c] ss:$16 sps:$4 sm:$0xff]   ;;  %v20182_v24 = vld [vmem:[%s29078_s3 + $0x68] ss:$16 sps:$4 sm:$0xff]   ;;  %v6723_v1 = vrot.slane %v24953_v48, 1  ;;  %vm14315_vm8 = vcmask 717828  }
 0x410   : > { %v20188_v61 = vld [vmem:[%s29078_s3 + $0x84] ss:$16 sps:$4 sm:$0xff]   ;;  %v20191_v14 = vld [vmem:[%s29078_s3 + $0x8c] ss:$16 sps:$4 sm:$0xff]   ;;  %v6733_v16 = vrot.slane %v24956_v17, 1  ;;  %vm15614_vm12 = vcmask 392196  }
 0x411   : > { %v20186_v8 = vld [vmem:[%s29078_s3 + $0x80] ss:$16 sps:$4 sm:$0xff]   ;;  %v20189_v56 = vld [vmem:[%s29078_s3 + $0x88] ss:$16 sps:$4 sm:$0xff]   ;;  %v6724_v25 = vsel %vm3714_vm1, %v6715_v26, %v6723_v1  ;;  %v20196_v50 = vld [vmem:[%s29078_s3 + $0xa4] ss:$16 sps:$4 sm:$0xff]  }
 0x412   : > { %v20199_v10 = vld [vmem:[%s29078_s3 + $0xac] ss:$16 sps:$4 sm:$0xff]   ;;  %v24987_v34 = vld [vmem:[#allocation2 + $0x88] ss:$16 sps:$4 sm:$0xff]   ;;  %v6734_v31 = vsel %vm3714_vm1, %v6725_v29, %v6733_v16  ;;  %v20194_v51 = vld [vmem:[%s29078_s3 + $0xa0] ss:$16 sps:$4 sm:$0xff]  }
 0x413   : > { %7797 = vmatmul.mubr.bf16.gmra.mrb[56].mxu0 %v6752_v6  ;;  %8023 = vmatmul.mubr.bf16.gmra.mrb[72].mxu1 %v6752_v6  ;;  %v24990_v23 = vld [vmem:[#allocation2 + $0xac] ss:$16 sps:$4 sm:$0xff]   ;;  %v20197_v5 = vld [vmem:[%s29078_s3 + $0xa8] ss:$16 sps:$4 sm:$0xff]   ;;  %v20201_v32 = vld [vmem:[%s29078_s3 + $0xc0] ss:$16 sps:$4 sm:$0xff]  }
 0x414   : > { %7806 = vmatprep.mubr.bf16.mxu0 %v6753_v15  ;;  %8032 = vmatprep.mubr.bf16.mxu1 %v6753_v15  ;;  %v6731_v15 = vrot.slane %v24987_v34, 1  ;;  %v20206_v13 = vld [vmem:[%s29078_s3 + $0xcc] ss:$16 sps:$4 sm:$0xff]   ;;  %v6741_v3 = vrot.slane %v24990_v23, 1  ;;  %v20204_v53 = vld [vmem:[%s29078_s3 + $0xc8] ss:$16 sps:$4 sm:$0xff]  }
 0x415   : > { %v20211_v36 = vld [vmem:[%s29078_s3 + $0xe4] ss:$16 sps:$4 sm:$0xff]   ;;  %v20214_v6 = vld [vmem:[%s29078_s3 + $0xec] ss:$16 sps:$4 sm:$0xff]   ;;  %v25021_v37 = vld [vmem:[#allocation2 + $0xa8] ss:$16 sps:$4 sm:$0xff]  }
 0x416   : > { %v6732_v47 = vsel %vm3714_vm1, %v6723_v1, %v6731_v15  ;;  %v6742_v28 = vsel %vm3714_vm1, %v6733_v16, %v6741_v3  ;;  %v25024_v54 = vld [vmem:[#allocation2 + $0xcc] ss:$16 sps:$4 sm:$0xff]   ;;  %v20209_v30 = vld [vmem:[%s29078_s3 + $0xe0] ss:$16 sps:$4 sm:$0xff]   ;;  %v20212_v49 = vld [vmem:[%s29078_s3 + $0xe8] ss:$16 sps:$4 sm:$0xff]  }
 0x417   : > { %v20218_v21 = vld [vmem:[%s29078_s3 + $0x104] ss:$16 sps:$4 sm:$0xff]   ;;  %v20221_v52 = vld [vmem:[%s29078_s3 + $0x10c] ss:$16 sps:$4 sm:$0xff]   ;;  %v6749_v27 = vrot.slane %v25024_v54, 1  ;;  %vm15626_vm14 = vcmask 390148  }
 0x418   : > { %v20227_v29 = vld [vmem:[%s29078_s3 + $0x128] ss:$16 sps:$4 sm:$0xff]   ;;  %v20243_v1 = vld [vmem:[%s29078_s3 + $0x16c] ss:$16 sps:$4 sm:$0xff]   ;;  %v20238_v16 = vld [vmem:[%s29078_s3 + $0x160] ss:$16 sps:$4 sm:$0xff]  }
 0x419   : > { %v6750_v26 = vsel %vm3714_vm1, %v6741_v3, %v6749_v27  ;;  %v20259_v3 = vld [vmem:[%s29078_s3 + $0x1c4] ss:$16 sps:$4 sm:$0xff]   ;;  %vm14316_vm9 = vsmask.f32 5376 }
 0x41b   : > { %7807 = vmatmul.mubr.bf16.gmra.mrb[60].mxu0 %v6751_v35  ;;  %8033 = vmatmul.mubr.bf16.gmra.mrb[76].mxu1 %v6751_v35  ;;  %v20203_v35 = vld [vmem:[%s29078_s3 + $0xc4] ss:$16 sps:$4 sm:$0xff]  }
 0x41c   : > { %17007 = vmatprep.mubr.msk.bf16.mxu0 %vm7666_vm6, %v6710_v2  ;;  %17016 = vmatprep.mubr.msk.bf16.mxu1 %vm7666_vm6, %v6710_v2  ;;  %v6739_v2 = vrot.slane %v25021_v37, 1 }
 0x423   : > { %7850 = vmatmul.mubr.bf16.vlgmr.msra.gmra.mrb[32].mxu0 %v6707_v57  ;;  %8076 = vmatmul.mubr.bf16.vlgmr.msra.gmra.mrb[48].mxu1 %v6707_v57  ;;  %v20216_v57 = vld [vmem:[%s29078_s3 + $0x100] ss:$16 sps:$4 sm:$0xff]  }
 0x424   : > { %17008 = vmatprep.mubr.msk.bf16.mxu0 %vm7666_vm6, %v6718_v59  ;;  %17017 = vmatprep.mubr.msk.bf16.mxu1 %vm7666_vm6, %v6718_v59  ;;  %v20226_v59 = vld [vmem:[%s29078_s3 + $0x124] ss:$16 sps:$4 sm:$0xff]  }
 0x425   : > { %8867 = vmatpush1.bf16.msra.mxu0 %v20156_v45  ;;  %9093 = vmatpush1.bf16.msra.mxu1 %v20159_v22  ;;  %v25042_v45 = vld [vmem:[#allocation2 + $0xe8] sm:$0xff]  ;;  %v6444_v22 = vld [vmem:[#allocation2 + $0xf8] sm:$0x33] }
 0x426   : > { %8868 = vmatprep.subr.bf16.mxu0 %v20166_v58  ;;  %9094 = vmatprep.subr.bf16.mxu1 %v20169_v20  ;;  %v20219_v58 = vld [vmem:[%s29078_s3 + $0x108] ss:$16 sps:$4 sm:$0xff]   ;;  %v6740_v20 = vsel %vm3714_vm1, %v6731_v15, %v6739_v2  ;;  %v20256_v15 = vld [vmem:[%s29078_s3 + $0x1ac] ss:$16 sps:$4 sm:$0xff]  }
 0x429   : > { %8869 = vmatpush1.bf16.msra.mxu0 %v20164_v46  ;;  %9095 = vmatpush1.bf16.msra.mxu1 %v20167_v55  ;;  %v20229_v46 = vld [vmem:[%s29078_s3 + $0x12c] ss:$16 sps:$4 sm:$0xff]   ;;  %v25057_v55 = vld [vmem:[#allocation2 + $0xc8] ss:$16 sps:$4 sm:$0xff]  }
 0x42a   : > { %8870 = vmatprep.subr.bf16.mxu0 %v20173_v60  ;;  %9096 = vmatprep.subr.bf16.mxu1 %v20176_v39  ;;  %v16877_v60 = vcombine.high %v25042_v45, %v6444_v22  ;;  %v20224_v39 = vld [vmem:[%s29078_s3 + $0x120] ss:$16 sps:$4 sm:$0xff]  }
 0x42b   : > { %7860 = vmatmul.mubr.bf16.gmra.mrb[36].mxu0 %v6716_v43  ;;  %8086 = vmatmul.mubr.bf16.gmra.mrb[52].mxu1 %v6716_v43  ;;  %v20236_v43 = vld [vmem:[%s29078_s3 + $0x14c] ss:$16 sps:$4 sm:$0xff]  }
 0x42c   : > { %17009 = vmatprep.mubr.msk.bf16.mxu0 %vm7666_vm6, %v6726_v7  ;;  %17018 = vmatprep.mubr.msk.bf16.mxu1 %vm7666_vm6, %v6726_v7  ;;  %v20234_v7 = vld [vmem:[%s29078_s3 + $0x148] ss:$16 sps:$4 sm:$0xff]  }
 0x42d   : > { %8871 = vmatpush1.bf16.msra.mxu0 %v20171_v9  ;;  %9097 = vmatpush1.bf16.msra.mxu1 %v20174_v11  ;;  %v6747_v9 = vrot.slane %v25057_v55, 1  ;;  %v20233_v11 = vld [vmem:[%s29078_s3 + $0x144] ss:$16 sps:$4 sm:$0xff]  }
 0x42e   : > { %8872 = vmatprep.subr.bf16.mxu0 %v20181_v33  ;;  %9098 = vmatprep.subr.bf16.mxu1 %v20184_v12  ;;  %v6757_v33 = vrot.slane %v16877_v60, 1  ;;  %v20231_v12 = vld [vmem:[%s29078_s3 + $0x140] ss:$16 sps:$4 sm:$0xff]   ;;  %v20278_v60 = vld [vmem:[%s29078_s3 + $0x228] ss:$16 sps:$4 sm:$0xff]  }
 0x431   : > { %8873 = vmatpush1.bf16.msra.mxu0 %v20179_v40  ;;  %9099 = vmatpush1.bf16.msra.mxu1 %v20182_v24  ;;  %v6748_v40 = vsel %vm3714_vm1, %v6739_v2, %v6747_v9  ;;  %v20240_v24 = vld [vmem:[%s29078_s3 + $0x164] ss:$16 sps:$4 sm:$0xff]   ;;  %v20263_v2 = vld [vmem:[%s29078_s3 + $0x1e0] ss:$16 sps:$4 sm:$0xff]  }
 0x432   : > { %8874 = vmatprep.subr.bf16.mxu0 %v20188_v61  ;;  %9100 = vmatprep.subr.bf16.mxu1 %v20191_v14  ;;  %v16876_v61 = vcombine.low %v25042_v45, %v6444_v22  ;;  %v6758_v14 = vsel %vm3714_vm1, %v6749_v27, %v6757_v33  ;;  %v20274_v27 = vld [vmem:[%s29078_s3 + $0x20c] ss:$16 sps:$4 sm:$0xff]   ;;  %v20269_v22 = vld [vmem:[%s29078_s3 + $0x200] ss:$16 sps:$4 sm:$0xff]  }
 0x433   : > { %7870 = vmatmul.mubr.bf16.gmra.mrb[40].mxu0 %v6724_v25  ;;  %8096 = vmatmul.mubr.bf16.gmra.mrb[56].mxu1 %v6724_v25  ;;  %v20247_v25 = vld [vmem:[%s29078_s3 + $0x184] ss:$16 sps:$4 sm:$0xff]  }
 0x434   : > { %17010 = vmatprep.mubr.msk.bf16.mxu0 %vm7666_vm6, %v6734_v31  ;;  %17019 = vmatprep.mubr.msk.bf16.mxu1 %vm7666_vm6, %v6734_v31  ;;  %v20248_v31 = vld [vmem:[%s29078_s3 + $0x188] ss:$16 sps:$4 sm:$0xff]  }
 0x435   : > { %8875 = vmatpush1.bf16.msra.mxu0 %v20186_v8  ;;  %9101 = vmatpush1.bf16.msra.mxu1 %v20189_v56  ;;  %v20241_v8 = vld [vmem:[%s29078_s3 + $0x168] ss:$16 sps:$4 sm:$0xff]   ;;  %v6755_v56 = vrot.slane %v16876_v61, 1  ;;  %v20298_v61 = vld [vmem:[%s29078_s3 + $0x28c] ss:$16 sps:$4 sm:$0xff]  }
 0x436   : > { %8876 = vmatprep.subr.bf16.mxu0 %v20196_v50  ;;  %9102 = vmatprep.subr.bf16.mxu1 %v20199_v10  ;;  %v20250_v50 = vld [vmem:[%s29078_s3 + $0x18c] ss:$16 sps:$4 sm:$0xff]   ;;  %v20245_v10 = vld [vmem:[%s29078_s3 + $0x180] ss:$16 sps:$4 sm:$0xff]  }
 0x439   : > { %8877 = vmatpush1.bf16.msra.mxu0 %v20194_v51  ;;  %9103 = vmatpush1.bf16.msra.mxu1 %v20197_v5  ;;  %v6756_v51 = vsel %vm3714_vm1, %v6747_v9, %v6755_v56  ;;  %v20253_v5 = vld [vmem:[%s29078_s3 + $0x1a4] ss:$16 sps:$4 sm:$0xff]   ;;  %v20281_v9 = vld [vmem:[%s29078_s3 + $0x240] ss:$16 sps:$4 sm:$0xff]   ;;  %vm11373_vm1 = vcmask 982016  }
 0x43a   : > { %8878 = vmatprep.subr.bf16.mxu0 %v20203_v35  ;;  %9104 = vmatprep.subr.bf16.mxu1 %v20206_v13  ;;  %v20251_v35 = vld [vmem:[%s29078_s3 + $0x1a0] ss:$16 sps:$4 sm:$0xff]   ;;  %v20254_v13 = vld [vmem:[%s29078_s3 + $0x1a8] ss:$16 sps:$4 sm:$0xff]  }
 0x43b   : > { %7880 = vmatmul.mubr.bf16.gmra.mrb[44].mxu0 %v6732_v47  ;;  %8106 = vmatmul.mubr.bf16.gmra.mrb[60].mxu1 %v6732_v47  ;;  %v20257_v47 = vld [vmem:[%s29078_s3 + $0x1c0] ss:$16 sps:$4 sm:$0xff]  }
 0x43c   : > { %17011 = vmatprep.mubr.msk.bf16.mxu0 %vm7666_vm6, %v6742_v28  ;;  %17020 = vmatprep.mubr.msk.bf16.mxu1 %vm7666_vm6, %v6742_v28 }
 0x43d   : > { %8879 = vmatpush1.bf16.msra.mxu0 %v20201_v32  ;;  %9105 = vmatpush1.bf16.msra.mxu1 %v20204_v53  ;;  %v20262_v32 = vld [vmem:[%s29078_s3 + $0x1cc] ss:$16 sps:$4 sm:$0xff]   ;;  %v6283_v53 = vld [vmem:[#allocation2] sm:$0xff] }
 0x43e   : > { %8880 = vmatprep.subr.bf16.mxu0 %v20211_v36  ;;  %9106 = vmatprep.subr.bf16.mxu1 %v20214_v6  ;;  %v20260_v36 = vld [vmem:[%s29078_s3 + $0x1c8] ss:$16 sps:$4 sm:$0xff]   ;;  %v25138_v6 = vld [vmem:[#allocation2 + $0x10] sm:$0xff] }
 0x43f   : > { %v17025_v28 = vcombine.high %v6283_v53, %v25138_v6 }
 0x441   : > { %8881 = vmatpush1.bf16.msra.mxu0 %v20209_v30  ;;  %9107 = vmatpush1.bf16.msra.mxu1 %v20212_v49  ;;  %v20265_v30 = vld [vmem:[%s29078_s3 + $0x1e4] ss:$16 sps:$4 sm:$0xff]   ;;  %v20268_v49 = vld [vmem:[%s29078_s3 + $0x1ec] ss:$16 sps:$4 sm:$0xff]  }
 0x442   : > { %8882 = vmatprep.subr.bf16.mxu0 %v20218_v21  ;;  %9108 = vmatprep.subr.bf16.mxu1 %v20221_v52  ;;  %v20266_v21 = vld [vmem:[%s29078_s3 + $0x1e8] ss:$16 sps:$4 sm:$0xff]   ;;  %v20271_v52 = vld [vmem:[%s29078_s3 + $0x204] ss:$16 sps:$4 sm:$0xff]  }
 0x443   : > { %7890 = vmatmul.mubr.bf16.gmra.mrb[48].mxu0 %v6740_v20  ;;  %8116 = vmatmul.mubr.bf16.gmra.mrb[64].mxu1 %v6740_v20  ;;  %v20277_v20 = vld [vmem:[%s29078_s3 + $0x224] ss:$16 sps:$4 sm:$0xff]  }
 0x444   : > { %17012 = vmatprep.mubr.msk.bf16.mxu0 %vm7666_vm6, %v6750_v26  ;;  %17021 = vmatprep.mubr.msk.bf16.mxu1 %vm7666_vm6, %v6750_v26  ;;  %v20275_v26 = vld [vmem:[%s29078_s3 + $0x220] ss:$16 sps:$4 sm:$0xff]  }
 0x445   : > { %8883 = vmatpush1.bf16.msra.mxu0 %v20216_v57  ;;  %9109 = vmatpush1.bf16.msra.mxu1 %v20219_v58  ;;  %v17024_v57 = vcombine.low %v6283_v53, %v25138_v6  ;;  %v20272_v58 = vld [vmem:[%s29078_s3 + $0x208] ss:$16 sps:$4 sm:$0xff]  }
 0x446   : > { %8884 = vmatprep.subr.bf16.mxu0 %v20226_v59  ;;  %9110 = vmatprep.subr.bf16.mxu1 %v20229_v46  ;;  %v20280_v59 = vld [vmem:[%s29078_s3 + $0x22c] ss:$16 sps:$4 sm:$0xff]  }
 0x447   : > { %v29627_v46 = vld [vmem:[#allocation77_spill] sm:$0xff] }
 0x448   : > { %v29633_v53 = vld [vmem:[#allocation21_spill] sm:$0xff] }
 0x449   : > { %8885 = vmatpush1.bf16.msra.mxu0 %v20224_v39  ;;  %9111 = vmatpush1.bf16.msra.mxu1 %v20227_v29  ;;  %v20283_v39 = vld [vmem:[%s29078_s3 + $0x244] ss:$16 sps:$4 sm:$0xff]   ;;  %v20286_v29 = vld [vmem:[%s29078_s3 + $0x24c] ss:$16 sps:$4 sm:$0xff]  }
 0x44a   : > { %8886 = vmatprep.subr.bf16.mxu0 %v20233_v11  ;;  %9112 = vmatprep.subr.bf16.mxu1 %v20236_v43  ;;  %v20284_v11 = vld [vmem:[%s29078_s3 + $0x248] ss:$16 sps:$4 sm:$0xff]   ;;  %v20289_v43 = vld [vmem:[%s29078_s3 + $0x264] ss:$16 sps:$4 sm:$0xff]  }
 0x44b   : > { %7900 = vmatmul.mubr.bf16.gmra.mrb[52].mxu0 %v6748_v40  ;;  %8126 = vmatmul.mubr.bf16.gmra.mrb[68].mxu1 %v6748_v40  ;;  %v20287_v40 = vld [vmem:[%s29078_s3 + $0x260] ss:$16 sps:$4 sm:$0xff]  }
 0x44c   : > { %17013 = vmatprep.mubr.msk.bf16.mxu0 %vm7666_vm6, %v6758_v14  ;;  %17022 = vmatprep.mubr.msk.bf16.mxu1 %vm7666_vm6, %v6758_v14  ;;  %v20293_v14 = vld [vmem:[%s29078_s3 + $0x280] ss:$16 sps:$4 sm:$0xff]  }
 0x44d   : > { %8887 = vmatpush1.bf16.msra.mxu0 %v20231_v12  ;;  %9113 = vmatpush1.bf16.msra.mxu1 %v20234_v7  ;;  %v29628_v12 = vld [vmem:[#allocation16_spill] sm:$0xff]  ;;  %v29629_v7 = vld [vmem:[#allocation17_spill] sm:$0xff] }
 0x44e   : > { %8888 = vmatprep.subr.bf16.mxu0 %v20240_v24  ;;  %9114 = vmatprep.subr.bf16.mxu1 %v20243_v1  ;;  %v20290_v24 = vld [vmem:[%s29078_s3 + $0x268] ss:$16 sps:$4 sm:$0xff]   ;;  %v20295_v1 = vld [vmem:[%s29078_s3 + $0x284] ss:$16 sps:$4 sm:$0xff]  }
 0x451   : > { %8889 = vmatpush1.bf16.msra.mxu0 %v20238_v16  ;;  %9115 = vmatpush1.bf16.msra.mxu1 %v20241_v8  ;;  %v20296_v16 = vld [vmem:[%s29078_s3 + $0x288] ss:$16 sps:$4 sm:$0xff]   ;;  %v20301_v8 = vld [vmem:[%s29078_s3 + $0x2a4] ss:$16 sps:$4 sm:$0xff]  }
 0x452   : > { %8890 = vmatprep.subr.bf16.mxu0 %v20247_v25  ;;  %9116 = vmatprep.subr.bf16.mxu1 %v20250_v50  ;;  %v29630_v25 = vld [vmem:[#allocation18_spill] sm:$0xff]  ;;  %v29631_v50 = vld [vmem:[#allocation19_spill] sm:$0xff] }
 0x453   : > { %7910 = vmatmul.mubr.bf16.gmra.mrb[56].mxu0 %v6756_v51  ;;  %8136 = vmatmul.mubr.bf16.gmra.mrb[72].mxu1 %v6756_v51  ;;  %v20307_v51 = vld [vmem:[%s29078_s3 + $0x2c4] ss:$16 sps:$4 sm:$0xff]  }
 0x454   : > { %17014 = vmatprep.mubr.msk.bf16.mxu0 %vm7666_vm6, %v6757_v33  ;;  %17023 = vmatprep.mubr.msk.bf16.mxu1 %vm7666_vm6, %v6757_v33  ;;  %v20292_v33 = vld [vmem:[%s29078_s3 + $0x26c] ss:$16 sps:$4 sm:$0xff]  }
 0x455   : > { %8891 = vmatpush1.bf16.msra.mxu0 %v20245_v10  ;;  %9117 = vmatpush1.bf16.msra.mxu1 %v20248_v31  ;;  %v20299_v10 = vld [vmem:[%s29078_s3 + $0x2a0] ss:$16 sps:$4 sm:$0xff]   ;;  %v20302_v31 = vld [vmem:[%s29078_s3 + $0x2a8] ss:$16 sps:$4 sm:$0xff]  }
 0x456   : > { %8892 = vmatprep.subr.bf16.mxu0 %v20253_v5  ;;  %9118 = vmatprep.subr.bf16.mxu1 %v20256_v15  ;;  %v20310_v5 = vld [vmem:[%s29078_s3 + $0x2cc] ss:$16 sps:$4 sm:$0xff]   ;;  %v20305_v15 = vld [vmem:[%s29078_s3 + $0x2c0] ss:$16 sps:$4 sm:$0xff]  }
 0x459   : > { %8893 = vmatpush1.bf16.msra.mxu0 %v20251_v35  ;;  %9119 = vmatpush1.bf16.msra.mxu1 %v20254_v13  ;;  %v20308_v35 = vld [vmem:[%s29078_s3 + $0x2c8] ss:$16 sps:$4 sm:$0xff]   ;;  %v20313_v13 = vld [vmem:[%s29078_s3 + $0x2e4] ss:$16 sps:$4 sm:$0xff]  }
 0x45a   : > { %8894 = vmatprep.subr.bf16.mxu0 %v20259_v3  ;;  %9120 = vmatprep.subr.bf16.mxu1 %v20262_v32  ;;  %v20316_v3 = vld [vmem:[%s29078_s3 + $0x2ec] ss:$16 sps:$4 sm:$0xff]   ;;  %v29632_v32 = vld [vmem:[#allocation20_spill] sm:$0xff] }
 0x45b   : > { %7920 = vmatmul.mubr.bf16.gmra.mrb[60].mxu0 %v6755_v56  ;;  %8146 = vmatmul.mubr.bf16.gmra.mrb[76].mxu1 %v6755_v56  ;;  %v20304_v56 = vld [vmem:[%s29078_s3 + $0x2ac] ss:$16 sps:$4 sm:$0xff]  }
 0x45c   : > { %8898 = vmatprep.mubr.bf16.mxu0 %v17025_v28  ;;  %9124 = vmatprep.mubr.bf16.mxu1 %v17025_v28  ;;  %v20319_v28 = vld [vmem:[%s29078_s3 + $0x304] ss:$16 sps:$4 sm:$0xff]  }
 0x45d   : > { %8895 = vmatpush1.bf16.msra.mxu0 %v20257_v47  ;;  %9121 = vmatpush1.bf16.msra.mxu1 %v20260_v36  ;;  %v20311_v47 = vld [vmem:[%s29078_s3 + $0x2e0] ss:$16 sps:$4 sm:$0xff]   ;;  %v20314_v36 = vld [vmem:[%s29078_s3 + $0x2e8] ss:$16 sps:$4 sm:$0xff]  }
 0x45e   : > { %8896 = vmatprep.subr.bf16.mxu0 %v20265_v30  ;;  %9122 = vmatprep.subr.bf16.mxu1 %v20268_v49  ;;  %v20322_v30 = vld [vmem:[%s29078_s3 + $0x30c] ss:$16 sps:$4 sm:$0xff]   ;;  %v20317_v49 = vld [vmem:[%s29078_s3 + $0x300] ss:$16 sps:$4 sm:$0xff]  }
 0x461   : > { %8897 = vmatpush1.bf16.msra.mxu0 %v20263_v2  ;;  %9123 = vmatpush1.bf16.msra.mxu1 %v20266_v21  ;;  %v20320_v2 = vld [vmem:[%s29078_s3 + $0x308] ss:$16 sps:$4 sm:$0xff]   ;;  %v20325_v21 = vld [vmem:[%s29078_s3 + $0x324] ss:$16 sps:$4 sm:$0xff]  }
 0x462   : > { %8979 = vmatprep.subr.bf16.mxu0 %v20271_v52  ;;  %9205 = vmatprep.subr.bf16.mxu1 %v20274_v27  ;;  %v20328_v52 = vld [vmem:[%s29078_s3 + $0x32c] ss:$16 sps:$4 sm:$0xff]   ;;  %v29634_v27 = vld [vmem:[#allocation22_spill] sm:$0xff] }
 0x464   : > { %8899 = vmatmul.mubr.bf16.vlgmr.msra.gmra.mrb[32].mxu0 %v17024_v57  ;;  %9125 = vmatmul.mubr.bf16.vlgmr.msra.gmra.mrb[48].mxu1 %v17024_v57  ;;  %v20326_v57 = vld [vmem:[%s29078_s3 + $0x328] ss:$16 sps:$4 sm:$0xff]  }
 0x465   : > { %8908 = vmatprep.mubr.bf16.mxu0 %v29627_v46  ;;  %8980 = vmatpush1.bf16.msra.mxu0 %v20269_v22  ;;  %v20323_v22 = vld [vmem:[%s29078_s3 + $0x320] ss:$16 sps:$4 sm:$0xff]  }
 0x466   : > { %9134 = vmatprep.mubr.bf16.mxu1 %v29627_v46  ;;  %9206 = vmatpush1.bf16.msra.mxu1 %v20272_v58  ;;  %v20331_v58 = vld [vmem:[%s29078_s3 + $0x344] ss:$16 sps:$4 sm:$0xff]  }
 0x467   : > { %8981 = vmatprep.subr.bf16.mxu0 %v20277_v20  ;;  %9207 = vmatprep.subr.bf16.mxu1 %v20280_v59  ;;  %v20334_v20 = vld [vmem:[%s29078_s3 + $0x34c] ss:$16 sps:$4 sm:$0xff]   ;;  %v20329_v59 = vld [vmem:[%s29078_s3 + $0x340] ss:$16 sps:$4 sm:$0xff]  }
 0x469   : > { %8982 = vmatpush1.bf16.msra.mxu0 %v20275_v26  ;;  %v20332_v26 = vld [vmem:[%s29078_s3 + $0x348] ss:$16 sps:$4 sm:$0xff]  }
 0x46a   : > { %9208 = vmatpush1.bf16.msra.mxu1 %v20278_v60  ;;  %8983 = vmatprep.subr.bf16.mxu0 %v20283_v39  ;;  %v20337_v60 = vld [vmem:[%s29078_s3 + $0x364] ss:$16 sps:$4 sm:$0xff]   ;;  %v20340_v39 = vld [vmem:[%s29078_s3 + $0x36c] ss:$16 sps:$4 sm:$0xff]  }
 0x46b   : > { %9209 = vmatprep.subr.bf16.mxu1 %v20286_v29  ;;  %v20335_v29 = vld [vmem:[%s29078_s3 + $0x360] ss:$16 sps:$4 sm:$0xff]  }
 0x46c   : > { %8909 = vmatmul.mubr.bf16.gmra.mrb[36].mxu0 %v29628_v12  ;;  %9135 = vmatmul.mubr.bf16.gmra.mrb[52].mxu1 %v29628_v12 }
 0x46d   : > { %8918 = vmatprep.mubr.bf16.mxu0 %v29629_v7  ;;  %8984 = vmatpush1.bf16.msra.mxu0 %v20281_v9  ;;  %v20338_v9 = vld [vmem:[%s29078_s3 + $0x368] ss:$16 sps:$4 sm:$0xff]  }
 0x46e   : > { %9144 = vmatprep.mubr.bf16.mxu1 %v29629_v7  ;;  %9210 = vmatpush1.bf16.msra.mxu1 %v20284_v11  ;;  %v20343_v11 = vld [vmem:[%s29078_s3 + $0x384] ss:$16 sps:$4 sm:$0xff]  }
 0x46f   : > { %8985 = vmatprep.subr.bf16.mxu0 %v20289_v43  ;;  %9211 = vmatprep.subr.bf16.mxu1 %v20292_v33  ;;  %v20346_v43 = vld [vmem:[%s29078_s3 + $0x38c] ss:$16 sps:$4 sm:$0xff]   ;;  %v6313_v33 = vld [vmem:[#allocation2 + $0xf0] sm:$0x11] }
 0x471   : > { %8986 = vmatpush1.bf16.msra.mxu0 %v20287_v40  ;;  %v20341_v40 = vld [vmem:[%s29078_s3 + $0x380] ss:$16 sps:$4 sm:$0xff]  }
 0x472   : > { %9212 = vmatpush1.bf16.msra.mxu1 %v20290_v24  ;;  %8987 = vmatprep.subr.bf16.mxu0 %v20295_v1  ;;  %v20344_v24 = vld [vmem:[%s29078_s3 + $0x388] ss:$16 sps:$4 sm:$0xff]   ;;  %v25332_v1 = vld [vmem:[#allocation2 + $0xe0] sm:$0xff] }
 0x473   : > { %9213 = vmatprep.subr.bf16.mxu1 %v20298_v61  ;;  %v17029_v61 = vcombine.high %v25332_v1, %v6313_v33 }
 0x474   : > { %8919 = vmatmul.mubr.bf16.gmra.mrb[40].mxu0 %v29630_v25  ;;  %9145 = vmatmul.mubr.bf16.gmra.mrb[56].mxu1 %v29630_v25 }
 0x475   : > { %8928 = vmatprep.mubr.bf16.mxu0 %v29631_v50  ;;  %8988 = vmatpush1.bf16.msra.mxu0 %v20293_v14  ;;  %v20349_v14 = vld [vmem:[%s29078_s3 + $0x3a4] ss:$16 sps:$4 sm:$0xff]  }
 0x476   : > { %9154 = vmatprep.mubr.bf16.mxu1 %v29631_v50  ;;  %9214 = vmatpush1.bf16.msra.mxu1 %v20296_v16  ;;  %v20352_v16 = vld [vmem:[%s29078_s3 + $0x3ac] ss:$16 sps:$4 sm:$0xff]  }
 0x477   : > { %8989 = vmatprep.subr.bf16.mxu0 %v20301_v8  ;;  %9215 = vmatprep.subr.bf16.mxu1 %v20304_v56  ;;  %v20347_v8 = vld [vmem:[%s29078_s3 + $0x3a0] ss:$16 sps:$4 sm:$0xff]   ;;  %v20350_v56 = vld [vmem:[%s29078_s3 + $0x3a8] ss:$16 sps:$4 sm:$0xff]  }
 0x479   : > { %8990 = vmatpush1.bf16.msra.mxu0 %v20299_v10  ;;  %v20355_v10 = vld [vmem:[%s29078_s3 + $0x3c4] ss:$16 sps:$4 sm:$0xff]  }
 0x47a   : > { %9216 = vmatpush1.bf16.msra.mxu1 %v20302_v31  ;;  %8991 = vmatprep.subr.bf16.mxu0 %v20307_v51  ;;  %v20358_v31 = vld [vmem:[%s29078_s3 + $0x3cc] ss:$16 sps:$4 sm:$0xff]   ;;  %v6439_v51 = vld [vmem:[%s29078_s3 + $0x3e0] sm:$0x33] }
 0x47b   : > { %9217 = vmatprep.subr.bf16.mxu1 %v20310_v5  ;;  %v6284_v5 = vld [vmem:[#allocation2 + $0x8] sm:$0xff] }
 0x47c   : > { %8929 = vmatmul.mubr.bf16.gmra.mrb[44].mxu0 %v29632_v32  ;;  %9155 = vmatmul.mubr.bf16.gmra.mrb[60].mxu1 %v29632_v32 }
 0x47d   : > { %8938 = vmatprep.mubr.bf16.mxu0 %v29633_v53  ;;  %8992 = vmatpush1.bf16.msra.mxu0 %v20305_v15  ;;  %v6440_v15 = vld [vmem:[%s29078_s3 + $0x3e8] sm:$0x33] }
 0x47e   : > { %9164 = vmatprep.mubr.bf16.mxu1 %v29633_v53  ;;  %9218 = vmatpush1.bf16.msra.mxu1 %v20308_v35  ;;  %v20353_v35 = vld [vmem:[%s29078_s3 + $0x3c0] ss:$16 sps:$4 sm:$0xff]  }
 0x47f   : > { %8993 = vmatprep.subr.bf16.mxu0 %v20313_v13  ;;  %9219 = vmatprep.subr.bf16.mxu1 %v20316_v3  ;;  %v17028_v13 = vcombine.low %v25332_v1, %v6313_v33  ;;  %v20356_v3 = vld [vmem:[%s29078_s3 + $0x3c8] ss:$16 sps:$4 sm:$0xff]   ;;  %v20383_v33 = vld [vmem:[%s29078_s3 + $0x830] ss:$16 sps:$4 sm:$0xff]  }
 0x481   : > { %8994 = vmatpush1.bf16.msra.mxu0 %v20311_v47  ;;  %v17156_v47 = vcombine.low %v6439_v51, %v6439_v51 }
 0x482   : > { %9220 = vmatpush1.bf16.msra.mxu1 %v20314_v36  ;;  %8995 = vmatprep.subr.bf16.mxu0 %v20319_v28  ;;  %v17027_v36 = vcombine.high %v6284_v5, %v24890_v62  ;;  %v17157_v28 = vcombine.high %v6439_v51, %v6439_v51  ;;  %v20409_v51 = vld [vmem:[%s29078_s3 + $0x8b4] ss:$16 sps:$4 sm:$0xff]  }
 0x483   : > { %9221 = vmatprep.subr.bf16.mxu1 %v20322_v30  ;;  %v17159_v30 = vcombine.high %v6440_v15, %v6440_v15 }
 0x484   : > { %8939 = vmatmul.mubr.bf16.gmra.mrb[48].mxu0 %v29634_v27  ;;  %9165 = vmatmul.mubr.bf16.gmra.mrb[64].mxu1 %v29634_v27 }
 0x485   : > { %8948 = vmatprep.mubr.bf16.mxu0 %v24593_v18  ;;  %8996 = vmatpush1.bf16.msra.mxu0 %v20317_v49  ;;  %v17158_v49 = vcombine.low %v6440_v15, %v6440_v15  ;;  %v20407_v15 = vld [vmem:[%s29078_s3 + $0x8b0] ss:$16 sps:$4 sm:$0xff]  }
 0x486   : > { %9174 = vmatprep.mubr.bf16.mxu1 %v24593_v18  ;;  %9222 = vmatpush1.bf16.msra.mxu1 %v20320_v2  ;;  %v8855_v2 = vsel %vm7691_vm5, %v17156_v47, 0  ;;  %v20421_v47 = vld [vmem:[%s29078_s3 + $0x8f4] ss:$16 sps:$4 sm:$0xff]  }
 0x487   : > { %8997 = vmatprep.subr.bf16.mxu0 %v20325_v21  ;;  %9223 = vmatprep.subr.bf16.mxu1 %v20328_v52  ;;  %v20367_v21 = vld [vmem:[%s29078_s3 + $0x7d4] ss:$16 sps:$4 sm:$0xff]   ;;  %v8861_v52 = vsel %vm7691_vm5, %v17158_v49, 0  ;;  %v20425_v49 = vld [vmem:[%s29078_s3 + $0x910] ss:$16 sps:$4 sm:$0xff]  }
 0x489   : > { %8998 = vmatpush1.bf16.msra.mxu0 %v20323_v22  ;;  %v20370_v22 = vld [vmem:[%s29078_s3 + $0x7dc] ss:$16 sps:$4 sm:$0xff]  }
 0x48a   : > { %9224 = vmatpush1.bf16.msra.mxu1 %v20326_v57  ;;  %8999 = vmatprep.subr.bf16.mxu0 %v20331_v58  ;;  %v17026_v57 = vcombine.low %v6284_v5, %v24890_v62  ;;  %v20365_v58 = vld [vmem:[%s29078_s3 + $0x7d0] ss:$16 sps:$4 sm:$0xff]   ;;  %v20376_v62 = vld [vmem:[%s29078_s3 + $0x7fc] ss:$16 sps:$4 sm:$0xff]  }
 0x48b   : > { %9225 = vmatprep.subr.bf16.mxu1 %v20334_v20  ;;  %v20368_v20 = vld [vmem:[%s29078_s3 + $0x7d8] ss:$16 sps:$4 sm:$0xff]   ;;  %v20412_v5 = vld [vmem:[%s29078_s3 + $0x8bc] ss:$16 sps:$4 sm:$0xff]  }
 0x48c   : > { %8949 = vmatmul.mubr.bf16.gmra.mrb[52].mxu0 %v24595_v4  ;;  %9175 = vmatmul.mubr.bf16.gmra.mrb[68].mxu1 %v24595_v4 }
 0x48d   : > { %8958 = vmatprep.mubr.bf16.mxu0 %v24675_v41  ;;  %9000 = vmatpush1.bf16.msra.mxu0 %v20329_v59  ;;  %v20373_v59 = vld [vmem:[%s29078_s3 + $0x7f4] ss:$16 sps:$4 sm:$0xff]  }
 0x48e   : > { %9184 = vmatprep.mubr.bf16.mxu1 %v24675_v41  ;;  %9226 = vmatpush1.bf16.msra.mxu1 %v20332_v26  ;;  %v20371_v26 = vld [vmem:[%s29078_s3 + $0x7f0] ss:$16 sps:$4 sm:$0xff]  }
 0x48f   : > { %9001 = vmatprep.subr.bf16.mxu0 %v20337_v60  ;;  %9227 = vmatprep.subr.bf16.mxu1 %v20340_v39  ;;  %v20374_v60 = vld [vmem:[%s29078_s3 + $0x7f8] ss:$16 sps:$4 sm:$0xff]   ;;  %v20379_v39 = vld [vmem:[%s29078_s3 + $0x814] ss:$16 sps:$4 sm:$0xff]  }
 0x491   : > { %9002 = vmatpush1.bf16.msra.mxu0 %v20335_v29  ;;  %v20377_v29 = vld [vmem:[%s29078_s3 + $0x810] ss:$16 sps:$4 sm:$0xff]  }
 0x492   : > { %9228 = vmatpush1.bf16.msra.mxu1 %v20338_v9  ;;  %9003 = vmatprep.subr.bf16.mxu0 %v20343_v11  ;;  %v20380_v9 = vld [vmem:[%s29078_s3 + $0x818] ss:$16 sps:$4 sm:$0xff]   ;;  %v20385_v11 = vld [vmem:[%s29078_s3 + $0x834] ss:$16 sps:$4 sm:$0xff]  }
 0x493   : > { %9229 = vmatprep.subr.bf16.mxu1 %v20346_v43  ;;  %v20388_v43 = vld [vmem:[%s29078_s3 + $0x83c] ss:$16 sps:$4 sm:$0xff]  }
 0x494   : > { %8959 = vmatmul.mubr.bf16.gmra.mrb[56].mxu0 %v24841_v44  ;;  %9185 = vmatmul.mubr.bf16.gmra.mrb[72].mxu1 %v24841_v44 }
 0x495   : > { %8968 = vmatprep.mubr.bf16.mxu0 %v17029_v61  ;;  %9004 = vmatpush1.bf16.msra.mxu0 %v20341_v40  ;;  %v20386_v40 = vld [vmem:[%s29078_s3 + $0x838] ss:$16 sps:$4 sm:$0xff]  }
 0x496   : > { %9194 = vmatprep.mubr.bf16.mxu1 %v17029_v61  ;;  %9230 = vmatpush1.bf16.msra.mxu1 %v20344_v24  ;;  %v20389_v24 = vld [vmem:[%s29078_s3 + $0x850] ss:$16 sps:$4 sm:$0xff]   ;;  %v20392_v61 = vld [vmem:[%s29078_s3 + $0x858] ss:$16 sps:$4 sm:$0xff]  }
 0x497   : > { %9005 = vmatprep.subr.bf16.mxu0 %v20349_v14  ;;  %9231 = vmatprep.subr.bf16.mxu1 %v20352_v16  ;;  %v20397_v14 = vld [vmem:[%s29078_s3 + $0x874] ss:$16 sps:$4 sm:$0xff]   ;;  %v20400_v16 = vld [vmem:[%s29078_s3 + $0x87c] ss:$16 sps:$4 sm:$0xff]  }
 0x499   : > { %9006 = vmatpush1.bf16.msra.mxu0 %v20347_v8  ;;  %v20395_v8 = vld [vmem:[%s29078_s3 + $0x870] ss:$16 sps:$4 sm:$0xff]  }
 0x49a   : > { %9232 = vmatpush1.bf16.msra.mxu1 %v20350_v56  ;;  %9007 = vmatprep.subr.bf16.mxu0 %v20355_v10  ;;  %v20398_v56 = vld [vmem:[%s29078_s3 + $0x878] ss:$16 sps:$4 sm:$0xff]   ;;  %v20401_v10 = vld [vmem:[%s29078_s3 + $0x890] ss:$16 sps:$4 sm:$0xff]  }
 0x49b   : > { %9233 = vmatprep.subr.bf16.mxu1 %v20358_v31  ;;  %v20404_v31 = vld [vmem:[%s29078_s3 + $0x898] ss:$16 sps:$4 sm:$0xff]  }
 0x49c   : > { %8969 = vmatmul.mubr.bf16.gmra.mrb[60].mxu0 %v17028_v13  ;;  %9195 = vmatmul.mubr.bf16.gmra.mrb[76].mxu1 %v17028_v13  ;;  %v20413_v13 = vld [vmem:[%s29078_s3 + $0x8d0] ss:$16 sps:$4 sm:$0xff]  }
 0x49d   : > { %9008 = vmatpush1.bf16.msra.mxu0 %v20353_v35  ;;  %17161 = vmatprep.mubr.msk.bf16.mxu0 %vm7666_vm6, %v17027_v36  ;;  %v20410_v35 = vld [vmem:[%s29078_s3 + $0x8b8] ss:$16 sps:$4 sm:$0xff]  }
 0x49e   : > { %9234 = vmatpush1.bf16.msra.mxu1 %v20356_v3  ;;  %17170 = vmatprep.mubr.msk.bf16.mxu1 %vm7666_vm6, %v17027_v36  ;;  %v20416_v3 = vld [vmem:[%s29078_s3 + $0x8d8] ss:$16 sps:$4 sm:$0xff]   ;;  %v20424_v36 = vld [vmem:[%s29078_s3 + $0x8fc] ss:$16 sps:$4 sm:$0xff]  }
 0x49f   : > { %17160 = vmatprep.subr.msk.bf16.mxu0 %vm7691_vm5, %v17157_v28  ;;  %17169 = vmatprep.subr.msk.bf16.mxu1 %vm7691_vm5, %v17159_v30  ;;  %v20419_v28 = vld [vmem:[%s29078_s3 + $0x8f0] ss:$16 sps:$4 sm:$0xff]   ;;  %v20422_v30 = vld [vmem:[%s29078_s3 + $0x8f8] ss:$16 sps:$4 sm:$0xff]  }
 0x4a1   : > { %9010 = vmatpush1.bf16.msra.mxu0 %v8855_v2  ;;  %v20428_v2 = vld [vmem:[%s29078_s3 + $0x918] ss:$16 sps:$4 sm:$0xff]  }
 0x4a2   : > { %9236 = vmatpush1.bf16.msra.mxu1 %v8861_v52  ;;  %10218 = vmatprep.subr.bf16.mxu0 %v20367_v21  ;;  %v20433_v21 = vld [vmem:[%s29078_s3 + $0x934] ss:$16 sps:$4 sm:$0xff]   ;;  %v20436_v52 = vld [vmem:[%s29078_s3 + $0x93c] ss:$16 sps:$4 sm:$0xff]  }
 0x4a3   : > { %10444 = vmatprep.subr.bf16.mxu1 %v20370_v22  ;;  %v20431_v22 = vld [vmem:[%s29078_s3 + $0x930] ss:$16 sps:$4 sm:$0xff]  }
 0x4a4   : > { %9012 = vmatmul.mubr.bf16.vlgmr.msra.gmra.mrb[32].mxu0 %v17026_v57 }
 0x4a5   : > { %9238 = vmatmul.mubr.bf16.vlgmr.msra.gmra.mrb[48].mxu1 %v17026_v57  ;;  %17162 = vmatprep.mubr.msk.bf16.mxu0 %vm7666_vm6, %v24893_v42  ;;  %v20434_v57 = vld [vmem:[%s29078_s3 + $0x938] ss:$16 sps:$4 sm:$0xff]  }
 0x4a6   : > { %17171 = vmatprep.mubr.msk.bf16.mxu1 %vm7666_vm6, %v24893_v42  ;;  %10219 = vmatpush1.bf16.msra.mxu0 %v20365_v58  ;;  %v20382_v42 = vld [vmem:[%s29078_s3 + $0x81c] ss:$16 sps:$4 sm:$0xff]  }
 0x4a7   : > { %10445 = vmatpush1.bf16.msra.mxu1 %v20368_v20  ;;  %10220 = vmatprep.subr.bf16.mxu0 %v20373_v59  ;;  %v6314_v58 = vld [vmem:[#allocation2 + $0xf8] sm:$0x11]  ;;  %v20437_v20 = vld [vmem:[%s29078_s3 + $0x950] ss:$16 sps:$4 sm:$0xff]  }
 0x4a8   : > { %10446 = vmatprep.subr.bf16.mxu1 %v20376_v62  ;;  %v20440_v59 = vld [vmem:[%s29078_s3 + $0x958] ss:$16 sps:$4 sm:$0xff]   ;;  %v17031_v62 = vcombine.high %v25042_v45, %v6314_v58 }
 0x4aa   : > { %10221 = vmatpush1.bf16.msra.mxu0 %v20371_v26  ;;  %v20446_v26 = vld [vmem:[%s29078_s3 + $0x974] ss:$16 sps:$4 sm:$0xff]  }
 0x4ab   : > { %10447 = vmatpush1.bf16.msra.mxu1 %v20374_v60  ;;  %10222 = vmatprep.subr.bf16.mxu0 %v20379_v39  ;;  %v9318_v60 = vld [vmem:[#allocation2] sm:$0xcc]  ;;  %v20449_v39 = vld [vmem:[%s29078_s3 + $0x97c] ss:$16 sps:$4 sm:$0xff]  }
 0x4ac   : > { %9022 = vmatmul.mubr.bf16.gmra.mrb[36].mxu0 %v24897_v19  ;;  %10448 = vmatprep.subr.bf16.mxu1 %v20382_v42  ;;  %v20444_v42 = vld [vmem:[%s29078_s3 + $0x970] ss:$16 sps:$4 sm:$0xff]  }
 0x4ad   : > { %9248 = vmatmul.mubr.bf16.gmra.mrb[52].mxu1 %v24897_v19  ;;  %17163 = vmatprep.mubr.msk.bf16.mxu0 %vm7666_vm6, %v24900_v63  ;;  %v20391_v19 = vld [vmem:[%s29078_s3 + $0x854] ss:$16 sps:$4 sm:$0xff]  }
 0x4ae   : > { %17172 = vmatprep.mubr.msk.bf16.mxu1 %vm7666_vm6, %v24900_v63  ;;  %10223 = vmatpush1.bf16.msra.mxu0 %v20377_v29  ;;  %v20394_v63 = vld [vmem:[%s29078_s3 + $0x85c] ss:$16 sps:$4 sm:$0xff]   ;;  %v17179_v29 = vcombine.high %v9318_v60, %v25138_v6 }
 0x4af   : > { %10449 = vmatpush1.bf16.msra.mxu1 %v20380_v9  ;;  %10224 = vmatprep.subr.bf16.mxu0 %v20385_v11  ;;  %v20447_v9 = vld [vmem:[%s29078_s3 + $0x978] ss:$16 sps:$4 sm:$0xff]   ;;  %v20456_v11 = vld [vmem:[%s29078_s3 + $0x99c] ss:$16 sps:$4 sm:$0xff]  }
 0x4b0   : > { %10450 = vmatprep.subr.bf16.mxu1 %v20388_v43  ;;  %v9472_v43 = vrot.slane %v29627_v46, 2 }
 0x4b2   : > { %10225 = vmatpush1.bf16.msra.mxu0 %v20383_v33  ;;  %v17030_v33 = vcombine.low %v25042_v45, %v6314_v58  ;;  %v20462_v45 = vld [vmem:[%s29078_s3 + $0x9bc] ss:$16 sps:$4 sm:$0xff]   ;;  %v20493_v58 = vld [vmem:[%s29078_s3 + $0xa70] ss:$16 sps:$4 sm:$0xff]  }
 0x4b3   : > { %10451 = vmatpush1.bf16.msra.mxu1 %v20386_v40  ;;  %10226 = vmatprep.subr.bf16.mxu0 %v20391_v19  ;;  %v20451_v40 = vld [vmem:[%s29078_s3 + $0x990] ss:$16 sps:$4 sm:$0xff]   ;;  %v9471_v19 = vrot.slane %v17179_v29, 2  ;;  %v20507_v29 = vld [vmem:[%s29078_s3 + $0xab4] ss:$16 sps:$4 sm:$0xff]  }
 0x4b4   : > { %9032 = vmatmul.mubr.bf16.gmra.mrb[40].mxu0 %v24919_v38  ;;  %10452 = vmatprep.subr.bf16.mxu1 %v20394_v63  ;;  %v20454_v63 = vld [vmem:[%s29078_s3 + $0x998] ss:$16 sps:$4 sm:$0xff]  }
 0x4b5   : > { %9258 = vmatmul.mubr.bf16.gmra.mrb[56].mxu1 %v24919_v38  ;;  %17164 = vmatprep.mubr.msk.bf16.mxu0 %vm7666_vm6, %v24922_v0  ;;  %v20403_v38 = vld [vmem:[%s29078_s3 + $0x894] ss:$16 sps:$4 sm:$0xff]   ;;  %v9473_v46 = vsel %vm7289_vm2, %v9471_v19, %v9472_v43  ;;  %v9514_v19 = vrot.slane %v24675_v41, 2 }
 0x4b6   : > { %17173 = vmatprep.mubr.msk.bf16.mxu1 %vm7666_vm6, %v24922_v0  ;;  %10227 = vmatpush1.bf16.msra.mxu0 %v20389_v24  ;;  %v20406_v0 = vld [vmem:[%s29078_s3 + $0x89c] ss:$16 sps:$4 sm:$0xff]   ;;  %v20459_v24 = vld [vmem:[%s29078_s3 + $0x9b4] ss:$16 sps:$4 sm:$0xff]  }
 0x4b7   : > { %10453 = vmatpush1.bf16.msra.mxu1 %v20392_v61  ;;  %10228 = vmatprep.subr.bf16.mxu0 %v20397_v14  ;;  %v17178_v61 = vcombine.low %v9318_v60, %v25138_v6  ;;  %v20457_v14 = vld [vmem:[%s29078_s3 + $0x9b0] ss:$16 sps:$4 sm:$0xff]   ;;  %v20468_v6 = vld [vmem:[%s29078_s3 + $0x9dc] ss:$16 sps:$4 sm:$0xff]   ;;  %v9506_v60 = vrot.slane %v24593_v18, 2 }
 0x4b8   : > { %10454 = vmatprep.subr.bf16.mxu1 %v20400_v16  ;;  %v20460_v16 = vld [vmem:[%s29078_s3 + $0x9b8] ss:$16 sps:$4 sm:$0xff]  }
 0x4b9   : > { %v9515_v41 = vsel %vm7289_vm2, %v9506_v60, %v9514_v19 }
 0x4ba   : > { %10229 = vmatpush1.bf16.msra.mxu0 %v20395_v8  ;;  %v20465_v8 = vld [vmem:[%s29078_s3 + $0x9d4] ss:$16 sps:$4 sm:$0xff]  }
 0x4bb   : > { %10455 = vmatpush1.bf16.msra.mxu1 %v20398_v56  ;;  %10230 = vmatprep.subr.bf16.mxu0 %v20403_v38  ;;  %v9469_v56 = vrot.slane %v29628_v12, 2  ;;  %v9482_v38 = vrot.slane %v29629_v7, 2  ;;  %v20466_v12 = vld [vmem:[%s29078_s3 + $0x9d8] ss:$16 sps:$4 sm:$0xff]  }
 0x4bc   : > { %9042 = vmatmul.mubr.bf16.gmra.mrb[44].mxu0 %v24953_v48  ;;  %10456 = vmatprep.subr.bf16.mxu1 %v20406_v0  ;;  %v9468_v0 = vrot.slane %v17178_v61, 2  ;;  %v20522_v61 = vld [vmem:[%s29078_s3 + $0xafc] ss:$16 sps:$4 sm:$0xff]  }
 0x4bd   : > { %9268 = vmatmul.mubr.bf16.gmra.mrb[60].mxu1 %v24953_v48  ;;  %17165 = vmatprep.mubr.msk.bf16.mxu0 %vm7666_vm6, %v24956_v17  ;;  %v20415_v48 = vld [vmem:[%s29078_s3 + $0x8d4] ss:$16 sps:$4 sm:$0xff]   ;;  %v9483_v7 = vsel %vm7289_vm2, %v9472_v43, %v9482_v38  ;;  %v9504_v43 = vrot.slane %v24595_v4, 2 }
 0x4be   : > { %17174 = vmatprep.mubr.msk.bf16.mxu1 %vm7666_vm6, %v24956_v17  ;;  %10231 = vmatpush1.bf16.msra.mxu0 %v20401_v10  ;;  %v20418_v17 = vld [vmem:[%s29078_s3 + $0x8dc] ss:$16 sps:$4 sm:$0xff]   ;;  %v20463_v10 = vld [vmem:[%s29078_s3 + $0x9d0] ss:$16 sps:$4 sm:$0xff]  }
 0x4bf   : > { %10457 = vmatpush1.bf16.msra.mxu1 %v20404_v31  ;;  %10232 = vmatprep.subr.bf16.mxu0 %v20409_v51  ;;  %v9470_v31 = vsel %vm7289_vm2, %v9468_v0, %v9469_v56  ;;  %v20471_v51 = vld [vmem:[%s29078_s3 + $0x9f4] ss:$16 sps:$4 sm:$0xff]  }
 0x4c0   : > { %10458 = vmatprep.subr.bf16.mxu1 %v20412_v5  ;;  %v20474_v5 = vld [vmem:[%s29078_s3 + $0x9fc] ss:$16 sps:$4 sm:$0xff]  }
 0x4c2   : > { %10233 = vmatpush1.bf16.msra.mxu0 %v20407_v15  ;;  %v20469_v15 = vld [vmem:[%s29078_s3 + $0x9f0] ss:$16 sps:$4 sm:$0xff]  }
 0x4c3   : > { %10459 = vmatpush1.bf16.msra.mxu1 %v20410_v35  ;;  %10234 = vmatprep.subr.bf16.mxu0 %v20415_v48  ;;  %v20472_v35 = vld [vmem:[%s29078_s3 + $0x9f8] ss:$16 sps:$4 sm:$0xff]   ;;  %v9480_v48 = vrot.slane %v29630_v25, 2 }
 0x4c4   : > { %9052 = vmatmul.mubr.bf16.gmra.mrb[48].mxu0 %v24987_v34  ;;  %10460 = vmatprep.subr.bf16.mxu1 %v20418_v17  ;;  %v20477_v17 = vld [vmem:[%s29078_s3 + $0xa14] ss:$16 sps:$4 sm:$0xff]   ;;  %v20478_v25 = vld [vmem:[%s29078_s3 + $0xa18] ss:$16 sps:$4 sm:$0xff]  }
 0x4c5   : > { %9278 = vmatmul.mubr.bf16.gmra.mrb[64].mxu1 %v24987_v34  ;;  %17166 = vmatprep.mubr.msk.bf16.mxu0 %vm7666_vm6, %v24990_v23  ;;  %v20427_v34 = vld [vmem:[%s29078_s3 + $0x914] ss:$16 sps:$4 sm:$0xff]  }
 0x4c6   : > { %17175 = vmatprep.mubr.msk.bf16.mxu1 %vm7666_vm6, %v24990_v23  ;;  %10235 = vmatpush1.bf16.msra.mxu0 %v20413_v13  ;;  %v20430_v23 = vld [vmem:[%s29078_s3 + $0x91c] ss:$16 sps:$4 sm:$0xff]  }
 0x4c7   : > { %10461 = vmatpush1.bf16.msra.mxu1 %v20416_v3  ;;  %10236 = vmatprep.subr.bf16.mxu0 %v20421_v47  ;;  %v20480_v13 = vld [vmem:[%s29078_s3 + $0xa1c] ss:$16 sps:$4 sm:$0xff]   ;;  %v9490_v3 = vrot.slane %v29631_v50, 2  ;;  %v20475_v47 = vld [vmem:[%s29078_s3 + $0xa10] ss:$16 sps:$4 sm:$0xff]  }
 0x4c8   : > { %10462 = vmatprep.subr.bf16.mxu1 %v20424_v36  ;;  %v9481_v36 = vsel %vm7289_vm2, %v9469_v56, %v9480_v48  ;;  %v9512_v56 = vrot.slane %v24841_v44, 2  ;;  %v20526_v44 = vld [vmem:[%s29078_s3 + $0xb18] ss:$16 sps:$4 sm:$0xff]  }
 0x4c9   : > { %v9491_v50 = vsel %vm7289_vm2, %v9482_v38, %v9490_v3  ;;  %v20528_v38 = vld [vmem:[%s29078_s3 + $0xb1c] ss:$16 sps:$4 sm:$0xff]  }
 0x4ca   : > { %10237 = vmatpush1.bf16.msra.mxu0 %v20419_v28  ;;  %v20483_v28 = vld [vmem:[%s29078_s3 + $0xa34] ss:$16 sps:$4 sm:$0xff]  }
 0x4cb   : > { %10463 = vmatpush1.bf16.msra.mxu1 %v20422_v30  ;;  %10238 = vmatprep.subr.bf16.mxu0 %v20427_v34  ;;  %v20486_v30 = vld [vmem:[%s29078_s3 + $0xa3c] ss:$16 sps:$4 sm:$0xff]   ;;  %v20481_v34 = vld [vmem:[%s29078_s3 + $0xa30] ss:$16 sps:$4 sm:$0xff]  }
 0x4cc   : > { %9062 = vmatmul.mubr.bf16.gmra.mrb[52].mxu0 %v25021_v37  ;;  %10464 = vmatprep.subr.bf16.mxu1 %v20430_v23  ;;  %v20484_v23 = vld [vmem:[%s29078_s3 + $0xa38] ss:$16 sps:$4 sm:$0xff]  }
 0x4cd   : > { %9288 = vmatmul.mubr.bf16.gmra.mrb[68].mxu1 %v25021_v37  ;;  %17167 = vmatprep.mubr.msk.bf16.mxu0 %vm7666_vm6, %v25024_v54  ;;  %v20439_v37 = vld [vmem:[%s29078_s3 + $0x954] ss:$16 sps:$4 sm:$0xff]  }
 0x4ce   : > { %17176 = vmatprep.mubr.msk.bf16.mxu1 %vm7666_vm6, %v25024_v54  ;;  %10239 = vmatpush1.bf16.msra.mxu0 %v20425_v49  ;;  %v20442_v54 = vld [vmem:[%s29078_s3 + $0x95c] ss:$16 sps:$4 sm:$0xff]   ;;  %v9488_v49 = vrot.slane %v29632_v32, 2  ;;  %v20490_v32 = vld [vmem:[%s29078_s3 + $0xa58] ss:$16 sps:$4 sm:$0xff]  }
 0x4cf   : > { %10465 = vmatpush1.bf16.msra.mxu1 %v20428_v2  ;;  %10240 = vmatprep.subr.bf16.mxu0 %v20433_v21  ;;  %v20489_v2 = vld [vmem:[%s29078_s3 + $0xa54] ss:$16 sps:$4 sm:$0xff]   ;;  %v20492_v21 = vld [vmem:[%s29078_s3 + $0xa5c] ss:$16 sps:$4 sm:$0xff]  }
 0x4d0   : > { %10466 = vmatprep.subr.bf16.mxu1 %v20436_v52  ;;  %v9498_v52 = vrot.slane %v29633_v53, 2 }
 0x4d2   : > { %10241 = vmatpush1.bf16.msra.mxu0 %v20431_v22  ;;  %v20487_v22 = vld [vmem:[%s29078_s3 + $0xa50] ss:$16 sps:$4 sm:$0xff]   ;;  %v9499_v53 = vsel %vm7289_vm2, %v9490_v3, %v9498_v52  ;;  %v9507_v18 = vsel %vm7289_vm2, %v9498_v52, %v9506_v60  ;;  %v21110_v52 = vld [vmem:[#allocation2 + $0x2c] ss:$16 sps:$4 sm:$0xff]  }
 0x4d3   : > { %10467 = vmatpush1.bf16.msra.mxu1 %v20434_v57  ;;  %10242 = vmatprep.subr.bf16.mxu0 %v20439_v37  ;;  %v9489_v57 = vsel %vm7289_vm2, %v9480_v48, %v9488_v49  ;;  %v20495_v37 = vld [vmem:[%s29078_s3 + $0xa74] ss:$16 sps:$4 sm:$0xff]   ;;  %v20535_v3 = vld [vmem:[%s29078_s3 + $0xb50] ss:$16 sps:$4 sm:$0xff]  }
 0x4d4   : > { %9072 = vmatmul.mubr.bf16.gmra.mrb[56].mxu0 %v25057_v55  ;;  %10468 = vmatprep.subr.bf16.mxu1 %v20442_v54  ;;  %v20498_v54 = vld [vmem:[%s29078_s3 + $0xa7c] ss:$16 sps:$4 sm:$0xff]   ;;  %v20537_v48 = vld [vmem:[%s29078_s3 + $0xb54] ss:$16 sps:$4 sm:$0xff]  }
 0x4d5   : > { %9298 = vmatmul.mubr.bf16.gmra.mrb[72].mxu1 %v25057_v55  ;;  %17168 = vmatprep.mubr.msk.bf16.mxu0 %vm7666_vm6, %v17031_v62  ;;  %v20453_v55 = vld [vmem:[%s29078_s3 + $0x994] ss:$16 sps:$4 sm:$0xff]  }
 0x4d6   : > { %17177 = vmatprep.mubr.msk.bf16.mxu1 %vm7666_vm6, %v17031_v62  ;;  %10243 = vmatpush1.bf16.msra.mxu0 %v20437_v20  ;;  %v20496_v20 = vld [vmem:[%s29078_s3 + $0xa78] ss:$16 sps:$4 sm:$0xff]   ;;  %v20501_v62 = vld [vmem:[%s29078_s3 + $0xa94] ss:$16 sps:$4 sm:$0xff]  }
 0x4d7   : > { %10469 = vmatpush1.bf16.msra.mxu1 %v20440_v59  ;;  %10244 = vmatprep.subr.bf16.mxu0 %v20446_v26  ;;  %v9496_v59 = vrot.slane %v29634_v27, 2  ;;  %v20504_v26 = vld [vmem:[%s29078_s3 + $0xa9c] ss:$16 sps:$4 sm:$0xff]   ;;  %v20502_v27 = vld [vmem:[%s29078_s3 + $0xa98] ss:$16 sps:$4 sm:$0xff]  }
 0x4d8   : > { %10470 = vmatprep.subr.bf16.mxu1 %v20449_v39  ;;  %v20499_v39 = vld [vmem:[%s29078_s3 + $0xa90] ss:$16 sps:$4 sm:$0xff]  }
 0x4d9   : > { %v9505_v4 = vsel %vm7289_vm2, %v9496_v59, %v9504_v43 }
 0x4da   : > { %10245 = vmatpush1.bf16.msra.mxu0 %v20444_v42  ;;  %v9497_v42 = vsel %vm7289_vm2, %v9488_v49, %v9496_v59  ;;  %v20549_v49 = vld [vmem:[%s29078_s3 + $0xb94] ss:$16 sps:$4 sm:$0xff]  }
 0x4db   : > { %10471 = vmatpush1.bf16.msra.mxu1 %v20447_v9  ;;  %10246 = vmatprep.subr.bf16.mxu0 %v20453_v55  ;;  %v20510_v9 = vld [vmem:[%s29078_s3 + $0xabc] ss:$16 sps:$4 sm:$0xff]   ;;  %v20505_v55 = vld [vmem:[%s29078_s3 + $0xab0] ss:$16 sps:$4 sm:$0xff]  }
 0x4dc   : > { %9082 = vmatmul.mubr.bf16.gmra.mrb[60].mxu0 %v17030_v33  ;;  %10472 = vmatprep.subr.bf16.mxu1 %v20456_v11  ;;  %v20508_v11 = vld [vmem:[%s29078_s3 + $0xab8] ss:$16 sps:$4 sm:$0xff]  }
 0x4dd   : > { %9308 = vmatmul.mubr.bf16.gmra.mrb[76].mxu1 %v17030_v33  ;;  %10250 = vmatprep.mubr.bf16.mxu0 %v9473_v46  ;;  %v20513_v33 = vld [vmem:[%s29078_s3 + $0xad4] ss:$16 sps:$4 sm:$0xff]  }
 0x4de   : > { %10247 = vmatpush1.bf16.msra.mxu0 %v20451_v40  ;;  %10476 = vmatprep.mubr.bf16.mxu1 %v9473_v46  ;;  %v20516_v40 = vld [vmem:[%s29078_s3 + $0xadc] ss:$16 sps:$4 sm:$0xff]   ;;  %v20514_v46 = vld [vmem:[%s29078_s3 + $0xad8] ss:$16 sps:$4 sm:$0xff]  }
 0x4df   : > { %10473 = vmatpush1.bf16.msra.mxu1 %v20454_v63  ;;  %10248 = vmatprep.subr.bf16.mxu0 %v20459_v24  ;;  %v9320_v63 = vld [vmem:[#allocation2 + $0xf0] sm:$0x77] }
 0x4e0   : > { %10474 = vmatprep.subr.bf16.mxu1 %v20462_v45  ;;  %v20511_v24 = vld [vmem:[%s29078_s3 + $0xad0] ss:$16 sps:$4 sm:$0xff]   ;;  %v20519_v45 = vld [vmem:[%s29078_s3 + $0xaf4] ss:$16 sps:$4 sm:$0xff]  }
 0x4e2   : > { %10249 = vmatpush1.bf16.msra.mxu0 %v20457_v14  ;;  %v17183_v14 = vcombine.high %v25332_v1, %v9320_v63 }
 0x4e3   : > { %10475 = vmatpush1.bf16.msra.mxu1 %v20460_v16  ;;  %10331 = vmatprep.subr.bf16.mxu0 %v20465_v8  ;;  %v20517_v16 = vld [vmem:[%s29078_s3 + $0xaf0] ss:$16 sps:$4 sm:$0xff]   ;;  %v20520_v8 = vld [vmem:[%s29078_s3 + $0xaf8] ss:$16 sps:$4 sm:$0xff]  }
 0x4e4   : > { %10557 = vmatprep.subr.bf16.mxu1 %v20468_v6  ;;  %v20525_v6 = vld [vmem:[%s29078_s3 + $0xb14] ss:$16 sps:$4 sm:$0xff]   ;;  %v9522_v0 = vrot.slane %v17183_v14, 2 }
 0x4e5   : > { %10251 = vmatmul.mubr.bf16.vlgmr.msra.gmra.mrb[32].mxu0 %v9470_v31 }
 0x4e6   : > { %10477 = vmatmul.mubr.bf16.vlgmr.msra.gmra.mrb[48].mxu1 %v9470_v31  ;;  %10260 = vmatprep.mubr.bf16.mxu0 %v9483_v7  ;;  %v9513_v31 = vsel %vm7289_vm2, %v9504_v43, %v9512_v56  ;;  %v21113_v43 = vld [vmem:[#allocation2 + $0x48] ss:$16 sps:$4 sm:$0xff]  }
 0x4e7   : > { %10332 = vmatpush1.bf16.msra.mxu0 %v20463_v10  ;;  %10486 = vmatprep.mubr.bf16.mxu1 %v9483_v7  ;;  %v20523_v10 = vld [vmem:[%s29078_s3 + $0xb10] ss:$16 sps:$4 sm:$0xff]   ;;  %v9523_v7 = vsel %vm7289_vm2, %v9514_v19, %v9522_v0 }
 0x4e8   : > { %10558 = vmatpush1.bf16.msra.mxu1 %v20466_v12  ;;  %10333 = vmatprep.subr.bf16.mxu0 %v20471_v51  ;;  %v20531_v12 = vld [vmem:[%s29078_s3 + $0xb34] ss:$16 sps:$4 sm:$0xff]   ;;  %v17182_v51 = vcombine.low %v25332_v1, %v9320_v63  ;;  %v20532_v1 = vld [vmem:[%s29078_s3 + $0xb38] ss:$16 sps:$4 sm:$0xff]  }
 0x4e9   : > { %10559 = vmatprep.subr.bf16.mxu1 %v20474_v5  ;;  %v20534_v5 = vld [vmem:[%s29078_s3 + $0xb3c] ss:$16 sps:$4 sm:$0xff]  }
 0x4eb   : > { %10334 = vmatpush1.bf16.msra.mxu0 %v20469_v15  ;;  %v20529_v15 = vld [vmem:[%s29078_s3 + $0xb30] ss:$16 sps:$4 sm:$0xff]  }
 0x4ec   : > { %10560 = vmatpush1.bf16.msra.mxu1 %v20472_v35  ;;  %10335 = vmatprep.subr.bf16.mxu0 %v20477_v17  ;;  %v9520_v35 = vrot.slane %v17182_v51, 2  ;;  %v20540_v17 = vld [vmem:[%s29078_s3 + $0xb5c] ss:$16 sps:$4 sm:$0xff]  }
 0x4ed   : > { %10261 = vmatmul.mubr.bf16.gmra.mrb[36].mxu0 %v9481_v36  ;;  %10561 = vmatprep.subr.bf16.mxu1 %v20480_v13  ;;  %v9319_v13 = vld [vmem:[#allocation2 + $0x8] sm:$0xcc]  ;;  %v9321_v51 = vld [vmem:[#allocation2 + $0xf8] sm:$0x77] }
 0x4ee   : > { %10487 = vmatmul.mubr.bf16.gmra.mrb[52].mxu1 %v9481_v36  ;;  %10270 = vmatprep.mubr.bf16.mxu0 %v9491_v50  ;;  %v20538_v36 = vld [vmem:[%s29078_s3 + $0xb58] ss:$16 sps:$4 sm:$0xff]  }
 0x4ef   : > { %10336 = vmatpush1.bf16.msra.mxu0 %v20475_v47  ;;  %10496 = vmatprep.mubr.bf16.mxu1 %v9491_v50  ;;  %v9521_v47 = vsel %vm7289_vm2, %v9512_v56, %v9520_v35  ;;  %v21109_v50 = vld [vmem:[#allocation2 + $0x18] sm:$0xff] }
 0x4f0   : > { %10562 = vmatpush1.bf16.msra.mxu1 %v20478_v25  ;;  %10337 = vmatprep.subr.bf16.mxu0 %v20483_v28  ;;  %v20543_v25 = vld [vmem:[%s29078_s3 + $0xb74] ss:$16 sps:$4 sm:$0xff]   ;;  %v20546_v28 = vld [vmem:[%s29078_s3 + $0xb7c] ss:$16 sps:$4 sm:$0xff]  }
 0x4f1   : > { %10563 = vmatprep.subr.bf16.mxu1 %v20486_v30  ;;  %v17181_v30 = vcombine.high %v9319_v13, %v21109_v50  ;;  %v21118_v56 = vld [vmem:[#allocation2 + $0xac] ss:$16 sps:$4 sm:$0xff]  }
 0x4f3   : > { %10338 = vmatpush1.bf16.msra.mxu0 %v20481_v34  ;;  %v20541_v34 = vld [vmem:[%s29078_s3 + $0xb70] ss:$16 sps:$4 sm:$0xff]  }
 0x4f4   : > { %10564 = vmatpush1.bf16.msra.mxu1 %v20484_v23  ;;  %10339 = vmatprep.subr.bf16.mxu0 %v20489_v2  ;;  %v20544_v23 = vld [vmem:[%s29078_s3 + $0xb78] ss:$16 sps:$4 sm:$0xff]   ;;  %v20552_v2 = vld [vmem:[%s29078_s3 + $0xb9c] ss:$16 sps:$4 sm:$0xff]  }
 0x4f5   : > { %10271 = vmatmul.mubr.bf16.gmra.mrb[40].mxu0 %v9489_v57  ;;  %10565 = vmatprep.subr.bf16.mxu1 %v20492_v21  ;;  %v9477_v21 = vrot.slane %v17181_v30, 2  ;;  %v20566_v30 = vld [vmem:[%s29080_s5 + $0x1f4] ss:$8 sps:$4 sm:$0xff]  }
 0x4f6   : > { %10497 = vmatmul.mubr.bf16.gmra.mrb[56].mxu1 %v9489_v57  ;;  %10280 = vmatprep.mubr.bf16.mxu0 %v9499_v53  ;;  %v9446_v57 = vld [vmem:[%s29078_s3 + $0xbb0] sm:$0x33] }
 0x4f7   : > { %10340 = vmatpush1.bf16.msra.mxu0 %v20487_v22  ;;  %10506 = vmatprep.mubr.bf16.mxu1 %v9499_v53  ;;  %v9478_v22 = vrot.slane %v21110_v52, 2  ;;  %v20550_v53 = vld [vmem:[%s29078_s3 + $0xb98] ss:$16 sps:$4 sm:$0xff]   ;;  %v20575_v52 = vld [vmem:[%s29080_s5 + $0x224] ss:$8 sps:$4 sm:$0xff]  }
 0x4f8   : > { %10566 = vmatpush1.bf16.msra.mxu1 %v20490_v32  ;;  %10341 = vmatprep.subr.bf16.mxu0 %v20495_v37  ;;  %v9447_v32 = vld [vmem:[%s29078_s3 + $0xbb8] sm:$0x33]  ;;  %v20547_v37 = vld [vmem:[%s29078_s3 + $0xb90] ss:$16 sps:$4 sm:$0xff]  }
 0x4f9   : > { %10567 = vmatprep.subr.bf16.mxu1 %v20498_v54  ;;  %v17180_v54 = vcombine.low %v9319_v13, %v21109_v50  ;;  %v9479_v59 = vsel %vm7289_vm2, %v9477_v21, %v9478_v22  ;;  %v20563_v50 = vld [vmem:[%s29080_s5 + $0x1e4] ss:$8 sps:$4 sm:$0xff]   ;;  %v20570_v21 = vld [vmem:[%s29080_s5 + $0x210] ss:$8 sps:$4 sm:$0xff]  }
 0x4fb   : > { %10342 = vmatpush1.bf16.msra.mxu0 %v20493_v58  ;;  %v17311_v58 = vcombine.high %v9446_v57, %v9446_v57 }
 0x4fc   : > { %10568 = vmatpush1.bf16.msra.mxu1 %v20496_v20  ;;  %10343 = vmatprep.subr.bf16.mxu0 %v20501_v62  ;;  %v17310_v20 = vcombine.low %v9446_v57, %v9446_v57  ;;  %v17313_v62 = vcombine.high %v9447_v32, %v9447_v32  ;;  %v20578_v57 = vld [vmem:[%s29080_s5 + $0x234] ss:$8 sps:$4 sm:$0xff]  }
 0x4fd   : > { %10281 = vmatmul.mubr.bf16.gmra.mrb[44].mxu0 %v9497_v42  ;;  %10569 = vmatprep.subr.bf16.mxu1 %v20504_v26  ;;  %v17312_v26 = vcombine.low %v9447_v32, %v9447_v32  ;;  %v10734_v32 = vld [vmem:[%s29079_s4] sm:$0xf] }
 0x4fe   : > { %10507 = vmatmul.mubr.bf16.gmra.mrb[60].mxu1 %v9497_v42  ;;  %10290 = vmatprep.mubr.bf16.mxu0 %v9507_v18  ;;  %v10207_v60 = vsel %vm7691_vm5, %v17310_v20, 0  ;;  %v9474_v42 = vrot.slane %v17180_v54, 2  ;;  %v29635_v54 = vld [vmem:[#allocation8_spill] sm:$0xff]  ;;  %v29636_v20 = vld [vmem:[#allocation7_spill] sm:$0xff] }
 0x4ff   : > { %10344 = vmatpush1.bf16.msra.mxu0 %v20499_v39  ;;  %10516 = vmatprep.mubr.bf16.mxu1 %v9507_v18  ;;  %v10213_v39 = vsel %vm7691_vm5, %v17312_v26, 0  ;;  %v21112_v18 = vld [vmem:[#allocation2 + $0x4c] ss:$16 sps:$4 sm:$0xff]  }
 0x500   : > { %10570 = vmatpush1.bf16.msra.mxu1 %v20502_v27  ;;  %10345 = vmatprep.subr.bf16.mxu0 %v20507_v29  ;;  %v21111_v27 = vld [vmem:[#allocation2 + $0x28] ss:$16 sps:$4 sm:$0xff]  }
 0x501   : > { %10571 = vmatprep.subr.bf16.mxu1 %v20510_v9  ;;  %v9475_v29 = vrot.slane %v21111_v27, 2  ;;  %v9486_v9 = vrot.slane %v21112_v18, 2  ;;  %v29638_v26 = vld [vmem:[#allocation9_spill] sm:$0xff]  ;;  %v20584_v18 = vld [vmem:[%s29080_s5 + $0x254] ss:$8 sps:$4 sm:$0xff]  }
 0x502   : > { %v20579_v27 = vld [vmem:[%s29080_s5 + $0x240] ss:$8 sps:$4 sm:$0xff]  }
 0x503   : > { %10346 = vmatpush1.bf16.msra.mxu0 %v20505_v55  ;;  %v9476_v55 = vsel %vm7289_vm2, %v9474_v42, %v9475_v29 }
 0x504   : > { %10572 = vmatpush1.bf16.msra.mxu1 %v20508_v11  ;;  %10347 = vmatprep.subr.bf16.mxu0 %v20513_v33  ;;  %v9487_v11 = vsel %vm7289_vm2, %v9478_v22, %v9486_v9  ;;  %v9484_v33 = vrot.slane %v21113_v43, 2  ;;  %v20573_v22 = vld [vmem:[%s29080_s5 + $0x220] ss:$8 sps:$4 sm:$0xff]  }
 0x505   : > { %10291 = vmatmul.mubr.bf16.gmra.mrb[48].mxu0 %v9505_v4  ;;  %10573 = vmatprep.subr.bf16.mxu1 %v20516_v40  ;;  %v21114_v40 = vld [vmem:[#allocation2 + $0x6c] ss:$16 sps:$4 sm:$0xff]  }
 0x506   : > { %10517 = vmatmul.mubr.bf16.gmra.mrb[64].mxu1 %v9505_v4  ;;  %10300 = vmatprep.mubr.bf16.mxu0 %v9515_v41  ;;  %v9494_v19 = vrot.slane %v21114_v40, 2  ;;  %v9485_v63 = vsel %vm7289_vm2, %v9475_v29, %v9484_v33  ;;  %v21115_v4 = vld [vmem:[#allocation2 + $0x68] ss:$16 sps:$4 sm:$0xff]  }
 0x507   : > { %10348 = vmatpush1.bf16.msra.mxu0 %v20511_v24  ;;  %10526 = vmatprep.mubr.bf16.mxu1 %v9515_v41 }
 0x508   : > { %10574 = vmatpush1.bf16.msra.mxu1 %v20514_v46  ;;  %10349 = vmatprep.subr.bf16.mxu0 %v20519_v45  ;;  %v9495_v24 = vsel %vm7289_vm2, %v9486_v9, %v9494_v19  ;;  %v9492_v46 = vrot.slane %v21115_v4, 2  ;;  %v21116_v45 = vld [vmem:[#allocation2 + $0x8c] ss:$16 sps:$4 sm:$0xff]  }
 0x509   : > { %10575 = vmatprep.subr.bf16.mxu1 %v20522_v61  ;;  %v9502_v41 = vrot.slane %v21116_v45, 2 }
 0x50a   : > { %v9493_v61 = vsel %vm7289_vm2, %v9484_v33, %v9492_v46 }
 0x50b   : > { %10350 = vmatpush1.bf16.msra.mxu0 %v20517_v16  ;;  %v9503_v14 = vsel %vm7289_vm2, %v9494_v19, %v9502_v41  ;;  %v21117_v16 = vld [vmem:[#allocation2 + $0x88] ss:$16 sps:$4 sm:$0xff]  }
 0x50c   : > { %10576 = vmatpush1.bf16.msra.mxu1 %v20520_v8  ;;  %10351 = vmatprep.subr.bf16.mxu0 %v20525_v6  ;;  %v9500_v8 = vrot.slane %v21117_v16, 2  ;;  %v9510_v6 = vrot.slane %v21118_v56, 2 }
 0x50d   : > { %10301 = vmatmul.mubr.bf16.gmra.mrb[52].mxu0 %v9513_v31  ;;  %10577 = vmatprep.subr.bf16.mxu1 %v20528_v38 }
 0x50e   : > { %10527 = vmatmul.mubr.bf16.gmra.mrb[68].mxu1 %v9513_v31  ;;  %10310 = vmatprep.mubr.bf16.mxu0 %v9523_v7  ;;  %v9501_v38 = vsel %vm7289_vm2, %v9492_v46, %v9500_v8 }
 0x50f   : > { %10352 = vmatpush1.bf16.msra.mxu0 %v20523_v10  ;;  %10536 = vmatprep.mubr.bf16.mxu1 %v9523_v7  ;;  %v21119_v10 = vld [vmem:[#allocation2 + $0xa8] ss:$16 sps:$4 sm:$0xff]  }
 0x510   : > { %10578 = vmatpush1.bf16.msra.mxu1 %v20526_v44  ;;  %10353 = vmatprep.subr.bf16.mxu0 %v20531_v12  ;;  %v9508_v31 = vrot.slane %v21119_v10, 2  ;;  %v21120_v44 = vld [vmem:[#allocation2 + $0xcc] ss:$16 sps:$4 sm:$0xff]  }
 0x511   : > { %10579 = vmatprep.subr.bf16.mxu1 %v20534_v5  ;;  %v9518_v12 = vrot.slane %v21120_v44, 2 }
 0x512   : > { %v9509_v7 = vsel %vm7289_vm2, %v9500_v8, %v9508_v31 }
 0x513   : > { %10354 = vmatpush1.bf16.msra.mxu0 %v20529_v15  ;;  %v9519_v5 = vsel %vm7289_vm2, %v9510_v6, %v9518_v12  ;;  %v21121_v15 = vld [vmem:[#allocation2 + $0xe8] sm:$0xff] }
 0x514   : > { %10580 = vmatpush1.bf16.msra.mxu1 %v20532_v1  ;;  %10355 = vmatprep.subr.bf16.mxu0 %v20537_v48  ;;  %v17185_v1 = vcombine.high %v21121_v15, %v9321_v51 }
 0x515   : > { %10311 = vmatmul.mubr.bf16.gmra.mrb[56].mxu0 %v9521_v47  ;;  %10581 = vmatprep.subr.bf16.mxu1 %v20540_v17 }
 0x516   : > { %10537 = vmatmul.mubr.bf16.gmra.mrb[72].mxu1 %v9521_v47  ;;  %10320 = vmatprep.mubr.bf16.mxu0 %v9522_v0  ;;  %v9526_v17 = vrot.slane %v17185_v1, 2 }
 0x517   : > { %10356 = vmatpush1.bf16.msra.mxu0 %v20535_v3  ;;  %10546 = vmatprep.mubr.bf16.mxu1 %v9522_v0  ;;  %v9511_v0 = vsel %vm7289_vm2, %v9502_v41, %v9510_v6  ;;  %v17184_v3 = vcombine.low %v21121_v15, %v9321_v51  ;;  %v20582_v41 = vld [vmem:[%s29080_s5 + $0x250] ss:$8 sps:$4 sm:$0xff]  }
 0x518   : > { %10582 = vmatpush1.bf16.msra.mxu1 %v20538_v36  ;;  %10357 = vmatprep.subr.bf16.mxu0 %v20543_v25  ;;  %v9527_v47 = vsel %vm7289_vm2, %v9518_v12, %v9526_v17 }
 0x519   : > { %10583 = vmatprep.subr.bf16.mxu1 %v20546_v28  ;;  %v9524_v36 = vrot.slane %v17184_v3, 2  ;;  %v20561_v28 = vld [vmem:[%s29080_s5 + $0x1e0] ss:$8 sps:$4 sm:$0xff]  }
 0x51b   : > { %10358 = vmatpush1.bf16.msra.mxu0 %v20541_v34  ;;  %v20564_v34 = vld [vmem:[%s29080_s5 + $0x1f0] ss:$8 sps:$4 sm:$0xff]  }
 0x51c   : > { %10584 = vmatpush1.bf16.msra.mxu1 %v20544_v23  ;;  %10359 = vmatprep.subr.bf16.mxu0 %v20549_v49  ;;  %v20569_v23 = vld [vmem:[%s29080_s5 + $0x204] ss:$8 sps:$4 sm:$0xff]   ;;  %v20567_v49 = vld [vmem:[%s29080_s5 + $0x200] ss:$8 sps:$4 sm:$0xff]  }
 0x51d   : > { %10321 = vmatmul.mubr.bf16.gmra.mrb[60].mxu0 %v9520_v35  ;;  %10585 = vmatprep.subr.bf16.mxu1 %v20552_v2  ;;  %v20572_v2 = vld [vmem:[%s29080_s5 + $0x214] ss:$8 sps:$4 sm:$0xff]  }
 0x51e   : > { %10547 = vmatmul.mubr.bf16.gmra.mrb[76].mxu1 %v9520_v35  ;;  %17315 = vmatprep.mubr.msk.bf16.mxu0 %vm7666_vm6, %v9479_v59  ;;  %v21122_v35 = vld [vmem:[#allocation2 + $0xc8] ss:$16 sps:$4 sm:$0xff]  }
 0x51f   : > { %10360 = vmatpush1.bf16.msra.mxu0 %v20547_v37  ;;  %17324 = vmatprep.mubr.msk.bf16.mxu1 %vm7666_vm6, %v9479_v59  ;;  %v9516_v48 = vrot.slane %v21122_v35, 2  ;;  %v20576_v37 = vld [vmem:[%s29080_s5 + $0x230] ss:$8 sps:$4 sm:$0xff]   ;;  %v29637_v59 = vsub.s32 2, %v29636_v20 }
 0x520   : > { %10586 = vmatpush1.bf16.msra.mxu1 %v20550_v53  ;;  %17314 = vmatprep.subr.msk.bf16.mxu0 %vm7691_vm5, %v17311_v58  ;;  %v20581_v53 = vld [vmem:[%s29080_s5 + $0x244] ss:$8 sps:$4 sm:$0xff]   ;;  %v25901_v58 = vrot.slane %v10734_v32, %v29635_v54 }
 0x521   : > { %17323 = vmatprep.subr.msk.bf16.mxu1 %vm7691_vm5, %v17313_v62  ;;  %v9517_v13 = vsel %vm7289_vm2, %v9508_v31, %v9516_v48  ;;  %v9525_v25 = vsel %vm7289_vm2, %v9516_v48, %v9524_v36  ;;  %v25905_v62 = vrot.slane %v10734_v32, %v29637_v59  ;;  %v20587_v48 = vld [vmem:[%s29080_s5 + $0x264] ss:$8 sps:$4 sm:$0xff]  }
 0x523   : > { %10362 = vmatpush1.bf16.msra.mxu0 %v10207_v60  ;;  %v25908_v60 = vrot.slane %v10734_v32, %v29638_v26 }
 0x524   : > { %10588 = vmatpush1.bf16.msra.mxu1 %v10213_v39  ;;  %12445 = vmatprep.subr.bf16.mxu0 %v20563_v50  ;;  %v29639_v39 = vsub.s32 3, %v29636_v20 }
 0x526   : > { %10364 = vmatmul.mubr.bf16.vlgmr.msra.gmra.mrb[32].mxu0 %v9476_v55  ;;  %v25912_v42 = vrot.slane %v10734_v32, %v29639_v39 }
 0x527   : > { %10590 = vmatmul.mubr.bf16.vlgmr.msra.gmra.mrb[48].mxu1 %v9476_v55  ;;  %17316 = vmatprep.mubr.msk.bf16.mxu0 %vm7666_vm6, %v9487_v11 }
 0x528   : > { %17325 = vmatprep.mubr.msk.bf16.mxu1 %vm7666_vm6, %v9487_v11  ;;  %12446 = vmatpush1.bf16.msra.mxu0 %v20561_v28 }
 0x529   : > { %12447 = vmatprep.subr.bf16.mxu0 %v20566_v30 }
 0x52c   : > { %12448 = vmatpush1.bf16.msra.mxu0 %v20564_v34 }
 0x52d   : > { %12449 = vmatprep.subr.bf16.mxu0 %v20569_v23 }
 0x52e   : > { %10374 = vmatmul.mubr.bf16.gmra.mrb[36].mxu0 %v9485_v63 }
 0x52f   : > { %10600 = vmatmul.mubr.bf16.gmra.mrb[52].mxu1 %v9485_v63  ;;  %17317 = vmatprep.mubr.msk.bf16.mxu0 %vm7666_vm6, %v9495_v24 }
 0x530   : > { %17326 = vmatprep.mubr.msk.bf16.mxu1 %vm7666_vm6, %v9495_v24  ;;  %12450 = vmatpush1.bf16.msra.mxu0 %v20567_v49 }
 0x531   : > { %12451 = vmatprep.subr.bf16.mxu0 %v20572_v2 }
 0x534   : > { %12452 = vmatpush1.bf16.msra.mxu0 %v20570_v21 }
 0x535   : > { %12453 = vmatprep.subr.bf16.mxu0 %v20575_v52 }
 0x536   : > { %10384 = vmatmul.mubr.bf16.gmra.mrb[40].mxu0 %v9493_v61 }
 0x537   : > { %10610 = vmatmul.mubr.bf16.gmra.mrb[56].mxu1 %v9493_v61  ;;  %17318 = vmatprep.mubr.msk.bf16.mxu0 %vm7666_vm6, %v9503_v14 }
 0x538   : > { %17327 = vmatprep.mubr.msk.bf16.mxu1 %vm7666_vm6, %v9503_v14  ;;  %12454 = vmatpush1.bf16.msra.mxu0 %v20573_v22 }
 0x539   : > { %12455 = vmatprep.subr.bf16.mxu0 %v20578_v57 }
 0x53c   : > { %12456 = vmatpush1.bf16.msra.mxu0 %v20576_v37 }
 0x53d   : > { %12457 = vmatprep.subr.bf16.mxu0 %v20581_v53 }
 0x53e   : > { %10394 = vmatmul.mubr.bf16.gmra.mrb[44].mxu0 %v9501_v38 }
 0x53f   : > { %10620 = vmatmul.mubr.bf16.gmra.mrb[60].mxu1 %v9501_v38  ;;  %17319 = vmatprep.mubr.msk.bf16.mxu0 %vm7666_vm6, %v9511_v0 }
 0x540   : > { %17328 = vmatprep.mubr.msk.bf16.mxu1 %vm7666_vm6, %v9511_v0  ;;  %12458 = vmatpush1.bf16.msra.mxu0 %v20579_v27 }
 0x541   : > { %12459 = vmatprep.subr.bf16.mxu0 %v20584_v18 }
 0x544   : > { %12460 = vmatpush1.bf16.msra.mxu0 %v20582_v41 }
 0x545   : > { %12461 = vmatprep.subr.bf16.mxu0 %v20587_v48 }
 0x546   : > { %10404 = vmatmul.mubr.bf16.gmra.mrb[48].mxu0 %v9509_v7 }
 0x547   : > { %10630 = vmatmul.mubr.bf16.gmra.mrb[64].mxu1 %v9509_v7  ;;  %17320 = vmatprep.mubr.msk.bf16.mxu0 %vm7666_vm6, %v9519_v5  ;;  %v20585_v7 = vld [vmem:[%s29080_s5 + $0x260] ss:$8 sps:$4 sm:$0xff]  }
 0x548   : > { %17329 = vmatprep.mubr.msk.bf16.mxu1 %vm7666_vm6, %v9519_v5  ;;  %12462 = vmatpush1.bf16.msra.mxu0 %v20585_v7 }
 0x54e   : > { %10414 = vmatmul.mubr.bf16.gmra.mrb[52].mxu0 %v9517_v13 }
 0x54f   : > { %10640 = vmatmul.mubr.bf16.gmra.mrb[68].mxu1 %v9517_v13  ;;  %17321 = vmatprep.mubr.msk.bf16.mxu0 %vm7666_vm6, %v9527_v47 }
 0x550   : > { %17330 = vmatprep.mubr.msk.bf16.mxu1 %vm7666_vm6, %v9527_v47 }
 0x556   : > { %10424 = vmatmul.mubr.bf16.gmra.mrb[56].mxu0 %v9525_v25 }
 0x557   : > { %10650 = vmatmul.mubr.bf16.gmra.mrb[72].mxu1 %v9525_v25  ;;  %17322 = vmatprep.mubr.msk.bf16.mxu0 %vm7666_vm6, %v9526_v17 }
 0x558   : > { %17331 = vmatprep.mubr.msk.bf16.mxu1 %vm7666_vm6, %v9526_v17  ;;  %vm14579_vm6 = vcmask 719872  }
 0x55e   : > { %10434 = vmatmul.mubr.bf16.gmra.mrb[60].mxu0 %v9524_v36 }
 0x55f   : > { %10660 = vmatmul.mubr.bf16.gmra.mrb[76].mxu1 %v9524_v36 }
 0x5f9   : > { %v10365_v29 = vpop.f32.mrb[32].mxu0 }
 0x5fa   : > { %v10756_v9 = vadd.f32 %v25901_v58, %v10365_v29  ;;  %v10591_v55 = vpop.f32.mrb[48].mxu1  ;;  %v10367_v11 = vpop.f32.mrb[33].mxu0 }
 0x5fb   : > { %v25922_v43 = vadd.f32 %v25905_v62, %v10591_v55  ;;  %v10757_v33 = vadd.f32 %v25908_v60, %v10367_v11  ;;  %v10593_v40 = vpop.f32.mrb[49].mxu1  ;;  %v10369_v19 = vpop.f32.mrb[34].mxu0 }
 0x5fc   : > { %v10820_v63 = vmax.f32 %v10756_v9, 0.0  ;;  %v25926_v24 = vadd.f32 %v25912_v42, %v10593_v40  ;;  %v25929_v4 = vadd.f32 %v25901_v58, %v10369_v19  ;;  %v10595_v46 = vpop.f32.mrb[50].mxu1  ;;  %v10371_v45 = vpop.f32.mrb[35].mxu0 }
 0x5fd   : > { %v10822_v61 = vmax.f32 %v25922_v43, 0.0  ;;  %v10821_v14 = vmax.f32 %v10757_v33, 0.0  ;;  %v25936_v16 = vadd.f32 %v25905_v62, %v10595_v46  ;;  %v25939_v8 = vadd.f32 %v25908_v60, %v10371_v45  ;;  %v10597_v56 = vpop.f32.mrb[51].mxu1 }
 0x5fe   : > { %v29232_v6 = vmax.f32 %v25926_v24, 0.0  ;;  %v10824_v38 = vmax.f32 %v25929_v4, 0.0  ;;  %v25944_v0 = vadd.f32 %v25912_v42, %v10597_v56  ;;  %v10949_v44 = vrot.slane %v10820_v63, 2 }
 0x5ff   : > { %v10826_v10 = vmax.f32 %v25936_v16, 0.0  ;;  %v10825_v31 = vmax.f32 %v25939_v8, 0.0  ;;  %v10955_v12 = vrot.slane %v10822_v61, 2  ;;  %v10952_v5 = vrot.slane %v10821_v14, 2 }
 0x600   : > { %v10950_v51 = vrot.slane %v10824_v38, 2  ;;  %v25957_v15 = vrot.slane %v29232_v6, 2  ;;  %v29231_v13 = vmax.f32 %v25944_v0, 0.0 }
 0x601   : > { %v10953_v1 = vrot.slane %v10825_v31, 2  ;;  %v10375_v35 = vpop.f32.mrb[36].mxu0  ;;  %v10956_v17 = vrot.slane %v10826_v10, 2 }
 0x602   : > { %v25968_v3 = vadd.f32 %v25901_v58, %v10375_v35  ;;  %v10601_v47 = vpop.f32.mrb[52].mxu1  ;;  %v10377_v36 = vpop.f32.mrb[37].mxu0  ;;  %v10951_v25 = vsel %vm7289_vm2, %v10949_v44, %v10950_v51  ;;  %v26014_v19 = vrot.slane %v29231_v13, 2 }
 0x603   : > { %v25972_v28 = vadd.f32 %v25905_v62, %v10601_v47  ;;  %v25975_v50 = vadd.f32 %v25908_v60, %v10377_v36  ;;  %v10603_v30 = vpop.f32.mrb[53].mxu1  ;;  %v10379_v34 = vpop.f32.mrb[38].mxu0  ;;  %v10954_v23 = vsel %vm7289_vm2, %v10952_v5, %v10953_v1  ;;  %v25978_v49 = vmax.f32 %v10820_v63, %v10951_v25 }
 0x604   : > { %v10828_v2 = vmax.f32 %v25968_v3, 0.0  ;;  %v25982_v21 = vadd.f32 %v25912_v42, %v10603_v30  ;;  %v25985_v52 = vadd.f32 %v25901_v58, %v10379_v34  ;;  %v10605_v22 = vpop.f32.mrb[54].mxu1  ;;  %v10381_v57 = vpop.f32.mrb[39].mxu0  ;;  %v25987_v32 = vmax.f32 %v10821_v14, %v10954_v23 }
 0x605   : > { %29640 = vst [vmem:[#allocation66_spill] sm:$0xff] %v25978_v49  ;;  %v29243_v37 = vmax.f32 %v25972_v28, 0.0  ;;  %v10829_v53 = vmax.f32 %v25975_v50, 0.0  ;;  %v25992_v20 = vadd.f32 %v25905_v62, %v10605_v22  ;;  %v25995_v59 = vadd.f32 %v25908_v60, %v10381_v57  ;;  %v10607_v39 = vpop.f32.mrb[55].mxu1 }
 0x606   : > { %29641 = vst [vmem:[#allocation26_spill] sm:$0xff] %v25987_v32  ;;  %v10961_v27 = vrot.slane %v10828_v2, 2  ;;  %v29230_v29 = vmax.f32 %v25982_v21, 0.0  ;;  %v29242_v18 = vmax.f32 %v25985_v52, 0.0  ;;  %v26002_v9 = vadd.f32 %v25912_v42, %v10607_v39 }
 0x607   : > { %v26006_v55 = vrot.slane %v29243_v37, 2  ;;  %v10963_v11 = vrot.slane %v10829_v53, 2  ;;  %v29238_v33 = vmax.f32 %v25992_v20, 0.0  ;;  %v29241_v40 = vmax.f32 %v25995_v59, 0.0 }
 0x608   : > { %v26018_v63 = vrot.slane %v29230_v29, 2  ;;  %v26022_v46 = vrot.slane %v29242_v18, 2  ;;  %v19229_v45 = vpack.i.bf16 %v25987_v32, %v25978_v49  ;;  %v29229_v14 = vmax.f32 %v26002_v9, 0.0  ;;  %v20588_v29 = vld [vmem:[%s29080_s5 + $0x270] ss:$8 sps:$4 sm:$0xff]  }
 0x609   : > { %v26028_v41 = vrot.slane %v29238_v33, 2  ;;  %v10385_v56 = vpop.f32.mrb[40].mxu0  ;;  %v10957_v44 = vsel %vm7289_vm2, %v10955_v12, %v10956_v17  ;;  %v10962_v7 = vsel %vm7289_vm2, %v10950_v51, %v10961_v27  ;;  %v26035_v5 = vrot.slane %v29241_v40, 2 }
 0x60a   : > { %19230 = vrot.lane.b32.xlu0 %v19229_v45, %s21170_s24  ;;  %v26039_v35 = vadd.f32 %v25901_v58, %v10385_v56  ;;  %v10611_v48 = vpop.f32.mrb[56].mxu1  ;;  %v10387_v47 = vpop.f32.mrb[41].mxu0  ;;  %v26043_v36 = vmax.f32 %v10822_v61, %v10957_v44  ;;  %v26047_v12 = vmax.f32 %v10824_v38, %v10962_v7  ;;  %v10964_v23 = vsel %vm7289_vm2, %v10953_v1, %v10963_v11 }
 0x60b   : > { %v26050_v51 = vadd.f32 %v25905_v62, %v10611_v48  ;;  %v26053_v25 = vadd.f32 %v25908_v60, %v10387_v47  ;;  %v10613_v30 = vpop.f32.mrb[57].mxu1  ;;  %v10389_v34 = vpop.f32.mrb[42].mxu0  ;;  %v10966_v22 = vsel %vm7289_vm2, %v10956_v17, %v26006_v55  ;;  %v26077_v7 = vrot.slane %v29229_v14, 2 }
 0x60c   : > { %29642 = vst [vmem:[#allocation27_spill] sm:$0xff] %v26043_v36  ;;  %29643 = vst [vmem:[#allocation67_spill] sm:$0xff] %v26047_v12  ;;  %v29235_v43 = vmax.f32 %v26039_v35, 0.0  ;;  %v26060_v61 = vadd.f32 %v25912_v42, %v10613_v30  ;;  %v26063_v4 = vadd.f32 %v25901_v58, %v10389_v34  ;;  %v10615_v38 = vpop.f32.mrb[58].mxu1  ;;  %v10391_v57 = vpop.f32.mrb[43].mxu0  ;;  %v19234_v39 = vpack.i.bf16 %v26047_v12, %v26043_v36 }
 0x60d   : > { %v29233_v45 = vmax.f32 %v26050_v51, 0.0  ;;  %v29234_v1 = vmax.f32 %v26053_v25, 0.0  ;;  %v26070_v56 = vadd.f32 %v25905_v62, %v10615_v38  ;;  %v26073_v17 = vadd.f32 %v25908_v60, %v10391_v57  ;;  %v10617_v44 = vpop.f32.mrb[59].mxu1 }
 0x60e   : > { %v29236_v48 = vmax.f32 %v26060_v61, 0.0  ;;  %v29237_v47 = vmax.f32 %v26063_v4, 0.0  ;;  %v26082_v30 = vadd.f32 %v25912_v42, %v10617_v44  ;;  %19235 = vrot.lane.b32.xlu1 %v19234_v39, %s21170_s24  ;;  %v26087_v34 = vrot.slane %v29235_v43, 2 }
 0x60f   : > { %v26091_v38 = vrot.slane %v29233_v45, 2  ;;  %v29239_v57 = vmax.f32 %v26070_v56, 0.0  ;;  %v29240_v14 = vmax.f32 %v26073_v17, 0.0  ;;  %v26100_v44 = vrot.slane %v29234_v1, 2  ;;  %v20590_v45 = vld [vmem:[%s29080_s5 + $0x274] ss:$8 sps:$4 sm:$0xff]  }
 0x610   : > { %29644 = vst [vmem:[#allocation68_spill] sm:$0xff] %v26082_v30  ;;  %v26104_v39 = vrot.slane %v29236_v48, 2  ;;  %v26108_v13 = vrot.slane %v29237_v47, 2  ;;  %v26112_v6 = vmax.f32 %v10825_v31, %v10964_v23  ;;  %v29244_v43 = vmax.f32 %v26082_v30, 0.0  ;;  %12463 = vmatprep.subr.bf16.mxu0 %v20590_v45  ;;  %v20591_v45 = vld [vmem:[%s29080_s5 + $0x280] ss:$8 sps:$4 sm:$0xff]  }
 0x611   : > { %v26119_v1 = vrot.slane %v29239_v57, 2  ;;  %v26124_v48 = vmax.f32 %v10826_v10, %v10966_v22  ;;  %v10970_v47 = vsel %vm7289_vm2, %v10961_v27, %v26022_v46  ;;  %v10395_v8 = vpop.f32.mrb[44].mxu0  ;;  %v26130_v31 = vrot.slane %v29240_v14, 2  ;;  %v20593_v27 = vld [vmem:[%s29080_s5 + $0x284] ss:$8 sps:$4 sm:$0xff]   ;;  %12464 = vmatpush1.bf16.msra.mxu0 %v20588_v29 }
 0x612   : > { %29645 = vst [vmem:[#allocation69_spill] sm:$0xff] %v26112_v6  ;;  %v10621_v23 = vpop.f32.mrb[60].mxu1  ;;  %v10972_v33 = vsel %vm7289_vm2, %v10963_v11, %v26035_v5  ;;  %v26136_v57 = vmax.f32 %v10828_v2, %v10970_v47  ;;  %v26139_v16 = vadd.f32 %v25901_v58, %v10395_v8  ;;  %v10397_v10 = vpop.f32.mrb[45].mxu0  ;;  %12465 = vmatprep.subr.bf16.mxu0 %v20593_v27  ;;  %v26179_v37 = vrot.slane %v29244_v43, 2 }
 0x613   : > { %29646 = vst [vmem:[#allocation70_spill] sm:$0xff] %v26124_v48  ;;  %v19239_v22 = vpack.i.bf16 %v26124_v48, %v26112_v6  ;;  %v26147_v14 = vadd.f32 %v25905_v62, %v10621_v23  ;;  %v26151_v3 = vmax.f32 %v10829_v53, %v10972_v33  ;;  %v26154_v2 = vadd.f32 %v25908_v60, %v10397_v10  ;;  %v10623_v11 = vpop.f32.mrb[61].mxu1  ;;  %v10399_v47 = vpop.f32.mrb[46].mxu0 }
 0x614   : > { %29647 = vst [vmem:[#allocation51_spill] sm:$0xff] %v26136_v57  ;;  %v26161_v40 = vadd.f32 %v25912_v42, %v10623_v11  ;;  %v26164_v23 = vadd.f32 %v25901_v58, %v10399_v47  ;;  %v10625_v50 = vpop.f32.mrb[62].mxu1  ;;  %v10401_v53 = vpop.f32.mrb[47].mxu0  ;;  %v10974_v33 = vsel %vm7289_vm2, %v26006_v55, %v26028_v41  ;;  %v29662_v32 = vmax.f32 %v26039_v35, 0.0 }
 0x615   : > { %29648 = vst [vmem:[#allocation56_spill] sm:$0xff] %v26151_v3  ;;  %19240 = vrot.lane.b32.xlu0 %v19239_v22, %s21170_s24  ;;  %v29245_v29 = vmax.f32 %v26147_v14, 0.0  ;;  %v19244_v10 = vpack.i.bf16 %v26151_v3, %v26136_v57  ;;  %v26175_v18 = vadd.f32 %v25905_v62, %v10625_v50  ;;  %v10627_v47 = vpop.f32.mrb[63].mxu1  ;;  %v26184_v22 = vadd.f32 %v25908_v60, %v10401_v53 }
 0x616   : > { %29649 = vst [vmem:[#allocation28_spill] sm:$0xff] %v26161_v40  ;;  %v29247_v55 = vmax.f32 %v26161_v40, 0.0  ;;  %v29650_v50 = vmax.f32 %v26139_v16, 0.0  ;;  %v26197_v26 = vadd.f32 %v25912_v42, %v10627_v47  ;;  %12466 = vmatpush1.bf16.msra.mxu0 %v20591_v45  ;;  %v29652_v27 = vmax.f32 %v26154_v2, 0.0 }
 0x617   : > { %v26188_v8 = vrot.slane %v29245_v29, 2  ;;  %19245 = vrot.lane.b32.xlu1 %v19244_v10, %s21170_s24  ;;  %v29250_v43 = vmax.f32 %v26175_v18, 0.0  ;;  %v29653_v10 = vmax.f32 %v26164_v23, 0.0  ;;  %v10980_v3 = vsel %vm7289_vm2, %v26035_v5, %v26100_v44 }
 0x618   : > { %v26193_v11 = vrot.slane %v29650_v50, 2  ;;  %29651 = vst [vmem:[#allocation29_spill] sm:$0xff] %v26197_v26  ;;  %v26201_v53 = vrot.slane %v29652_v27, 2  ;;  %v26205_v29 = vrot.slane %v29247_v55, 2  ;;  %v10978_v50 = vsel %vm7289_vm2, %v26022_v46, %v26087_v34 }
 0x619   : > { %v26209_v54 = vrot.slane %v29653_v10, 2  ;;  %v26216_v47 = vrot.slane %v29250_v43, 2  ;;  %v29654_v27 = vmax.f32 %v25972_v28, 0.0  ;;  %v29656_v55 = vmax.f32 %v25985_v52, 0.0  ;;  %v10405_v10 = vpop.f32.mrb[48].mxu0 }
 0x61a   : > { %v10982_v46 = vsel %vm7289_vm2, %v26028_v41, %v26091_v38  ;;  %v10631_v43 = vpop.f32.mrb[64].mxu1  ;;  %v10986_v28 = vsel %vm7289_vm2, %v26087_v34, %v26108_v13  ;;  %v20594_v52 = vld [vmem:[%s29080_s5 + $0x290] ss:$8 sps:$4 sm:$0xff]   ;;  %v29658_v41 = vmax.f32 %v25995_v59, 0.0  ;;  %v29660_v34 = vmax.f32 %v25992_v20, 0.0 }
 0x61b   : > { %v26221_v36 = vmax.f32 %v29654_v27, %v10974_v33  ;;  %v26225_v48 = vmax.f32 %v29656_v55, %v10978_v50  ;;  %v10407_v33 = vpop.f32.mrb[49].mxu0  ;;  %v20596_v55 = vld [vmem:[%s29080_s5 + $0x294] ss:$8 sps:$4 sm:$0xff]   ;;  %v10633_v57 = vpop.f32.mrb[65].mxu1  ;;  %v26254_v12 = vadd.f32 %v25905_v62, %v10631_v43  ;;  %v10988_v5 = vsel %vm7289_vm2, %v26100_v44, %v26130_v31 }
 0x61c   : > { %v26247_v27 = vmax.f32 %v29658_v41, %v10980_v3  ;;  %v26251_v45 = vmax.f32 %v29660_v34, %v10982_v46  ;;  %v10409_v6 = vpop.f32.mrb[50].mxu0  ;;  %v26264_v59 = vadd.f32 %v25901_v58, %v10405_v10  ;;  %v10635_v3 = vpop.f32.mrb[66].mxu1  ;;  %12467 = vmatprep.subr.bf16.mxu0 %v20596_v55  ;;  %v20599_v46 = vld [vmem:[%s29080_s5 + $0x2a4] ss:$8 sps:$4 sm:$0xff]   ;;  %v29664_v44 = vmax.f32 %v26053_v25, 0.0 }
 0x61d   : > { %29655 = vst [vmem:[#allocation71_spill] sm:$0xff] %v26221_v36  ;;  %29657 = vst [vmem:[#allocation72_spill] sm:$0xff] %v26225_v48  ;;  %v19249_v50 = vpack.i.bf16 %v26225_v48, %v26221_v36  ;;  %v26261_v36 = vmax.f32 %v29662_v32, %v10986_v28  ;;  %v10411_v20 = vpop.f32.mrb[51].mxu0  ;;  %v26277_v32 = vadd.f32 %v25908_v60, %v10407_v33  ;;  %v10637_v28 = vpop.f32.mrb[67].mxu1  ;;  %12468 = vmatpush1.bf16.msra.mxu0 %v20594_v52  ;;  %v20597_v25 = vld [vmem:[%s29080_s5 + $0x2a0] ss:$8 sps:$4 sm:$0xff]  }
 0x61e   : > { %29659 = vst [vmem:[#allocation73_spill] sm:$0xff] %v26247_v27  ;;  %29661 = vst [vmem:[#allocation74_spill] sm:$0xff] %v26251_v45  ;;  %v19254_v43 = vpack.i.bf16 %v26251_v45, %v26247_v27  ;;  %v26274_v35 = vmax.f32 %v29664_v44, %v10988_v5  ;;  %v26280_v10 = vadd.f32 %v25912_v42, %v10633_v57  ;;  %12469 = vmatprep.subr.bf16.mxu0 %v20599_v46 }
 0x61f   : > { %29663 = vst [vmem:[#allocation12_spill] sm:$0xff] %v26261_v36  ;;  %19250 = vrot.lane.b32.xlu0 %v19249_v50, %s21170_s24  ;;  %v26285_v50 = vadd.f32 %v25901_v58, %v10409_v6  ;;  %v26288_v34 = vadd.f32 %v25905_v62, %v10635_v3  ;;  %v26299_v6 = vadd.f32 %v25908_v60, %v10411_v20  ;;  %v29667_v3 = vmax.f32 %v26184_v22, 0.0 }
 0x620   : > { %29665 = vst [vmem:[#allocation33_spill] sm:$0xff] %v26274_v35  ;;  %29666 = vst [vmem:[#allocation10_spill] sm:$0xff] %v26280_v10  ;;  %19255 = vrot.lane.b32.xlu1 %v19254_v43, %s21170_s24  ;;  %v19259_v57 = vpack.i.bf16 %v26274_v35, %v26261_v36  ;;  %v29668_v44 = vmax.f32 %v26197_v26, 0.0  ;;  %v29670_v33 = vmax.f32 %v26254_v12, 0.0  ;;  %v29671_v20 = vmax.f32 %v26264_v59, 0.0 }
 0x621   : > { %v26303_v52 = vrot.slane %v29667_v3, 2  ;;  %v29672_v3 = vmax.f32 %v26277_v32, 0.0  ;;  %v10415_v43 = vpop.f32.mrb[52].mxu0  ;;  %v29674_v55 = vmax.f32 %v26280_v10, 0.0  ;;  %12470 = vmatpush1.bf16.msra.mxu0 %v20597_v25  ;;  %v10996_v25 = vsel %vm7289_vm2, %v26130_v31, %v26201_v53  ;;  %v20602_v31 = vld [vmem:[%s29080_s5 + $0x2b4] ss:$8 sps:$4 sm:$0xff]  }
 0x622   : > { %v26307_v41 = vrot.slane %v29668_v44, 2  ;;  %v26313_v45 = vrot.slane %v29670_v33, 2  ;;  %v26318_v46 = vrot.slane %v29671_v20, 2  ;;  %v26325_v44 = vadd.f32 %v25912_v42, %v10637_v28  ;;  %v10417_v36 = vpop.f32.mrb[53].mxu0  ;;  %12471 = vmatprep.subr.bf16.mxu0 %v20602_v31 }
 0x623   : > { %19260 = vrot.lane.b32.xlu0 %v19259_v57, %s21170_s24  ;;  %v26322_v5 = vrot.slane %v29672_v3, 2  ;;  %v26329_v35 = vrot.slane %v29674_v55, 2  ;;  %v10990_v57 = vsel %vm7289_vm2, %v26091_v38, %v26119_v1  ;;  %v10994_v20 = vsel %vm7289_vm2, %v26108_v13, %v26193_v11  ;;  %v10641_v3 = vpop.f32.mrb[68].mxu1  ;;  %v10419_v26 = vpop.f32.mrb[54].mxu0 }
 0x624   : > { %29669 = vst [vmem:[#allocation31_spill] sm:$0xff] %v26307_v41  ;;  %29673 = vst [vmem:[#allocation32_spill] sm:$0xff] %v26325_v44  ;;  %v29676_v28 = vmax.f32 %v26285_v50, 0.0  ;;  %v29677_v55 = vmax.f32 %v26288_v34, 0.0  ;;  %v29678_v33 = vmax.f32 %v26050_v51, 0.0  ;;  %v29680_v38 = vmax.f32 %v26063_v4, 0.0 }
 0x625   : > { %29675 = vst [vmem:[#allocation30_spill] sm:$0xff] %v26329_v35  ;;  %v10643_v13 = vpop.f32.mrb[69].mxu1  ;;  %v11002_v51 = vsel %vm7289_vm2, %v26193_v11, %v26209_v54  ;;  %v29684_v11 = vmax.f32 %v26070_v56, 0.0  ;;  %v20605_v41 = vld [vmem:[%s29080_s5 + $0x2c4] ss:$8 sps:$4 sm:$0xff]  }
 0x626   : > { %v26340_v27 = vrot.slane %v29676_v28, 2  ;;  %v26344_v48 = vrot.slane %v29677_v55, 2  ;;  %v26348_v49 = vmax.f32 %v29678_v33, %v10990_v57  ;;  %v26352_v10 = vmax.f32 %v29680_v38, %v10994_v20  ;;  %v10645_v4 = vpop.f32.mrb[70].mxu1  ;;  %v10421_v33 = vpop.f32.mrb[55].mxu0  ;;  %v20600_v57 = vld [vmem:[%s29080_s5 + $0x2b0] ss:$8 sps:$4 sm:$0xff]  }
 0x627   : > { %v10998_v28 = vsel %vm7289_vm2, %v26119_v1, %v26188_v8  ;;  %v26361_v55 = vadd.f32 %v25905_v62, %v10641_v3  ;;  %v29682_v3 = vmax.f32 %v26073_v17, 0.0  ;;  %v10647_v35 = vpop.f32.mrb[71].mxu1  ;;  %v11004_v20 = vsel %vm7289_vm2, %v26201_v53, %v26303_v52  ;;  %12472 = vmatpush1.bf16.msra.mxu0 %v20600_v57 }
 0x628   : > { %29679 = vst [vmem:[#allocation13_spill] sm:$0xff] %v26348_v49  ;;  %29681 = vst [vmem:[#allocation37_spill] sm:$0xff] %v26352_v10  ;;  %v19264_v1 = vpack.i.bf16 %v26352_v10, %v26348_v49  ;;  %v26381_v40 = vmax.f32 %v29684_v11, %v10998_v28  ;;  %v29686_v49 = vmax.f32 %v26139_v16, 0.0  ;;  %v29688_v28 = vmax.f32 %v26154_v2, 0.0  ;;  %12473 = vmatprep.subr.bf16.mxu0 %v20605_v41 }
 0x629   : > { %v26377_v38 = vmax.f32 %v29682_v3, %v10996_v25  ;;  %v29271_v30 = vmax.f32 %v26361_v55, 0.0  ;;  %v26395_v25 = vadd.f32 %v25901_v58, %v10415_v43  ;;  %v26405_v11 = vadd.f32 %v25908_v60, %v10417_v36  ;;  %v20603_v36 = vld [vmem:[%s29080_s5 + $0x2c0] ss:$8 sps:$4 sm:$0xff]  }
 0x62a   : > { %29685 = vst [vmem:[#allocation11_spill] sm:$0xff] %v26381_v40  ;;  %v26392_v17 = vmax.f32 %v29686_v49, %v11002_v51  ;;  %19265 = vrot.lane.b32.xlu1 %v19264_v1, %s21170_s24  ;;  %v26402_v3 = vmax.f32 %v29688_v28, %v11004_v20  ;;  %v26408_v16 = vadd.f32 %v25912_v42, %v10643_v13  ;;  %v29691_v49 = vmax.f32 %v26299_v6, 0.0  ;;  %v10425_v1 = vpop.f32.mrb[56].mxu0  ;;  %v10651_v43 = vpop.f32.mrb[72].mxu1 }
 0x62b   : > { %29683 = vst [vmem:[#allocation36_spill] sm:$0xff] %v26377_v38  ;;  %v19269_v56 = vpack.i.bf16 %v26381_v40, %v26377_v38  ;;  %v26416_v51 = vadd.f32 %v25901_v58, %v10419_v26  ;;  %v26419_v31 = vadd.f32 %v25905_v62, %v10645_v4  ;;  %v26430_v26 = vadd.f32 %v25908_v60, %v10421_v33  ;;  %v10427_v13 = vpop.f32.mrb[57].mxu0 }
 0x62c   : > { %29687 = vst [vmem:[#allocation35_spill] sm:$0xff] %v26392_v17  ;;  %29689 = vst [vmem:[#allocation75_spill] sm:$0xff] %v26402_v3  ;;  %v26412_v53 = vrot.slane %v29691_v49, 2  ;;  %v19274_v2 = vpack.i.bf16 %v26402_v3, %v26392_v17  ;;  %v29692_v4 = vmax.f32 %v26325_v44, 0.0  ;;  %v26439_v49 = vadd.f32 %v25912_v42, %v10647_v35  ;;  %v10429_v40 = vpop.f32.mrb[58].mxu0  ;;  %12474 = vmatpush1.bf16.msra.mxu0 %v20603_v36 }
 0x62d   : > { %29690 = vst [vmem:[#allocation76_spill] sm:$0xff] %v26408_v16  ;;  %19270 = vrot.lane.b32.xlu0 %v19269_v56, %s21170_s24  ;;  %v26443_v20 = vrot.slane %v29271_v30, 2  ;;  %v29695_v41 = vmax.f32 %v26395_v25, 0.0  ;;  %v11006_v35 = vsel %vm7289_vm2, %v26188_v8, %v26216_v47  ;;  %v10653_v56 = vpop.f32.mrb[73].mxu1  ;;  %v29697_v3 = vmax.f32 %v26408_v16, 0.0  ;;  %v10431_v10 = vpop.f32.mrb[59].mxu0 }
 0x62e   : > { %v26434_v57 = vrot.slane %v29692_v4, 2  ;;  %29694 = vst [vmem:[#allocation15_spill] sm:$0xff] %v26439_v49  ;;  %19275 = vrot.lane.b32.xlu1 %v19274_v2, %s21170_s24  ;;  %v29696_v4 = vmax.f32 %v26405_v11, 0.0  ;;  %v29699_v2 = vmax.f32 %v26416_v51, 0.0  ;;  %v10655_v38 = vpop.f32.mrb[74].mxu1  ;;  %v29700_v8 = vmax.f32 %v26419_v31, 0.0 }
 0x62f   : > { %v26448_v33 = vrot.slane %v29695_v41, 2  ;;  %v26459_v30 = vrot.slane %v29697_v3, 2  ;;  %v29701_v3 = vmax.f32 %v26147_v14, 0.0  ;;  %v11012_v41 = vsel %vm7289_vm2, %v26303_v52, %v26322_v5  ;;  %v20606_v36 = vld [vmem:[%s29080_s5 + $0x2d0] ss:$8 sps:$4 sm:$0xff]  }
 0x630   : > { %29693 = vst [vmem:[#allocation34_spill] sm:$0xff] %v26434_v57  ;;  %v26452_v28 = vrot.slane %v29696_v4, 2  ;;  %v26463_v17 = vrot.slane %v29699_v2, 2  ;;  %v11010_v4 = vsel %vm7289_vm2, %v26209_v54, %v26318_v46  ;;  %v26471_v44 = vrot.slane %v29700_v8, 2  ;;  %v10657_v54 = vpop.f32.mrb[75].mxu1 }
 0x631   : > { %29698 = vst [vmem:[#allocation41_spill] sm:$0xff] %v26459_v30  ;;  %v26475_v16 = vmax.f32 %v29701_v3, %v11006_v35  ;;  %v29703_v2 = vmax.f32 %v26164_v23, 0.0  ;;  %v20608_v8 = vld [vmem:[%s29080_s5 + $0x2d4] ss:$8 sps:$4 sm:$0xff]   ;;  %v11014_v23 = vsel %vm7289_vm2, %v26216_v47, %v26313_v45  ;;  %v29705_v35 = vmax.f32 %v26184_v22, 0.0 }
 0x632   : > { %v26499_v52 = vadd.f32 %v25905_v62, %v10651_v43  ;;  %v20611_v3 = vld [vmem:[%s29080_s5 + $0x2e4] ss:$8 sps:$4 sm:$0xff]   ;;  %v29707_v14 = vmax.f32 %v26175_v18, 0.0  ;;  %v11018_v22 = vsel %vm7289_vm2, %v26318_v46, %v26340_v27  ;;  %v11020_v47 = vsel %vm7289_vm2, %v26322_v5, %v26412_v53  ;;  %12475 = vmatprep.subr.bf16.mxu0 %v20608_v8 }
 0x633   : > { %29702 = vst [vmem:[#allocation40_spill] sm:$0xff] %v26475_v16  ;;  %v26479_v30 = vmax.f32 %v29703_v2, %v11010_v4  ;;  %v26496_v4 = vmax.f32 %v29705_v35, %v11012_v41  ;;  %v29709_v41 = vmax.f32 %v26264_v59, 0.0  ;;  %12476 = vmatpush1.bf16.msra.mxu0 %v20606_v36  ;;  %v26532_v46 = vadd.f32 %v25908_v60, %v10427_v13  ;;  %v10661_v13 = vpop.f32.mrb[76].mxu1 }
 0x634   : > { %v26508_v57 = vmax.f32 %v29707_v14, %v11014_v23  ;;  %v26526_v14 = vadd.f32 %v25901_v58, %v10425_v1  ;;  %v26535_v59 = vadd.f32 %v25912_v42, %v10653_v56  ;;  %v26538_v8 = vadd.f32 %v25901_v58, %v10429_v40  ;;  %12548 = vmatprep.subr.bf16.mxu0 %v20611_v3 }
 0x635   : > { %29704 = vst [vmem:[#allocation14_spill] sm:$0xff] %v26479_v30  ;;  %29706 = vst [vmem:[#allocation39_spill] sm:$0xff] %v26496_v4  ;;  %v19279_v2 = vpack.i.bf16 %v26479_v30, %v26475_v16  ;;  %v26519_v35 = vmax.f32 %v29709_v41, %v11018_v22  ;;  %v29711_v16 = vmax.f32 %v26277_v32, 0.0  ;;  %v10435_v32 = vpop.f32.mrb[60].mxu0  ;;  %v26555_v41 = vadd.f32 %v25908_v60, %v10431_v10 }
 0x636   : > { %29708 = vst [vmem:[#allocation38_spill] sm:$0xff] %v26508_v57  ;;  %v19284_v5 = vpack.i.bf16 %v26508_v57, %v26496_v4  ;;  %29713 = vst [vmem:[#allocation43_spill] sm:$0xff] %v26535_v59  ;;  %v10437_v22 = vpop.f32.mrb[61].mxu0  ;;  %v29715_v23 = vmax.f32 %v26439_v49, 0.0  ;;  %v26563_v3 = vadd.f32 %v25912_v42, %v10657_v54  ;;  %v29717_v10 = vmax.f32 %v26499_v52, 0.0 }
 0x637   : > { %29710 = vst [vmem:[#allocation45_spill] sm:$0xff] %v26519_v35  ;;  %v26523_v18 = vmax.f32 %v29711_v16, %v11020_v47  ;;  %19280 = vrot.lane.b32.xlu0 %v19279_v2, %s21170_s24  ;;  %v29714_v16 = vmax.f32 %v26430_v26, 0.0  ;;  %v26548_v2 = vadd.f32 %v25905_v62, %v10655_v38  ;;  %v10439_v43 = vpop.f32.mrb[62].mxu0  ;;  %v29719_v57 = vmax.f32 %v26532_v46, 0.0 }
 0x638   : > { %19285 = vrot.lane.b32.xlu1 %v19284_v5, %s21170_s24  ;;  %v26559_v38 = vrot.slane %v29715_v23, 2  ;;  %v11022_v5 = vsel %vm7289_vm2, %v26313_v45, %v26344_v48  ;;  %v10441_v47 = vpop.f32.mrb[63].mxu0  ;;  %v26570_v40 = vrot.slane %v29717_v10, 2  ;;  %v29718_v23 = vmax.f32 %v26526_v14, 0.0 }
 0x639   : > { %29712 = vst [vmem:[#allocation44_spill] sm:$0xff] %v26523_v18  ;;  %v26542_v1 = vrot.slane %v29714_v16, 2  ;;  %v19289_v36 = vpack.i.bf16 %v26523_v18, %v26519_v35  ;;  %v10663_v16 = vpop.f32.mrb[77].mxu1  ;;  %v11043_v35 = vrot.slane %v29719_v57, 2  ;;  %v29720_v54 = vmax.f32 %v26535_v59, 0.0 }
 0x63a   : > { %29716 = vst [vmem:[#allocation42_spill] sm:$0xff] %v26559_v38  ;;  %v10665_v56 = vpop.f32.mrb[78].mxu1  ;;  %v11041_v18 = vrot.slane %v29718_v23, 2  ;;  %v29722_v45 = vmax.f32 %v26538_v8, 0.0  ;;  %v29723_v23 = vmax.f32 %v26254_v12, 0.0  ;;  %v29724_v57 = vmax.f32 %v26548_v2, 0.0 }
 0x63b   : > { %19290 = vrot.lane.b32.xlu0 %v19289_v36, %s21170_s24  ;;  %v26579_v4 = vrot.slane %v29720_v54, 2  ;;  %v10667_v30 = vpop.f32.mrb[79].mxu1  ;;  %v11026_v36 = vsel %vm7289_vm2, %v26340_v27, %v26448_v33  ;;  %v29725_v54 = vmax.f32 %v26285_v50, 0.0  ;;  %v11030_v27 = vsel %vm7289_vm2, %v26344_v48, %v26443_v20 }
 0x63c   : > { %v26583_v49 = vrot.slane %v29722_v45, 2  ;;  %v26591_v38 = vmax.f32 %v29723_v23, %v11022_v5  ;;  %v26595_v59 = vrot.slane %v29724_v57, 2  ;;  %v11028_v45 = vsel %vm7289_vm2, %v26412_v53, %v26452_v28 }
 0x63d   : > { %29721 = vst [vmem:[#allocation49_spill] sm:$0xff] %v26579_v4  ;;  %v26599_v4 = vmax.f32 %v29725_v54, %v11026_v36  ;;  %v29726_v5 = vmax.f32 %v26299_v6, 0.0  ;;  %v29727_v57 = vmax.f32 %v26288_v34, 0.0  ;;  %v26617_v50 = vadd.f32 %v25905_v62, %v10661_v13 }
 0x63e   : > { %v11034_v48 = vsel %vm7289_vm2, %v26448_v33, %v26463_v17  ;;  %v11036_v6 = vsel %vm7289_vm2, %v26452_v28, %v26542_v1  ;;  %v10812_v36 = vadd.f32 %v25901_v58, %v10435_v32  ;;  %v29728_v13 = vmax.f32 %v26395_v25, 0.0 }
 0x63f   : > { %v26610_v23 = vmax.f32 %v29726_v5, %v11028_v45  ;;  %v26614_v10 = vmax.f32 %v29727_v57, %v11030_v27  ;;  %v19294_v53 = vpack.i.bf16 %v26599_v4, %v26591_v38  ;;  %v10878_v54 = vmax.f32 %v26617_v50, 0.0 }
 0x640   : > { %v26633_v45 = vmax.f32 %v29728_v13, %v11034_v48  ;;  %v29729_v27 = vmax.f32 %v26405_v11, 0.0  ;;  %v10876_v33 = vmax.f32 %v10812_v36, 0.0  ;;  %v10813_v28 = vadd.f32 %v25908_v60, %v10437_v22 }
 0x641   : > { %v19299_v34 = vpack.i.bf16 %v26614_v10, %v26610_v23  ;;  %19295 = vrot.lane.b32.xlu1 %v19294_v53, %s21170_s24  ;;  %v26642_v32 = vadd.f32 %v25912_v42, %v10663_v16  ;;  %v10816_v57 = vadd.f32 %v25901_v58, %v10439_v43  ;;  %v29730_v50 = vmax.f32 %v26555_v41, 0.0 }
 0x642   : > { %v26637_v5 = vmax.f32 %v29729_v27, %v11036_v6  ;;  %v10818_v11 = vadd.f32 %v25905_v62, %v10665_v56  ;;  %v10817_v53 = vadd.f32 %v25908_v60, %v10441_v47  ;;  %v29731_v48 = vmax.f32 %v26563_v3, 0.0 }
 0x643   : > { %v11051_v12 = vrot.slane %v29730_v50, 2  ;;  %19300 = vrot.lane.b32.xlu0 %v19299_v34, %s21170_s24  ;;  %v11061_v16 = vrot.slane %v10878_v54, 2  ;;  %v10877_v6 = vmax.f32 %v10813_v28, 0.0  ;;  %v10880_v36 = vmax.f32 %v10816_v57, 0.0 }
 0x644   : > { %v19304_v25 = vpack.i.bf16 %v26637_v5, %v26633_v45  ;;  %v26654_v22 = vrot.slane %v29731_v48, 2  ;;  %v10882_v58 = vmax.f32 %v10818_v11, 0.0  ;;  %v10881_v43 = vmax.f32 %v10817_v53, 0.0 }
 0x645   : > { %v10819_v13 = vadd.f32 %v25912_v42, %v10667_v30  ;;  %v11038_v34 = vsel %vm7289_vm2, %v26443_v20, %v26471_v44  ;;  %v11057_v62 = vrot.slane %v10876_v33, 2  ;;  %v10879_v60 = vmax.f32 %v26642_v32, 0.0 }
 0x646   : > { %19305 = vrot.lane.b32.xlu1 %v19304_v25, %s21170_s24  ;;  %v11065_v56 = vrot.slane %v10880_v36, 2  ;;  %v11042_v47 = vsel %vm7289_vm2, %v26463_v17, %v11041_v18  ;;  %v11059_v27 = vrot.slane %v10877_v6, 2  ;;  %v11069_v28 = vrot.slane %v10882_v58, 2 }
 0x647   : > { %v11067_v57 = vrot.slane %v10881_v43, 2  ;;  %v29732_v50 = vmax.f32 %v26361_v55, 0.0  ;;  %v29733_v30 = vmax.f32 %v26416_v51, 0.0  ;;  %v11044_v25 = vsel %vm7289_vm2, %v26542_v1, %v11043_v35 }
 0x648   : > { %v11066_v42 = vsel %vm7289_vm2, %v11057_v62, %v11065_v56  ;;  %v11046_v17 = vsel %vm7289_vm2, %v26471_v44, %v26570_v40  ;;  %v10883_v48 = vmax.f32 %v10819_v13, 0.0  ;;  %v29734_v55 = vmax.f32 %v26430_v26, 0.0 }
 0x649   : > { %v26666_v11 = vmax.f32 %v29732_v50, %v11038_v34  ;;  %v26671_v20 = vmax.f32 %v29733_v30, %v11042_v47  ;;  %v11068_v53 = vsel %vm7289_vm2, %v11059_v27, %v11067_v57  ;;  %v29735_v58 = vmax.f32 %v26419_v31, 0.0 }
 0x64a   : > { %v26681_v36 = vmax.f32 %v29734_v55, %v11044_v25  ;;  %v11050_v1 = vsel %vm7289_vm2, %v11041_v18, %v26583_v49  ;;  %v11052_v34 = vsel %vm7289_vm2, %v11043_v35, %v11051_v12  ;;  %v11054_v44 = vsel %vm7289_vm2, %v26570_v40, %v26595_v59 }
 0x64b   : > { %v26685_v43 = vmax.f32 %v29735_v58, %v11046_v17  ;;  %v19309_v51 = vpack.i.bf16 %v26671_v20, %v26666_v11  ;;  %v29736_v13 = vmax.f32 %v26526_v14, 0.0  ;;  %v29737_v56 = vmax.f32 %v26532_v46, 0.0 }
 0x64c   : > { %v11058_v18 = vsel %vm7289_vm2, %v26583_v49, %v11057_v62  ;;  %v29738_v35 = vmax.f32 %v26499_v52, 0.0  ;;  %v29739_v40 = vmax.f32 %v26538_v8, 0.0  ;;  %v11060_v14 = vsel %vm7289_vm2, %v11051_v12, %v11059_v27 }
 0x64d   : > { %v19314_v26 = vpack.i.bf16 %v26685_v43, %v26681_v36  ;;  %v26699_v31 = vmax.f32 %v29736_v13, %v11050_v1  ;;  %v26703_v47 = vmax.f32 %v29737_v56, %v11052_v34  ;;  %19310 = vrot.lane.b32.xlu0 %v19309_v51, %s21170_s24  ;;  %v11062_v46 = vsel %vm7289_vm2, %v26595_v59, %v11061_v16  ;;  %v29748_v1 = vld [vmem:[#allocation68_spill] sm:$0xff]  ;;  %v29751_v13 = vld [vmem:[#allocation30_spill] sm:$0xff] }
 0x64e   : > { %v26710_v57 = vmax.f32 %v29738_v35, %v11054_v44  ;;  %v26714_v50 = vmax.f32 %v29739_v40, %v11058_v18  ;;  %v29740_v62 = vmax.f32 %v26555_v41, 0.0  ;;  %v29741_v52 = vmax.f32 %v26548_v2, 0.0  ;;  %v29750_v44 = vld [vmem:[#allocation31_spill] sm:$0xff]  ;;  %v29752_v56 = vld [vmem:[#allocation28_spill] sm:$0xff] }
 0x64f   : > { %19315 = vrot.lane.b32.xlu1 %v19314_v26, %s21170_s24  ;;  %v19319_v49 = vpack.i.bf16 %v26703_v47, %v26699_v31  ;;  %v26730_v8 = vmax.f32 %v10876_v33, %v11066_v42  ;;  %v26734_v27 = vmax.f32 %v10877_v6, %v11068_v53  ;;  %v11070_v59 = vsel %vm7289_vm2, %v11061_v16, %v11069_v28 }
 0x650   : > { %v26724_v30 = vmax.f32 %v29740_v62, %v11060_v14  ;;  %v26728_v25 = vmax.f32 %v29741_v52, %v11062_v46  ;;  %v19324_v12 = vpack.i.bf16 %v26714_v50, %v26710_v57  ;;  %v10960_v17 = vsel %vm7289_vm2, %v25957_v15, %v26014_v19  ;;  %v29755_v14 = vld [vmem:[#allocation29_spill] sm:$0xff]  ;;  %v29758_v62 = vld [vmem:[#allocation10_spill] sm:$0xff] }
 0x651   : > { %v26742_v55 = vmax.f32 %v10878_v54, %v11070_v59  ;;  %v10968_v2 = vsel %vm7289_vm2, %v26014_v19, %v26018_v63  ;;  %v29743_v33 = vmax.f32 %v25926_v24, 0.0  ;;  %19320 = vrot.lane.b32.xlu0 %v19319_v49, %s21170_s24  ;;  %v19334_v16 = vpack.i.bf16 %v26734_v27, %v26730_v8  ;;  %v29760_v59 = vld [vmem:[#allocation32_spill] sm:$0xff] }
 0x652   : > { %v19329_v41 = vpack.i.bf16 %v26728_v25, %v26724_v30  ;;  %v29744_v15 = vmax.f32 %v25944_v0, 0.0  ;;  %v10976_v54 = vsel %vm7289_vm2, %v26018_v63, %v26077_v7  ;;  %v10984_v19 = vsel %vm7289_vm2, %v26077_v7, %v26104_v39 }
 0x653   : > { %29742 = vst [vmem:[#allocation48_spill] sm:$0xff] %v26742_v55  ;;  %v26749_v42 = vmax.f32 %v29743_v33, %v10960_v17  ;;  %19325 = vrot.lane.b32.xlu1 %v19324_v12, %s21170_s24  ;;  %v29745_v24 = vmax.f32 %v25982_v21, 0.0  ;;  %v29746_v53 = vmax.f32 %v26002_v9, 0.0  ;;  %v10992_v0 = vsel %vm7289_vm2, %v26104_v39, %v26179_v37  ;;  %v29762_v33 = vld [vmem:[#allocation42_spill] sm:$0xff] }
 0x654   : > { %v26756_v6 = vmax.f32 %v29744_v15, %v10968_v2  ;;  %v11000_v63 = vsel %vm7289_vm2, %v26179_v37, %v26205_v29  ;;  %v11063_v7 = vrot.slane %v10879_v60, 2  ;;  %v29747_v51 = vmax.f32 %v26060_v61, 0.0  ;;  %v29754_v61 = vld [vmem:[#allocation34_spill] sm:$0xff]  ;;  %v29763_v15 = vld [vmem:[#allocation49_spill] sm:$0xff] }
 0x655   : > { %v26767_v28 = vmax.f32 %v29745_v24, %v10976_v54  ;;  %v26771_v58 = vmax.f32 %v29746_v53, %v10984_v19  ;;  %v29749_v34 = vmax.f32 %v29748_v1, 0.0  ;;  %v11008_v26 = vsel %vm7289_vm2, %v26205_v29, %v29750_v44  ;;  %19330 = vrot.lane.b32.xlu0 %v19329_v41, %s21170_s24  ;;  %v29757_v29 = vld [vmem:[#allocation41_spill] sm:$0xff]  ;;  %v29764_v24 = vld [vmem:[#allocation76_spill] sm:$0xff] }
 0x656   : > { %v26783_v21 = vmax.f32 %v29747_v51, %v10992_v0  ;;  %v11071_v39 = vrot.slane %v10883_v48, 2  ;;  %v11016_v37 = vsel %vm7289_vm2, %v29750_v44, %v29751_v13  ;;  %v29753_v18 = vmax.f32 %v29752_v56, 0.0  ;;  %v29768_v44 = vld [vmem:[#allocation43_spill] sm:$0xff] }
 0x657   : > { %v26787_v9 = vmax.f32 %v29749_v34, %v11000_v63  ;;  %v11024_v40 = vsel %vm7289_vm2, %v29751_v13, %v29754_v61  ;;  %v29756_v46 = vmax.f32 %v29755_v14, 0.0  ;;  %v11032_v48 = vsel %vm7289_vm2, %v29754_v61, %v29757_v29  ;;  %19335 = vrot.lane.b32.xlu1 %v19334_v16, %s21170_s24  ;;  %v29766_v16 = vld [vmem:[#allocation15_spill] sm:$0xff] }
 0x658   : > { %v26797_v35 = vmax.f32 %v29753_v18, %v11008_v26  ;;  %v29759_v52 = vmax.f32 %v29758_v62, 0.0  ;;  %v29761_v17 = vmax.f32 %v29760_v59, 0.0  ;;  %v11040_v41 = vsel %vm7289_vm2, %v29757_v29, %v29762_v33  ;;  %v29773_v59 = vld [vmem:[#allocation66_spill] sm:$0xff] }
 0x659   : > { %v26805_v49 = vmax.f32 %v29756_v46, %v11016_v37  ;;  %v11048_v54 = vsel %vm7289_vm2, %v29762_v33, %v29763_v15  ;;  %v11056_v19 = vsel %vm7289_vm2, %v29763_v15, %v26654_v22  ;;  %v29765_v53 = vmax.f32 %v29764_v24, 0.0  ;;  %11369 = vrot.lane.b32.xlu0 %v26742_v55, %s21170_s24  ;;  %v29774_v33 = vld [vmem:[#allocation26_spill] sm:$0xff] }
 0x65a   : > { %v26812_v12 = vmax.f32 %v29759_v52, %v11024_v40  ;;  %v26817_v2 = vmax.f32 %v29761_v17, %v11032_v48  ;;  %v29767_v63 = vmax.f32 %v29766_v16, 0.0  ;;  %v11064_v1 = vsel %vm7289_vm2, %v26654_v22, %v11063_v7 }
 0x65b   : > { %v26830_v0 = vmax.f32 %v29765_v53, %v11040_v41  ;;  %v19339_v34 = vpack.i.bf16 %v26756_v6, %v26749_v42  ;;  %v29769_v26 = vmax.f32 %v29768_v44, 0.0  ;;  %v29771_v37 = vmax.f32 %v26563_v3, 0.0 }
 0x65c   : > { %v26834_v51 = vmax.f32 %v29767_v63, %v11048_v54  ;;  %v11072_v18 = vsel %vm7289_vm2, %v11063_v7, %v11071_v39  ;;  %v19344_v22 = vpack.i.bf16 %v26771_v58, %v26767_v28  ;;  %v19349_v40 = vpack.i.bf16 %v26787_v9, %v26783_v21 }
 0x65d   : > { %v26842_v13 = vmax.f32 %v29769_v26, %v11056_v19  ;;  %v26846_v56 = vmax.f32 %v29771_v37, %v11064_v1  ;;  %v26853_v61 = vmax.f32 %v10879_v60, %v11072_v18  ;;  %19340 = vrot.lane.b32.xlu1 %v19339_v34, %s21170_s24  ;;  %v19354_v3 = vpack.i.bf16 %v26805_v49, %v26797_v35  ;;  %v29775_v34 = vld [vmem:[#allocation67_spill] sm:$0xff]  ;;  %v29777_v26 = vld [vmem:[#allocation69_spill] sm:$0xff] }
 0x65e   : > { %19345 = vrot.lane.b32.xlu0 %v19344_v22, %s21170_s24  ;;  %v19359_v32 = vpack.i.bf16 %v26817_v2, %v26812_v12  ;;  %v19364_v60 = vpack.i.bf16 %v26834_v51, %v26830_v0 }
 0x65f   : > { %29770 = vst [vmem:[#allocation47_spill] sm:$0xff] %v26842_v13  ;;  %29772 = vst [vmem:[#allocation46_spill] sm:$0xff] %v26853_v61  ;;  %v19369_v7 = vpack.i.bf16 %v26846_v56, %v26842_v13 }
 0x661   : > { %19350 = vrot.lane.b32.xlu1 %v19349_v40, %s21170_s24 }
 0x662   : > { %19355 = vrot.lane.b32.xlu0 %v19354_v3, %s21170_s24 }
 0x665   : > { %19360 = vrot.lane.b32.xlu1 %v19359_v32, %s21170_s24 }
 0x666   : > { %19365 = vrot.lane.b32.xlu0 %v19364_v60, %s21170_s24 }
 0x669   : > { %19370 = vrot.lane.b32.xlu1 %v19369_v7, %s21170_s24 }
 0x66a   : > { %11371 = vrot.lane.b32.xlu0 %v26853_v61, %s21170_s24 }
 0x67c   : > { %v19231_v39 = vpop.permute.xlu0 %19230 }
 0x67d   : > { %v19233_v14 = vunpack.i.h.bf16 %v19231_v39  ;;  %v19232_v46 = vunpack.i.l.bf16 %v19231_v39 }
 0x67f   : > { %v11374_v48 = vsel %vm11373_vm1, %v19232_v46, %v19233_v14 }
 0x680   : > { %v26876_v29 = vpop.permute.xlu1 %19235  ;;  %v11479_v17 = vmax.f32 %v29773_v59, %v11374_v48  ;;  %v29779_v59 = vld [vmem:[#allocation51_spill] sm:$0xff] }
 0x681   : > { %v29291_v62 = vunpack.i.l.bf16 %v26876_v29  ;;  %v19238_v15 = vunpack.i.h.bf16 %v26876_v29 }
 0x683   : > { %v11375_v52 = vsel %vm11373_vm1, %v19233_v14, %v29291_v62  ;;  %v29791_v62 = vld [vmem:[#allocation33_spill] sm:$0xff] }
 0x684   : > { %v11480_v41 = vmax.f32 %v29774_v33, %v11375_v52  ;;  %v29781_v33 = vld [vmem:[#allocation56_spill] sm:$0xff] }
 0x686   : > { %v17903_v54 = vpack.c.bf16 %v11480_v41, %v11479_v17 }
 0x687   : > { %v26886_v19 = vpop.permute.xlu0 %19240 }
 0x688   : > { %11723 = vst [vmem:[#allocation3] sm:$0xff] %v17903_v54  ;;  %v29292_v24 = vunpack.i.h.bf16 %v26886_v19  ;;  %v19242_v53 = vunpack.i.l.bf16 %v26886_v19 }
 0x689   : > { %v19246_v16 = vpop.permute.xlu1 %19245 }
 0x68a   : > { %v11377_v63 = vsel %vm11373_vm1, %v19238_v15, %v19242_v53  ;;  %v11378_v1 = vsel %vm11373_vm1, %v19242_v53, %v29292_v24  ;;  %v19248_v18 = vunpack.i.h.bf16 %v19246_v16  ;;  %v19247_v22 = vunpack.i.l.bf16 %v19246_v16 }
 0x68b   : > { %v26895_v44 = vmax.f32 %v29775_v34, %v11377_v63  ;;  %v26898_v37 = vmax.f32 %v29777_v26, %v11378_v1  ;;  %v29783_v63 = vld [vmem:[#allocation72_spill] sm:$0xff]  ;;  %v29785_v34 = vld [vmem:[#allocation73_spill] sm:$0xff] }
 0x68c   : > { %v11380_v32 = vsel %vm11373_vm1, %v19247_v22, %v19248_v18 }
 0x68d   : > { %29776 = vst [vmem:[#allocation53_spill] sm:$0xff] %v26895_v44  ;;  %29778 = vst [vmem:[#allocation54_spill] sm:$0xff] %v26898_v37  ;;  %v17905_v40 = vpack.c.bf16 %v26898_v37, %v26895_v44  ;;  %v26915_v17 = vmax.f32 %v29779_v59, %v11380_v32 }
 0x68f   : > { %11727 = vst [vmem:[#allocation3 + $0x10] sm:$0xff] %v17905_v40  ;;  %v11856_v14 = vld [vmem:[#allocation3] sm:$0xcc]  ;;  %29780 = vst [vmem:[#allocation52_spill] sm:$0xff] %v26915_v17 }
 0x690   : > { %v17362_v16 = vcombine.low %v11856_v14, %v17905_v40 }
 0x691   : > { %v26902_v3 = vpop.permute.xlu0 %19250 }
 0x692   : > { %v19253_v60 = vunpack.i.h.bf16 %v26902_v3  ;;  %v29289_v7 = vunpack.i.l.bf16 %v26902_v3  ;;  %v26907_v39 = vpop.permute.xlu1 %19255 }
 0x693   : > { %v29290_v48 = vunpack.i.h.bf16 %v26907_v39  ;;  %v19257_v52 = vunpack.i.l.bf16 %v26907_v39 }
 0x694   : > { %v11381_v46 = vsel %vm11373_vm1, %v19248_v18, %v29289_v7  ;;  %v17363_v18 = vcombine.high %v11856_v14, %v17905_v40  ;;  %v29789_v7 = vld [vmem:[#allocation12_spill] sm:$0xff] }
 0x695   : > { %v26918_v41 = vmax.f32 %v29781_v33, %v11381_v46  ;;  %v19261_v15 = vpop.permute.xlu0 %19260  ;;  %v11383_v54 = vsel %vm11373_vm1, %v19253_v60, %v19257_v52  ;;  %v11384_v53 = vsel %vm11373_vm1, %v19257_v52, %v29290_v48  ;;  %v12042_v33 = vrot.slane %v17362_v16, 2 }
 0x696   : > { %v26925_v1 = vmax.f32 %v29783_v63, %v11383_v54  ;;  %v26928_v26 = vmax.f32 %v29785_v34, %v11384_v53  ;;  %v19263_v22 = vunpack.i.h.bf16 %v19261_v15  ;;  %v19262_v32 = vunpack.i.l.bf16 %v19261_v15 }
 0x697   : > { %29782 = vst [vmem:[#allocation60_spill] sm:$0xff] %v26918_v41  ;;  %v12045_v54 = vrot.slane %v17363_v18, 2 }
 0x698   : > { %29784 = vst [vmem:[#allocation50_spill] sm:$0xff] %v26925_v1  ;;  %29786 = vst [vmem:[#allocation58_spill] sm:$0xff] %v26928_v26  ;;  %v26938_v52 = vpack.c.bf16 %v26928_v26, %v26918_v41  ;;  %v26942_v53 = vpack.c.bf16 %v26925_v1, %v26915_v17  ;;  %v11386_v40 = vsel %vm11373_vm1, %v19262_v32, %v19263_v22  ;;  %v20609_v32 = vld [vmem:[%s29080_s5 + $0x2e0] ss:$8 sps:$4 sm:$0xff]  }
 0x699   : > { %v26960_v48 = vmax.f32 %v29789_v7, %v11386_v40  ;;  %v29793_v7 = vld [vmem:[#allocation37_spill] sm:$0xff] }
 0x69a   : > { %29787 = vst [vmem:[#allocation57_spill] sm:$0xff] %v26938_v52  ;;  %29788 = vst [vmem:[#allocation55_spill] sm:$0xff] %v26942_v53  ;;  %v12046_v34 = vrot.slane %v26938_v52, 2  ;;  %v12043_v60 = vrot.slane %v26942_v53, 2  ;;  %v20612_v53 = vld [vmem:[%s29080_s5 + $0x2f0] ss:$8 sps:$4 sm:$0xff]  }
 0x69b   : > { %29790 = vst [vmem:[#allocation62_spill] sm:$0xff] %v26960_v48 }
 0x69c   : > { %v26934_v59 = vpop.permute.xlu1 %19265  ;;  %v12047_v17 = vsel %vm7289_vm2, %v12045_v54, %v12046_v34  ;;  %v12044_v37 = vsel %vm7289_vm2, %v12042_v33, %v12043_v60 }
 0x69d   : > { %v19268_v14 = vunpack.i.h.bf16 %v26934_v59  ;;  %v29296_v15 = vunpack.i.l.bf16 %v26934_v59  ;;  %12477 = vmatprep.mubr.bf16.mxu0 %v12047_v17 }
 0x69e   : > { %12478 = vmatmul.mubr.bf16.vlgmr.msra.gmra.mrb[64].mxu0 %v12044_v37 }
 0x69f   : > { %v26947_v63 = vpop.permute.xlu0 %19270  ;;  %v11387_v16 = vsel %vm11373_vm1, %v19263_v22, %v29296_v15  ;;  %v20614_v22 = vld [vmem:[%s29080_s5 + $0x2f4] ss:$8 sps:$4 sm:$0xff]   ;;  %12549 = vmatpush1.bf16.msra.mxu0 %v20609_v32 }
 0x6a0   : > { %v29299_v18 = vunpack.i.h.bf16 %v26947_v63  ;;  %v19272_v46 = vunpack.i.l.bf16 %v26947_v63  ;;  %v26963_v24 = vmax.f32 %v29791_v62, %v11387_v16  ;;  %v19276_v44 = vpop.permute.xlu1 %19275  ;;  %v29795_v62 = vld [vmem:[#allocation36_spill] sm:$0xff]  ;;  %12550 = vmatprep.subr.bf16.mxu0 %v20614_v22 }
 0x6a1   : > { %v19278_v54 = vunpack.i.h.bf16 %v19276_v44  ;;  %v19277_v33 = vunpack.i.l.bf16 %v19276_v44 }
 0x6a2   : > { %29792 = vst [vmem:[#allocation61_spill] sm:$0xff] %v26963_v24  ;;  %v11389_v15 = vsel %vm11373_vm1, %v19268_v14, %v19272_v46  ;;  %v11390_v41 = vsel %vm11373_vm1, %v19272_v46, %v29299_v18  ;;  %v20617_v46 = vld [vmem:[%s29080_s5 + $0x304] ss:$8 sps:$4 sm:$0xff]  }
 0x6a3   : > { %v26975_v40 = vmax.f32 %v29793_v7, %v11389_v15  ;;  %v26978_v16 = vmax.f32 %v29795_v62, %v11390_v41  ;;  %v11392_v15 = vsel %vm11373_vm1, %v19277_v33, %v19278_v54  ;;  %12551 = vmatpush1.bf16.msra.mxu0 %v20612_v53  ;;  %v20615_v7 = vld [vmem:[%s29080_s5 + $0x300] ss:$8 sps:$4 sm:$0xff]   ;;  %v20620_v33 = vld [vmem:[%s29080_s5 + $0x314] ss:$8 sps:$4 sm:$0xff]  }
 0x6a4   : > { %12552 = vmatprep.subr.bf16.mxu0 %v20617_v46 }
 0x6a5   : > { %29794 = vst [vmem:[#allocation63_spill] sm:$0xff] %v26975_v40  ;;  %29796 = vst [vmem:[#allocation59_spill] sm:$0xff] %v26978_v16  ;;  %v26994_v44 = vpack.c.bf16 %v26978_v16, %v26963_v24  ;;  %v26998_v37 = vpack.c.bf16 %v26975_v40, %v26960_v48  ;;  %v29799_v48 = vld [vmem:[#allocation35_spill] sm:$0xff]  ;;  %v29811_v16 = vld [vmem:[#allocation44_spill] sm:$0xff] }
 0x6a6   : > { %v27019_v26 = vmax.f32 %v29799_v48, %v11392_v15  ;;  %v29801_v24 = vld [vmem:[#allocation75_spill] sm:$0xff] }
 0x6a7   : > { %29797 = vst [vmem:[#allocation65_spill] sm:$0xff] %v26994_v44  ;;  %29798 = vst [vmem:[#allocation25_spill] sm:$0xff] %v26998_v37  ;;  %v12056_v41 = vrot.slane %v26994_v44, 2  ;;  %v12054_v17 = vrot.slane %v26998_v37, 2  ;;  %12553 = vmatpush1.bf16.msra.mxu0 %v20615_v7  ;;  %v20618_v48 = vld [vmem:[%s29080_s5 + $0x310] ss:$8 sps:$4 sm:$0xff]  }
 0x6a8   : > { %29800 = vst [vmem:[#allocation24_spill] sm:$0xff] %v27019_v26  ;;  %v29805_v15 = vld [vmem:[#allocation39_spill] sm:$0xff]  ;;  %12554 = vmatprep.subr.bf16.mxu0 %v20620_v33 }
 0x6a9   : > { %v26990_v14 = vpop.permute.xlu0 %19280  ;;  %v12057_v37 = vsel %vm7289_vm2, %v12046_v34, %v12056_v41  ;;  %v12055_v52 = vsel %vm7289_vm2, %v12043_v60, %v12054_v17 }
 0x6aa   : > { %v19283_v32 = vunpack.i.h.bf16 %v26990_v14  ;;  %v29308_v22 = vunpack.i.l.bf16 %v26990_v14  ;;  %v27006_v62 = vpop.permute.xlu1 %19285  ;;  %12487 = vmatprep.mubr.bf16.mxu0 %v12057_v37 }
 0x6ab   : > { %v29309_v53 = vunpack.i.h.bf16 %v27006_v62  ;;  %v19287_v1 = vunpack.i.l.bf16 %v27006_v62  ;;  %12488 = vmatmul.mubr.bf16.gmra.mrb[68].mxu0 %v12055_v52 }
 0x6ac   : > { %v11393_v18 = vsel %vm11373_vm1, %v19278_v54, %v29308_v22  ;;  %12555 = vmatpush1.bf16.msra.mxu0 %v20618_v48 }
 0x6ad   : > { %v27022_v44 = vmax.f32 %v29801_v24, %v11393_v18  ;;  %v19291_v46 = vpop.permute.xlu0 %19290  ;;  %v11395_v61 = vsel %vm11373_vm1, %v19283_v32, %v19287_v1  ;;  %v11396_v54 = vsel %vm11373_vm1, %v19287_v1, %v29309_v53  ;;  %v29803_v24 = vld [vmem:[#allocation14_spill] sm:$0xff]  ;;  %v20623_v1 = vld [vmem:[%s29080_s5 + $0x324] ss:$8 sps:$4 sm:$0xff]  }
 0x6ae   : > { %v19293_v22 = vunpack.i.h.bf16 %v19291_v46  ;;  %v27034_v18 = vmax.f32 %v29803_v24, %v11395_v61  ;;  %v27037_v34 = vmax.f32 %v29805_v15, %v11396_v54  ;;  %v19292_v60 = vunpack.i.l.bf16 %v19291_v46  ;;  %v20621_v61 = vld [vmem:[%s29080_s5 + $0x320] ss:$8 sps:$4 sm:$0xff]   ;;  %12556 = vmatprep.subr.bf16.mxu0 %v20623_v1  ;;  %v20626_v54 = vld [vmem:[%s29080_s5 + $0x334] ss:$8 sps:$4 sm:$0xff]  }
 0x6af   : > { %29802 = vst [vmem:[#allocation23_spill] sm:$0xff] %v27022_v44  ;;  %v29809_v53 = vld [vmem:[#allocation45_spill] sm:$0xff] }
 0x6b0   : > { %29804 = vst [vmem:[#allocation64_spill] sm:$0xff] %v27034_v18  ;;  %29806 = vst [vmem:[#allocation77_spill] sm:$0xff] %v27037_v34  ;;  %v11398_v7 = vsel %vm11373_vm1, %v19292_v60, %v19293_v22  ;;  %v27054_v52 = vpack.c.bf16 %v27037_v34, %v27022_v44  ;;  %v27058_v33 = vpack.c.bf16 %v27034_v18, %v27019_v26  ;;  %12557 = vmatpush1.bf16.msra.mxu0 %v20621_v61 }
 0x6b1   : > { %v27072_v40 = vmax.f32 %v29809_v53, %v11398_v7  ;;  %v20624_v53 = vld [vmem:[%s29080_s5 + $0x330] ss:$8 sps:$4 sm:$0xff]   ;;  %12558 = vmatprep.subr.bf16.mxu0 %v20626_v54  ;;  %v20627_v7 = vld [vmem:[%s29080_s5 + $0x340] ss:$8 sps:$4 sm:$0xff]  }
 0x6b2   : > { %29807 = vst [vmem:[#allocation16_spill] sm:$0xff] %v27054_v52  ;;  %29808 = vst [vmem:[#allocation17_spill] sm:$0xff] %v27058_v33  ;;  %v12064_v1 = vrot.slane %v27054_v52, 2  ;;  %v12062_v37 = vrot.slane %v27058_v33, 2 }
 0x6b3   : > { %v27050_v46 = vpop.permute.xlu1 %19295  ;;  %29810 = vst [vmem:[#allocation18_spill] sm:$0xff] %v27072_v40 }
 0x6b4   : > { %v19298_v48 = vunpack.i.h.bf16 %v27050_v46  ;;  %v29318_v24 = vunpack.i.l.bf16 %v27050_v46  ;;  %v12065_v33 = vsel %vm7289_vm2, %v12056_v41, %v12064_v1  ;;  %v12063_v41 = vsel %vm7289_vm2, %v12054_v17, %v12062_v37  ;;  %12559 = vmatpush1.bf16.msra.mxu0 %v20624_v53  ;;  %v20632_v17 = vld [vmem:[%s29080_s5 + $0x354] ss:$8 sps:$4 sm:$0xff]  }
 0x6b5   : > { %v27065_v15 = vpop.permute.xlu0 %19300  ;;  %12497 = vmatprep.mubr.bf16.mxu0 %v12065_v33 }
 0x6b6   : > { %v29319_v60 = vunpack.i.h.bf16 %v27065_v15  ;;  %v19302_v32 = vunpack.i.l.bf16 %v27065_v15  ;;  %v11399_v26 = vsel %vm11373_vm1, %v19293_v22, %v29318_v24  ;;  %12498 = vmatmul.mubr.bf16.gmra.mrb[72].mxu0 %v12063_v41 }
 0x6b7   : > { %v27078_v44 = vmax.f32 %v29811_v16, %v11399_v26  ;;  %v20629_v16 = vld [vmem:[%s29080_s5 + $0x344] ss:$8 sps:$4 sm:$0xff]  }
 0x6b8   : > { %v11401_v55 = vsel %vm11373_vm1, %v19298_v48, %v19302_v32  ;;  %v11402_v13 = vsel %vm11373_vm1, %v19302_v32, %v29319_v60  ;;  %v19306_v52 = vpop.permute.xlu1 %19305  ;;  %12560 = vmatprep.subr.bf16.mxu0 %v20629_v16 }
 0x6b9   : > { %29812 = vst [vmem:[#allocation19_spill] sm:$0xff] %v27078_v44  ;;  %v27089_v22 = vmax.f32 %v26599_v4, %v11401_v55  ;;  %v27092_v26 = vmax.f32 %v26610_v23, %v11402_v13  ;;  %v19308_v32 = vunpack.i.h.bf16 %v19306_v52  ;;  %v19307_v61 = vunpack.i.l.bf16 %v19306_v52  ;;  %12561 = vmatpush1.bf16.msra.mxu0 %v20627_v7  ;;  %v20635_v7 = vld [vmem:[%s29080_s5 + $0x364] ss:$8 sps:$4 sm:$0xff]  }
 0x6ba   : > { %12562 = vmatprep.subr.bf16.mxu0 %v20632_v17 }
 0x6bb   : > { %29813 = vst [vmem:[#allocation20_spill] sm:$0xff] %v27089_v22  ;;  %29814 = vst [vmem:[#allocation21_spill] sm:$0xff] %v27092_v26  ;;  %v27107_v55 = vpack.c.bf16 %v27092_v26, %v27078_v44  ;;  %v27111_v13 = vpack.c.bf16 %v27089_v22, %v27072_v40  ;;  %v11404_v52 = vsel %vm11373_vm1, %v19307_v61, %v19308_v32  ;;  %v20630_v61 = vld [vmem:[%s29080_s5 + $0x350] ss:$8 sps:$4 sm:$0xff]  }
 0x6bc   : > { %v27143_v23 = vmax.f32 %v26633_v45, %v11404_v52  ;;  %v29833_v44 = vld [vmem:[#allocation27_spill] sm:$0xff] }
 0x6bd   : > { %29815 = vst [vmem:[#allocation22_spill] sm:$0xff] %v27107_v55  ;;  %29816 = vst [vmem:[#allocation7_spill] sm:$0xff] %v27111_v13  ;;  %v29323_v16 = vrot.slane %v27107_v55, 2  ;;  %v29324_v41 = vrot.slane %v27111_v13, 2  ;;  %12563 = vmatpush1.bf16.msra.mxu0 %v20630_v61 }
 0x6be   : > { %29817 = vst [vmem:[#allocation68_spill] sm:$0xff] %v27143_v23  ;;  %12564 = vmatprep.subr.bf16.mxu0 %v20635_v7 }
 0x6bf   : > { %v27117_v33 = vpop.permute.xlu0 %19310  ;;  %v12073_v60 = vsel %vm7289_vm2, %v12064_v1, %v29323_v16  ;;  %v12071_v18 = vsel %vm7289_vm2, %v12062_v37, %v29324_v41 }
 0x6c0   : > { %v19313_v54 = vunpack.i.h.bf16 %v27117_v33  ;;  %v29322_v48 = vunpack.i.l.bf16 %v27117_v33  ;;  %12507 = vmatprep.mubr.bf16.mxu0 %v12073_v60 }
 0x6c1   : > { %v27121_v53 = vpop.permute.xlu1 %19315  ;;  %12508 = vmatmul.mubr.bf16.gmra.mrb[76].mxu0 %v12071_v18 }
 0x6c2   : > { %v19317_v4 = vunpack.i.l.bf16 %v27121_v53  ;;  %v11405_v24 = vsel %vm11373_vm1, %v19308_v32, %v29322_v48  ;;  %v29819_v48 = vunpack.i.h.bf16 %v27121_v53 }
 0x6c3   : > { %v27146_v40 = vmax.f32 %v26637_v5, %v11405_v24  ;;  %v19321_v16 = vpop.permute.xlu0 %19320  ;;  %v20633_v24 = vld [vmem:[%s29080_s5 + $0x360] ss:$8 sps:$4 sm:$0xff]  }
 0x6c4   : > { %v11407_v32 = vsel %vm11373_vm1, %v19313_v54, %v19317_v4  ;;  %v11408_v1 = vsel %vm11373_vm1, %v19317_v4, %v29819_v48  ;;  %v19323_v41 = vunpack.i.h.bf16 %v19321_v16  ;;  %v19322_v45 = vunpack.i.l.bf16 %v19321_v16  ;;  %12565 = vmatpush1.bf16.msra.mxu0 %v20633_v24  ;;  %v20641_v24 = vld [vmem:[%s29080_s5 + $0x384] ss:$8 sps:$4 sm:$0xff]  }
 0x6c5   : > { %29818 = vst [vmem:[#allocation31_spill] sm:$0xff] %v27146_v40  ;;  %v27153_v37 = vmax.f32 %v26671_v20, %v11407_v32  ;;  %v27156_v17 = vmax.f32 %v26681_v36, %v11408_v1  ;;  %v27158_v52 = vpop.permute.xlu1 %19325  ;;  %v20638_v36 = vld [vmem:[%s29080_s5 + $0x374] ss:$8 sps:$4 sm:$0xff]  }
 0x6c6   : > { %v29325_v5 = vunpack.i.l.bf16 %v27158_v52  ;;  %v11410_v60 = vsel %vm11373_vm1, %v19322_v45, %v19323_v41  ;;  %v19328_v20 = vunpack.i.h.bf16 %v27158_v52  ;;  %12566 = vmatprep.subr.bf16.mxu0 %v20638_v36 }
 0x6c7   : > { %29820 = vst [vmem:[#allocation30_spill] sm:$0xff] %v27156_v17  ;;  %v27170_v18 = vmax.f32 %v26699_v31, %v11410_v60  ;;  %v27175_v54 = vpop.permute.xlu0 %19330  ;;  %v27188_v1 = vpack.c.bf16 %v27156_v17, %v27146_v40  ;;  %v27192_v60 = vpack.c.bf16 %v27153_v37, %v27143_v23  ;;  %v29831_v17 = vunpack.i.l.bf16 %v26876_v29 }
 0x6c8   : > { %v11411_v4 = vsel %vm11373_vm1, %v19323_v41, %v29325_v5  ;;  %v29326_v7 = vunpack.i.h.bf16 %v27175_v54  ;;  %v19332_v31 = vunpack.i.l.bf16 %v27175_v54 }
 0x6c9   : > { %v27182_v61 = vmax.f32 %v26703_v47, %v11411_v4  ;;  %v19336_v32 = vpop.permute.xlu1 %19335  ;;  %v20636_v47 = vld [vmem:[%s29080_s5 + $0x370] ss:$8 sps:$4 sm:$0xff]  }
 0x6ca   : > { %v19338_v41 = vunpack.i.h.bf16 %v19336_v32  ;;  %v19337_v45 = vunpack.i.l.bf16 %v19336_v32  ;;  %v11413_v4 = vsel %vm11373_vm1, %v19328_v20, %v19332_v31  ;;  %v11414_v16 = vsel %vm11373_vm1, %v19332_v31, %v29326_v7  ;;  %12567 = vmatpush1.bf16.msra.mxu0 %v20636_v47 }
 0x6cb   : > { %v27212_v5 = vmax.f32 %v26714_v50, %v11413_v4  ;;  %v27215_v20 = vmax.f32 %v26724_v30, %v11414_v16  ;;  %v27224_v32 = vpop.permute.xlu0 %11369  ;;  %v29825_v30 = vrot.slane %v27188_v1, 2  ;;  %v29826_v16 = vrot.slane %v27107_v55, 2  ;;  %12568 = vmatprep.subr.bf16.mxu0 %v20641_v24  ;;  %v29832_v24 = vld [vmem:[#allocation70_spill] sm:$0xff] }
 0x6cc   : > { %v11416_v31 = vsel %vm11373_vm1, %v19337_v45, %v19338_v41  ;;  %v11417_v22 = vsel %vm11373_vm1, %v19338_v41, %v27224_v32 }
 0x6cd   : > { %v11535_v50 = vmax.f32 %v26730_v8, %v11416_v31  ;;  %v12081_v45 = vsel %vm7289_vm2, %v29826_v16, %v29825_v30  ;;  %v27239_v26 = vpack.c.bf16 %v27215_v20, %v27212_v5  ;;  %v11536_v36 = vmax.f32 %v26734_v27, %v11417_v22  ;;  %v20639_v8 = vld [vmem:[%s29080_s5 + $0x380] ss:$8 sps:$4 sm:$0xff]   ;;  %v20645_v22 = vld [vmem:[%s29080_s5 + $0x394] ss:$8 sps:$4 sm:$0xff]  }
 0x6ce   : > { %12517 = vmatprep.mubr.bf16.mxu0 %v12081_v45  ;;  %v11759_v31 = vld [vmem:[#allocation3 + $0xe0] sm:$0xff]  ;;  %v29828_v30 = vrot.slane %v27192_v60, 2  ;;  %v29829_v16 = vrot.slane %v27111_v13, 2  ;;  %v29830_v45 = vunpack.i.h.bf16 %v26886_v19  ;;  %12569 = vmatpush1.bf16.msra.mxu0 %v20639_v8 }
 0x6cf   : > { %v19341_v4 = vpop.permute.xlu1 %19340  ;;  %29827 = vst [vmem:[#allocation28_spill] sm:$0xff] %v27239_v26  ;;  %12570 = vmatprep.subr.bf16.mxu0 %v20645_v22 }
 0x6d0   : > { %v19343_v40 = vunpack.i.h.bf16 %v19341_v4  ;;  %v19342_v41 = vunpack.i.l.bf16 %v19341_v4  ;;  %v12079_v27 = vsel %vm7289_vm2, %v29829_v16, %v29828_v30  ;;  %v17931_v4 = vpack.c.bf16 %v11536_v36, %v11535_v50  ;;  %v19346_v30 = vpop.permute.xlu0 %19345 }
 0x6d1   : > { %12518 = vmatmul.mubr.bf16.gmra.mrb[80].mxu0 %v12079_v27  ;;  %v19348_v47 = vunpack.i.h.bf16 %v19346_v30  ;;  %v19347_v19 = vunpack.i.l.bf16 %v19346_v30  ;;  %v29838_v27 = vunpack.i.l.bf16 %v26902_v3  ;;  %v29842_v30 = vunpack.i.l.bf16 %v26934_v59  ;;  %v20655_v59 = vld [vmem:[%s29080_s5 + $0x3b4] ss:$8 sps:$4 sm:$0xff]  }
 0x6d2   : > { %v11379_v23 = vsel %vm11373_vm1, %v29830_v45, %v19343_v40  ;;  %v11486_v26 = vmax.f32 %v26756_v6, %v19343_v40  ;;  %v11376_v34 = vsel %vm11373_vm1, %v29831_v17, %v19342_v41  ;;  %v11482_v55 = vmax.f32 %v26749_v42, %v19342_v41  ;;  %v20643_v42 = vld [vmem:[%s29080_s5 + $0x390] ss:$8 sps:$4 sm:$0xff]   ;;  %v20648_v41 = vld [vmem:[%s29080_s5 + $0x3a4] ss:$8 sps:$4 sm:$0xff]  }
 0x6d3   : > { %v11485_v16 = vmax.f32 %v29832_v24, %v11379_v23  ;;  %v11481_v13 = vmax.f32 %v29833_v44, %v11376_v34  ;;  %v19351_v36 = vpop.permute.xlu1 %19350  ;;  %v11760_v6 = vsel %vm11758_vm11, %v17931_v4, %v11759_v31  ;;  %v29836_v17 = vunpack.i.h.bf16 %v26907_v39  ;;  %v29837_v31 = vld [vmem:[#allocation74_spill] sm:$0xff]  ;;  %12571 = vmatpush1.bf16.msra.mxu0 %v20643_v42  ;;  %vm28430_vm11 = vmand %vm14315_vm8, %vm14316_vm9 }
 0x6d4   : > { %v19353_v40 = vunpack.i.h.bf16 %v19351_v36  ;;  %v19352_v23 = vunpack.i.l.bf16 %v19351_v36  ;;  %11761 = vst [vmem:[#allocation3 + $0xe0] sm:$0xff] %v11760_v6  ;;  %v11494_v50 = vmax.f32 %v26771_v58, %v19348_v47  ;;  %v11382_v4 = vsel %vm11373_vm1, %v29838_v27, %v19347_v19  ;;  %v29840_v58 = vld [vmem:[#allocation71_spill] sm:$0xff]  ;;  %12572 = vmatprep.subr.bf16.mxu0 %v20648_v41  ;;  %v29845_v41 = vld [vmem:[#allocation38_spill] sm:$0xff]  ;;  %vm14318_vm5 = vmor %vm28430_vm11, %vm28418_vm10 }
 0x6d5   : > { %v17906_v44 = vpack.c.bf16 %v11486_v26, %v11485_v16  ;;  %v17904_v34 = vpack.c.bf16 %v11482_v55, %v11481_v13  ;;  %v11385_v7 = vsel %vm11373_vm1, %v29836_v17, %v19348_v47  ;;  %v11490_v26 = vmax.f32 %v26767_v28, %v19347_v19  ;;  %v19356_v13 = vpop.permute.xlu0 %19355  ;;  %v29841_v47 = vld [vmem:[#allocation11_spill] sm:$0xff]  ;;  %v29843_v16 = vld [vmem:[#allocation13_spill] sm:$0xff] }
 0x6d6   : > { %v11493_v8 = vmax.f32 %v29837_v31, %v11385_v7  ;;  %v29839_v55 = vunpack.i.h.bf16 %v26947_v63  ;;  %v11489_v22 = vmax.f32 %v29840_v58, %v11382_v4  ;;  %v11502_v3 = vmax.f32 %v26787_v9, %v19353_v40 }
 0x6d7   : > { %11728 = vst.msk [vmem:[#allocation3 + $0x18] sm:$0xff] %vm27276_vm13, %v17906_v44  ;;  %11726 = vst.msk [vmem:[#allocation3 + $0x8] sm:$0xff] %vm27276_vm13, %v17904_v34  ;;  %v11388_v28 = vsel %vm11373_vm1, %v29842_v30, %v19352_v23  ;;  %v19361_v63 = vpop.permute.xlu1 %19360  ;;  %v11498_v6 = vmax.f32 %v26783_v21, %v19352_v23  ;;  %v19358_v19 = vunpack.i.h.bf16 %v19356_v13  ;;  %v20646_v44 = vld [vmem:[%s29080_s5 + $0x3a0] ss:$8 sps:$4 sm:$0xff]   ;;  %v19357_v7 = vunpack.i.l.bf16 %v19356_v13 }
 0x6d8   : > { %v11391_v39 = vsel %vm11373_vm1, %v29839_v55, %v19353_v40  ;;  %v17910_v24 = vpack.c.bf16 %v11494_v50, %v11493_v8  ;;  %v11497_v36 = vmax.f32 %v29843_v16, %v11388_v28  ;;  %v17908_v34 = vpack.c.bf16 %v11490_v26, %v11489_v22  ;;  %12573 = vmatpush1.bf16.msra.mxu0 %v20646_v44 }
 0x6d9   : > { %v11501_v45 = vmax.f32 %v29841_v47, %v11391_v39  ;;  %v19363_v9 = vunpack.i.h.bf16 %v19361_v63  ;;  %v29844_v21 = vunpack.i.h.bf16 %v27006_v62  ;;  %v11510_v42 = vmax.f32 %v26805_v49, %v19358_v19  ;;  %v19366_v31 = vpop.permute.xlu0 %19365  ;;  %v29848_v39 = vld [vmem:[#allocation40_spill] sm:$0xff]  ;;  %12574 = vmatprep.subr.bf16.mxu0 %v20655_v59 }
 0x6da   : > { %11732 = vst.msk [vmem:[#allocation3 + $0x38] sm:$0xff] %vm27276_vm13, %v17910_v24  ;;  %v17912_v40 = vpack.c.bf16 %v11498_v6, %v11497_v36  ;;  %v19362_v50 = vunpack.i.l.bf16 %v19361_v63  ;;  %11730 = vst.msk [vmem:[#allocation3 + $0x28] sm:$0xff] %vm27276_vm13, %v17908_v34  ;;  %v29846_v27 = vunpack.i.l.bf16 %v26990_v14  ;;  %v11506_v62 = vmax.f32 %v26797_v35, %v19357_v7  ;;  %v20653_v35 = vld [vmem:[%s29080_s5 + $0x3b0] ss:$8 sps:$4 sm:$0xff]  }
 0x6db   : > { %v17914_v17 = vpack.c.bf16 %v11502_v3, %v11501_v45  ;;  %v11397_v23 = vsel %vm11373_vm1, %v29844_v21, %v19358_v19  ;;  %v29847_v26 = vunpack.i.h.bf16 %v27065_v15  ;;  %v19371_v55 = vpop.permute.xlu1 %19370  ;;  %v11518_v22 = vmax.f32 %v26817_v2, %v19363_v9 }
 0x6dc   : > { %v11509_v8 = vmax.f32 %v29845_v41, %v11397_v23  ;;  %v11394_v4 = vsel %vm11373_vm1, %v29846_v27, %v19357_v7  ;;  %11734 = vst.msk [vmem:[#allocation3 + $0x48] sm:$0xff] %vm27276_vm13, %v17912_v40  ;;  %v29849_v14 = vunpack.i.l.bf16 %v27050_v46  ;;  %v11514_v3 = vmax.f32 %v26812_v12, %v19362_v50  ;;  %12575 = vmatpush1.bf16.msra.mxu0 %v20653_v35  ;;  %v29858_v41 = vld [vmem:[#allocation46_spill] sm:$0xff] }
 0x6dd   : > { %11736 = vst.msk [vmem:[#allocation3 + $0x58] sm:$0xff] %vm27276_vm13, %v17914_v17  ;;  %v11403_v49 = vsel %vm11373_vm1, %v29847_v26, %v19363_v9  ;;  %v11505_v13 = vmax.f32 %v29848_v39, %v11394_v4  ;;  %v19368_v30 = vunpack.i.h.bf16 %v19366_v31  ;;  %v19367_v28 = vunpack.i.l.bf16 %v19366_v31  ;;  %v11372_v6 = vpop.permute.xlu0 %11371 }
 0x6de   : > { %v11517_v58 = vmax.f32 %v26614_v10, %v11403_v49  ;;  %v11400_v47 = vsel %vm11373_vm1, %v29849_v14, %v19362_v50  ;;  %v17918_v15 = vpack.c.bf16 %v11510_v42, %v11509_v8  ;;  %v20658_v10 = vld [vmem:[%s29080_s5 + $0x4] ss:$8 sps:$4 sm:$0xff]   ;;  %v19373_v63 = vunpack.i.h.bf16 %v19371_v55 }
 0x6df   : > { %v11513_v45 = vmax.f32 %v26591_v38, %v11400_v47  ;;  %v17916_v2 = vpack.c.bf16 %v11506_v62, %v11505_v13  ;;  %v29850_v16 = vunpack.i.h.bf16 %v27121_v53  ;;  %v11526_v12 = vmax.f32 %v26834_v51, %v19368_v30  ;;  %13003 = vmatprep.subr.bf16.mxu0 %v20658_v10  ;;  %v11765_v42 = vld [vmem:[#allocation3 + $0xe8] sm:$0xff]  ;;  %v27402_v62 = vld [vmem:[#allocation3 + $0x18] sm:$0xff] }
 0x6e0   : > { %v17922_v46 = vpack.c.bf16 %v11518_v22, %v11517_v58  ;;  %11740 = vst.msk [vmem:[#allocation3 + $0x78] sm:$0xff] %vm27276_vm13, %v17918_v15  ;;  %v19372_v36 = vunpack.i.l.bf16 %v19371_v55  ;;  %v29851_v44 = vunpack.i.l.bf16 %v27117_v33  ;;  %v11522_v53 = vmax.f32 %v26830_v0, %v19367_v28  ;;  %v29857_v50 = vld [vmem:[#allocation48_spill] sm:$0xff]  ;;  %v11857_v26 = vld [vmem:[#allocation3 + $0x8] sm:$0xcc] }
 0x6e1   : > { %v17920_v24 = vpack.c.bf16 %v11514_v3, %v11513_v45  ;;  %v11409_v38 = vsel %vm11373_vm1, %v29850_v16, %v19368_v30  ;;  %11738 = vst.msk [vmem:[#allocation3 + $0x68] sm:$0xff] %vm27276_vm13, %v17916_v2  ;;  %v29852_v17 = vunpack.i.h.bf16 %v27175_v54  ;;  %v29853_v33 = vunpack.i.l.bf16 %v27158_v52  ;;  %v11858_v54 = vld [vmem:[#allocation3 + $0xe0] sm:$0x33]  ;;  %v27408_v49 = vld [vmem:[#allocation3 + $0x28] sm:$0xff]  ;;  %v27410_v55 = vld [vmem:[#allocation3 + $0x38] sm:$0xff] }
 0x6e2   : > { %11744 = vst.msk [vmem:[#allocation3 + $0x98] sm:$0xff] %vm27276_vm13, %v17922_v46  ;;  %v11525_v19 = vmax.f32 %v26685_v43, %v11409_v38  ;;  %v11406_v34 = vsel %vm11373_vm1, %v29851_v44, %v19367_v28  ;;  %v11534_v43 = vmax.f32 %v26846_v56, %v19373_v63  ;;  %v11538_v8 = vmax.f32 %v29858_v41, %v11372_v6 }
 0x6e3   : > { %v11415_v51 = vsel %vm11373_vm1, %v29852_v17, %v19373_v63  ;;  %11742 = vst.msk [vmem:[#allocation3 + $0x88] sm:$0xff] %vm27276_vm13, %v17920_v24  ;;  %v11521_v7 = vmax.f32 %v26666_v11, %v11406_v34  ;;  %v11412_v59 = vsel %vm11373_vm1, %v29853_v33, %v19372_v36  ;;  %v29856_v11 = vld [vmem:[#allocation47_spill] sm:$0xff]  ;;  %v17391_v4 = vcombine.high %v11858_v54, %v11858_v54  ;;  %v27429_v2 = vld [vmem:[#allocation3 + $0x48] sm:$0xff] }
 0x6e4   : > { %v11533_v9 = vmax.f32 %v26728_v25, %v11415_v51  ;;  %v17926_v40 = vpack.c.bf16 %v11526_v12, %v11525_v19  ;;  %v11529_v21 = vmax.f32 %v26710_v57, %v11412_v59  ;;  %v11530_v23 = vmax.f32 %v29856_v11, %v19372_v36  ;;  %v27431_v46 = vld [vmem:[#allocation3 + $0x58] sm:$0xff] }
 0x6e5   : > { %v11418_v25 = vsel %vm11373_vm1, %v27224_v32, %v11372_v6  ;;  %v17924_v56 = vpack.c.bf16 %v11522_v53, %v11521_v7  ;;  %v27396_v57 = vpack.c.bf16 %v27215_v20, %v27182_v61  ;;  %v27400_v32 = vpack.c.bf16 %v27212_v5, %v27170_v18 }
 0x6e6   : > { %v17930_v52 = vpack.c.bf16 %v11534_v43, %v11533_v9  ;;  %v11537_v31 = vmax.f32 %v29857_v50, %v11418_v25  ;;  %11748 = vst.msk [vmem:[#allocation3 + $0xb8] sm:$0xff] %vm27276_vm13, %v17926_v40  ;;  %v17928_v27 = vpack.c.bf16 %v11530_v23, %v11529_v21  ;;  %v12096_v39 = vrot.slane %v17391_v4, 2  ;;  %v20666_v4 = vld [vmem:[%s29080_s5 + $0x24] ss:$8 sps:$4 sm:$0xff]  }
 0x6e7   : > { %11746 = vst.msk [vmem:[#allocation3 + $0xa8] sm:$0xff] %vm27276_vm13, %v17924_v56  ;;  %v12088_v5 = vrot.slane %v27396_v57, 2  ;;  %v12086_v20 = vrot.slane %v27400_v32, 2  ;;  %v17390_v58 = vcombine.low %v11858_v54, %v11858_v54  ;;  %v17365_v22 = vcombine.high %v11857_v26, %v27402_v62  ;;  %v27461_v9 = vld [vmem:[#allocation3 + $0x78] sm:$0xff]  ;;  %v20656_v56 = vld [vmem:[%s29080_s5] ss:$8 sps:$4 sm:$0xff]  }
 0x6e8   : > { %11752 = vst.msk [vmem:[#allocation3 + $0xd8] sm:$0xff] %vm27276_vm13, %v17930_v52  ;;  %v17932_v48 = vpack.c.bf16 %v11538_v8, %v11537_v31  ;;  %11750 = vst.msk [vmem:[#allocation3 + $0xc8] sm:$0xff] %vm27276_vm13, %v17928_v27  ;;  %v29859_v14 = vrot.slane %v27188_v1, 2  ;;  %v29860_v35 = vrot.slane %v27192_v60, 2  ;;  %v27426_v45 = vcombine.high %v27408_v49, %v27410_v55  ;;  %v27444_v12 = vld [vmem:[#allocation3 + $0x68] sm:$0xff] }
 0x6e9   : > { %v12097_v29 = vsel %vm7289_vm2, %v12088_v5, %v12096_v39  ;;  %v12094_v3 = vrot.slane %v17390_v58, 2  ;;  %v12051_v30 = vrot.slane %v17365_v22, 2  ;;  %v17364_v63 = vcombine.low %v11857_v26, %v27402_v62  ;;  %v27449_v6 = vld [vmem:[#allocation3 + $0x98] sm:$0xff]  ;;  %vm28863_vm13 = vmor %vm15614_vm12, %vm6235_vm4 }
 0x6ea   : > { %v11766_v13 = vsel %vm11764_vm0, %v17932_v48, %v11765_v42  ;;  %v12089_v47 = vsel %vm7289_vm2, %v29859_v14, %v12088_v5  ;;  %v12087_v15 = vsel %vm7289_vm2, %v29860_v35, %v12086_v20  ;;  %v12052_v10 = vrot.slane %v27426_v45, 2  ;;  %v27446_v36 = vld [vmem:[#allocation3 + $0x88] sm:$0xff]  ;;  %v20663_v42 = vld [vmem:[%s29080_s5 + $0x14] ss:$8 sps:$4 sm:$0xff]   ;;  %v20661_v27 = vld [vmem:[%s29080_s5 + $0x10] ss:$8 sps:$4 sm:$0xff]  }
 0x6eb   : > { %11767 = vst [vmem:[#allocation3 + $0xe8] sm:$0xff] %v11766_v13  ;;  %12527 = vmatprep.mubr.bf16.mxu0 %v12089_v47  ;;  %v12095_v28 = vsel %vm7289_vm2, %v12086_v20, %v12094_v3  ;;  %v27438_v16 = vcombine.low %v27408_v49, %v27410_v55  ;;  %v27442_v38 = vcombine.high %v27429_v2, %v27431_v46  ;;  %v12048_v17 = vrot.slane %v17364_v63, 2  ;;  %v20664_v5 = vld [vmem:[%s29080_s5 + $0x20] ss:$8 sps:$4 sm:$0xff]   ;;  %v20671_v20 = vld [vmem:[%s29080_s5 + $0x34] ss:$8 sps:$4 sm:$0xff]   ;;  %vm28937_vm0 = vmand %vm15626_vm14, %vm14316_vm9 }
 0x6ec   : > { %12528 = vmatmul.mubr.bf16.gmra.mrb[84].mxu0 %v12087_v15  ;;  %v12053_v24 = vsel %vm7289_vm2, %v12051_v30, %v12052_v10  ;;  %v17535_v34 = vcombine.high %v27402_v62, %v27408_v49  ;;  %v17534_v53 = vcombine.low %v27402_v62, %v27408_v49  ;;  %v17539_v43 = vcombine.high %v27410_v55, %v27429_v2  ;;  %v20669_v14 = vld [vmem:[%s29080_s5 + $0x30] ss:$8 sps:$4 sm:$0xff]   ;;  %v20674_v47 = vld [vmem:[%s29080_s5 + $0x44] ss:$8 sps:$4 sm:$0xff]   ;;  %v20679_v3 = vld [vmem:[%s29080_s5 + $0x54] ss:$8 sps:$4 sm:$0xff]  }
 0x6ed   : > { %12537 = vmatprep.mubr.bf16.mxu0 %v12097_v29  ;;  %v12049_v51 = vrot.slane %v27438_v16, 2  ;;  %v12060_v7 = vrot.slane %v27442_v38, 2  ;;  %v27465_v33 = vld [vmem:[#allocation3 + $0xb8] sm:$0xff]  ;;  %v17538_v59 = vcombine.low %v27410_v55, %v27429_v2  ;;  %v17543_v0 = vcombine.high %v27431_v46, %v27444_v12  ;;  %v20672_v29 = vld [vmem:[%s29080_s5 + $0x40] ss:$8 sps:$4 sm:$0xff]  }
 0x6ee   : > { %v27451_v19 = vld [vmem:[#allocation3 + $0xa8] sm:$0xff]  ;;  %v17542_v54 = vcombine.low %v27431_v46, %v27444_v12  ;;  %v17547_v40 = vcombine.high %v27461_v9, %v27446_v36  ;;  %v17546_v21 = vcombine.low %v27461_v9, %v27446_v36  ;;  %v27494_v31 = vcombine.low %v27429_v2, %v27431_v46  ;;  %v20865_v2 = vld [vmem:[%s29082_s7 + $0xd8] ss:$8 sps:$4 sm:$0xff]   ;;  %v20867_v46 = vld [vmem:[%s29082_s7 + $0xdc] ss:$8 sps:$4 sm:$0xff]  }
 0x6ef   : > { %v27453_v44 = vld [vmem:[#allocation3 + $0xc8] sm:$0xff]  ;;  %v17551_v11 = vcombine.high %v27449_v6, %v27451_v19  ;;  %v17550_v23 = vcombine.low %v27449_v6, %v27451_v19  ;;  %v12050_v50 = vsel %vm7289_vm2, %v12048_v17, %v12049_v51  ;;  %v12061_v41 = vsel %vm7289_vm2, %v12052_v10, %v12060_v7  ;;  %14604 = vmatprep.subr.bf16.mxu1 %v20867_v46 }
 0x6f0   : > { %v17555_v25 = vcombine.high %v27465_v33, %v27453_v44  ;;  %v17554_v52 = vcombine.low %v27465_v33, %v27453_v44  ;;  %v27499_v8 = vcombine.high %v27444_v12, %v27461_v9  ;;  %v12058_v26 = vrot.slane %v27494_v31, 2  ;;  %v20682_v17 = vld [vmem:[%s29080_s5 + $0x64] ss:$8 sps:$4 sm:$0xff]   ;;  %14605 = vmatpush1.bf16.msra.mxu1 %v20865_v2 }
 0x6f1   : > { %v27519_v13 = vcombine.low %v27444_v12, %v27461_v9  ;;  %v27524_v22 = vcombine.high %v27446_v36, %v27449_v6  ;;  %v27544_v10 = vcombine.low %v27446_v36, %v27449_v6  ;;  %v27549_v63 = vcombine.high %v27451_v19, %v27465_v33  ;;  %v20870_v12 = vld [vmem:[%s29082_s7 + $0xec] ss:$8 sps:$4 sm:$0xff]   ;;  %v20868_v36 = vld [vmem:[%s29082_s7 + $0xe8] ss:$8 sps:$4 sm:$0xff]   ;;  %v20873_v6 = vld [vmem:[%s29082_s7 + $0xfc] ss:$8 sps:$4 sm:$0xff]  }
 0x6f2   : > { %v12068_v48 = vrot.slane %v27499_v8, 2  ;;  %v12059_v39 = vsel %vm7289_vm2, %v12049_v51, %v12058_v26  ;;  %14606 = vmatprep.subr.bf16.mxu1 %v20870_v12  ;;  %v20877_v9 = vld [vmem:[%s29082_s7 + $0x118] ss:$8 sps:$4 sm:$0xff]   ;;  %v20900_v2 = vld [vmem:[%s29082_s7 + $0x18c] ss:$8 sps:$4 sm:$0xff]  }
 0x6f3   : > { %v12066_v35 = vrot.slane %v27519_v13, 2  ;;  %v12076_v15 = vrot.slane %v27524_v22, 2  ;;  %v12074_v51 = vrot.slane %v27544_v10, 2 }
 0x6f4   : > { %12538 = vmatmul.mubr.bf16.gmra.mrb[88].mxu0 %v12095_v28  ;;  %v12069_v58 = vsel %vm7289_vm2, %v12060_v7, %v12068_v48  ;;  %v12084_v7 = vrot.slane %v27549_v63, 2  ;;  %14607 = vmatpush1.bf16.msra.mxu1 %v20868_v36 }
 0x6f5   : > { %17454 = vmatprep.mubr.msk.bf16.mxu0 %vm12423_vm15, %v12053_v24  ;;  %v12067_v30 = vsel %vm7289_vm2, %v12058_v26, %v12066_v35  ;;  %v12077_v28 = vsel %vm7289_vm2, %v12068_v48, %v12076_v15  ;;  %v20677_v24 = vld [vmem:[%s29080_s5 + $0x50] ss:$8 sps:$4 sm:$0xff]   ;;  %14608 = vmatprep.subr.bf16.mxu1 %v20873_v6 }
 0x6f6   : > { %v20685_v48 = vld [vmem:[%s29080_s5 + $0x70] ss:$8 sps:$4 sm:$0xff]  }
 0x6fc   : > { %12581 = vmatmul.mubr.bf16.vlgmr.msra.gmra.mrb[64].mxu0 %v12050_v50  ;;  %v20687_v50 = vld [vmem:[%s29080_s5 + $0x74] ss:$8 sps:$4 sm:$0xff]  }
 0x6fd   : > { %13004 = vmatpush1.bf16.msra.mxu0 %v20656_v56  ;;  %17455 = vmatprep.mubr.msk.bf16.mxu0 %vm12423_vm15, %v12061_v41  ;;  %v20680_v56 = vld [vmem:[%s29080_s5 + $0x60] ss:$8 sps:$4 sm:$0xff]   ;;  %v12075_v41 = vsel %vm7289_vm2, %v12066_v35, %v12074_v51 }
 0x6fe   : > { %13005 = vmatprep.subr.bf16.mxu0 %v20663_v42  ;;  %v27563_v42 = vld [vmem:[#allocation3 + $0xd8] sm:$0xff] }
 0x6ff   : > { %v27576_v26 = vcombine.high %v27453_v44, %v27563_v42 }
 0x701   : > { %13006 = vmatpush1.bf16.msra.mxu0 %v20661_v27  ;;  %v27571_v27 = vcombine.low %v27451_v19, %v27465_v33  ;;  %v20871_v19 = vld [vmem:[%s29082_s7 + $0xf8] ss:$8 sps:$4 sm:$0xff]   ;;  %v20880_v33 = vld [vmem:[%s29082_s7 + $0x128] ss:$8 sps:$4 sm:$0xff]  }
 0x702   : > { %13007 = vmatprep.subr.bf16.mxu0 %v20666_v4  ;;  %v12085_v4 = vsel %vm7289_vm2, %v12076_v15, %v12084_v7  ;;  %v27596_v15 = vcombine.low %v27453_v44, %v27563_v42  ;;  %v20876_v44 = vld [vmem:[%s29082_s7 + $0x10c] ss:$8 sps:$4 sm:$0xff]   ;;  %14609 = vmatpush1.bf16.msra.mxu1 %v20871_v19 }
 0x703   : > { %14610 = vmatprep.subr.bf16.mxu1 %v20876_v44 }
 0x704   : > { %12591 = vmatmul.mubr.bf16.gmra.mrb[68].mxu0 %v12059_v39  ;;  %v12092_v39 = vrot.slane %v27576_v26, 2 }
 0x705   : > { %13008 = vmatpush1.bf16.msra.mxu0 %v20664_v5  ;;  %17456 = vmatprep.mubr.msk.bf16.mxu0 %vm12423_vm15, %v12069_v58  ;;  %v20690_v5 = vld [vmem:[%s29080_s5 + $0x84] ss:$8 sps:$4 sm:$0xff]   ;;  %v20688_v58 = vld [vmem:[%s29080_s5 + $0x80] ss:$8 sps:$4 sm:$0xff]  }
 0x706   : > { %13009 = vmatprep.subr.bf16.mxu0 %v20671_v20  ;;  %v12082_v20 = vrot.slane %v27571_v27, 2 }
 0x708   : > { %v12083_v35 = vsel %vm7289_vm2, %v12074_v51, %v12082_v20  ;;  %v20696_v51 = vld [vmem:[%s29080_s5 + $0xa0] ss:$8 sps:$4 sm:$0xff]  }
 0x709   : > { %13010 = vmatpush1.bf16.msra.mxu0 %v20669_v14  ;;  %v11859_v14 = vld [vmem:[#allocation3 + $0xe8] sm:$0x33] }
 0x70a   : > { %13011 = vmatprep.subr.bf16.mxu0 %v20674_v47  ;;  %v20695_v47 = vld [vmem:[%s29080_s5 + $0x94] ss:$8 sps:$4 sm:$0xff]  }
 0x70c   : > { %12601 = vmatmul.mubr.bf16.gmra.mrb[72].mxu0 %v12067_v30  ;;  %v20693_v30 = vld [vmem:[%s29080_s5 + $0x90] ss:$8 sps:$4 sm:$0xff]  }
 0x70d   : > { %13012 = vmatpush1.bf16.msra.mxu0 %v20672_v29  ;;  %17457 = vmatprep.mubr.msk.bf16.mxu0 %vm12423_vm15, %v12077_v28  ;;  %v12093_v29 = vsel %vm7289_vm2, %v12084_v7, %v12092_v39  ;;  %v20698_v28 = vld [vmem:[%s29080_s5 + $0xa4] ss:$8 sps:$4 sm:$0xff]   ;;  %v20703_v7 = vld [vmem:[%s29080_s5 + $0xb4] ss:$8 sps:$4 sm:$0xff]  }
 0x70e   : > { %13013 = vmatprep.subr.bf16.mxu0 %v20679_v3  ;;  %v17393_v3 = vcombine.high %v11859_v14, %v11859_v14 }
 0x711   : > { %13014 = vmatpush1.bf16.msra.mxu0 %v20677_v24  ;;  %v12090_v24 = vrot.slane %v27596_v15, 2 }
 0x712   : > { %13015 = vmatprep.subr.bf16.mxu0 %v20682_v17  ;;  %v12100_v17 = vrot.slane %v17393_v3, 2  ;;  %v20713_v3 = vld [vmem:[%s29080_s5 + $0xe4] ss:$8 sps:$4 sm:$0xff]  }
 0x714   : > { %12611 = vmatmul.mubr.bf16.gmra.mrb[76].mxu0 %v12075_v41  ;;  %v12101_v41 = vsel %vm7289_vm2, %v12092_v39, %v12100_v17  ;;  %v20710_v39 = vld [vmem:[%s29080_s5 + $0xd4] ss:$8 sps:$4 sm:$0xff]   ;;  %v20719_v17 = vld [vmem:[%s29080_s5 + $0x104] ss:$8 sps:$4 sm:$0xff]  }
 0x715   : > { %13016 = vmatpush1.bf16.msra.mxu0 %v20680_v56  ;;  %17458 = vmatprep.mubr.msk.bf16.mxu0 %vm12423_vm15, %v12085_v4  ;;  %v12091_v56 = vsel %vm7289_vm2, %v12082_v20, %v12090_v24  ;;  %v20701_v4 = vld [vmem:[%s29080_s5 + $0xb0] ss:$8 sps:$4 sm:$0xff]   ;;  %v20704_v20 = vld [vmem:[%s29080_s5 + $0xc0] ss:$8 sps:$4 sm:$0xff]  }
 0x716   : > { %13017 = vmatprep.subr.bf16.mxu0 %v20687_v50  ;;  %v17392_v50 = vcombine.low %v11859_v14, %v11859_v14 }
 0x719   : > { %13018 = vmatpush1.bf16.msra.mxu0 %v20685_v48  ;;  %v20706_v48 = vld [vmem:[%s29080_s5 + $0xc4] ss:$8 sps:$4 sm:$0xff]  }
 0x71a   : > { %13019 = vmatprep.subr.bf16.mxu0 %v20690_v5  ;;  %v12098_v5 = vrot.slane %v17392_v50, 2  ;;  %v29861_v50 = vld [vmem:[#allocation57_spill] sm:$0xff] }
 0x71c   : > { %12621 = vmatmul.mubr.bf16.gmra.mrb[80].mxu0 %v12083_v35  ;;  %v12099_v14 = vsel %vm7289_vm2, %v12090_v24, %v12098_v5  ;;  %v20714_v24 = vld [vmem:[%s29080_s5 + $0xf0] ss:$8 sps:$4 sm:$0xff]   ;;  %v20728_v5 = vld [vmem:[%s29080_s5 + $0x134] ss:$8 sps:$4 sm:$0xff]   ;;  %vm14297_vm2 = vcmask 719876  }
 0x71d   : > { %13020 = vmatpush1.bf16.msra.mxu0 %v20688_v58  ;;  %17459 = vmatprep.mubr.msk.bf16.mxu0 %vm12423_vm15, %v12093_v29  ;;  %v11768_v58 = vld [vmem:[#allocation3] sm:$0xff]  ;;  %v20708_v29 = vld [vmem:[%s29080_s5 + $0xd0] ss:$8 sps:$4 sm:$0xff]   ;;  %vm28276_vm3 = vmor %vm14297_vm2, %vm6235_vm4  ;;  %vm21173_vm2 = vmmov 0  }
 0x71e   : > { %13021 = vmatprep.subr.bf16.mxu0 %v20695_v47  ;;  %v21123_v47 = vld [vmem:[#allocation3 + $0x10] sm:$0xff] }
 0x71f   : > { %v17462_v35 = vcombine.high %v11768_v58, %v21123_v47 }
 0x721   : > { %13022 = vmatpush1.bf16.msra.mxu0 %v20693_v30  ;;  %v20711_v30 = vld [vmem:[%s29080_s5 + $0xe0] ss:$8 sps:$4 sm:$0xff]  }
 0x722   : > { %13023 = vmatprep.subr.bf16.mxu0 %v20698_v28  ;;  %v20716_v28 = vld [vmem:[%s29080_s5 + $0xf4] ss:$8 sps:$4 sm:$0xff]  }
 0x724   : > { %12631 = vmatmul.mubr.bf16.gmra.mrb[84].mxu0 %v12091_v56  ;;  %v20722_v56 = vld [vmem:[%s29080_s5 + $0x114] ss:$8 sps:$4 sm:$0xff]  }
 0x725   : > { %13024 = vmatpush1.bf16.msra.mxu0 %v20696_v51  ;;  %17460 = vmatprep.mubr.msk.bf16.mxu0 %vm12423_vm15, %v12101_v41  ;;  %v20717_v51 = vld [vmem:[%s29080_s5 + $0x100] ss:$8 sps:$4 sm:$0xff]   ;;  %v20720_v41 = vld [vmem:[%s29080_s5 + $0x110] ss:$8 sps:$4 sm:$0xff]  }
 0x726   : > { %13025 = vmatprep.subr.bf16.mxu0 %v20703_v7  ;;  %v17461_v7 = vcombine.low %v11768_v58, %v21123_v47  ;;  %v29862_v58 = vld [vmem:[#allocation55_spill] sm:$0xff] }
 0x727   : > { %v20729_v47 = vld [vmem:[%s29080_s5 + $0x140] ss:$8 sps:$4 sm:$0xff]  }
 0x729   : > { %13026 = vmatpush1.bf16.msra.mxu0 %v20701_v4  ;;  %v20725_v4 = vld [vmem:[%s29080_s5 + $0x124] ss:$8 sps:$4 sm:$0xff]  }
 0x72a   : > { %13027 = vmatprep.subr.bf16.mxu0 %v20706_v48  ;;  %v20723_v48 = vld [vmem:[%s29080_s5 + $0x120] ss:$8 sps:$4 sm:$0xff]  }
 0x72c   : > { %12641 = vmatmul.mubr.bf16.gmra.mrb[88].mxu0 %v12099_v14  ;;  %v20731_v14 = vld [vmem:[%s29080_s5 + $0x144] ss:$8 sps:$4 sm:$0xff]  }
 0x72d   : > { %13028 = vmatpush1.bf16.msra.mxu0 %v20704_v20  ;;  %13035 = vmatprep.mubr.bf16.mxu0 %v17462_v35  ;;  %v29863_v20 = vld [vmem:[#allocation65_spill] sm:$0xff]  ;;  %v20734_v35 = vld [vmem:[%s29080_s5 + $0x154] ss:$8 sps:$4 sm:$0xff]  }
 0x72e   : > { %13029 = vmatprep.subr.bf16.mxu0 %v20710_v39  ;;  %v20726_v39 = vld [vmem:[%s29080_s5 + $0x130] ss:$8 sps:$4 sm:$0xff]  }
 0x731   : > { %13030 = vmatpush1.bf16.msra.mxu0 %v20708_v29  ;;  %v29864_v29 = vld [vmem:[#allocation25_spill] sm:$0xff] }
 0x732   : > { %13031 = vmatprep.subr.bf16.mxu0 %v20713_v3  ;;  %v29865_v3 = vld [vmem:[#allocation16_spill] sm:$0xff] }
 0x735   : > { %13032 = vmatpush1.bf16.msra.mxu0 %v20711_v30  ;;  %v20732_v30 = vld [vmem:[%s29080_s5 + $0x150] ss:$8 sps:$4 sm:$0xff]  }
 0x736   : > { %13033 = vmatprep.subr.bf16.mxu0 %v20716_v28  ;;  %v20737_v28 = vld [vmem:[%s29080_s5 + $0x164] ss:$8 sps:$4 sm:$0xff]  }
 0x739   : > { %13034 = vmatpush1.bf16.msra.mxu0 %v20714_v24  ;;  %v20735_v24 = vld [vmem:[%s29080_s5 + $0x160] ss:$8 sps:$4 sm:$0xff]  }
 0x73a   : > { %13106 = vmatprep.subr.bf16.mxu0 %v20719_v17  ;;  %v20740_v17 = vld [vmem:[%s29080_s5 + $0x174] ss:$8 sps:$4 sm:$0xff]  }
 0x73c   : > { %13036 = vmatmul.mubr.bf16.vlgmr.msra.gmra.mrb[64].mxu0 %v17461_v7  ;;  %v29867_v7 = vld [vmem:[#allocation22_spill] sm:$0xff] }
 0x73d   : > { %13045 = vmatprep.mubr.bf16.mxu0 %v29861_v50  ;;  %13107 = vmatpush1.bf16.msra.mxu0 %v20717_v51  ;;  %v29866_v51 = vld [vmem:[#allocation17_spill] sm:$0xff] }
 0x73e   : > { %13108 = vmatprep.subr.bf16.mxu0 %v20722_v56  ;;  %v20738_v56 = vld [vmem:[%s29080_s5 + $0x170] ss:$8 sps:$4 sm:$0xff]   ;;  %v20743_v50 = vld [vmem:[%s29080_s5 + $0x184] ss:$8 sps:$4 sm:$0xff]  }
 0x741   : > { %13109 = vmatpush1.bf16.msra.mxu0 %v20720_v41  ;;  %v20741_v41 = vld [vmem:[%s29080_s5 + $0x180] ss:$8 sps:$4 sm:$0xff]  }
 0x742   : > { %13110 = vmatprep.subr.bf16.mxu0 %v20725_v4  ;;  %v20746_v4 = vld [vmem:[%s29080_s5 + $0x194] ss:$8 sps:$4 sm:$0xff]  }
 0x744   : > { %13046 = vmatmul.mubr.bf16.gmra.mrb[68].mxu0 %v29862_v58  ;;  %v20749_v58 = vld [vmem:[%s29080_s5 + $0x1a4] ss:$8 sps:$4 sm:$0xff]  }
 0x745   : > { %13055 = vmatprep.mubr.bf16.mxu0 %v29863_v20  ;;  %13111 = vmatpush1.bf16.msra.mxu0 %v20723_v48  ;;  %v29868_v48 = vld [vmem:[#allocation7_spill] sm:$0xff] }
 0x746   : > { %13112 = vmatprep.subr.bf16.mxu0 %v20728_v5  ;;  %v20744_v5 = vld [vmem:[%s29080_s5 + $0x190] ss:$8 sps:$4 sm:$0xff]   ;;  %v20747_v20 = vld [vmem:[%s29080_s5 + $0x1a0] ss:$8 sps:$4 sm:$0xff]  }
 0x749   : > { %13113 = vmatpush1.bf16.msra.mxu0 %v20726_v39  ;;  %v20750_v39 = vld [vmem:[%s29080_s5 + $0x1b0] ss:$8 sps:$4 sm:$0xff]  }
 0x74a   : > { %13114 = vmatprep.subr.bf16.mxu0 %v20731_v14  ;;  %v20755_v14 = vld [vmem:[%s29080_s5 + $0x1c4] ss:$8 sps:$4 sm:$0xff]  }
 0x74c   : > { %13056 = vmatmul.mubr.bf16.gmra.mrb[72].mxu0 %v29864_v29  ;;  %v20758_v29 = vld [vmem:[%s29080_s5 + $0x1d0] ss:$8 sps:$4 sm:$0xff]  }
 0x74d   : > { %13065 = vmatprep.mubr.bf16.mxu0 %v29865_v3  ;;  %13115 = vmatpush1.bf16.msra.mxu0 %v20729_v47  ;;  %v11769_v47 = vld [vmem:[#allocation3 + $0x8] sm:$0xff] }
 0x74e   : > { %13116 = vmatprep.subr.bf16.mxu0 %v20734_v35  ;;  %v20753_v35 = vld [vmem:[%s29080_s5 + $0x1c0] ss:$8 sps:$4 sm:$0xff]   ;;  %v20763_v3 = vld [vmem:[%s29080_s5 + $0x3c4] ss:$8 sps:$4 sm:$0xff]  }
 0x751   : > { %13117 = vmatpush1.bf16.msra.mxu0 %v20732_v30  ;;  %v20761_v30 = vld [vmem:[%s29080_s5 + $0x3c0] ss:$8 sps:$4 sm:$0xff]  }
 0x752   : > { %13118 = vmatprep.subr.bf16.mxu0 %v20737_v28  ;;  %v17463_v28 = vcombine.low %v11769_v47, %v27402_v62 }
 0x754   : > { %13066 = vmatmul.mubr.bf16.gmra.mrb[76].mxu0 %v29866_v51  ;;  %v20767_v51 = vld [vmem:[%s29080_s5 + $0x3e0] ss:$8 sps:$4 sm:$0xff]  }
 0x755   : > { %13075 = vmatprep.mubr.bf16.mxu0 %v29867_v7  ;;  %13119 = vmatpush1.bf16.msra.mxu0 %v20735_v24  ;;  %v20764_v24 = vld [vmem:[%s29080_s5 + $0x3d0] ss:$8 sps:$4 sm:$0xff]  }
 0x756   : > { %13120 = vmatprep.subr.bf16.mxu0 %v20740_v17  ;;  %v20769_v17 = vld [vmem:[%s29080_s5 + $0x3e4] ss:$8 sps:$4 sm:$0xff]   ;;  %v20770_v7 = vld [vmem:[%s29080_s5 + $0x3f0] ss:$8 sps:$4 sm:$0xff]  }
 0x759   : > { %13121 = vmatpush1.bf16.msra.mxu0 %v20738_v56  ;;  %v20775_v56 = vld [vmem:[%s29080_s5 + $0x404] ss:$8 sps:$4 sm:$0xff]  }
 0x75a   : > { %13122 = vmatprep.subr.bf16.mxu0 %v20743_v50  ;;  %v20773_v50 = vld [vmem:[%s29080_s5 + $0x400] ss:$8 sps:$4 sm:$0xff]  }
 0x75c   : > { %13076 = vmatmul.mubr.bf16.gmra.mrb[80].mxu0 %v29868_v48  ;;  %v20787_v48 = vld [vmem:[%s29080_s5 + $0x444] ss:$8 sps:$4 sm:$0xff]  }
 0x75d   : > { %13085 = vmatprep.mubr.bf16.mxu0 %v27188_v1  ;;  %13123 = vmatpush1.bf16.msra.mxu0 %v20741_v41  ;;  %v20752_v1 = vld [vmem:[%s29080_s5 + $0x1b4] ss:$8 sps:$4 sm:$0xff]   ;;  %v20781_v41 = vld [vmem:[%s29080_s5 + $0x424] ss:$8 sps:$4 sm:$0xff]  }
 0x75e   : > { %13124 = vmatprep.subr.bf16.mxu0 %v20746_v4  ;;  %v20779_v4 = vld [vmem:[%s29080_s5 + $0x420] ss:$8 sps:$4 sm:$0xff]  }
 0x761   : > { %13125 = vmatpush1.bf16.msra.mxu0 %v20744_v5  ;;  %v20785_v5 = vld [vmem:[%s29080_s5 + $0x440] ss:$8 sps:$4 sm:$0xff]  }
 0x762   : > { %13126 = vmatprep.subr.bf16.mxu0 %v20749_v58  ;;  %v20793_v58 = vld [vmem:[%s29080_s5 + $0x464] ss:$8 sps:$4 sm:$0xff]  }
 0x764   : > { %13086 = vmatmul.mubr.bf16.gmra.mrb[84].mxu0 %v27192_v60  ;;  %v20760_v60 = vld [vmem:[%s29080_s5 + $0x1d4] ss:$8 sps:$4 sm:$0xff]  }
 0x765   : > { %13095 = vmatprep.mubr.bf16.mxu0 %v27396_v57  ;;  %13127 = vmatpush1.bf16.msra.mxu0 %v20747_v20  ;;  %v17464_v57 = vcombine.high %v11769_v47, %v27402_v62  ;;  %v20791_v20 = vld [vmem:[%s29080_s5 + $0x460] ss:$8 sps:$4 sm:$0xff]  }
 0x766   : > { %13128 = vmatprep.subr.bf16.mxu0 %v20752_v1  ;;  %v20799_v1 = vld [vmem:[%s29080_s5 + $0x484] ss:$8 sps:$4 sm:$0xff]  }
 0x767   : > { %v13210_v62 = vld [vmem:[#allocation3 + $0xe8] sm:$0xff] }
 0x768   : > { %v17559_v49 = vcombine.high %v27563_v42, %v13210_v62  ;;  %v17558_v55 = vcombine.low %v27563_v42, %v13210_v62  ;;  %v29904_v42 = vld [vmem:[#allocation8_spill] sm:$0xff] }
 0x769   : > { %13129 = vmatpush1.bf16.msra.mxu0 %v20750_v39  ;;  %v20797_v39 = vld [vmem:[%s29080_s5 + $0x480] ss:$8 sps:$4 sm:$0xff]  }
 0x76a   : > { %13130 = vmatprep.subr.bf16.mxu0 %v20755_v14  ;;  %v29870_v14 = vld [vmem:[#allocation54_spill] sm:$0xff] }
 0x76c   : > { %13096 = vmatmul.mubr.bf16.gmra.mrb[88].mxu0 %v27400_v32  ;;  %v20766_v32 = vld [vmem:[%s29080_s5 + $0x3d4] ss:$8 sps:$4 sm:$0xff]  }
 0x76d   : > { %13131 = vmatpush1.bf16.msra.mxu0 %v20753_v35  ;;  %17525 = vmatprep.mubr.msk.bf16.mxu0 %vm12423_vm15, %v17464_v57  ;;  %v20800_v35 = vld [vmem:[%s29080_s5 + $0x490] ss:$8 sps:$4 sm:$0xff]   ;;  %v20803_v57 = vld [vmem:[%s29080_s5 + $0x4a0] ss:$8 sps:$4 sm:$0xff]  }
 0x76e   : > { %13132 = vmatprep.subr.bf16.mxu0 %v20760_v60  ;;  %v20805_v60 = vld [vmem:[%s29080_s5 + $0x4a4] ss:$8 sps:$4 sm:$0xff]  }
 0x771   : > { %13133 = vmatpush1.bf16.msra.mxu0 %v20758_v29  ;;  %v20806_v29 = vld [vmem:[%s29080_s5 + $0x4b0] ss:$8 sps:$4 sm:$0xff]  }
 0x772   : > { %13647 = vmatprep.subr.bf16.mxu0 %v20763_v3  ;;  %v20811_v3 = vld [vmem:[%s29080_s5 + $0x4c4] ss:$8 sps:$4 sm:$0xff]  }
 0x774   : > { %13139 = vmatmul.mubr.bf16.vlgmr.msra.gmra.mrb[64].mxu0 %v17463_v28  ;;  %v20814_v28 = vld [vmem:[%s29080_s5 + $0x4d4] ss:$8 sps:$4 sm:$0xff]  }
 0x775   : > { %17526 = vmatprep.mubr.msk.bf16.mxu0 %vm12423_vm15, %v27426_v45  ;;  %13648 = vmatpush1.bf16.msra.mxu0 %v20761_v30  ;;  %v20772_v45 = vld [vmem:[%s29080_s5 + $0x3f4] ss:$8 sps:$4 sm:$0xff]   ;;  %v20809_v30 = vld [vmem:[%s29080_s5 + $0x4c0] ss:$8 sps:$4 sm:$0xff]  }
 0x776   : > { %13649 = vmatprep.subr.bf16.mxu0 %v20766_v32  ;;  %v29872_v32 = vld [vmem:[#allocation52_spill] sm:$0xff] }
 0x779   : > { %13650 = vmatpush1.bf16.msra.mxu0 %v20764_v24  ;;  %v29873_v24 = vld [vmem:[#allocation53_spill] sm:$0xff] }
 0x77a   : > { %13651 = vmatprep.subr.bf16.mxu0 %v20769_v17  ;;  %v29874_v17 = vpack.c.bf16 %v29872_v32, %v29873_v24  ;;  %v20830_v32 = vld [vmem:[%s29080_s5 + $0x530] ss:$8 sps:$4 sm:$0xff]   ;;  %v20835_v24 = vld [vmem:[%s29080_s5 + $0x544] ss:$8 sps:$4 sm:$0xff]  }
 0x77c   : > { %13149 = vmatmul.mubr.bf16.gmra.mrb[68].mxu0 %v27438_v16  ;;  %v20778_v16 = vld [vmem:[%s29080_s5 + $0x414] ss:$8 sps:$4 sm:$0xff]  }
 0x77d   : > { %17527 = vmatprep.mubr.msk.bf16.mxu0 %vm12423_vm15, %v27442_v38  ;;  %13652 = vmatpush1.bf16.msra.mxu0 %v20767_v51  ;;  %v20776_v38 = vld [vmem:[%s29080_s5 + $0x410] ss:$8 sps:$4 sm:$0xff]  }
 0x77e   : > { %13653 = vmatprep.subr.bf16.mxu0 %v20772_v45  ;;  %v29875_v51 = vld [vmem:[#allocation61_spill] sm:$0xff]  ;;  %v29876_v45 = vld [vmem:[#allocation58_spill] sm:$0xff] }
 0x781   : > { %13654 = vmatpush1.bf16.msra.mxu0 %v20770_v7  ;;  %v29877_v7 = vpack.c.bf16 %v29875_v51, %v29876_v45  ;;  %v20838_v51 = vld [vmem:[%s29080_s5 + $0x554] ss:$8 sps:$4 sm:$0xff]   ;;  %v29896_v45 = vld [vmem:[#allocation68_spill] sm:$0xff] }
 0x782   : > { %13655 = vmatprep.subr.bf16.mxu0 %v20775_v56  ;;  %v20812_v56 = vld [vmem:[%s29080_s5 + $0x4d0] ss:$8 sps:$4 sm:$0xff]  }
 0x784   : > { %13159 = vmatmul.mubr.bf16.gmra.mrb[72].mxu0 %v27494_v31  ;;  %v20784_v31 = vld [vmem:[%s29080_s5 + $0x434] ss:$8 sps:$4 sm:$0xff]  }
 0x785   : > { %17528 = vmatprep.mubr.msk.bf16.mxu0 %vm12423_vm15, %v27499_v8  ;;  %13656 = vmatpush1.bf16.msra.mxu0 %v20773_v50  ;;  %v20782_v8 = vld [vmem:[%s29080_s5 + $0x430] ss:$8 sps:$4 sm:$0xff]   ;;  %v20817_v50 = vld [vmem:[%s29080_s5 + $0x4e4] ss:$8 sps:$4 sm:$0xff]  }
 0x786   : > { %13657 = vmatprep.subr.bf16.mxu0 %v20778_v16  ;;  %v20815_v16 = vld [vmem:[%s29080_s5 + $0x4e0] ss:$8 sps:$4 sm:$0xff]  }
 0x789   : > { %13658 = vmatpush1.bf16.msra.mxu0 %v20776_v38  ;;  %v20820_v38 = vld [vmem:[%s29080_s5 + $0x4f4] ss:$8 sps:$4 sm:$0xff]  }
 0x78a   : > { %13659 = vmatprep.subr.bf16.mxu0 %v20781_v41  ;;  %v29878_v41 = vld [vmem:[#allocation62_spill] sm:$0xff] }
 0x78c   : > { %13169 = vmatmul.mubr.bf16.gmra.mrb[76].mxu0 %v27519_v13  ;;  %v20790_v13 = vld [vmem:[%s29080_s5 + $0x454] ss:$8 sps:$4 sm:$0xff]  }
 0x78d   : > { %17529 = vmatprep.mubr.msk.bf16.mxu0 %vm12423_vm15, %v27524_v22  ;;  %13660 = vmatpush1.bf16.msra.mxu0 %v20779_v4  ;;  %v20788_v22 = vld [vmem:[%s29080_s5 + $0x450] ss:$8 sps:$4 sm:$0xff]  }
 0x78e   : > { %13661 = vmatprep.subr.bf16.mxu0 %v20784_v31  ;;  %v29879_v4 = vld [vmem:[#allocation50_spill] sm:$0xff] }
 0x78f   : > { %v29880_v31 = vpack.c.bf16 %v29878_v41, %v29879_v4  ;;  %v20841_v41 = vld [vmem:[%s29080_s5 + $0x564] ss:$8 sps:$4 sm:$0xff]  }
 0x790   : > { %v13209_v4 = vld [vmem:[#allocation3 + $0xe0] sm:$0xff] }
 0x791   : > { %13662 = vmatpush1.bf16.msra.mxu0 %v20782_v8  ;;  %v29881_v8 = vld [vmem:[#allocation23_spill] sm:$0xff] }
 0x792   : > { %13663 = vmatprep.subr.bf16.mxu0 %v20787_v48  ;;  %v29882_v48 = vld [vmem:[#allocation59_spill] sm:$0xff] }
 0x794   : > { %13179 = vmatmul.mubr.bf16.gmra.mrb[80].mxu0 %v27544_v10  ;;  %v20796_v10 = vld [vmem:[%s29080_s5 + $0x474] ss:$8 sps:$4 sm:$0xff]  }
 0x795   : > { %17530 = vmatprep.mubr.msk.bf16.mxu0 %vm12423_vm15, %v27549_v63  ;;  %13664 = vmatpush1.bf16.msra.mxu0 %v20785_v5  ;;  %v20794_v63 = vld [vmem:[%s29080_s5 + $0x470] ss:$8 sps:$4 sm:$0xff]   ;;  %v29883_v5 = vpack.c.bf16 %v29881_v8, %v29882_v48  ;;  %v29901_v8 = vld [vmem:[#allocation28_spill] sm:$0xff] }
 0x796   : > { %13665 = vmatprep.subr.bf16.mxu0 %v20790_v13  ;;  %v20818_v13 = vld [vmem:[%s29080_s5 + $0x4f0] ss:$8 sps:$4 sm:$0xff]   ;;  %v17557_v48 = vcombine.high %v29901_v8, %v13209_v4 }
 0x799   : > { %13666 = vmatpush1.bf16.msra.mxu0 %v20788_v22  ;;  %v20823_v22 = vld [vmem:[%s29080_s5 + $0x504] ss:$8 sps:$4 sm:$0xff]  }
 0x79a   : > { %13667 = vmatprep.subr.bf16.mxu0 %v20793_v58  ;;  %v20821_v58 = vld [vmem:[%s29080_s5 + $0x500] ss:$8 sps:$4 sm:$0xff]  }
 0x79c   : > { %13189 = vmatmul.mubr.bf16.gmra.mrb[84].mxu0 %v27571_v27  ;;  %v20802_v27 = vld [vmem:[%s29080_s5 + $0x494] ss:$8 sps:$4 sm:$0xff]  }
 0x79d   : > { %17531 = vmatprep.mubr.msk.bf16.mxu0 %vm12423_vm15, %v27576_v26  ;;  %13668 = vmatpush1.bf16.msra.mxu0 %v20791_v20  ;;  %v29869_v26 = vld [vmem:[#allocation60_spill] sm:$0xff]  ;;  %v20826_v20 = vld [vmem:[%s29080_s5 + $0x514] ss:$8 sps:$4 sm:$0xff]  }
 0x79e   : > { %13669 = vmatprep.subr.bf16.mxu0 %v20796_v10  ;;  %v29871_v47 = vpack.c.bf16 %v29869_v26, %v29870_v14  ;;  %v29884_v10 = vld [vmem:[#allocation24_spill] sm:$0xff]  ;;  %v20824_v14 = vld [vmem:[%s29080_s5 + $0x510] ss:$8 sps:$4 sm:$0xff]  }
 0x7a1   : > { %13670 = vmatpush1.bf16.msra.mxu0 %v20794_v63  ;;  %v29885_v63 = vld [vmem:[#allocation63_spill] sm:$0xff] }
 0x7a2   : > { %13671 = vmatprep.subr.bf16.mxu0 %v20799_v1  ;;  %v29886_v1 = vpack.c.bf16 %v29884_v10, %v29885_v63  ;;  %v29903_v10 = vmov 0  }
 0x7a4   : > { %13199 = vmatmul.mubr.bf16.gmra.mrb[88].mxu0 %v27596_v15  ;;  %v20808_v15 = vld [vmem:[%s29080_s5 + $0x4b4] ss:$8 sps:$4 sm:$0xff]  }
 0x7a5   : > { %13672 = vmatpush1.bf16.msra.mxu0 %v20797_v39  ;;  %13679 = vmatprep.mubr.bf16.mxu0 %v29871_v47  ;;  %v29887_v39 = vld [vmem:[#allocation19_spill] sm:$0xff]  ;;  %v20829_v47 = vld [vmem:[%s29080_s5 + $0x524] ss:$8 sps:$4 sm:$0xff]  }
 0x7a6   : > { %13673 = vmatprep.subr.bf16.mxu0 %v20802_v27  ;;  %v29888_v27 = vld [vmem:[#allocation77_spill] sm:$0xff] }
 0x7a7   : > { %v29889_v26 = vpack.c.bf16 %v29887_v39, %v29888_v27 }
 0x7a9   : > { %13674 = vmatpush1.bf16.msra.mxu0 %v20800_v35  ;;  %v20827_v35 = vld [vmem:[%s29080_s5 + $0x520] ss:$8 sps:$4 sm:$0xff]  }
 0x7aa   : > { %13675 = vmatprep.subr.bf16.mxu0 %v20805_v60  ;;  %v20832_v60 = vld [vmem:[%s29080_s5 + $0x534] ss:$8 sps:$4 sm:$0xff]  }
 0x7ad   : > { %13676 = vmatpush1.bf16.msra.mxu0 %v20803_v57  ;;  %v29890_v57 = vld [vmem:[#allocation18_spill] sm:$0xff] }
 0x7ae   : > { %13677 = vmatprep.subr.bf16.mxu0 %v20808_v15  ;;  %v29891_v15 = vld [vmem:[#allocation64_spill] sm:$0xff] }
 0x7b1   : > { %13678 = vmatpush1.bf16.msra.mxu0 %v20806_v29  ;;  %v29892_v29 = vpack.c.bf16 %v29890_v57, %v29891_v15 }
 0x7b2   : > { %13750 = vmatprep.subr.bf16.mxu0 %v20811_v3  ;;  %v29893_v3 = vld [vmem:[#allocation31_spill] sm:$0xff] }
 0x7b4   : > { %13680 = vmatmul.mubr.bf16.vlgmr.msra.gmra.mrb[64].mxu0 %v29874_v17  ;;  %v20833_v17 = vld [vmem:[%s29080_s5 + $0x540] ss:$8 sps:$4 sm:$0xff]  }
 0x7b5   : > { %13689 = vmatprep.mubr.bf16.mxu0 %v29877_v7  ;;  %13751 = vmatpush1.bf16.msra.mxu0 %v20809_v30  ;;  %v29894_v30 = vld [vmem:[#allocation21_spill] sm:$0xff]  ;;  %v29897_v7 = vld [vmem:[#allocation20_spill] sm:$0xff] }
 0x7b6   : > { %13752 = vmatprep.subr.bf16.mxu0 %v20814_v28  ;;  %v29895_v28 = vpack.c.bf16 %v29893_v3, %v29894_v30 }
 0x7b9   : > { %13753 = vmatpush1.bf16.msra.mxu0 %v20812_v56  ;;  %v29898_v56 = vpack.c.bf16 %v29896_v45, %v29897_v7 }
 0x7ba   : > { %13754 = vmatprep.subr.bf16.mxu0 %v20817_v50  ;;  %v29899_v50 = vld [vmem:[#allocation30_spill] sm:$0xff] }
 0x7bc   : > { %13690 = vmatmul.mubr.bf16.gmra.mrb[68].mxu0 %v29880_v31  ;;  %v20839_v31 = vld [vmem:[%s29080_s5 + $0x560] ss:$8 sps:$4 sm:$0xff]  }
 0x7bd   : > { %13699 = vmatprep.mubr.bf16.mxu0 %v29883_v5  ;;  %13755 = vmatpush1.bf16.msra.mxu0 %v20815_v16  ;;  %v29900_v16 = vpack.c.bf16 %v27182_v61, %v29899_v50  ;;  %v20844_v61 = vld [vmem:[%s29080_s5 + $0x574] ss:$8 sps:$4 sm:$0xff]   ;;  %v29902_v5 = vpack.c.bf16 %v27170_v18, %v27153_v37  ;;  %v20849_v18 = vld [vmem:[%s29080_s5 + $0x590] ss:$8 sps:$4 sm:$0xff]  }
 0x7be   : > { %13756 = vmatprep.subr.bf16.mxu0 %v20820_v38  ;;  %v20836_v38 = vld [vmem:[%s29080_s5 + $0x550] ss:$8 sps:$4 sm:$0xff]   ;;  %v20851_v37 = vld [vmem:[%s29080_s5 + $0x594] ss:$8 sps:$4 sm:$0xff]  }
 0x7c1   : > { %13757 = vmatpush1.bf16.msra.mxu0 %v20818_v13  ;;  %v20842_v13 = vld [vmem:[%s29080_s5 + $0x570] ss:$8 sps:$4 sm:$0xff]  }
 0x7c2   : > { %13758 = vmatprep.subr.bf16.mxu0 %v20823_v22  ;;  %v20847_v22 = vld [vmem:[%s29080_s5 + $0x584] ss:$8 sps:$4 sm:$0xff]  }
 0x7c4   : > { %13700 = vmatmul.mubr.bf16.gmra.mrb[72].mxu0 %v29886_v1  ;;  %v29905_v1 = vld [vmem:[#allocation9_spill] sm:$0xff] }
 0x7c5   : > { %13709 = vmatprep.mubr.bf16.mxu0 %v29889_v26  ;;  %13759 = vmatpush1.bf16.msra.mxu0 %v20821_v58  ;;  %v20845_v58 = vld [vmem:[%s29080_s5 + $0x580] ss:$8 sps:$4 sm:$0xff]  }
 0x7c6   : > { %13760 = vmatprep.subr.bf16.mxu0 %v20826_v20  ;;  %v17556_v20 = vcombine.low %v29901_v8, %v13209_v4 }
 0x7c9   : > { %13761 = vmatpush1.bf16.msra.mxu0 %v20824_v14 }
 0x7ca   : > { %13762 = vmatprep.subr.bf16.mxu0 %v20829_v47 }
 0x7cc   : > { %13710 = vmatmul.mubr.bf16.gmra.mrb[76].mxu0 %v29892_v29 }
 0x7cd   : > { %13719 = vmatprep.mubr.bf16.mxu0 %v29895_v28  ;;  %13763 = vmatpush1.bf16.msra.mxu0 %v20827_v35 }
 0x7ce   : > { %13764 = vmatprep.subr.bf16.mxu0 %v20832_v60 }
 0x7d1   : > { %13765 = vmatpush1.bf16.msra.mxu0 %v20830_v32 }
 0x7d2   : > { %13766 = vmatprep.subr.bf16.mxu0 %v20835_v24 }
 0x7d4   : > { %13720 = vmatmul.mubr.bf16.gmra.mrb[80].mxu0 %v29898_v56 }
 0x7d5   : > { %13729 = vmatprep.mubr.bf16.mxu0 %v29900_v16  ;;  %13767 = vmatpush1.bf16.msra.mxu0 %v20833_v17 }
 0x7d6   : > { %13768 = vmatprep.subr.bf16.mxu0 %v20838_v51 }
 0x7d9   : > { %13769 = vmatpush1.bf16.msra.mxu0 %v20836_v38 }
 0x7da   : > { %13770 = vmatprep.subr.bf16.mxu0 %v20841_v41 }
 0x7dc   : > { %13730 = vmatmul.mubr.bf16.gmra.mrb[84].mxu0 %v29902_v5 }
 0x7dd   : > { %13739 = vmatprep.mubr.bf16.mxu0 %v17557_v48  ;;  %13771 = vmatpush1.bf16.msra.mxu0 %v20839_v31 }
 0x7de   : > { %13772 = vmatprep.subr.bf16.mxu0 %v20844_v61 }
 0x7e1   : > { %13773 = vmatpush1.bf16.msra.mxu0 %v20842_v13 }
 0x7e2   : > { %13774 = vmatprep.subr.bf16.mxu0 %v20847_v22 }
 0x7e4   : > { %13740 = vmatmul.mubr.bf16.gmra.mrb[88].mxu0 %v17556_v20 }
 0x7e5   : > { %13775 = vmatpush1.bf16.msra.mxu0 %v20845_v58  ;;  %17620 = vmatprep.mubr.msk.bf16.mxu0 %vm12423_vm15, %v17535_v34  ;;  %v20874_v34 = vld [vmem:[%s29082_s7 + $0x108] ss:$8 sps:$4 sm:$0xff]  }
 0x7e6   : > { %13776 = vmatprep.subr.bf16.mxu0 %v20851_v37  ;;  %14611 = vmatpush1.bf16.msra.mxu1 %v20874_v34  ;;  %v20895_v37 = vld [vmem:[%s29082_s7 + $0x178] ss:$8 sps:$4 sm:$0xff]   ;;  %v20898_v34 = vld [vmem:[%s29082_s7 + $0x188] ss:$8 sps:$4 sm:$0xff]  }
 0x7e9   : > { %13777 = vmatpush1.bf16.msra.mxu0 %v20849_v18  ;;  %v20897_v18 = vld [vmem:[%s29082_s7 + $0x17c] ss:$8 sps:$4 sm:$0xff]  }
 0x7ea   : > { %16147 = vmatprep.subr.bf16.mxu0 %v29903_v10 }
 0x7ec   : > { %13783 = vmatmul.mubr.bf16.vlgmr.msra.gmra.mrb[64].mxu0 %v17534_v53  ;;  %v20879_v53 = vld [vmem:[%s29082_s7 + $0x11c] ss:$8 sps:$4 sm:$0xff]  }
 0x7ed   : > { %17621 = vmatprep.mubr.msk.bf16.mxu0 %vm12423_vm15, %v17539_v43  ;;  %14612 = vmatprep.subr.bf16.mxu1 %v20879_v53  ;;  %v20882_v43 = vld [vmem:[%s29082_s7 + $0x12c] ss:$8 sps:$4 sm:$0xff]  }
 0x7ee   : > { %14613 = vmatpush1.bf16.msra.mxu1 %v20877_v9 }
 0x7ef   : > { %14614 = vmatprep.subr.bf16.mxu1 %v20882_v43 }
 0x7f2   : > { %14615 = vmatpush1.bf16.msra.mxu1 %v20880_v33 }
 0x7f4   : > { %13793 = vmatmul.mubr.bf16.gmra.mrb[68].mxu0 %v17538_v59  ;;  %v20885_v59 = vld [vmem:[%s29082_s7 + $0x13c] ss:$8 sps:$4 sm:$0xff]  }
 0x7f5   : > { %17622 = vmatprep.mubr.msk.bf16.mxu0 %vm12423_vm15, %v17543_v0  ;;  %v20883_v0 = vld [vmem:[%s29082_s7 + $0x138] ss:$8 sps:$4 sm:$0xff]   ;;  %14616 = vmatprep.subr.bf16.mxu1 %v20885_v59 }
 0x7f6   : > { %14617 = vmatpush1.bf16.msra.mxu1 %v20883_v0 }
 0x7fc   : > { %13803 = vmatmul.mubr.bf16.gmra.mrb[72].mxu0 %v17542_v54  ;;  %v20888_v54 = vld [vmem:[%s29082_s7 + $0x14c] ss:$8 sps:$4 sm:$0xff]  }
 0x7fd   : > { %17623 = vmatprep.mubr.msk.bf16.mxu0 %vm12423_vm15, %v17547_v40  ;;  %v20886_v40 = vld [vmem:[%s29082_s7 + $0x148] ss:$8 sps:$4 sm:$0xff]   ;;  %14618 = vmatprep.subr.bf16.mxu1 %v20888_v54 }
 0x7fe   : > { %14619 = vmatpush1.bf16.msra.mxu1 %v20886_v40 }
 0x804   : > { %13813 = vmatmul.mubr.bf16.gmra.mrb[76].mxu0 %v17546_v21  ;;  %v20891_v21 = vld [vmem:[%s29082_s7 + $0x15c] ss:$8 sps:$4 sm:$0xff]  }
 0x805   : > { %17624 = vmatprep.mubr.msk.bf16.mxu0 %vm12423_vm15, %v17551_v11  ;;  %v20889_v11 = vld [vmem:[%s29082_s7 + $0x158] ss:$8 sps:$4 sm:$0xff]   ;;  %14620 = vmatprep.subr.bf16.mxu1 %v20891_v21 }
 0x806   : > { %14621 = vmatpush1.bf16.msra.mxu1 %v20889_v11 }
 0x80c   : > { %13823 = vmatmul.mubr.bf16.gmra.mrb[80].mxu0 %v17550_v23  ;;  %v20894_v23 = vld [vmem:[%s29082_s7 + $0x16c] ss:$8 sps:$4 sm:$0xff]  }
 0x80d   : > { %17625 = vmatprep.mubr.msk.bf16.mxu0 %vm12423_vm15, %v17555_v25  ;;  %v20892_v25 = vld [vmem:[%s29082_s7 + $0x168] ss:$8 sps:$4 sm:$0xff]   ;;  %14622 = vmatprep.subr.bf16.mxu1 %v20894_v23 }
 0x80e   : > { %14623 = vmatpush1.bf16.msra.mxu1 %v20892_v25 }
 0x80f   : > { %14624 = vmatprep.subr.bf16.mxu1 %v20897_v18 }
 0x812   : > { %14625 = vmatpush1.bf16.msra.mxu1 %v20895_v37 }
 0x813   : > { %14626 = vmatprep.subr.bf16.mxu1 %v20900_v2 }
 0x814   : > { %13833 = vmatmul.mubr.bf16.gmra.mrb[84].mxu0 %v17554_v52  ;;  %v13881_v52 = vld [vmem:[%s29081_s6] sm:$0x3] }
 0x815   : > { %17626 = vmatprep.mubr.msk.bf16.mxu0 %vm12423_vm15, %v17559_v49  ;;  %v28089_v63 = vrot.slane %v13881_v52, %v29904_v42  ;;  %v28092_v39 = vrot.slane %v13881_v52, %v29905_v1  ;;  %vm15628_vm15 = vmor %vm28937_vm0, %vm28418_vm10 }
 0x816   : > { %14627 = vmatpush1.bf16.msra.mxu1 %v20898_v34 }
 0x81c   : > { %13843 = vmatmul.mubr.bf16.gmra.mrb[88].mxu0 %v17558_v55 }
 0x8bf   : > { %v13784_v27 = vpop.f32.mrb[64].mxu0 }
 0x8c0   : > { %v13893_v26 = vadd.f32 %v28089_v63, %v13784_v27  ;;  %v13786_v14 = vpop.f32.mrb[65].mxu0  ;;  %v20901_v27 = vld [vmem:[%s29082_s7 + $0x198] ss:$8 sps:$4 sm:$0xff]  }
 0x8c1   : > { %v13894_v47 = vadd.f32 %v28092_v39, %v13786_v14  ;;  %v13788_v35 = vpop.f32.mrb[66].mxu0  ;;  %v14389_v14 = vld [vmem:[%s29082_s7 + $0x1a8] sm:$0xff] }
 0x8c2   : > { %v13895_v60 = vadd.f32 %v28089_v63, %v13788_v35  ;;  %v13790_v57 = vpop.f32.mrb[67].mxu0  ;;  %v13949_v29 = vrot.slane %v13893_v26, 4 }
 0x8c3   : > { %v13896_v15 = vadd.f32 %v28092_v39, %v13790_v57  ;;  %v13952_v30 = vrot.slane %v13894_v47, 4  ;;  %v17680_v57 = vcombine.high %v14389_v14, %v14389_v14 }
 0x8c4   : > { %v13950_v3 = vrot.slane %v13895_v60, 4 }
 0x8c5   : > { %v13953_v28 = vrot.slane %v13896_v15, 4 }
 0x8c6   : > { %v13951_v32 = vsel %vm6235_vm4, %v13949_v29, %v13950_v3 }
 0x8c7   : > { %v13794_v24 = vpop.f32.mrb[68].mxu0  ;;  %v13954_v17 = vsel %vm6235_vm4, %v13952_v30, %v13953_v28  ;;  %v28100_v51 = vmax.f32 %v13893_v26, %v13951_v32  ;;  %v20903_v26 = vld [vmem:[%s29082_s7 + $0x19c] ss:$8 sps:$4 sm:$0xff]  }
 0x8c8   : > { %v13897_v45 = vadd.f32 %v28089_v63, %v13794_v24  ;;  %v13796_v7 = vpop.f32.mrb[69].mxu0  ;;  %v28103_v56 = vmax.f32 %v13894_v47, %v13954_v17  ;;  %14628 = vmatprep.subr.bf16.mxu1 %v20903_v26 }
 0x8c9   : > { %v13898_v50 = vadd.f32 %v28092_v39, %v13796_v7  ;;  %v13798_v16 = vpop.f32.mrb[70].mxu0  ;;  %14629 = vmatpush1.bf16.msra.mxu1 %v20901_v27 }
 0x8ca   : > { %v13955_v38 = vrot.slane %v13897_v45, 4  ;;  %v13899_v41 = vadd.f32 %v28089_v63, %v13798_v16  ;;  %v13800_v4 = vpop.f32.mrb[71].mxu0  ;;  %17681 = vmatprep.subr.msk.bf16.mxu1 %vm6235_vm4, %v17680_v57 }
 0x8cb   : > { %v13957_v31 = vrot.slane %v13898_v50, 4  ;;  %v13900_v61 = vadd.f32 %v28092_v39, %v13800_v4  ;;  %v17679_v4 = vcombine.low %v14389_v14, %v14389_v14 }
 0x8cc   : > { %v13959_v8 = vrot.slane %v13899_v41, 4  ;;  %v13956_v48 = vsel %vm6235_vm4, %v13950_v3, %v13955_v38 }
 0x8cd   : > { %v13961_v5 = vrot.slane %v13900_v61, 4  ;;  %v13958_v13 = vsel %vm6235_vm4, %v13953_v28, %v13957_v31  ;;  %v28110_v22 = vmax.f32 %v13895_v60, %v13956_v48 }
 0x8ce   : > { %v28112_v58 = vmax.f32 %v13896_v15, %v13958_v13  ;;  %v13960_v20 = vsel %vm6235_vm4, %v13955_v38, %v13959_v8  ;;  %v14599_v13 = vsel %vm6235_vm4, %v17679_v4, 0 }
 0x8cf   : > { %v13804_v62 = vpop.f32.mrb[72].mxu0  ;;  %v13962_v49 = vsel %vm6235_vm4, %v13957_v31, %v13961_v5  ;;  %v28122_v55 = vmax.f32 %v13897_v45, %v13960_v20  ;;  %v20908_v20 = vld [vmem:[%s29082_s7 + $0x4] ss:$8 sps:$4 sm:$0xff]   ;;  %14631 = vmatpush1.bf16.msra.mxu1 %v14599_v13 }
 0x8d0   : > { %v13901_v46 = vadd.f32 %v28089_v63, %v13804_v62  ;;  %v13806_v12 = vpop.f32.mrb[73].mxu0  ;;  %v19374_v36 = vpack.i.bf16 %v28112_v58, %v28110_v22  ;;  %v28130_v6 = vmax.f32 %v13898_v50, %v13962_v49  ;;  %14880 = vmatprep.subr.bf16.mxu1 %v20908_v20 }
 0x8d1   : > { %v13902_v19 = vadd.f32 %v28092_v39, %v13806_v12  ;;  %v13808_v44 = vpop.f32.mrb[74].mxu0 }
 0x8d2   : > { %v13963_v53 = vrot.slane %v13901_v46, 4  ;;  %v13903_v9 = vadd.f32 %v28089_v63, %v13808_v44  ;;  %19375 = vrot.lane.b32.xlu1 %v19374_v36, %s21170_s24  ;;  %v13810_v43 = vpop.f32.mrb[75].mxu0  ;;  %v19379_v33 = vpack.i.bf16 %v28130_v6, %v28122_v55 }
 0x8d3   : > { %v13965_v59 = vrot.slane %v13902_v19, 4  ;;  %v13904_v0 = vadd.f32 %v28092_v39, %v13810_v43 }
 0x8d4   : > { %v13967_v54 = vrot.slane %v13903_v9, 4  ;;  %19380 = vrot.lane.b32.xlu0 %v19379_v33, %s21170_s24  ;;  %v13964_v40 = vsel %vm6235_vm4, %v13959_v8, %v13963_v53 }
 0x8d5   : > { %v13969_v21 = vrot.slane %v13904_v0, 4  ;;  %v13966_v11 = vsel %vm6235_vm4, %v13961_v5, %v13965_v59  ;;  %v28144_v23 = vmax.f32 %v13899_v41, %v13964_v40 }
 0x8d6   : > { %v28146_v25 = vmax.f32 %v13900_v61, %v13966_v11  ;;  %v13968_v52 = vsel %vm6235_vm4, %v13963_v53, %v13967_v54 }
 0x8d7   : > { %v13814_v47 = vpop.f32.mrb[76].mxu0  ;;  %v13970_v35 = vsel %vm6235_vm4, %v13965_v59, %v13969_v21  ;;  %v28159_v60 = vmax.f32 %v13901_v46, %v13968_v52 }
 0x8d8   : > { %v13905_v15 = vadd.f32 %v28089_v63, %v13814_v47  ;;  %v13816_v29 = vpop.f32.mrb[77].mxu0  ;;  %v19384_v3 = vpack.i.bf16 %v28146_v25, %v28144_v23  ;;  %v28164_v30 = vmax.f32 %v13902_v19, %v13970_v35 }
 0x8d9   : > { %v13906_v28 = vadd.f32 %v28092_v39, %v13816_v29  ;;  %v13818_v32 = vpop.f32.mrb[78].mxu0 }
 0x8da   : > { %v13971_v24 = vrot.slane %v13905_v15, 4  ;;  %v13907_v17 = vadd.f32 %v28089_v63, %v13818_v32  ;;  %19385 = vrot.lane.b32.xlu1 %v19384_v3, %s21170_s24  ;;  %v13820_v45 = vpop.f32.mrb[79].mxu0  ;;  %v19389_v7 = vpack.i.bf16 %v28164_v30, %v28159_v60 }
 0x8db   : > { %v13973_v50 = vrot.slane %v13906_v28, 4  ;;  %v13908_v16 = vadd.f32 %v28092_v39, %v13820_v45 }
 0x8dc   : > { %v13975_v38 = vrot.slane %v13907_v17, 4  ;;  %19390 = vrot.lane.b32.xlu0 %v19389_v7, %s21170_s24  ;;  %v13972_v41 = vsel %vm6235_vm4, %v13967_v54, %v13971_v24 }
 0x8dd   : > { %v13977_v31 = vrot.slane %v13908_v16, 4  ;;  %v13974_v61 = vsel %vm6235_vm4, %v13969_v21, %v13973_v50  ;;  %v28176_v8 = vmax.f32 %v13903_v9, %v13972_v41 }
 0x8de   : > { %v28178_v48 = vmax.f32 %v13904_v0, %v13974_v61  ;;  %v13976_v5 = vsel %vm6235_vm4, %v13971_v24, %v13975_v38 }
 0x8df   : > { %v13824_v37 = vpop.f32.mrb[80].mxu0  ;;  %v13978_v18 = vsel %vm6235_vm4, %v13973_v50, %v13977_v31  ;;  %v28186_v62 = vmax.f32 %v13905_v15, %v13976_v5 }
 0x8e0   : > { %v13909_v49 = vadd.f32 %v28089_v63, %v13824_v37  ;;  %v13826_v2 = vpop.f32.mrb[81].mxu0  ;;  %v19394_v46 = vpack.i.bf16 %v28178_v48, %v28176_v8  ;;  %v28191_v12 = vmax.f32 %v13906_v28, %v13978_v18 }
 0x8e1   : > { %v13910_v36 = vadd.f32 %v28092_v39, %v13826_v2  ;;  %v13828_v19 = vpop.f32.mrb[82].mxu0 }
 0x8e2   : > { %v13979_v44 = vrot.slane %v13909_v49, 4  ;;  %v13911_v34 = vadd.f32 %v28089_v63, %v13828_v19  ;;  %19395 = vrot.lane.b32.xlu1 %v19394_v46, %s21170_s24  ;;  %v13830_v53 = vpop.f32.mrb[83].mxu0  ;;  %v19399_v9 = vpack.i.bf16 %v28191_v12, %v28186_v62 }
 0x8e3   : > { %v13981_v43 = vrot.slane %v13910_v36, 4  ;;  %v13912_v33 = vadd.f32 %v28092_v39, %v13830_v53 }
 0x8e4   : > { %v13983_v59 = vrot.slane %v13911_v34, 4  ;;  %19400 = vrot.lane.b32.xlu0 %v19399_v9, %s21170_s24  ;;  %v13980_v0 = vsel %vm6235_vm4, %v13975_v38, %v13979_v44 }
 0x8e5   : > { %v13985_v54 = vrot.slane %v13912_v33, 4  ;;  %v13982_v40 = vsel %vm6235_vm4, %v13977_v31, %v13981_v43  ;;  %v28202_v21 = vmax.f32 %v13907_v17, %v13980_v0 }
 0x8e6   : > { %v28204_v11 = vmax.f32 %v13908_v16, %v13982_v40  ;;  %v13984_v52 = vsel %vm6235_vm4, %v13979_v44, %v13983_v59 }
 0x8e7   : > { %v13834_v27 = vpop.f32.mrb[84].mxu0  ;;  %v13986_v26 = vsel %vm6235_vm4, %v13981_v43, %v13985_v54  ;;  %v28208_v14 = vmax.f32 %v13909_v49, %v13984_v52 }
 0x8e8   : > { %v13913_v47 = vadd.f32 %v28089_v63, %v13834_v27  ;;  %v13836_v35 = vpop.f32.mrb[85].mxu0  ;;  %v19404_v57 = vpack.i.bf16 %v28204_v11, %v28202_v21  ;;  %v28213_v15 = vmax.f32 %v13910_v36, %v13986_v26 }
 0x8e9   : > { %v13914_v29 = vadd.f32 %v28092_v39, %v13836_v35  ;;  %v13838_v3 = vpop.f32.mrb[86].mxu0 }
 0x8ea   : > { %v13987_v28 = vrot.slane %v13913_v47, 4  ;;  %v13915_v32 = vadd.f32 %v28089_v63, %v13838_v3  ;;  %19405 = vrot.lane.b32.xlu1 %v19404_v57, %s21170_s24  ;;  %v13840_v24 = vpop.f32.mrb[87].mxu0  ;;  %v19409_v17 = vpack.i.bf16 %v28213_v15, %v28208_v14  ;;  %v19434_v3 = vpack.i.bf16 %v28103_v56, %v28100_v51 }
 0x8eb   : > { %v13989_v45 = vrot.slane %v13914_v29, 4  ;;  %v13916_v7 = vadd.f32 %v28092_v39, %v13840_v24 }
 0x8ec   : > { %v13991_v50 = vrot.slane %v13915_v32, 4  ;;  %19410 = vrot.lane.b32.xlu0 %v19409_v17, %s21170_s24  ;;  %v13988_v16 = vsel %vm6235_vm4, %v13983_v59, %v13987_v28 }
 0x8ed   : > { %v13993_v38 = vrot.slane %v13916_v7, 4  ;;  %v13990_v41 = vsel %vm6235_vm4, %v13985_v54, %v13989_v45  ;;  %v28224_v4 = vmax.f32 %v13911_v34, %v13988_v16 }
 0x8ee   : > { %v28226_v31 = vmax.f32 %v13912_v33, %v13990_v41  ;;  %v13992_v61 = vsel %vm6235_vm4, %v13987_v28, %v13991_v50 }
 0x8ef   : > { %v13844_v5 = vpop.f32.mrb[88].mxu0  ;;  %v13994_v13 = vsel %vm6235_vm4, %v13989_v45, %v13993_v38  ;;  %v28230_v20 = vmax.f32 %v13913_v47, %v13992_v61 }
 0x8f0   : > { %v13917_v37 = vadd.f32 %v28089_v63, %v13844_v5  ;;  %v13846_v18 = vpop.f32.mrb[89].mxu0  ;;  %v19414_v49 = vpack.i.bf16 %v28226_v31, %v28224_v4  ;;  %v28235_v2 = vmax.f32 %v13914_v29, %v13994_v13 }
 0x8f1   : > { %v13918_v46 = vadd.f32 %v28092_v39, %v13846_v18  ;;  %v13848_v36 = vpop.f32.mrb[90].mxu0 }
 0x8f2   : > { %v13995_v19 = vrot.slane %v13917_v37, 4  ;;  %v13919_v44 = vadd.f32 %v28089_v63, %v13848_v36  ;;  %19415 = vrot.lane.b32.xlu1 %v19414_v49, %s21170_s24  ;;  %v13850_v34 = vpop.f32.mrb[91].mxu0  ;;  %v19419_v53 = vpack.i.bf16 %v28235_v2, %v28230_v20 }
 0x8f3   : > { %v13997_v9 = vrot.slane %v13918_v46, 4  ;;  %v13920_v43 = vadd.f32 %v28092_v39, %v13850_v34 }
 0x8f4   : > { %v13999_v33 = vrot.slane %v13919_v44, 4  ;;  %19420 = vrot.lane.b32.xlu0 %v19419_v53, %s21170_s24  ;;  %v13996_v59 = vsel %vm6235_vm4, %v13991_v50, %v13995_v19 }
 0x8f5   : > { %v14001_v0 = vrot.slane %v13920_v43, 4  ;;  %v13998_v54 = vsel %vm6235_vm4, %v13993_v38, %v13997_v9  ;;  %v28246_v40 = vmax.f32 %v13915_v32, %v13996_v59 }
 0x8f6   : > { %v28248_v63 = vmax.f32 %v13916_v7, %v13998_v54  ;;  %v14000_v52 = vsel %vm6235_vm4, %v13995_v19, %v13999_v33  ;;  %v28258_v35 = vmax.f32 %v13919_v44, %v13999_v33 }
 0x8f7   : > { %v14002_v27 = vsel %vm6235_vm4, %v13997_v9, %v14001_v0  ;;  %v28252_v26 = vmax.f32 %v13917_v37, %v14000_v52  ;;  %v28260_v57 = vmax.f32 %v13920_v43, %v14001_v0 }
 0x8f8   : > { %v19424_v39 = vpack.i.bf16 %v28248_v63, %v28246_v40  ;;  %v28256_v47 = vmax.f32 %v13918_v46, %v14002_v27 }
 0x8f9   : > { %v19439_v28 = vpack.i.bf16 %v28260_v57, %v28258_v35 }
 0x8fa   : > { %19425 = vrot.lane.b32.xlu1 %v19424_v39, %s21170_s24  ;;  %v19429_v29 = vpack.i.bf16 %v28256_v47, %v28252_v26 }
 0x8fc   : > { %19430 = vrot.lane.b32.xlu0 %v19429_v29, %s21170_s24 }
 0x8fe   : > { %19435 = vrot.lane.b32.xlu1 %v19434_v3, %s21170_s24 }
 0x900   : > { %19440 = vrot.lane.b32.xlu0 %v19439_v28, %s21170_s24 }
 0x944   : > { %v19376_v32 = vpop.permute.xlu1 %19375 }
 0x945   : > { %v19378_v24 = vunpack.i.h.bf16 %v19376_v32  ;;  %v19377_v17 = vunpack.i.l.bf16 %v19376_v32 }
 0x946   : > { %v19381_v45 = vpop.permute.xlu0 %19380 }
 0x947   : > { %v14188_v7 = vmax.f32 %v28112_v58, %v19378_v24  ;;  %v14144_v50 = vsel %vm11373_vm1, %v19377_v17, %v19378_v24  ;;  %v19383_v16 = vunpack.i.h.bf16 %v19381_v45  ;;  %v19382_v38 = vunpack.i.l.bf16 %v19381_v45  ;;  %v20912_v24 = vld [vmem:[%s29082_s7 + $0x14] ss:$8 sps:$4 sm:$0xff]  }
 0x948   : > { %v14187_v41 = vmax.f32 %v28110_v22, %v14144_v50 }
 0x949   : > { %v14190_v5 = vmax.f32 %v28130_v6, %v19383_v16  ;;  %v14145_v13 = vsel %vm11373_vm1, %v19382_v38, %v19383_v16  ;;  %v20910_v16 = vld [vmem:[%s29082_s7 + $0x10] ss:$8 sps:$4 sm:$0xff]  }
 0x94a   : > { %v17934_v37 = vpack.c.bf16 %v14188_v7, %v14187_v41  ;;  %v14189_v18 = vmax.f32 %v28122_v55, %v14145_v13 }
 0x94c   : > { %14300 = vst.msk [vmem:[#allocation4 + $0x8] sm:$0xff] %vm28276_vm3, %v17934_v37  ;;  %v17935_v58 = vpack.c.bf16 %v14190_v5, %v14189_v18  ;;  %v19386_v49 = vpop.permute.xlu1 %19385 }
 0x94d   : > { %v19388_v46 = vunpack.i.h.bf16 %v19386_v49  ;;  %v19387_v36 = vunpack.i.l.bf16 %v19386_v49 }
 0x94e   : > { %14301 = vst.msk [vmem:[#allocation4 + $0x10] sm:$0xff] %vm28276_vm3, %v17935_v58  ;;  %v19391_v22 = vpop.permute.xlu0 %19390  ;;  %v20914_v58 = vld [vmem:[%s29082_s7 + $0x20] ss:$8 sps:$4 sm:$0xff]  }
 0x94f   : > { %v14192_v19 = vmax.f32 %v28146_v25, %v19388_v46  ;;  %v14146_v6 = vsel %vm11373_vm1, %v19387_v36, %v19388_v46  ;;  %v19393_v44 = vunpack.i.h.bf16 %v19391_v22  ;;  %v19392_v34 = vunpack.i.l.bf16 %v19391_v22 }
 0x950   : > { %v14191_v53 = vmax.f32 %v28144_v23, %v14146_v6  ;;  %v20920_v6 = vld [vmem:[%s29082_s7 + $0x34] ss:$8 sps:$4 sm:$0xff]  }
 0x951   : > { %v14194_v55 = vmax.f32 %v28164_v30, %v19393_v44  ;;  %v14147_v9 = vsel %vm11373_vm1, %v19392_v34, %v19393_v44 }
 0x952   : > { %v17936_v43 = vpack.c.bf16 %v14192_v19, %v14191_v53  ;;  %v14193_v33 = vmax.f32 %v28159_v60, %v14147_v9  ;;  %v20906_v60 = vld [vmem:[%s29082_s7] ss:$8 sps:$4 sm:$0xff]   ;;  %v20918_v9 = vld [vmem:[%s29082_s7 + $0x30] ss:$8 sps:$4 sm:$0xff]  }
 0x953   : > { %v28295_v52 = vld [vmem:[#allocation4 + $0x8] sm:$0xff] }
 0x954   : > { %14302 = vst.msk [vmem:[#allocation4 + $0x18] sm:$0xff] %vm28276_vm3, %v17936_v43  ;;  %v17937_v59 = vpack.c.bf16 %v14194_v55, %v14193_v33  ;;  %v19396_v0 = vpop.permute.xlu1 %19395 }
 0x955   : > { %v19398_v54 = vunpack.i.h.bf16 %v19396_v0  ;;  %v19397_v25 = vunpack.i.l.bf16 %v19396_v0  ;;  %v28297_v27 = vld [vmem:[#allocation4 + $0x10] sm:$0xff] }
 0x956   : > { %14303 = vst.msk [vmem:[#allocation4 + $0x20] sm:$0xff] %vm28276_vm3, %v17937_v59  ;;  %v19401_v23 = vpop.permute.xlu0 %19400  ;;  %v17642_v30 = vcombine.high %v28295_v52, %v28297_v27  ;;  %v17641_v39 = vcombine.low %v28295_v52, %v28297_v27 }
 0x957   : > { %v14196_v29 = vmax.f32 %v28178_v48, %v19398_v54  ;;  %v14148_v3 = vsel %vm11373_vm1, %v19397_v25, %v19398_v54  ;;  %v19403_v28 = vunpack.i.h.bf16 %v19401_v23  ;;  %v19402_v32 = vunpack.i.l.bf16 %v19401_v23  ;;  %v20922_v23 = vld [vmem:[%s29082_s7 + $0x40] ss:$8 sps:$4 sm:$0xff]  }
 0x958   : > { %v14195_v17 = vmax.f32 %v28176_v8, %v14148_v3  ;;  %17682 = vmatprep.mubr.msk.bf16.mxu1 %vm14579_vm6, %v17642_v30  ;;  %v20916_v8 = vld [vmem:[%s29082_s7 + $0x24] ss:$8 sps:$4 sm:$0xff]  }
 0x959   : > { %v14198_v45 = vmax.f32 %v28191_v12, %v19403_v28  ;;  %v14149_v7 = vsel %vm11373_vm1, %v19402_v32, %v19403_v28  ;;  %14637 = vmatmul.mubr.bf16.vlgmr.msra.gmra.mrb[80].mxu1 %v17641_v39  ;;  %v20928_v28 = vld [vmem:[%s29082_s7 + $0x54] ss:$8 sps:$4 sm:$0xff]  }
 0x95a   : > { %v17938_v50 = vpack.c.bf16 %v14196_v29, %v14195_v17  ;;  %v14197_v48 = vmax.f32 %v28186_v62, %v14149_v7  ;;  %14881 = vmatpush1.bf16.msra.mxu1 %v20906_v60  ;;  %v20926_v7 = vld [vmem:[%s29082_s7 + $0x50] ss:$8 sps:$4 sm:$0xff]  }
 0x95b   : > { %14882 = vmatprep.subr.bf16.mxu1 %v20912_v24  ;;  %v28326_v13 = vld [vmem:[#allocation4 + $0x18] sm:$0xff] }
 0x95c   : > { %14304 = vst.msk [vmem:[#allocation4 + $0x28] sm:$0xff] %vm28276_vm3, %v17938_v50  ;;  %v17939_v12 = vpack.c.bf16 %v14198_v45, %v14197_v48  ;;  %v19406_v38 = vpop.permute.xlu1 %19405 }
 0x95d   : > { %v19408_v41 = vunpack.i.h.bf16 %v19406_v38  ;;  %v19407_v5 = vunpack.i.l.bf16 %v19406_v38  ;;  %v28328_v62 = vld [vmem:[#allocation4 + $0x20] sm:$0xff] }
 0x95e   : > { %14305 = vst.msk [vmem:[#allocation4 + $0x30] sm:$0xff] %vm28276_vm3, %v17939_v12  ;;  %14883 = vmatpush1.bf16.msra.mxu1 %v20910_v16  ;;  %v19411_v37 = vpop.permute.xlu0 %19410  ;;  %v17644_v18 = vcombine.high %v28326_v13, %v28328_v62  ;;  %v17643_v49 = vcombine.low %v28326_v13, %v28328_v62 }
 0x95f   : > { %v14200_v46 = vmax.f32 %v28204_v11, %v19408_v41  ;;  %v14150_v36 = vsel %vm11373_vm1, %v19407_v5, %v19408_v41  ;;  %v19413_v22 = vunpack.i.h.bf16 %v19411_v37  ;;  %v19412_v19 = vunpack.i.l.bf16 %v19411_v37  ;;  %14884 = vmatprep.subr.bf16.mxu1 %v20916_v8  ;;  %v20930_v41 = vld [vmem:[%s29082_s7 + $0x60] ss:$8 sps:$4 sm:$0xff]  }
 0x960   : > { %v14199_v44 = vmax.f32 %v28202_v21, %v14150_v36  ;;  %17683 = vmatprep.mubr.msk.bf16.mxu1 %vm14579_vm6, %v17644_v18  ;;  %v20924_v21 = vld [vmem:[%s29082_s7 + $0x44] ss:$8 sps:$4 sm:$0xff]  }
 0x961   : > { %v14202_v34 = vmax.f32 %v28213_v15, %v19413_v22  ;;  %v14151_v53 = vsel %vm11373_vm1, %v19412_v19, %v19413_v22  ;;  %14647 = vmatmul.mubr.bf16.gmra.mrb[84].mxu1 %v17643_v49 }
 0x962   : > { %v17940_v55 = vpack.c.bf16 %v14200_v46, %v14199_v44  ;;  %v14201_v11 = vmax.f32 %v28208_v14, %v14151_v53  ;;  %14885 = vmatpush1.bf16.msra.mxu1 %v20914_v58  ;;  %v20935_v46 = vld [vmem:[%s29082_s7 + $0x74] ss:$8 sps:$4 sm:$0xff]  }
 0x963   : > { %14886 = vmatprep.subr.bf16.mxu1 %v20920_v6  ;;  %v28357_v0 = vld [vmem:[#allocation4 + $0x28] sm:$0xff] }
 0x964   : > { %14306 = vst.msk [vmem:[#allocation4 + $0x38] sm:$0xff] %vm28276_vm3, %v17940_v55  ;;  %v17941_v15 = vpack.c.bf16 %v14202_v34, %v14201_v11  ;;  %v19416_v43 = vpop.permute.xlu1 %19415 }
 0x965   : > { %v19418_v33 = vunpack.i.h.bf16 %v19416_v43  ;;  %v19417_v59 = vunpack.i.l.bf16 %v19416_v43  ;;  %v28359_v14 = vld [vmem:[#allocation4 + $0x30] sm:$0xff] }
 0x966   : > { %14307 = vst.msk [vmem:[#allocation4 + $0x40] sm:$0xff] %vm28276_vm3, %v17941_v15  ;;  %14887 = vmatpush1.bf16.msra.mxu1 %v20918_v9  ;;  %v19421_v54 = vpop.permute.xlu0 %19420  ;;  %v17646_v25 = vcombine.high %v28357_v0, %v28359_v14  ;;  %v17645_v30 = vcombine.low %v28357_v0, %v28359_v14 }
 0x967   : > { %v14204_v60 = vmax.f32 %v28226_v31, %v19418_v33  ;;  %v14152_v39 = vsel %vm11373_vm1, %v19417_v59, %v19418_v33  ;;  %v19423_v29 = vunpack.i.h.bf16 %v19421_v54  ;;  %v19422_v3 = vunpack.i.l.bf16 %v19421_v54  ;;  %14888 = vmatprep.subr.bf16.mxu1 %v20924_v21  ;;  %v20981_v33 = vld [vmem:[%s29082_s7 + $0x230] ss:$8 sps:$4 sm:$0xff]  }
 0x968   : > { %v14203_v32 = vmax.f32 %v28224_v4, %v14152_v39  ;;  %17684 = vmatprep.mubr.msk.bf16.mxu1 %vm14579_vm6, %v17646_v25  ;;  %v20932_v4 = vld [vmem:[%s29082_s7 + $0x64] ss:$8 sps:$4 sm:$0xff]  }
 0x969   : > { %v14206_v24 = vmax.f32 %v28235_v2, %v19423_v29  ;;  %v14153_v17 = vsel %vm11373_vm1, %v19422_v3, %v19423_v29  ;;  %14657 = vmatmul.mubr.bf16.gmra.mrb[88].mxu1 %v17645_v30  ;;  %v14319_v29 = vld [vmem:[#allocation4 + $0x68] sm:$0x33] }
 0x96a   : > { %v17942_v45 = vpack.c.bf16 %v14204_v60, %v14203_v32  ;;  %v14205_v31 = vmax.f32 %v28230_v20, %v14153_v17  ;;  %14889 = vmatpush1.bf16.msra.mxu1 %v20922_v23  ;;  %v20941_v32 = vld [vmem:[%s29082_s7 + $0x90] ss:$8 sps:$4 sm:$0xff]   ;;  %v20947_v17 = vld [vmem:[%s29082_s7 + $0xa4] ss:$8 sps:$4 sm:$0xff]  }
 0x96b   : > { %14890 = vmatprep.subr.bf16.mxu1 %v20928_v28  ;;  %v28388_v8 = vld [vmem:[#allocation4 + $0x38] sm:$0xff] }
 0x96c   : > { %14308 = vst.msk [vmem:[#allocation4 + $0x48] sm:$0xff] %vm28276_vm3, %v17942_v45  ;;  %v17943_v2 = vpack.c.bf16 %v14206_v24, %v14205_v31  ;;  %v19426_v50 = vpop.permute.xlu1 %19425 }
 0x96d   : > { %v19428_v48 = vunpack.i.h.bf16 %v19426_v50  ;;  %v19427_v16 = vunpack.i.l.bf16 %v19426_v50  ;;  %v28390_v20 = vld [vmem:[#allocation4 + $0x40] sm:$0xff] }
 0x96e   : > { %14309 = vst.msk [vmem:[#allocation4 + $0x50] sm:$0xff] %vm28276_vm3, %v17943_v2  ;;  %14891 = vmatpush1.bf16.msra.mxu1 %v20926_v7  ;;  %v19431_v12 = vpop.permute.xlu0 %19430  ;;  %v17648_v38 = vcombine.high %v28388_v8, %v28390_v20  ;;  %v17647_v5 = vcombine.low %v28388_v8, %v28390_v20 }
 0x96f   : > { %v14208_v37 = vmax.f32 %v28248_v63, %v19428_v48  ;;  %v14154_v18 = vsel %vm11373_vm1, %v19427_v16, %v19428_v48  ;;  %v19433_v58 = vunpack.i.h.bf16 %v19431_v12  ;;  %v19432_v49 = vunpack.i.l.bf16 %v19431_v12  ;;  %14892 = vmatprep.subr.bf16.mxu1 %v20932_v4  ;;  %v20945_v4 = vld [vmem:[%s29082_s7 + $0xa0] ss:$8 sps:$4 sm:$0xff]   ;;  %v20951_v48 = vld [vmem:[%s29082_s7 + $0xb4] ss:$8 sps:$4 sm:$0xff]   ;;  %v20949_v12 = vld [vmem:[%s29082_s7 + $0xb0] ss:$8 sps:$4 sm:$0xff]  }
 0x970   : > { %v14207_v36 = vmax.f32 %v28246_v40, %v14154_v18  ;;  %17685 = vmatprep.mubr.msk.bf16.mxu1 %vm14579_vm6, %v17648_v38  ;;  %v19436_v22 = vpop.permute.xlu1 %19435  ;;  %v20933_v40 = vld [vmem:[%s29082_s7 + $0x70] ss:$8 sps:$4 sm:$0xff]   ;;  %v20954_v38 = vld [vmem:[%s29082_s7 + $0xc4] ss:$8 sps:$4 sm:$0xff]  }
 0x971   : > { %v14210_v19 = vmax.f32 %v28256_v47, %v19433_v58  ;;  %v14155_v63 = vsel %vm11373_vm1, %v19432_v49, %v19433_v58  ;;  %v19438_v6 = vunpack.i.h.bf16 %v19436_v22  ;;  %v19437_v44 = vunpack.i.l.bf16 %v19436_v22  ;;  %14667 = vmatmul.mubr.bf16.gmra.mrb[92].mxu1 %v17647_v5  ;;  %v20952_v5 = vld [vmem:[%s29082_s7 + $0xc0] ss:$8 sps:$4 sm:$0xff]   ;;  %v20959_v49 = vld [vmem:[%s29082_s7 + $0x1b4] ss:$8 sps:$4 sm:$0xff]   ;;  %v20962_v22 = vld [vmem:[%s29082_s7 + $0x1c4] ss:$8 sps:$4 sm:$0xff]  }
 0x972   : > { %v17944_v34 = vpack.c.bf16 %v14208_v37, %v14207_v36  ;;  %v14209_v53 = vmax.f32 %v28252_v26, %v14155_v63  ;;  %14893 = vmatpush1.bf16.msra.mxu1 %v20930_v41  ;;  %v19441_v55 = vpop.permute.xlu0 %19440  ;;  %v20939_v26 = vld [vmem:[%s29082_s7 + $0x84] ss:$8 sps:$4 sm:$0xff]   ;;  %v14360_v41 = vld [vmem:[%s29082_s7 + $0xd0] sm:$0xff]  ;;  %v20960_v63 = vld [vmem:[%s29082_s7 + $0x1c0] ss:$8 sps:$4 sm:$0xff]  }
 0x973   : > { %v14186_v11 = vmax.f32 %v28103_v56, %v19438_v6  ;;  %v14143_v9 = vsel %vm11373_vm1, %v19437_v44, %v19438_v6  ;;  %v19443_v21 = vunpack.i.h.bf16 %v19441_v55  ;;  %v19442_v15 = vunpack.i.l.bf16 %v19441_v55  ;;  %14894 = vmatprep.subr.bf16.mxu1 %v20935_v46  ;;  %v28436_v25 = vld [vmem:[#allocation4 + $0x48] sm:$0xff] }
 0x974   : > { %14310 = vst.msk [vmem:[#allocation4 + $0x58] sm:$0xff] %vm28276_vm3, %v17944_v34  ;;  %v17945_v43 = vpack.c.bf16 %v14210_v19, %v14209_v53  ;;  %v14185_v56 = vmax.f32 %v28100_v51, %v14143_v9  ;;  %v17727_v37 = vcombine.high %v14360_v41, %v14360_v41  ;;  %v17726_v18 = vcombine.low %v14360_v41, %v14360_v41  ;;  %v20957_v46 = vld [vmem:[%s29082_s7 + $0x1b0] ss:$8 sps:$4 sm:$0xff]   ;;  %v20968_v34 = vld [vmem:[%s29082_s7 + $0x1e4] ss:$8 sps:$4 sm:$0xff]  }
 0x975   : > { %v14212_v59 = vmax.f32 %v28260_v57, %v19443_v21  ;;  %v14156_v54 = vsel %vm11373_vm1, %v19442_v15, %v19443_v21  ;;  %v28438_v23 = vld [vmem:[#allocation4 + $0x50] sm:$0xff]  ;;  %v28509_v19 = vcombine.high %v28297_v27, %v28326_v13  ;;  %v20963_v6 = vld [vmem:[%s29082_s7 + $0x1d0] ss:$8 sps:$4 sm:$0xff]   ;;  %v28524_v44 = vcombine.low %v28297_v27, %v28326_v13  ;;  %v20971_v13 = vld [vmem:[%s29082_s7 + $0x1f4] ss:$8 sps:$4 sm:$0xff]  }
 0x976   : > { %14311 = vst.msk [vmem:[#allocation4 + $0x60] sm:$0xff] %vm28276_vm3, %v17945_v43  ;;  %v17933_v30 = vpack.c.bf16 %v14186_v11, %v14185_v56  ;;  %v14211_v51 = vmax.f32 %v28258_v35, %v14156_v54  ;;  %14895 = vmatpush1.bf16.msra.mxu1 %v20933_v40  ;;  %v17650_v60 = vcombine.high %v28436_v25, %v28438_v23  ;;  %v20937_v57 = vld [vmem:[%s29082_s7 + $0x80] ss:$8 sps:$4 sm:$0xff]   ;;  %v20943_v35 = vld [vmem:[%s29082_s7 + $0x94] ss:$8 sps:$4 sm:$0xff]   ;;  %v14875_v58 = vsel %vm6235_vm4, %v17726_v18, 0 }
 0x977   : > { %v17649_v39 = vcombine.low %v28436_v25, %v28438_v23  ;;  %14896 = vmatprep.subr.bf16.mxu1 %v20939_v26  ;;  %v28531_v53 = vcombine.high %v28328_v62, %v28357_v0  ;;  %v20966_v27 = vld [vmem:[%s29082_s7 + $0x1e0] ss:$8 sps:$4 sm:$0xff]   ;;  %v20969_v55 = vld [vmem:[%s29082_s7 + $0x1f0] ss:$8 sps:$4 sm:$0xff]   ;;  %v17692_v40 = vcombine.low %v28328_v62, %v28357_v0  ;;  %v20974_v11 = vld [vmem:[%s29082_s7 + $0x204] ss:$8 sps:$4 sm:$0xff]   ;;  %v17695_v9 = vcombine.high %v28359_v14, %v28388_v8 }
 0x978   : > { %14299 = vst.msk [vmem:[#allocation4] sm:$0xff] %vm28276_vm3, %v17933_v30  ;;  %v17946_v3 = vpack.c.bf16 %v14212_v59, %v14211_v51  ;;  %17686 = vmatprep.mubr.msk.bf16.mxu1 %vm14579_vm6, %v17650_v60  ;;  %v20972_v21 = vld [vmem:[%s29082_s7 + $0x200] ss:$8 sps:$4 sm:$0xff]   ;;  %v20977_v62 = vld [vmem:[%s29082_s7 + $0x214] ss:$8 sps:$4 sm:$0xff]   ;;  %v17694_v15 = vcombine.low %v28359_v14, %v28388_v8  ;;  %v17697_v43 = vcombine.high %v28390_v20, %v28436_v25  ;;  %vm15490_vm1 = vcmask 916480  }
 0x979   : > { %14677 = vmatmul.mubr.bf16.gmra.mrb[96].mxu1 %v17649_v39  ;;  %v20975_v0 = vld [vmem:[%s29082_s7 + $0x210] ss:$8 sps:$4 sm:$0xff]   ;;  %v20980_v26 = vld [vmem:[%s29082_s7 + $0x224] ss:$8 sps:$4 sm:$0xff]   ;;  %v20978_v56 = vld [vmem:[%s29082_s7 + $0x220] ss:$8 sps:$4 sm:$0xff]   ;;  %v17696_v59 = vcombine.low %v28390_v20, %v28436_v25 }
 0x97a   : > { %v14320_v28 = vsel %vm14318_vm5, %v17946_v3, %v14319_v29  ;;  %14897 = vmatpush1.bf16.msra.mxu1 %v20937_v57  ;;  %v20983_v14 = vld [vmem:[%s29082_s7 + $0x234] ss:$8 sps:$4 sm:$0xff]   ;;  %v20987_v54 = vld [vmem:[%s29082_s7 + $0x244] ss:$8 sps:$4 sm:$0xff]   ;;  %v20985_v51 = vld [vmem:[%s29082_s7 + $0x240] ss:$8 sps:$4 sm:$0xff]  }
 0x97b   : > { %14321 = vst [vmem:[#allocation4 + $0x68] sm:$0x33] %v14320_v28  ;;  %14898 = vmatprep.subr.bf16.mxu1 %v20943_v35  ;;  %v28463_v24 = vld [vmem:[#allocation4 + $0x58] sm:$0xff]  ;;  %v20991_v20 = vld [vmem:[%s29082_s7 + $0x254] ss:$8 sps:$4 sm:$0xff]   ;;  %v15011_v35 = vld [vmem:[%s29082_s7 + $0x280] sm:$0xff] }
 0x97c   : > { %v17744_v61 = vcombine.high %v28438_v23, %v28463_v24  ;;  %v17743_v45 = vcombine.low %v28438_v23, %v28463_v24  ;;  %v14333_v8 = vld [vmem:[#allocation4 + $0x58] sm:$0x33]  ;;  %v20989_v25 = vld [vmem:[%s29082_s7 + $0x250] ss:$8 sps:$4 sm:$0xff]   ;;  %v20997_v29 = vld [vmem:[%s29082_s7 + $0x274] ss:$8 sps:$4 sm:$0xff]   ;;  %v17774_v28 = vcombine.high %v15011_v35, %v15011_v35 }
 0x97d   : > { %v14362_v31 = vld [vmem:[#allocation4 + $0x60] sm:$0x33]  ;;  %v17699_v30 = vcombine.high %v28438_v23, %v14333_v8  ;;  %v17698_v60 = vcombine.low %v28438_v23, %v14333_v8  ;;  %v20994_v57 = vld [vmem:[%s29082_s7 + $0x264] ss:$8 sps:$4 sm:$0xff]   ;;  %v20992_v39 = vld [vmem:[%s29082_s7 + $0x260] ss:$8 sps:$4 sm:$0xff]  }
 0x97e   : > { %14899 = vmatpush1.bf16.msra.mxu1 %v20941_v32  ;;  %v17652_v7 = vcombine.high %v28463_v24, %v14362_v31  ;;  %v17651_v2 = vcombine.low %v28463_v24, %v14362_v31  ;;  %v20995_v3 = vld [vmem:[%s29082_s7 + $0x270] ss:$8 sps:$4 sm:$0xff]   ;;  %v17773_v32 = vcombine.low %v15011_v35, %v15011_v35  ;;  %v21007_v24 = vld [vmem:[%s29084_s9 + $0x68] sm:$0xff]   ;;  %vm16267_vm3 = vcmask 261120  }
 0x97f   : > { %14900 = vmatprep.subr.bf16.mxu1 %v20947_v17  ;;  %v14322_v50 = vld [vmem:[#allocation4] sm:$0xff]  ;;  %v28645_v23 = vld [vmem:[%s29084_s9 + $0xb8] sm:$0xff]  }
 0x980   : > { %17687 = vmatprep.mubr.msk.bf16.mxu1 %vm14579_vm6, %v17652_v7  ;;  %v17689_v16 = vcombine.high %v14322_v50, %v28295_v52  ;;  %v17688_v36 = vcombine.low %v14322_v50, %v28295_v52  ;;  %v20965_v52 = vld [vmem:[%s29082_s7 + $0x1d4] ss:$8 sps:$4 sm:$0xff]   ;;  %v15220_v17 = vsel %vm6235_vm4, %v17773_v32, 0 }
 0x981   : > { %14687 = vmatmul.mubr.bf16.gmra.mrb[100].mxu1 %v17651_v2  ;;  %v28635_v2 = vld [vmem:[%s29084_s9 + $0xb0] sm:$0xff]  }
 0x982   : > { %14901 = vmatpush1.bf16.msra.mxu1 %v20945_v4  ;;  %17729 = vmatprep.mubr.msk.bf16.mxu1 %vm14579_vm6, %v17689_v16  ;;  %v21002_v31 = vld [vmem:[#allocation4 + $0x64] ss:$8 sps:$4 sm:$0x3f]   ;;  %v21004_v7 = vld [vmem:[#allocation4 + $0x60] ss:$8 sps:$4 sm:$0x3f]  }
 0x983   : > { %14902 = vmatprep.subr.bf16.mxu1 %v20951_v48  ;;  %v21005_v4 = vld [vmem:[%s29084_s9 + $0x58] sm:$0xff]   ;;  %16148 = vmatpush1.bf16.msra.mxu0 %v28635_v2  ;;  %v21009_v50 = vld [vmem:[%s29084_s9 + $0x70] sm:$0xff]   ;;  %v21013_v16 = vld [vmem:[%s29084_s9 + $0x80] sm:$0xff]  }
 0x984   : > { %16149 = vmatprep.subr.bf16.mxu0 %v29903_v10  ;;  %v21011_v48 = vld [vmem:[%s29084_s9 + $0x78] sm:$0xff]  }
 0x986   : > { %14903 = vmatpush1.bf16.msra.mxu1 %v20949_v12  ;;  %v15342_v12 = vld [vmem:[%s29083_s8] sm:$0x3] }
 0x987   : > { %14904 = vmatprep.subr.bf16.mxu1 %v20954_v38  ;;  %16150 = vmatpush1.bf16.msra.mxu0 %v28645_v23  ;;  %v28678_v38 = vrot.slane %v15342_v12, %v29904_v42  ;;  %v28681_v41 = vrot.slane %v15342_v12, %v29905_v1 }
 0x988   : > { %16151 = vmatprep.subr.bf16.mxu0 %v29903_v10 }
 0x98a   : > { %14905 = vmatpush1.bf16.msra.mxu1 %v20952_v5 }
 0x98b   : > { %17728 = vmatprep.subr.msk.bf16.mxu1 %vm6235_vm4, %v17727_v37 }
 0x98e   : > { %14907 = vmatpush1.bf16.msra.mxu1 %v14875_v58 }
 0x98f   : > { %15225 = vmatprep.subr.bf16.mxu1 %v20959_v49 }
 0x991   : > { %14913 = vmatmul.mubr.bf16.vlgmr.msra.gmra.mrb[80].mxu1 %v17688_v36 }
 0x992   : > { %17730 = vmatprep.mubr.msk.bf16.mxu1 %vm14579_vm6, %v28509_v19  ;;  %15226 = vmatpush1.bf16.msra.mxu1 %v20957_v46 }
 0x993   : > { %15227 = vmatprep.subr.bf16.mxu1 %v20962_v22 }
 0x996   : > { %15228 = vmatpush1.bf16.msra.mxu1 %v20960_v63 }
 0x997   : > { %15229 = vmatprep.subr.bf16.mxu1 %v20965_v52 }
 0x999   : > { %14923 = vmatmul.mubr.bf16.gmra.mrb[84].mxu1 %v28524_v44 }
 0x99a   : > { %17731 = vmatprep.mubr.msk.bf16.mxu1 %vm14579_vm6, %v28531_v53  ;;  %15230 = vmatpush1.bf16.msra.mxu1 %v20963_v6 }
 0x99b   : > { %15231 = vmatprep.subr.bf16.mxu1 %v20968_v34 }
 0x99e   : > { %15232 = vmatpush1.bf16.msra.mxu1 %v20966_v27 }
 0x99f   : > { %15233 = vmatprep.subr.bf16.mxu1 %v20971_v13 }
 0x9a1   : > { %14933 = vmatmul.mubr.bf16.gmra.mrb[88].mxu1 %v17692_v40 }
 0x9a2   : > { %17732 = vmatprep.mubr.msk.bf16.mxu1 %vm14579_vm6, %v17695_v9  ;;  %15234 = vmatpush1.bf16.msra.mxu1 %v20969_v55 }
 0x9a3   : > { %15235 = vmatprep.subr.bf16.mxu1 %v20974_v11 }
 0x9a6   : > { %15236 = vmatpush1.bf16.msra.mxu1 %v20972_v21 }
 0x9a7   : > { %15237 = vmatprep.subr.bf16.mxu1 %v20977_v62 }
 0x9a9   : > { %14943 = vmatmul.mubr.bf16.gmra.mrb[92].mxu1 %v17694_v15 }
 0x9aa   : > { %17733 = vmatprep.mubr.msk.bf16.mxu1 %vm14579_vm6, %v17697_v43  ;;  %15238 = vmatpush1.bf16.msra.mxu1 %v20975_v0 }
 0x9ab   : > { %15239 = vmatprep.subr.bf16.mxu1 %v20980_v26 }
 0x9ae   : > { %15240 = vmatpush1.bf16.msra.mxu1 %v20978_v56  ;;  %v21015_v56 = vld [vmem:[%s29084_s9 + $0x88] sm:$0xff]  }
 0x9af   : > { %15241 = vmatprep.subr.bf16.mxu1 %v20983_v14 }
 0x9b1   : > { %14953 = vmatmul.mubr.bf16.gmra.mrb[96].mxu1 %v17696_v59 }
 0x9b2   : > { %17734 = vmatprep.mubr.msk.bf16.mxu1 %vm14579_vm6, %v17699_v30  ;;  %15242 = vmatpush1.bf16.msra.mxu1 %v20981_v33 }
 0x9b3   : > { %15243 = vmatprep.subr.bf16.mxu1 %v20987_v54 }
 0x9b6   : > { %15244 = vmatpush1.bf16.msra.mxu1 %v20985_v51 }
 0x9b7   : > { %15245 = vmatprep.subr.bf16.mxu1 %v20991_v20 }
 0x9b9   : > { %14963 = vmatmul.mubr.bf16.gmra.mrb[100].mxu1 %v17698_v60 }
 0x9ba   : > { %15246 = vmatpush1.bf16.msra.mxu1 %v20989_v25  ;;  %17776 = vmatprep.mubr.msk.bf16.mxu1 %vm14579_vm6, %v28509_v19 }
 0x9bb   : > { %15247 = vmatprep.subr.bf16.mxu1 %v20994_v57 }
 0x9be   : > { %15248 = vmatpush1.bf16.msra.mxu1 %v20992_v39 }
 0x9bf   : > { %15249 = vmatprep.subr.bf16.mxu1 %v20997_v29 }
 0x9c2   : > { %15250 = vmatpush1.bf16.msra.mxu1 %v20995_v3 }
 0x9c3   : > { %17775 = vmatprep.subr.msk.bf16.mxu1 %vm6235_vm4, %v17774_v28  ;;  %vm15785_vm4 = vcmask 392192  }
 0x9c6   : > { %15252 = vmatpush1.bf16.msra.mxu1 %v15220_v17 }
 0x9c7   : > { %15798 = vmatprep.subr.bf16.mxu1 %v29903_v10 }
 0x9c9   : > { %15258 = vmatmul.mubr.bf16.vlgmr.msra.gmra.mrb[80].mxu1 %v28524_v44 }
 0x9ca   : > { %17777 = vmatprep.mubr.msk.bf16.mxu1 %vm14579_vm6, %v28531_v53  ;;  %15799 = vmatpush1.bf16.msra.mxu1 %v21005_v4 }
 0x9cb   : > { %15800 = vmatprep.subr.bf16.mxu1 %v29903_v10 }
 0x9d1   : > { %15268 = vmatmul.mubr.bf16.gmra.mrb[84].mxu1 %v17692_v40 }
 0x9d2   : > { %17778 = vmatprep.mubr.msk.bf16.mxu1 %vm14579_vm6, %v17695_v9 }
 0x9d9   : > { %15278 = vmatmul.mubr.bf16.gmra.mrb[88].mxu1 %v17694_v15 }
 0x9da   : > { %17779 = vmatprep.mubr.msk.bf16.mxu1 %vm14579_vm6, %v17697_v43  ;;  %v28702_v43 = vld [vmem:[%s29084_s9 + $0xc8] sm:$0xff]  }
 0x9e1   : > { %15288 = vmatmul.mubr.bf16.gmra.mrb[92].mxu1 %v17696_v59  ;;  %v28715_v59 = vld [vmem:[%s29084_s9 + $0xd0] sm:$0xff]  }
 0x9e2   : > { %17780 = vmatprep.mubr.msk.bf16.mxu1 %vm14579_vm6, %v17744_v61  ;;  %v21006_v61 = vld [vmem:[%s29084_s9 + $0x60] sm:$0xff]  }
 0x9e3   : > { %15801 = vmatpush1.bf16.msra.mxu1 %v21006_v61 }
 0x9e4   : > { %15802 = vmatprep.subr.bf16.mxu1 %v29903_v10 }
 0x9e7   : > { %15803 = vmatpush1.bf16.msra.mxu1 %v21007_v24 }
 0x9e8   : > { %15804 = vmatprep.subr.bf16.mxu1 %v29903_v10 }
 0x9e9   : > { %15298 = vmatmul.mubr.bf16.gmra.mrb[96].mxu1 %v17743_v45  ;;  %v28656_v45 = vld [vmem:[%s29084_s9 + $0xc0] sm:$0xff]  }
 0x9ea   : > { %17781 = vmatprep.mubr.msk.bf16.mxu1 %vm14579_vm6, %v21002_v31  ;;  %16152 = vmatpush1.bf16.msra.mxu0 %v28656_v45  ;;  %v21017_v31 = vld [vmem:[%s29084_s9 + $0x90] sm:$0xff]   ;;  %vm16441_vm6 = vcmask 0  }
 0x9eb   : > { %16153 = vmatprep.subr.bf16.mxu0 %v29903_v10  ;;  %15805 = vmatpush1.bf16.msra.mxu1 %v21009_v50 }
 0x9ec   : > { %15806 = vmatprep.subr.bf16.mxu1 %v29903_v10 }
 0x9ee   : > { %16154 = vmatpush1.bf16.msra.mxu0 %v28702_v43 }
 0x9ef   : > { %15807 = vmatpush1.bf16.msra.mxu1 %v21011_v48  ;;  %16155 = vmatprep.subr.bf16.mxu0 %v29903_v10  ;;  %v21019_v48 = vld [vmem:[%s29084_s9 + $0x98] sm:$0xff]  }
 0x9f0   : > { %15808 = vmatprep.subr.bf16.mxu1 %v29903_v10 }
 0x9f1   : > { %15308 = vmatmul.mubr.bf16.gmra.mrb[100].mxu1 %v21004_v7  ;;  %v28738_v7 = vld [vmem:[%s29084_s9 + $0xd8] sm:$0xff]  }
 0x9f2   : > { %16156 = vmatpush1.bf16.msra.mxu0 %v28715_v59 }
 0x9f3   : > { %15809 = vmatpush1.bf16.msra.mxu1 %v21013_v16  ;;  %16157 = vmatprep.subr.bf16.mxu0 %v29903_v10 }
 0x9f4   : > { %15810 = vmatprep.subr.bf16.mxu1 %v29903_v10 }
 0x9f6   : > { %16158 = vmatpush1.bf16.msra.mxu0 %v28738_v7 }
 0x9f7   : > { %15811 = vmatpush1.bf16.msra.mxu1 %v21015_v56  ;;  %16159 = vmatprep.subr.bf16.mxu0 %v29903_v10 }
 0x9f8   : > { %15812 = vmatprep.subr.bf16.mxu1 %v29903_v10 }
 0x9fb   : > { %15813 = vmatpush1.bf16.msra.mxu1 %v21017_v31 }
 0x9fc   : > { %15814 = vmatprep.subr.bf16.mxu1 %v29903_v10 }
 0x9ff   : > { %15815 = vmatpush1.bf16.msra.mxu1 %v21019_v48 }
 0xa00   : > { %15816 = vmatprep.subr.bf16.mxu1 %v29903_v10 }
 0xa9c   : > { %v15259_v5 = vpop.f32.mrb[80].mxu1 }
 0xa9d   : > { %v15354_v37 = vadd.f32 %v28678_v38, %v15259_v5  ;;  %v15261_v18 = vpop.f32.mrb[81].mxu1  ;;  %v28756_v5 = vld [vmem:[%s29084_s9 + $0xe0] sm:$0xff]  }
 0xa9e   : > { %v15355_v58 = vadd.f32 %v28681_v41, %v15261_v18  ;;  %v15263_v49 = vpop.f32.mrb[82].mxu1  ;;  %16160 = vmatpush1.bf16.msra.mxu0 %v28756_v5 }
 0xa9f   : > { %v15356_v46 = vadd.f32 %v28678_v38, %v15263_v49  ;;  %v15265_v36 = vpop.f32.mrb[83].mxu1  ;;  %v15378_v19 = vmax.f32 %v15354_v37, 0.0  ;;  %16161 = vmatprep.subr.bf16.mxu0 %v29903_v10 }
 0xaa0   : > { %v15357_v22 = vadd.f32 %v28681_v41, %v15265_v36  ;;  %v15379_v52 = vmax.f32 %v15355_v58, 0.0 }
 0xaa1   : > { %v15380_v63 = vmax.f32 %v15356_v46, 0.0 }
 0xaa2   : > { %v15381_v42 = vmax.f32 %v15357_v22, 0.0 }
 0xaa3   : > { %v28687_v6 = vmax.f32 %v15378_v19, %v15380_v63 }
 0xaa4   : > { %v28689_v1 = vmax.f32 %v15379_v52, %v15381_v42  ;;  %v15269_v44 = vpop.f32.mrb[84].mxu1 }
 0xaa5   : > { %v15358_v34 = vadd.f32 %v28678_v38, %v15269_v44  ;;  %v15271_v53 = vpop.f32.mrb[85].mxu1 }
 0xaa6   : > { %v15359_v27 = vadd.f32 %v28681_v41, %v15271_v53  ;;  %v15273_v13 = vpop.f32.mrb[86].mxu1  ;;  %v28778_v53 = vld [vmem:[%s29084_s9 + $0xe8] sm:$0xff]  }
 0xaa7   : > { %v15382_v55 = vmax.f32 %v15358_v34, 0.0  ;;  %v15360_v40 = vadd.f32 %v28678_v38, %v15273_v13  ;;  %v15275_v11 = vpop.f32.mrb[87].mxu1  ;;  %v21021_v34 = vld [vmem:[%s29084_s9 + $0xa0] sm:$0xff]   ;;  %16162 = vmatpush1.bf16.msra.mxu0 %v28778_v53 }
 0xaa8   : > { %v15383_v9 = vmax.f32 %v15359_v27, 0.0  ;;  %v15361_v21 = vadd.f32 %v28681_v41, %v15275_v11  ;;  %15817 = vmatpush1.bf16.msra.mxu1 %v21021_v34  ;;  %v21023_v11 = vld [vmem:[%s29084_s9 + $0xa8] sm:$0xff]   ;;  %16163 = vmatprep.subr.bf16.mxu0 %v29903_v10 }
 0xaa9   : > { %v28695_v62 = vmax.f32 %v15380_v63, %v15382_v55  ;;  %v15384_v0 = vmax.f32 %v15360_v40, 0.0  ;;  %15818 = vmatprep.subr.bf16.mxu1 %v29903_v10 }
 0xaaa   : > { %v28697_v15 = vmax.f32 %v15381_v42, %v15383_v9  ;;  %v15385_v26 = vmax.f32 %v15361_v21, 0.0 }
 0xaab   : > { %v28707_v14 = vmax.f32 %v15382_v55, %v15384_v0 }
 0xaac   : > { %v28709_v8 = vmax.f32 %v15383_v9, %v15385_v26  ;;  %v15279_v33 = vpop.f32.mrb[88].mxu1  ;;  %15819 = vmatpush1.bf16.msra.mxu1 %v21023_v11 }
 0xaad   : > { %v15362_v54 = vadd.f32 %v28678_v38, %v15279_v33  ;;  %v15281_v30 = vpop.f32.mrb[89].mxu1  ;;  %15946 = vmatprep.subr.bf16.mxu1 %v29903_v10 }
 0xaae   : > { %v15363_v51 = vadd.f32 %v28681_v41, %v15281_v30  ;;  %v15283_v20 = vpop.f32.mrb[90].mxu1  ;;  %v19444_v25 = vpack.i.bf16 %v28709_v8, %v28707_v14 }
 0xaaf   : > { %v15386_v60 = vmax.f32 %v15362_v54, 0.0  ;;  %v15364_v57 = vadd.f32 %v28678_v38, %v15283_v20  ;;  %v15285_v39 = vpop.f32.mrb[91].mxu1 }
 0xab0   : > { %v15387_v29 = vmax.f32 %v15363_v51, 0.0  ;;  %v15365_v35 = vadd.f32 %v28681_v41, %v15285_v39  ;;  %19445 = vrot.lane.b32.xlu1 %v19444_v25, %s21171_s19 }
 0xab1   : > { %v28727_v3 = vmax.f32 %v15384_v0, %v15386_v60  ;;  %v15388_v28 = vmax.f32 %v15364_v57, 0.0  ;;  %v28795_v0 = vld [vmem:[%s29084_s9 + $0xf0] sm:$0xff]  }
 0xab2   : > { %v28730_v32 = vmax.f32 %v15385_v26, %v15387_v29  ;;  %v15389_v17 = vmax.f32 %v15365_v35, 0.0  ;;  %16164 = vmatpush1.bf16.msra.mxu0 %v28795_v0  ;;  %v28815_v35 = vld [vmem:[%s29084_s9 + $0xf8] sm:$0xff]  }
 0xab3   : > { %v28740_v4 = vmax.f32 %v15386_v60, %v15388_v28  ;;  %16165 = vmatprep.subr.bf16.mxu0 %v29903_v10 }
 0xab4   : > { %v28742_v61 = vmax.f32 %v15387_v29, %v15389_v17  ;;  %v15289_v24 = vpop.f32.mrb[92].mxu1  ;;  %v19449_v50 = vpack.i.bf16 %v28730_v32, %v28727_v3 }
 0xab5   : > { %v15366_v16 = vadd.f32 %v28678_v38, %v15289_v24  ;;  %v15291_v12 = vpop.f32.mrb[93].mxu1 }
 0xab6   : > { %v15367_v37 = vadd.f32 %v28681_v41, %v15291_v12  ;;  %19450 = vrot.lane.b32.xlu0 %v19449_v50, %s21171_s19  ;;  %v15293_v18 = vpop.f32.mrb[94].mxu1  ;;  %v19454_v58 = vpack.i.bf16 %v28742_v61, %v28740_v4  ;;  %16166 = vmatpush1.bf16.msra.mxu0 %v28815_v35 }
 0xab7   : > { %v15390_v49 = vmax.f32 %v15366_v16, 0.0  ;;  %v15368_v46 = vadd.f32 %v28678_v38, %v15293_v18  ;;  %v15295_v36 = vpop.f32.mrb[95].mxu1  ;;  %16167 = vmatprep.subr.bf16.mxu0 %v29903_v10  ;;  %v28833_v18 = vld [vmem:[%s29084_s9 + $0x100] sm:$0xff]  }
 0xab8   : > { %v15391_v22 = vmax.f32 %v15367_v37, 0.0  ;;  %v15369_v19 = vadd.f32 %v28681_v41, %v15295_v36  ;;  %19455 = vrot.lane.b32.xlu1 %v19454_v58, %s21171_s19 }
 0xab9   : > { %v28765_v63 = vmax.f32 %v15388_v28, %v15390_v49  ;;  %v15392_v52 = vmax.f32 %v15368_v46, 0.0 }
 0xaba   : > { %v28769_v42 = vmax.f32 %v15389_v17, %v15391_v22  ;;  %v15393_v44 = vmax.f32 %v15369_v19, 0.0  ;;  %v19479_v19 = vpack.i.bf16 %v28689_v1, %v28687_v6  ;;  %16168 = vmatpush1.bf16.msra.mxu0 %v28833_v18 }
 0xabb   : > { %v28780_v27 = vmax.f32 %v15390_v49, %v15392_v52 }
 0xabc   : > { %v28782_v13 = vmax.f32 %v15391_v22, %v15393_v44  ;;  %v15299_v55 = vpop.f32.mrb[96].mxu1  ;;  %v19459_v40 = vpack.i.bf16 %v28769_v42, %v28765_v63 }
 0xabd   : > { %v15370_v9 = vadd.f32 %v28678_v38, %v15299_v55  ;;  %v15301_v21 = vpop.f32.mrb[97].mxu1 }
 0xabe   : > { %v15371_v26 = vadd.f32 %v28681_v41, %v15301_v21  ;;  %19460 = vrot.lane.b32.xlu0 %v19459_v40, %s21171_s19  ;;  %v15303_v56 = vpop.f32.mrb[98].mxu1  ;;  %v19464_v33 = vpack.i.bf16 %v28782_v13, %v28780_v27 }
 0xabf   : > { %v15394_v54 = vmax.f32 %v15370_v9, 0.0  ;;  %v15372_v30 = vadd.f32 %v28678_v38, %v15303_v56  ;;  %v15305_v51 = vpop.f32.mrb[99].mxu1 }
 0xac0   : > { %v15395_v20 = vmax.f32 %v15371_v26, 0.0  ;;  %v15373_v25 = vadd.f32 %v28681_v41, %v15305_v51  ;;  %19465 = vrot.lane.b32.xlu1 %v19464_v33, %s21171_s19  ;;  %v21044_v51 = vld [vmem:[%s29084_s9 + $0x30] sm:$0xff]  }
 0xac1   : > { %v28805_v60 = vmax.f32 %v15392_v52, %v15394_v54  ;;  %v15396_v57 = vmax.f32 %v15372_v30, 0.0 }
 0xac2   : > { %v28809_v39 = vmax.f32 %v15393_v44, %v15395_v20  ;;  %v15397_v29 = vmax.f32 %v15373_v25, 0.0 }
 0xac3   : > { %v28817_v28 = vmax.f32 %v15394_v54, %v15396_v57 }
 0xac4   : > { %v28819_v17 = vmax.f32 %v15395_v20, %v15397_v29  ;;  %v15309_v31 = vpop.f32.mrb[100].mxu1  ;;  %v19469_v24 = vpack.i.bf16 %v28809_v39, %v28805_v60 }
 0xac5   : > { %v15374_v50 = vadd.f32 %v28678_v38, %v15309_v31  ;;  %v15311_v48 = vpop.f32.mrb[101].mxu1 }
 0xac6   : > { %v15375_v16 = vadd.f32 %v28681_v41, %v15311_v48  ;;  %19470 = vrot.lane.b32.xlu0 %v19469_v24, %s21171_s19  ;;  %v15313_v12 = vpop.f32.mrb[102].mxu1  ;;  %v19474_v37 = vpack.i.bf16 %v28819_v17, %v28817_v28 }
 0xac7   : > { %v15398_v58 = vmax.f32 %v15374_v50, 0.0  ;;  %v15376_v49 = vadd.f32 %v28678_v38, %v15313_v12  ;;  %v15315_v46 = vpop.f32.mrb[103].mxu1  ;;  %v19484_v38 = vpack.i.bf16 %v28697_v15, %v28695_v62 }
 0xac8   : > { %v15399_v36 = vmax.f32 %v15375_v16, 0.0  ;;  %v15377_v22 = vadd.f32 %v28681_v41, %v15315_v46  ;;  %19475 = vrot.lane.b32.xlu1 %v19474_v37, %s21171_s19 }
 0xac9   : > { %v28840_v52 = vmax.f32 %v15396_v57, %v15398_v58  ;;  %v15400_v44 = vmax.f32 %v15376_v49, 0.0 }
 0xaca   : > { %v28843_v34 = vmax.f32 %v15397_v29, %v15399_v36  ;;  %v15401_v55 = vmax.f32 %v15377_v22, 0.0  ;;  %19480 = vrot.lane.b32.xlu0 %v19479_v19, %s21171_s19 }
 0xacb   : > { %v28848_v40 = vmax.f32 %v15398_v58, %v15400_v44 }
 0xacc   : > { %v28850_v41 = vmax.f32 %v15399_v36, %v15401_v55  ;;  %19485 = vrot.lane.b32.xlu1 %v19484_v38, %s21171_s19  ;;  %v19489_v11 = vpack.i.bf16 %v28843_v34, %v28840_v52 }
 0xace   : > { %19490 = vrot.lane.b32.xlu0 %v19489_v11, %s21171_s19  ;;  %v19494_v9 = vpack.i.bf16 %v28850_v41, %v28848_v40 }
 0xad0   : > { %19495 = vrot.lane.b32.xlu1 %v19494_v9, %s21171_s19 }
 0xb22   : > { %v19446_v21 = vpop.permute.xlu1 %19445 }
 0xb23   : > { %v19448_v26 = vunpack.i.h.bf16 %v19446_v21  ;;  %v19447_v56 = vunpack.i.l.bf16 %v19446_v21  ;;  %v21028_v21 = vld [vmem:[%s29084_s9] sm:$0xff]  }
 0xb25   : > { %v15529_v33 = vmax.f32 %v28709_v8, %v19448_v26  ;;  %v15493_v54 = vsel %vm15490_vm1, %v19447_v56, %v19448_v26 }
 0xb26   : > { %v15528_v30 = vmax.f32 %v28707_v14, %v15493_v54 }
 0xb28   : > { %v17949_v20 = vpack.c.bf16 %v15529_v33, %v15528_v30  ;;  %v19451_v25 = vpop.permute.xlu0 %19450 }
 0xb29   : > { %v19453_v57 = vunpack.i.h.bf16 %v19451_v25  ;;  %v19452_v29 = vunpack.i.l.bf16 %v19451_v25 }
 0xb2a   : > { %15618 = vst.msk [vmem:[#allocation5 + $0x10] sm:$0xff] %vm28863_vm13, %v17949_v20  ;;  %v19456_v31 = vpop.permute.xlu1 %19455 }
 0xb2b   : > { %v15531_v24 = vmax.f32 %v28730_v32, %v19453_v57  ;;  %v15494_v8 = vsel %vm15490_vm1, %v19452_v29, %v19453_v57  ;;  %v19458_v50 = vunpack.i.h.bf16 %v19456_v31  ;;  %v19457_v48 = vunpack.i.l.bf16 %v19456_v31  ;;  %v21030_v57 = vld [vmem:[%s29084_s9 + $0x8] sm:$0xff]  }
 0xb2c   : > { %v15530_v14 = vmax.f32 %v28727_v3, %v15494_v8 }
 0xb2d   : > { %v15533_v16 = vmax.f32 %v28742_v61, %v19458_v50  ;;  %v15495_v12 = vsel %vm15490_vm1, %v19457_v48, %v19458_v50 }
 0xb2e   : > { %v17950_v37 = vpack.c.bf16 %v15531_v24, %v15530_v14  ;;  %v15532_v58 = vmax.f32 %v28740_v4, %v15495_v12  ;;  %v21035_v12 = vld [vmem:[%s29084_s9 + $0x10] sm:$0xff]  }
 0xb30   : > { %15619 = vst.msk [vmem:[#allocation5 + $0x18] sm:$0xff] %vm28863_vm13, %v17950_v37  ;;  %v17951_v49 = vpack.c.bf16 %v15533_v16, %v15532_v58  ;;  %v19461_v46 = vpop.permute.xlu0 %19460 }
 0xb31   : > { %v19463_v36 = vunpack.i.h.bf16 %v19461_v46  ;;  %v19462_v32 = vunpack.i.l.bf16 %v19461_v46 }
 0xb32   : > { %15620 = vst.msk [vmem:[#allocation5 + $0x20] sm:$0xff] %vm28863_vm13, %v17951_v49  ;;  %v19466_v22 = vpop.permute.xlu1 %19465 }
 0xb33   : > { %v15535_v3 = vmax.f32 %v28769_v42, %v19463_v36  ;;  %v15496_v61 = vsel %vm15490_vm1, %v19462_v32, %v19463_v36  ;;  %v19468_v19 = vunpack.i.h.bf16 %v19466_v22  ;;  %v19467_v44 = vunpack.i.l.bf16 %v19466_v22 }
 0xb34   : > { %v15534_v55 = vmax.f32 %v28765_v63, %v15496_v61 }
 0xb35   : > { %v15537_v4 = vmax.f32 %v28782_v13, %v19468_v19  ;;  %v15497_v38 = vsel %vm15490_vm1, %v19467_v44, %v19468_v19 }
 0xb36   : > { %v17952_v11 = vpack.c.bf16 %v15535_v3, %v15534_v55  ;;  %v15536_v9 = vmax.f32 %v28780_v27, %v15497_v38 }
 0xb37   : > { %v28888_v26 = vld [vmem:[#allocation5 + $0x10] ss:$8 sps:$4 sm:$0xff]   ;;  %v28890_v42 = vld [vmem:[#allocation5 + $0x14] ss:$8 sps:$4 sm:$0xff]  }
 0xb38   : > { %15621 = vst.msk [vmem:[#allocation5 + $0x28] sm:$0xff] %vm28863_vm13, %v17952_v11  ;;  %v17953_v63 = vpack.c.bf16 %v15537_v4, %v15536_v9  ;;  %v19471_v56 = vpop.permute.xlu0 %19470  ;;  %17812 = vmatprep.mubr.msk.bf16.mxu1 %vm15785_vm4, %v28890_v42 }
 0xb39   : > { %v19473_v13 = vunpack.i.h.bf16 %v19471_v56  ;;  %v19472_v33 = vunpack.i.l.bf16 %v19471_v56  ;;  %15831 = vmatmul.mubr.bf16.vlgmr.msra.gmra.mrb[104].mxu1 %v28888_v26 }
 0xb3a   : > { %15622 = vst.msk [vmem:[#allocation5 + $0x30] sm:$0xff] %vm28863_vm13, %v17953_v63  ;;  %v19476_v27 = vpop.permute.xlu1 %19475  ;;  %15947 = vmatpush1.bf16.msra.mxu1 %v21028_v21 }
 0xb3b   : > { %v15539_v54 = vmax.f32 %v28809_v39, %v19473_v13  ;;  %v15498_v30 = vsel %vm15490_vm1, %v19472_v33, %v19473_v13  ;;  %v19478_v20 = vunpack.i.h.bf16 %v19476_v27  ;;  %v19477_v25 = vunpack.i.l.bf16 %v19476_v27  ;;  %15948 = vmatprep.subr.bf16.mxu1 %v29903_v10  ;;  %v15629_v13 = vld [vmem:[#allocation5 + $0x50] sm:$0x33] }
 0xb3c   : > { %v15538_v29 = vmax.f32 %v28805_v60, %v15498_v30  ;;  %v19481_v31 = vpop.permute.xlu0 %19480 }
 0xb3d   : > { %v15541_v24 = vmax.f32 %v28819_v17, %v19478_v20  ;;  %v15499_v8 = vsel %vm15490_vm1, %v19477_v25, %v19478_v20  ;;  %v19483_v50 = vunpack.i.h.bf16 %v19481_v31  ;;  %v19482_v39 = vunpack.i.l.bf16 %v19481_v31  ;;  %v21042_v20 = vld [vmem:[%s29084_s9 + $0x28] sm:$0xff]   ;;  %v21049_v31 = vld [vmem:[%s29084_s9 + $0x40] sm:$0xff]  }
 0xb3e   : > { %v17954_v48 = vpack.c.bf16 %v15539_v54, %v15538_v29  ;;  %v15540_v14 = vmax.f32 %v28817_v28, %v15499_v8  ;;  %v19486_v16 = vpop.permute.xlu1 %19485  ;;  %15949 = vmatpush1.bf16.msra.mxu1 %v21030_v57  ;;  %v21048_v29 = vld [vmem:[%s29084_s9 + $0x38] sm:$0xff]   ;;  %v21051_v8 = vld [vmem:[%s29084_s9 + $0x50] sm:$0xff]  }
 0xb3f   : > { %v15525_v37 = vmax.f32 %v28689_v1, %v19483_v50  ;;  %v15491_v60 = vsel %vm15490_vm1, %v19482_v39, %v19483_v50  ;;  %v19488_v58 = vunpack.i.h.bf16 %v19486_v16  ;;  %v19487_v49 = vunpack.i.l.bf16 %v19486_v16  ;;  %v28914_v17 = vld [vmem:[#allocation5 + $0x24] ss:$8 sps:$4 sm:$0xff]   ;;  %v28916_v46 = vld [vmem:[#allocation5 + $0x20] ss:$8 sps:$4 sm:$0xff]   ;;  %15950 = vmatprep.subr.bf16.mxu1 %v29903_v10 }
 0xb40   : > { %15623 = vst.msk [vmem:[#allocation5 + $0x38] sm:$0xff] %vm28863_vm13, %v17954_v48  ;;  %v17955_v28 = vpack.c.bf16 %v15541_v24, %v15540_v14  ;;  %v15524_v36 = vmax.f32 %v28687_v6, %v15491_v60  ;;  %v19491_v32 = vpop.permute.xlu0 %19490  ;;  %17813 = vmatprep.mubr.msk.bf16.mxu1 %vm15785_vm4, %v28914_v17  ;;  %17854 = vmatprep.mubr.msk.bf16.mxu0 %vm15785_vm4, %v28914_v17  ;;  %v21050_v24 = vld [vmem:[%s29084_s9 + $0x48] sm:$0xff]  }
 0xb41   : > { %v15527_v1 = vmax.f32 %v28697_v15, %v19488_v58  ;;  %v15492_v22 = vsel %vm15490_vm1, %v19487_v49, %v19488_v58  ;;  %v19493_v3 = vunpack.i.h.bf16 %v19491_v32  ;;  %v19492_v61 = vunpack.i.l.bf16 %v19491_v32  ;;  %15838 = vmatmul.mubr.bf16.gmra.mrb[108].mxu1 %v28916_v46  ;;  %16180 = vmatmul.mubr.bf16.vlgmr.msra.gmra.mrb[92].mxu0 %v28916_v46  ;;  %v15638_v39 = vld [vmem:[#allocation5 + $0x30] sm:$0x33] }
 0xb42   : > { %15624 = vst.msk [vmem:[#allocation5 + $0x40] sm:$0xff] %vm28863_vm13, %v17955_v28  ;;  %v17947_v6 = vpack.c.bf16 %v15525_v37, %v15524_v36  ;;  %v15526_v19 = vmax.f32 %v28695_v62, %v15492_v22  ;;  %v19496_v44 = vpop.permute.xlu1 %19495  ;;  %15951 = vmatpush1.bf16.msra.mxu1 %v21035_v12  ;;  %v21036_v62 = vld [vmem:[%s29084_s9 + $0x18] sm:$0xff]  }
 0xb43   : > { %v15543_v15 = vmax.f32 %v28843_v34, %v19493_v3  ;;  %v15500_v55 = vsel %vm15490_vm1, %v19492_v61, %v19493_v3  ;;  %v19498_v38 = vunpack.i.h.bf16 %v19496_v44  ;;  %v19497_v11 = vunpack.i.l.bf16 %v19496_v44  ;;  %15952 = vmatprep.subr.bf16.mxu1 %v29903_v10 }
 0xb44   : > { %15616 = vst.msk [vmem:[#allocation5] sm:$0xff] %vm28863_vm13, %v17947_v6  ;;  %v17948_v9 = vpack.c.bf16 %v15527_v1, %v15526_v19  ;;  %v15542_v34 = vmax.f32 %v28840_v52, %v15500_v55  ;;  %v21040_v52 = vld [vmem:[%s29084_s9 + $0x20] sm:$0xff]  }
 0xb45   : > { %v15545_v21 = vmax.f32 %v28850_v41, %v19498_v38  ;;  %v15501_v63 = vsel %vm15490_vm1, %v19497_v11, %v19498_v38 }
 0xb46   : > { %15617 = vst.msk [vmem:[#allocation5 + $0x8] sm:$0xff] %vm28863_vm13, %v17948_v9  ;;  %v17956_v56 = vpack.c.bf16 %v15543_v15, %v15542_v34  ;;  %v15544_v33 = vmax.f32 %v28848_v40, %v15501_v63  ;;  %15953 = vmatpush1.bf16.msra.mxu1 %v21036_v62 }
 0xb47   : > { %v21037_v41 = vld [vmem:[#allocation5 + $0x34] ss:$8 sps:$4 sm:$0xff]   ;;  %v28960_v27 = vld [vmem:[#allocation5 + $0x30] ss:$8 sps:$4 sm:$0xff]   ;;  %15954 = vmatprep.subr.bf16.mxu1 %v29903_v10 }
 0xb48   : > { %15625 = vst.msk [vmem:[#allocation5 + $0x48] sm:$0xff] %vm28863_vm13, %v17956_v56  ;;  %v17957_v54 = vpack.c.bf16 %v15545_v21, %v15544_v33  ;;  %17814 = vmatprep.mubr.msk.bf16.mxu1 %vm15785_vm4, %v21037_v41 }
 0xb49   : > { %v15663_v47 = vld [vmem:[#allocation5 + $0x40] sm:$0x33]  ;;  %15845 = vmatmul.mubr.bf16.gmra.mrb[112].mxu1 %v28960_v27 }
 0xb4a   : > { %v15630_v30 = vsel %vm15628_vm15, %v17957_v54, %v15629_v13  ;;  %v17800_v40 = vcombine.high %v15663_v47, %v15663_v47  ;;  %15955 = vmatpush1.bf16.msra.mxu1 %v21040_v52  ;;  %v17799_v25 = vcombine.low %v15663_v47, %v15663_v47  ;;  %v17858_v47 = vld [vmem:[%s29085_s10] ss:$0 sm:$0xff] }
 0xb4b   : > { %15631 = vst [vmem:[#allocation5 + $0x50] sm:$0x33] %v15630_v30  ;;  %15956 = vmatprep.subr.bf16.mxu1 %v29903_v10 }
 0xb4c   : > { %17815 = vmatprep.mubr.msk.bf16.mxu1 %vm15785_vm4, %v17800_v40 }
 0xb4d   : > { %v21047_v57 = vld [vmem:[#allocation5 + $0x4] ss:$8 sps:$4 sm:$0xff]   ;;  %v21045_v50 = vld [vmem:[#allocation5] ss:$8 sps:$4 sm:$0xff]  }
 0xb4e   : > { %15957 = vmatpush1.bf16.msra.mxu1 %v21042_v20 }
 0xb4f   : > { %15958 = vmatprep.subr.bf16.mxu1 %v29903_v10 }
 0xb51   : > { %15852 = vmatmul.mubr.bf16.gmra.mrb[116].mxu1 %v17799_v25 }
 0xb52   : > { %15959 = vmatpush1.bf16.msra.mxu1 %v21044_v51  ;;  %17831 = vmatprep.mubr.msk.bf16.mxu1 %vm15785_vm4, %v21047_v57 }
 0xb53   : > { %15960 = vmatprep.subr.bf16.mxu1 %v29903_v10 }
 0xb56   : > { %15961 = vmatpush1.bf16.msra.mxu1 %v21048_v29 }
 0xb57   : > { %15962 = vmatprep.subr.bf16.mxu1 %v29903_v10 }
 0xb5a   : > { %15963 = vmatpush1.bf16.msra.mxu1 %v21049_v31 }
 0xb5b   : > { %15964 = vmatprep.subr.bf16.mxu1 %v29903_v10 }
 0xb5e   : > { %15965 = vmatpush1.bf16.msra.mxu1 %v21050_v24 }
 0xb5f   : > { %15966 = vmatprep.subr.bf16.mxu1 %v29903_v10 }
 0xb62   : > { %15967 = vmatpush1.bf16.msra.mxu1 %v21051_v8 }
 0xb63   : > { %18007 = vmatprep.subr.bf16.mxu1 %v29903_v10 }
 0xb65   : > { %15979 = vmatmul.mubr.bf16.vlgmr.msra.gmra.mrb[120].mxu1 %v21045_v50 }
 0xb66   : > { %17832 = vmatprep.mubr.msk.bf16.mxu1 %vm15785_vm4, %v28890_v42  ;;  %18018 = vmatpush1.bf16.msra.mxu1 %v28635_v2  ;;  %v17819_v2 = vcombine.high %v15638_v39, %v15638_v39 }
 0xb67   : > { %18008 = vmatprep.subr.bf16.mxu1 %v29903_v10 }
 0xb6a   : > { %18019 = vmatpush1.bf16.msra.mxu1 %v28645_v23  ;;  %v17818_v23 = vcombine.low %v15638_v39, %v15638_v39 }
 0xb6b   : > { %18009 = vmatprep.subr.bf16.mxu1 %v29903_v10 }
 0xb6d   : > { %15986 = vmatmul.mubr.bf16.gmra.mrb[124].mxu1 %v28888_v26 }
 0xb6e   : > { %17833 = vmatprep.mubr.msk.bf16.mxu1 %vm15785_vm4, %v28914_v17  ;;  %18020 = vmatpush1.bf16.msra.mxu1 %v28656_v45  ;;  %v21054_v45 = vld [vmem:[#allocation5 + $0x44] ss:$8 sps:$4 sm:$0xff]  }
 0xb6f   : > { %18010 = vmatprep.subr.bf16.mxu1 %v29903_v10 }
 0xb72   : > { %18021 = vmatpush1.bf16.msra.mxu1 %v28702_v43  ;;  %v16013_v43 = vld [vmem:[#allocation5 + $0x50] sm:$0x33] }
 0xb73   : > { %18011 = vmatprep.subr.bf16.mxu1 %v29903_v10 }
 0xb75   : > { %15993 = vmatmul.mubr.bf16.gmra.mrb[128].mxu1 %v28916_v46 }
 0xb76   : > { %17834 = vmatprep.mubr.msk.bf16.mxu1 %vm15785_vm4, %v17819_v2  ;;  %18022 = vmatpush1.bf16.msra.mxu1 %v28715_v59  ;;  %v21056_v59 = vld [vmem:[#allocation5 + $0x40] ss:$8 sps:$4 sm:$0xff]  }
 0xb77   : > { %18012 = vmatprep.subr.bf16.mxu1 %v29903_v10 }
 0xb7a   : > { %18023 = vmatpush1.bf16.msra.mxu1 %v28738_v7  ;;  %v17842_v7 = vcombine.high %v16013_v43, %v16013_v43 }
 0xb7b   : > { %18013 = vmatprep.subr.bf16.mxu1 %v29903_v10 }
 0xb7d   : > { %16000 = vmatmul.mubr.bf16.gmra.mrb[132].mxu1 %v17818_v23 }
 0xb7e   : > { %18024 = vmatpush1.bf16.msra.mxu1 %v28756_v5  ;;  %17855 = vmatprep.mubr.msk.bf16.mxu1 %vm15785_vm4, %v21037_v41  ;;  %v17841_v5 = vcombine.low %v16013_v43, %v16013_v43 }
 0xb7f   : > { %18014 = vmatprep.subr.bf16.mxu1 %v29903_v10 }
 0xb82   : > { %18025 = vmatpush1.bf16.msra.mxu1 %v28778_v53  ;;  %v21059_v53 = vld [vmem:[%s29086_s11] sm:$0xff]  }
 0xb83   : > { %18015 = vmatprep.subr.bf16.mxu1 %v29903_v10 }
 0xb86   : > { %18026 = vmatpush1.bf16.msra.mxu1 %v28795_v0  ;;  %v21060_v0 = vld [vmem:[%s29086_s11 + $0x8] sm:$0xff]  }
 0xb87   : > { %18016 = vmatprep.subr.bf16.mxu1 %v29903_v10 }
 0xb8a   : > { %18027 = vmatpush1.bf16.msra.mxu1 %v28815_v35 }
 0xb8b   : > { %18017 = vmatprep.subr.bf16.mxu1 %v29903_v10  ;;  %v21172_v10 = vmov 0.0  }
 0xb8e   : > { %18028 = vmatpush1.bf16.msra.mxu1 %v28833_v18 }
 0xb8f   : > { %17967 = vmatprep.subr.bf16.mxu1 %v21172_v10 }
 0xb91   : > { %16187 = vmatmul.mubr.bf16.vlgmr.msra.gmra.mrb[136].mxu1 %v28960_v27 }
 0xb92   : > { %17856 = vmatprep.mubr.msk.bf16.mxu1 %vm15785_vm4, %v21054_v45  ;;  %17968 = vmatpush3.bf16.msra.mxu1 %v21059_v53 }
 0xb93   : > { %17969 = vmatprep.subr.bf16.mxu1 %v21172_v10 }
 0xb96   : > { %17970 = vmatpush3.bf16.msra.mxu1 %v21060_v0 }
 0xb97   : > { %17975 = vmatprep.subr.bf16.mxu1 %v21172_v10 }
 0xb99   : > { %16194 = vmatmul.mubr.bf16.gmra.mrb[140].mxu1 %v21056_v59 }
 0xb9a   : > { %17857 = vmatprep.mubr.msk.bf16.mxu1 %vm15785_vm4, %v17842_v7 }
 0xba1   : > { %16201 = vmatmul.mubr.bf16.gmra.mrb[144].mxu1 %v17841_v5 }
 0xba2   : > { %17971 = vmatprep.mubr.msk.bf16.mxu1 %vm21173_vm2, %v21172_v10 }
 0xc0c   : > { %v15832_v35 = vpop.f32.mrb[104].mxu1 }
 0xc0d   : > { %v15834_v18 = vpop.f32.mrb[105].mxu1 }
 0xc0e   : > { %v15835_v26 = vpop.f32.mrb[106].mxu1 }
 0xc0f   : > { %v15836_v42 = vpop.f32.mrb[107].mxu1 }
 0xc14   : > { %v15839_v48 = vpop.f32.mrb[108].mxu1  ;;  %v16181_v14 = vpop.f32.mrb[92].mxu0 }
 0xc15   : > { %v15841_v16 = vpop.f32.mrb[109].mxu1  ;;  %v16183_v12 = vpop.f32.mrb[93].mxu0 }
 0xc16   : > { %v15842_v37 = vpop.f32.mrb[110].mxu1  ;;  %v16184_v60 = vpop.f32.mrb[94].mxu0 }
 0xc17   : > { %v15843_v58 = vpop.f32.mrb[111].mxu1  ;;  %v16185_v49 = vpop.f32.mrb[95].mxu0 }
 0xc18   : > { %v21061_v58 = vld [vmem:[%s29086_s11 + $0x10] sm:$0xff]  }
 0xc1c   : > { %v15846_v17 = vpop.f32.mrb[112].mxu1 }
 0xc1d   : > { %v15848_v46 = vpop.f32.mrb[113].mxu1 }
 0xc1e   : > { %v15849_v28 = vpop.f32.mrb[114].mxu1  ;;  %v21062_v46 = vld [vmem:[%s29086_s11 + $0x18] sm:$0xff]  }
 0xc1f   : > { %v15850_v36 = vpop.f32.mrb[115].mxu1 }
 0xc24   : > { %v15853_v32 = vpop.f32.mrb[116].mxu1 }
 0xc25   : > { %v15855_v1 = vpop.f32.mrb[117].mxu1 }
 0xc26   : > { %v15856_v22 = vpop.f32.mrb[118].mxu1 }
 0xc27   : > { %v15857_v3 = vpop.f32.mrb[119].mxu1  ;;  %v21063_v22 = vld [vmem:[%s29088_s13] sm:$0xff]  }
 0xc28   : > { %v21064_v3 = vld [vmem:[%s29088_s13 + $0x8] sm:$0xff]  }
 0xc38   : > { %v15980_v61 = vpop.f32.mrb[120].mxu1 }
 0xc39   : > { %v15981_v6 = vadd.f32 %v15980_v61, %v15832_v35  ;;  %v15982_v19 = vpop.f32.mrb[121].mxu1  ;;  %v16249_v61 = vld [vmem:[%s29087_s12] sm:$0x1] }
 0xc3a   : > { %v15983_v44 = vpop.f32.mrb[122].mxu1 }
 0xc3b   : > { %v16208_v15 = vadd.f32 %v16181_v14, %v15981_v6  ;;  %v15984_v55 = vpop.f32.mrb[123].mxu1 }
 0xc3d   : > { %v16219_v40 = vadd.f32 %v17858_v47, %v16208_v15 }
 0xc3f   : > { %v16223_v31 = vmax.f32 %v16219_v40, 0.0 }
 0xc40   : > { %v15987_v4 = vpop.f32.mrb[124].mxu1 }
 0xc41   : > { %v15988_v38 = vadd.f32 %v15987_v4, %v15839_v48  ;;  %v15989_v11 = vpop.f32.mrb[125].mxu1 }
 0xc42   : > { %v15990_v62 = vpop.f32.mrb[126].mxu1  ;;  %v16379_v11 = vld [vmem:[#allocation6] sm:$0x1] }
 0xc43   : > { %v15991_v9 = vpop.f32.mrb[127].mxu1 }
 0xc48   : > { %v15994_v34 = vpop.f32.mrb[128].mxu1 }
 0xc49   : > { %v15995_v21 = vadd.f32 %v15994_v34, %v15846_v17  ;;  %v15996_v63 = vpop.f32.mrb[129].mxu1 }
 0xc4a   : > { %v15997_v56 = vpop.f32.mrb[130].mxu1 }
 0xc4b   : > { %v15998_v13 = vpop.f32.mrb[131].mxu1 }
 0xc50   : > { %v16001_v33 = vpop.f32.mrb[132].mxu1 }
 0xc51   : > { %v16002_v52 = vadd.f32 %v16001_v33, %v15853_v32  ;;  %v16003_v41 = vpop.f32.mrb[133].mxu1 }
 0xc52   : > { %v16004_v27 = vpop.f32.mrb[134].mxu1 }
 0xc53   : > { %v16005_v54 = vpop.f32.mrb[135].mxu1 }
 0xc64   : > { %v16188_v30 = vpop.f32.mrb[136].mxu1 }
 0xc65   : > { %v16209_v20 = vadd.f32 %v16188_v30, %v15988_v38  ;;  %v16190_v51 = vpop.f32.mrb[137].mxu1 }
 0xc66   : > { %v16191_v25 = vpop.f32.mrb[138].mxu1 }
 0xc67   : > { %v16220_v57 = vadd.f32 %v17858_v47, %v16209_v20  ;;  %v16192_v29 = vpop.f32.mrb[139].mxu1 }
 0xc69   : > { %v16224_v24 = vmax.f32 %v16220_v57, 0.0 }
 0xc6b   : > { %v16227_v8 = vmax.f32 %v16223_v31, %v16224_v24 }
 0xc6c   : > { %v16195_v50 = vpop.f32.mrb[140].mxu1 }
 0xc6d   : > { %v16210_v39 = vadd.f32 %v16195_v50, %v15995_v21  ;;  %v16197_v2 = vpop.f32.mrb[141].mxu1 }
 0xc6e   : > { %v16198_v23 = vpop.f32.mrb[142].mxu1 }
 0xc6f   : > { %v16221_v45 = vadd.f32 %v17858_v47, %v16210_v39  ;;  %v16199_v43 = vpop.f32.mrb[143].mxu1 }
 0xc71   : > { %v16225_v59 = vmax.f32 %v16221_v45, 0.0 }
 0xc73   : > { %v16228_v7 = vmax.f32 %v16224_v24, %v16225_v59  ;;  %v16229_v5 = vmax.f32 %v16227_v8, %v16225_v59 }
 0xc74   : > { %v16202_v53 = vpop.f32.mrb[144].mxu1 }
 0xc75   : > { %v16211_v0 = vadd.f32 %v16202_v53, %v16002_v52  ;;  %16233 = vrot.lane.b32.xlu0 %v16229_v5, %s21171_s19  ;;  %16241 = vrot.lane.b32.xlu1 %v16229_v5, %s21174_s16  ;;  %v16204_v35 = vpop.f32.mrb[145].mxu1 }
 0xc76   : > { %v16205_v18 = vpop.f32.mrb[146].mxu1 }
 0xc77   : > { %v16222_v26 = vadd.f32 %v17858_v47, %v16211_v0  ;;  %v16206_v42 = vpop.f32.mrb[147].mxu1 }
 0xc79   : > { %v16226_v48 = vmax.f32 %v16222_v26, 0.0 }
 0xc7b   : > { %v16230_v14 = vmax.f32 %v16228_v7, %v16226_v48 }
 0xc7d   : > { %16243 = vrot.lane.b32.xlu1 %v16230_v14, %s21174_s16  ;;  %16235 = vrot.lane.b32.xlu0 %v16230_v14, %s21171_s19 }
 0xce7   : > { %v16234_v16 = vpop.permute.xlu0 %16233  ;;  %v16242_v37 = vpop.permute.xlu1 %16241 }
 0xce8   : > { %v16239_v12 = vmax.f32 %v16229_v5, %v16234_v16 }
 0xcea   : > { %v16247_v60 = vmax.f32 %v16239_v12, %v16242_v37 }
 0xcec   : > { %v16250_v49 = vpack.c.bf16 %v16247_v60, %v16247_v60 }
 0xcee   : > { %17972 = vmatmul.mubr.msk.bf16.vlgmr.msra.gmra.mrb[148].mxu1 %vm16267_vm3, %v16250_v49 }
 0xcef   : > { %17976 = vmatpush3.bf16.msra.mxu1 %v21061_v58  ;;  %v16236_v17 = vpop.permute.xlu0 %16235  ;;  %17979 = vmatprep.mubr.msk.bf16.mxu1 %vm21173_vm2, %v21172_v10  ;;  %v16244_v36 = vpop.permute.xlu1 %16243 }
 0xcf0   : > { %v16240_v28 = vmax.f32 %v16230_v14, %v16236_v17  ;;  %17977 = vmatprep.subr.bf16.mxu1 %v21172_v10 }
 0xcf2   : > { %v16248_v32 = vmax.f32 %v16240_v28, %v16244_v36 }
 0xcf3   : > { %17978 = vmatpush3.bf16.msra.mxu1 %v21062_v46 }
 0xcf4   : > { %17983 = vmatprep.subr.bf16.mxu1 %v21172_v10  ;;  %v16312_v1 = vpack.c.bf16 %v16248_v32, %v16248_v32 }
 0xcfa   : > { %17980 = vmatmul.mubr.msk.bf16.vlgmr.msra.gmra.mrb[148].mxu1 %vm16267_vm3, %v16312_v1 }
 0xcfb   : > { %17987 = vmatprep.mubr.msk.bf16.mxu1 %vm21173_vm2, %v21172_v10  ;;  %17984 = vmatpush3.bf16.msra.mxu1 %v21063_v22 }
 0xcfc   : > { %17985 = vmatprep.subr.bf16.mxu1 %v21172_v10 }
 0xcff   : > { %17986 = vmatpush3.bf16.msra.mxu1 %v21064_v3 }
 0xdcd   : > { %v16366_v6 = vpop.f32.mrb[148].mxu1 }
 0xdce   : > { %v18045_v19 = vadd.f32 %v16366_v6, %v16249_v61  ;;  %v17981_v44 = vpop.f32.mrb[149].mxu1 }
 0xdcf   : > { %v16369_v15 = vpop.f32.mrb[150].mxu1 }
 0xdd0   : > { %v16373_v55 = vmax.f32 %v18045_v19, 0.0  ;;  %v17982_v4 = vpop.f32.mrb[151].mxu1 }
 0xdd2   : > { %v16374_v38 = vpack.c.bf16 %v16373_v55, %v16373_v55 }
 0xdd4   : > { %17988 = vmatmul.mubr.msk.bf16.vlgmr.msra.gmra.mrb[152].mxu1 %vm16267_vm3, %v16374_v38 }
 0xea7   : > { %v16429_v62 = vpop.f32.mrb[152].mxu1 }
 0xea8   : > { %v16430_v9 = vadd.f32 %v16429_v62, %v16379_v11  ;;  %v17989_v10 = vpop.f32.mrb[153].mxu1 }
 0xea9   : > { %v16432_v34 = vpop.f32.mrb[154].mxu1 }
 0xeaa   : > { %v17868_v21 = vmul.f32 -1.442695, %v16430_v9  ;;  %v17990_v63 = vpop.f32.mrb[155].mxu1 }
 0xeac   : > { %21065 = vpow2.f32 %v17868_v21 }
 0xeb6   : > { %v21066_v56 = vpop.eup %21065 }
 0xeb7   : > { %v16438_v13 = vadd.f32 1.0, %v21066_v56 }
 0xeb9   : > { %21067 = vrcp.f32 %v16438_v13 }
 0xec3   : > { %v21068_v33 = vpop.eup %21067 }
 0xec4   : > { %16442 = vst.msk [vmem:[%s494_s29] sm:$0x1] %vm16441_vm6, %v21068_v33 }
 0xec5 PF: > { %s27_s20 = sadd.s32 1, %s21166_s20  }
 0xec6   : > { %p24_p5 = scmp.ge.s32.totalorder %s27_s20, 4  }
 0xec8   :  { %26 = sbr.rel (!%p24_p5) target bundleno = 3 (0x3), region = 110 }

</bundles_post_ra>
